<compile_context>
chip_gen: v7x
topology: tpu7x:2x2x1
jax: 0.10.0
libtpu: 0.0.40
codegen_flags: <defaults>
</compile_context>

<pallas_src>
import jax
import jax.numpy as jnp
from jax.experimental import pallas as pl
from jax.experimental.pallas import tpu as pltpu


def _round_up(x, m):
    return (x + m - 1) // m * m


_LEAD = 16  # zero-row margin (flattened) before/after each plane; multiple of 16


def _make_conv_kernel(H, Hp, Wp, Cp, *, with_residual, pad_output, out_dtype):
    """3x3x3 conv as 27 shifted-slab matmuls + folded BN (+residual) + ReLU."""
    M = H * Wp                 # matmul rows: interior rows x padded width
    Mf = Hp * Wp               # rows of one zero-padded plane
    Mext = Mf + 2 * _LEAD      # plane + safety margins (flattened layout)
    row0 = _LEAD + Wp          # first interior row (ext coords)

    def accumulate(acc_ref, x_ref, w_ref, kd, init):
        first = init
        for kh in range(3):
            for kw in range(3):
                start = _LEAD + kh * Wp + (kw - 1)       # static offset
                lhs = x_ref[0, pl.ds(start, M), :]       # contiguous row window
                rhs = w_ref[kd * 9 + kh * 3 + kw]
                contrib = jnp.dot(lhs, rhs, preferred_element_type=jnp.float32)
                if first:
                    acc_ref[...] = contrib               # init with first tap
                    first = False
                else:
                    acc_ref[...] += contrib

    def body(x0, x1, x2, xr, w_ref, s_ref, b_ref, o_ref, acc_ref):
        d = pl.program_id(1)
        nd = pl.num_programs(1)

        # Center depth tap group (always valid) initialises the accumulator.
        accumulate(acc_ref, x1, w_ref, kd=1, init=True)

        @pl.when(d > 0)                  # depth-halo masking (padding=1)
        def _():
            accumulate(acc_ref, x0, w_ref, kd=0, init=False)

        @pl.when(d < nd - 1)
        def _():
            accumulate(acc_ref, x2, w_ref, kd=2, init=False)

        # Epilogue: folded BN (scale/bias carry the column mask for conv1),
        # optional residual from the resident bf16 x plane, ReLU.
        y = acc_ref[...].reshape(H, Wp, Cp)
        y = y * s_ref[...] + b_ref[...]
        if xr is not None:
            y = y + xr[0, pl.ds(row0, M), :].astype(jnp.float32).reshape(H, Wp, Cp)
        y = jnp.maximum(y, 0.0).astype(out_dtype).reshape(M, Cp)

        if pad_output:
            # Emit a fully zero-padded plane so the next conv consumes it
            # directly (no HBM pad round-trip for the intermediate).
            o_ref[0, pl.ds(0, row0), :] = jnp.zeros((row0, Cp), out_dtype)
            o_ref[0, pl.ds(row0, M), :] = y
            tail = Mext - row0 - M
            o_ref[0, pl.ds(row0 + M, tail), :] = jnp.zeros((tail, Cp), out_dtype)
        else:
            o_ref[0] = y

    if with_residual:
        def kernel(x0, x1, x2, xr, w_ref, s_ref, b_ref, o_ref, acc_ref):
            body(x0, x1, x2, xr, w_ref, s_ref, b_ref, o_ref, acc_ref)
    else:
        def kernel(x0, x1, x2, w_ref, s_ref, b_ref, o_ref, acc_ref):
            body(x0, x1, x2, None, w_ref, s_ref, b_ref, o_ref, acc_ref)
    return kernel


def _conv3d_bn_act(x_ext, w27, scale3, bias3, x_res, *, N, D, H, Hp, Wp, Cp,
                   pad_output, out_dtype):
    """One fused 3x3x3 conv (stride=1, pad=1) + folded BN (+residual) + ReLU.

    x_ext:  (N*D, Hp*Wp + 2*_LEAD, Cp) bf16 - flattened zero-padded planes
    w27:    (27, Cp, Cp) bf16 (tap-major kd*9 + kh*3 + kw)
    scale3: (1, Wp, Cp) f32 - folded BN scale (column mask baked in for conv1)
    bias3:  (1, Wp, Cp) f32
    x_res:  None or (N*D, Hp*Wp + 2*_LEAD, Cp) bf16 - residual source planes
    """
    M = H * Wp
    Mext = Hp * Wp + 2 * _LEAD
    with_residual = x_res is not None

    kernel = _make_conv_kernel(H, Hp, Wp, Cp, with_residual=with_residual,
                               pad_output=pad_output, out_dtype=out_dtype)

    def plane_map(o):
        # Clamped depth indices: boundary steps fetch an (unused) valid plane
        # that coincides with the neighbouring step -> no extra HBM traffic.
        return lambda n, d, _o=o: (n * D + jnp.clip(d - 1 + _o, 0, D - 1), 0, 0)

    in_specs = [pl.BlockSpec((1, Mext, Cp), plane_map(0)),
                pl.BlockSpec((1, Mext, Cp), plane_map(1)),
                pl.BlockSpec((1, Mext, Cp), plane_map(2))]
    args = [x_ext, x_ext, x_ext]
    if with_residual:
        in_specs.append(pl.BlockSpec((1, Mext, Cp), lambda n, d: (n * D + d, 0, 0)))
        args.append(x_res)
    in_specs += [pl.BlockSpec((27, Cp, Cp), lambda n, d: (0, 0, 0)),   # resident
                 pl.BlockSpec((1, Wp, Cp), lambda n, d: (0, 0, 0)),
                 pl.BlockSpec((1, Wp, Cp), lambda n, d: (0, 0, 0))]
    args += [w27, scale3, bias3]

    out_rows = Mext if pad_output else M
    out_itemsize = jnp.dtype(out_dtype).itemsize
    out_specs = pl.BlockSpec((1, out_rows, Cp), lambda n, d: (n * D + d, 0, 0))
    out_shape = jax.ShapeDtypeStruct((N * D, out_rows, Cp), out_dtype)

    # Explicit scoped-VMEM budget (double-buffered blocks + scratch + headroom).
    in_bytes = Mext * Cp * 2
    need = (3 + (1 if with_residual else 0)) * in_bytes * 2
    need += 27 * Cp * Cp * 2 * 2
    need += 2 * Wp * Cp * 4 * 2
    need += out_rows * Cp * out_itemsize * 2
    need += 2 * M * Cp * 4                       # accumulator + matmul temp
    vmem_limit = int(min(max(need * 2, 32 * 1024 * 1024), 96 * 1024 * 1024))

    flops = 2 * N * D * 27 * M * Cp * Cp
    bytes_accessed = (3 * N * D * in_bytes
                      + (N * D * in_bytes if with_residual else 0)
                      + 27 * Cp * Cp * 2
                      + N * D * out_rows * Cp * out_itemsize)

    return pl.pallas_call(
        kernel,
        out_shape=out_shape,
        grid=(N, D),
        in_specs=in_specs,
        out_specs=out_specs,
        scratch_shapes=[pltpu.VMEM((M, Cp), jnp.float32)],
        compiler_params=pltpu.CompilerParams(
            dimension_semantics=("parallel", "parallel"),
            vmem_limit_bytes=vmem_limit),
        cost_estimate=pl.CostEstimate(flops=int(flops), transcendentals=0,
                                      bytes_accessed=int(bytes_accessed)),
    )(*args)


def _prep_weight(w, Cp):
    """(3,3,3,Cin,Cout) f32 -> (27, Cp, Cp) bf16, channel axes zero-padded."""
    cin, cout = w.shape[3], w.shape[4]
    wp = jnp.pad(w, ((0, 0), (0, 0), (0, 0), (0, Cp - cin), (0, Cp - cout)))
    return wp.reshape(27, Cp, Cp).astype(jnp.bfloat16)


def _prep_scale_bias(scale, bias, Cp, Wp, W, mask):
    """Folded BN scale/bias -> (1, Wp, Cp) f32; optional width-halo column mask."""
    C = scale.shape[0]
    s = jnp.pad(scale, (0, Cp - C)).astype(jnp.float32)
    b = jnp.pad(bias, (0, Cp - C)).astype(jnp.float32)
    if mask:
        col = jnp.arange(Wp)
        keep = ((col >= 1) & (col <= W)).astype(jnp.float32)
    else:
        keep = jnp.ones((Wp,), jnp.float32)
    s3 = (keep[:, None] * s[None, :])[None]
    b3 = (keep[:, None] * b[None, :])[None]
    return s3, b3


def basic_block_forward(x_ncdhw, params):
    """BasicBlock forward (stride=1, downsample=None). NCDHW in/out like PyTorch."""
    # TODO(synk): in a full network keep activations in the kernel's padded
    # NDHWC layout end-to-end and do these transposes once at the boundary.
    x = jnp.transpose(x_ncdhw, (0, 2, 3, 4, 1))               # -> NDHWC
    N, D, H, W, C = x.shape
    assert params["w1"].shape[3] == C and params["w1"].shape[4] == C \
        and params["w2"].shape[4] == C, "identity residual needs inplanes == planes"

    Cp = _round_up(C, 128)          # lane-dense channels
    Hp = H + 2
    Wp = _round_up(W + 2, 16)       # width halo rounded to the bf16 sublane tile

    # Zero-padded bf16 activations: one flattened (Hp*Wp + margins) slab / plane.
    xb = x.astype(jnp.bfloat16)
    xpad = jnp.pad(xb, ((0, 0), (0, 0), (1, 1), (1, Wp - W - 1), (0, Cp - C)))
    x_ext = jnp.pad(xpad.reshape(N * D, Hp * Wp, Cp),
                    ((0, 0), (_LEAD, _LEAD), (0, 0)))

    w1 = _prep_weight(params["w1"], Cp)
    w2 = _prep_weight(params["w2"], Cp)
    s1, b1 = _prep_scale_bias(params["scale1"], params["bias1"], Cp, Wp, W, mask=True)
    s2, b2 = _prep_scale_bias(params["scale2"], params["bias2"], Cp, Wp, W, mask=False)

    common = dict(N=N, D=D, H=H, Hp=Hp, Wp=Wp, Cp=Cp)

    # conv1 + BN1 + ReLU -> fully padded bf16 planes, ready for conv2's input.
    h_ext = _conv3d_bn_act(x_ext, w1, s1, b1, None, pad_output=True,
                           out_dtype=jnp.bfloat16, **common)

    # conv2 + BN2 + residual (bf16 x, read from the resident center plane) + ReLU.
    o = _conv3d_bn_act(h_ext, w2, s2, b2, x_ext, pad_output=False,
                       out_dtype=jnp.float32, **common)

    o = o.reshape(N, D, H, Wp, Cp)[:, :, :, 1:W + 1, :C]
    return jnp.transpose(o, (0, 4, 1, 2, 3))                  # -> NCDHW


def _reference_forward(x_ncdhw, params):
    """Pure-JAX reference with the same bf16-MXU / f32-accumulate precision."""
    x = jnp.transpose(x_ncdhw, (0, 2, 3, 4, 1))

    def conv(inp, w):
        return jax.lax.conv_general_dilated(
            inp.astype(jnp.bfloat16), w.astype(jnp.bfloat16),
            window_strides=(1, 1, 1), padding="SAME",
            dimension_numbers=("NDHWC", "DHWIO", "NDHWC"),
            preferred_element_type=jnp.float32)

    h = jax.nn.relu(conv(x, params["w1"]) * params["scale1"] + params["bias1"])
    h = h.astype(jnp.bfloat16)                       # kernel stores h in bf16
    res = x.astype(jnp.bfloat16).astype(jnp.float32)  # kernel residual is bf16 x
    o = jax.nn.relu(conv(h, params["w2"]) * params["scale2"] + params["bias2"] + res)
    return jnp.transpose(o, (0, 4, 1, 2, 3))


def init_params(key, inplanes, planes, eps=1e-5):
    ks = jax.random.split(key, 12)
    w1 = jax.random.normal(ks[0], (3, 3, 3, inplanes, planes), jnp.float32) \
        * (2.0 / (27 * inplanes)) ** 0.5
    w2 = jax.random.normal(ks[1], (3, 3, 3, planes, planes), jnp.float32) \
        * (2.0 / (27 * planes)) ** 0.5

    def bn(k_g, k_b, k_m, k_v):
        gamma = jax.random.uniform(k_g, (planes,), jnp.float32, 0.5, 1.5)
        beta = 0.1 * jax.random.normal(k_b, (planes,), jnp.float32)
        mean = 0.1 * jax.random.normal(k_m, (planes,), jnp.float32)
        var = jax.random.uniform(k_v, (planes,), jnp.float32, 0.5, 1.5)
        scale = gamma / jnp.sqrt(var + eps)    # folded inference-mode BN
        bias = beta - mean * scale
        return scale, bias

    scale1, bias1 = bn(ks[2], ks[3], ks[4], ks[5])
    scale2, bias2 = bn(ks[6], ks[7], ks[8], ks[9])
    # TODO(synk): BatchNorm3d training-mode batch statistics are not modeled;
    # this implements inference-mode (running-stats) BN folded into scale/bias.
    return {"w1": w1, "scale1": scale1, "bias1": bias1,
            "w2": w2, "scale2": scale2, "bias2": bias2}


if __name__ == "__main__":
    key = jax.random.PRNGKey(0)
    k_x, k_p = jax.random.split(key)

    # inplanes == planes (identity residual, stride=1, downsample=None)
    N, C, D, H, W = 2, 4, 4, 8, 8
    x = jax.random.normal(k_x, (N, C, D, H, W), jnp.float32)   # NCDHW like PyTorch
    params = init_params(k_p, inplanes=C, planes=C)

    out = jax.block_until_ready(jax.jit(basic_block_forward)(x, params))
    ref = jax.block_until_ready(_reference_forward(x, params))

    assert out.shape == (N, C, D, H, W)
    err = float(jnp.max(jnp.abs(out - ref)))
    assert jnp.allclose(out, ref, atol=2e-2, rtol=2e-2), f"max abs err {err}"

    print("KERNEL_OK")
</pallas_src>

<mosaic_0001>
module attributes {stable_mosaic.version = 11 : i64} {
  func.func @kernel(%arg0: i32, %arg1: i32, %arg2: memref<1x192x128xbf16, #tpu.memory_space<vmem>>, %arg3: memref<1x192x128xbf16, #tpu.memory_space<vmem>>, %arg4: memref<1x192x128xbf16, #tpu.memory_space<vmem>>, %arg5: memref<1x192x128xbf16, #tpu.memory_space<vmem>>, %arg6: memref<27x128x128xbf16, #tpu.memory_space<vmem>>, %arg7: memref<1x16x128xf32, #tpu.memory_space<vmem>>, %arg8: memref<1x16x128xf32, #tpu.memory_space<vmem>>, %arg9: memref<1x128x128xf32, #tpu.memory_space<vmem>>, %arg10: memref<128x128xf32, #tpu.memory_space<vmem>>) attributes {dimension_semantics = [#tpu.dimension_semantics<parallel>, #tpu.dimension_semantics<parallel>], iteration_bounds = array<i64: 2, 4>, scalar_prefetch = 0 : i64, scratch_operands = 1 : i64, tpu.core_type = #tpu.core_type<tc>, window_params = [{transform_indices = @transform_0, window_bounds = array<i64: 1, 192, 128>}, {transform_indices = @transform_1, window_bounds = array<i64: 1, 192, 128>}, {transform_indices = @transform_2, window_bounds = array<i64: 1, 192, 128>}, {transform_indices = @transform_3, window_bounds = array<i64: 1, 192, 128>}, {pipeline_mode = #tpu.pipeline_mode<synchronous>, transform_indices = @transform_4, window_bounds = array<i64: 27, 128, 128>}, {pipeline_mode = #tpu.pipeline_mode<synchronous>, transform_indices = @transform_5, window_bounds = array<i64: 1, 16, 128>}, {pipeline_mode = #tpu.pipeline_mode<synchronous>, transform_indices = @transform_6, window_bounds = array<i64: 1, 16, 128>}, {transform_indices = @transform_7, window_bounds = array<i64: 1, 128, 128>}]} {
    %c0 = arith.constant 0 : index
    %c15 = arith.constant 15 : index
    %c0_0 = arith.constant 0 : index
    %0 = vector.load %arg3[%c0, %c15, %c0_0] : memref<1x192x128xbf16, #tpu.memory_space<vmem>>, vector<1x128x128xbf16>
    %1 = vector.shape_cast %0 : vector<1x128x128xbf16> to vector<128x128xbf16>
    %c9 = arith.constant 9 : index
    %c0_1 = arith.constant 0 : index
    %c0_2 = arith.constant 0 : index
    %2 = vector.load %arg6[%c9, %c0_1, %c0_2] : memref<27x128x128xbf16, #tpu.memory_space<vmem>>, vector<1x128x128xbf16>
    %3 = vector.shape_cast %2 : vector<1x128x128xbf16> to vector<128x128xbf16>
    %cst = arith.constant dense<0.000000e+00> : vector<128x128xf32>
    %4 = tpu.matmul %1, %3, %cst {dimension_numbers = #tpu.dot_dimension_numbers<[1], [0], [0], [1], [0, 0, 1, 1], [], []>} : vector<128x128xbf16>, vector<128x128xbf16>, vector<128x128xf32> -> vector<128x128xf32>
    %c0_3 = arith.constant 0 : index
    %c0_4 = arith.constant 0 : index
    %5 = vector.load %arg10[%c0_3, %c0_4] : memref<128x128xf32, #tpu.memory_space<vmem>>, vector<128x128xf32>
    tpu.vector_store %arg10[%c0_3, %c0_4], %4 {strides = array<i32>} : memref<128x128xf32, #tpu.memory_space<vmem>>, vector<128x128xf32>,
    %c0_5 = arith.constant 0 : index
    %c16 = arith.constant 16 : index
    %c0_6 = arith.constant 0 : index
    %6 = vector.load %arg3[%c0_5, %c16, %c0_6] : memref<1x192x128xbf16, #tpu.memory_space<vmem>>, vector<1x128x128xbf16>
    %7 = vector.shape_cast %6 : vector<1x128x128xbf16> to vector<128x128xbf16>
    %c10 = arith.constant 10 : index
    %c0_7 = arith.constant 0 : index
    %c0_8 = arith.constant 0 : index
    %8 = vector.load %arg6[%c10, %c0_7, %c0_8] : memref<27x128x128xbf16, #tpu.memory_space<vmem>>, vector<1x128x128xbf16>
    %9 = vector.shape_cast %8 : vector<1x128x128xbf16> to vector<128x128xbf16>
    %cst_9 = arith.constant dense<0.000000e+00> : vector<128x128xf32>
    %10 = tpu.matmul %7, %9, %cst_9 {dimension_numbers = #tpu.dot_dimension_numbers<[1], [0], [0], [1], [0, 0, 1, 1], [], []>} : vector<128x128xbf16>, vector<128x128xbf16>, vector<128x128xf32> -> vector<128x128xf32>
    %c0_10 = arith.constant 0 : index
    %c0_11 = arith.constant 0 : index
    %11 = vector.load %arg10[%c0_10, %c0_11] : memref<128x128xf32, #tpu.memory_space<vmem>>, vector<128x128xf32>
    %12 = arith.addf %11, %10 : vector<128x128xf32>
    %c0_12 = arith.constant 0 : index
    %c0_13 = arith.constant 0 : index
    %13 = vector.load %arg10[%c0_12, %c0_13] : memref<128x128xf32, #tpu.memory_space<vmem>>, vector<128x128xf32>
    tpu.vector_store %arg10[%c0_12, %c0_13], %12 {strides = array<i32>} : memref<128x128xf32, #tpu.memory_space<vmem>>, vector<128x128xf32>,
    %c0_14 = arith.constant 0 : index
    %c17 = arith.constant 17 : index
    %c0_15 = arith.constant 0 : index
    %14 = vector.load %arg3[%c0_14, %c17, %c0_15] : memref<1x192x128xbf16, #tpu.memory_space<vmem>>, vector<1x128x128xbf16>
    %15 = vector.shape_cast %14 : vector<1x128x128xbf16> to vector<128x128xbf16>
    %c11 = arith.constant 11 : index
    %c0_16 = arith.constant 0 : index
    %c0_17 = arith.constant 0 : index
    %16 = vector.load %arg6[%c11, %c0_16, %c0_17] : memref<27x128x128xbf16, #tpu.memory_space<vmem>>, vector<1x128x128xbf16>
    %17 = vector.shape_cast %16 : vector<1x128x128xbf16> to vector<128x128xbf16>
    %cst_18 = arith.constant dense<0.000000e+00> : vector<128x128xf32>
    %18 = tpu.matmul %15, %17, %cst_18 {dimension_numbers = #tpu.dot_dimension_numbers<[1], [0], [0], [1], [0, 0, 1, 1], [], []>} : vector<128x128xbf16>, vector<128x128xbf16>, vector<128x128xf32> -> vector<128x128xf32>
    %c0_19 = arith.constant 0 : index
    %c0_20 = arith.constant 0 : index
    %19 = vector.load %arg10[%c0_19, %c0_20] : memref<128x128xf32, #tpu.memory_space<vmem>>, vector<128x128xf32>
    %20 = arith.addf %19, %18 : vector<128x128xf32>
    %c0_21 = arith.constant 0 : index
    %c0_22 = arith.constant 0 : index
    %21 = vector.load %arg10[%c0_21, %c0_22] : memref<128x128xf32, #tpu.memory_space<vmem>>, vector<128x128xf32>
    tpu.vector_store %arg10[%c0_21, %c0_22], %20 {strides = array<i32>} : memref<128x128xf32, #tpu.memory_space<vmem>>, vector<128x128xf32>,
    %c0_23 = arith.constant 0 : index
    %c31 = arith.constant 31 : index
    %c0_24 = arith.constant 0 : index
    %22 = vector.load %arg3[%c0_23, %c31, %c0_24] : memref<1x192x128xbf16, #tpu.memory_space<vmem>>, vector<1x128x128xbf16>
    %23 = vector.shape_cast %22 : vector<1x128x128xbf16> to vector<128x128xbf16>
    %c12 = arith.constant 12 : index
    %c0_25 = arith.constant 0 : index
    %c0_26 = arith.constant 0 : index
    %24 = vector.load %arg6[%c12, %c0_25, %c0_26] : memref<27x128x128xbf16, #tpu.memory_space<vmem>>, vector<1x128x128xbf16>
    %25 = vector.shape_cast %24 : vector<1x128x128xbf16> to vector<128x128xbf16>
    %cst_27 = arith.constant dense<0.000000e+00> : vector<128x128xf32>
    %26 = tpu.matmul %23, %25, %cst_27 {dimension_numbers = #tpu.dot_dimension_numbers<[1], [0], [0], [1], [0, 0, 1, 1], [], []>} : vector<128x128xbf16>, vector<128x128xbf16>, vector<128x128xf32> -> vector<128x128xf32>
    %c0_28 = arith.constant 0 : index
    %c0_29 = arith.constant 0 : index
    %27 = vector.load %arg10[%c0_28, %c0_29] : memref<128x128xf32, #tpu.memory_space<vmem>>, vector<128x128xf32>
    %28 = arith.addf %27, %26 : vector<128x128xf32>
    %c0_30 = arith.constant 0 : index
    %c0_31 = arith.constant 0 : index
    %29 = vector.load %arg10[%c0_30, %c0_31] : memref<128x128xf32, #tpu.memory_space<vmem>>, vector<128x128xf32>
    tpu.vector_store %arg10[%c0_30, %c0_31], %28 {strides = array<i32>} : memref<128x128xf32, #tpu.memory_space<vmem>>, vector<128x128xf32>,
    %c0_32 = arith.constant 0 : index
    %c32 = arith.constant 32 : index
    %c0_33 = arith.constant 0 : index
    %30 = vector.load %arg3[%c0_32, %c32, %c0_33] : memref<1x192x128xbf16, #tpu.memory_space<vmem>>, vector<1x128x128xbf16>
    %31 = vector.shape_cast %30 : vector<1x128x128xbf16> to vector<128x128xbf16>
    %c13 = arith.constant 13 : index
    %c0_34 = arith.constant 0 : index
    %c0_35 = arith.constant 0 : index
    %32 = vector.load %arg6[%c13, %c0_34, %c0_35] : memref<27x128x128xbf16, #tpu.memory_space<vmem>>, vector<1x128x128xbf16>
    %33 = vector.shape_cast %32 : vector<1x128x128xbf16> to vector<128x128xbf16>
    %cst_36 = arith.constant dense<0.000000e+00> : vector<128x128xf32>
    %34 = tpu.matmul %31, %33, %cst_36 {dimension_numbers = #tpu.dot_dimension_numbers<[1], [0], [0], [1], [0, 0, 1, 1], [], []>} : vector<128x128xbf16>, vector<128x128xbf16>, vector<128x128xf32> -> vector<128x128xf32>
    %c0_37 = arith.constant 0 : index
    %c0_38 = arith.constant 0 : index
    %35 = vector.load %arg10[%c0_37, %c0_38] : memref<128x128xf32, #tpu.memory_space<vmem>>, vector<128x128xf32>
    %36 = arith.addf %35, %34 : vector<128x128xf32>
    %c0_39 = arith.constant 0 : index
    %c0_40 = arith.constant 0 : index
    %37 = vector.load %arg10[%c0_39, %c0_40] : memref<128x128xf32, #tpu.memory_space<vmem>>, vector<128x128xf32>
    tpu.vector_store %arg10[%c0_39, %c0_40], %36 {strides = array<i32>} : memref<128x128xf32, #tpu.memory_space<vmem>>, vector<128x128xf32>,
    %c0_41 = arith.constant 0 : index
    %c33 = arith.constant 33 : index
    %c0_42 = arith.constant 0 : index
    %38 = vector.load %arg3[%c0_41, %c33, %c0_42] : memref<1x192x128xbf16, #tpu.memory_space<vmem>>, vector<1x128x128xbf16>
    %39 = vector.shape_cast %38 : vector<1x128x128xbf16> to vector<128x128xbf16>
    %c14 = arith.constant 14 : index
    %c0_43 = arith.constant 0 : index
    %c0_44 = arith.constant 0 : index
    %40 = vector.load %arg6[%c14, %c0_43, %c0_44] : memref<27x128x128xbf16, #tpu.memory_space<vmem>>, vector<1x128x128xbf16>
    %41 = vector.shape_cast %40 : vector<1x128x128xbf16> to vector<128x128xbf16>
    %cst_45 = arith.constant dense<0.000000e+00> : vector<128x128xf32>
    %42 = tpu.matmul %39, %41, %cst_45 {dimension_numbers = #tpu.dot_dimension_numbers<[1], [0], [0], [1], [0, 0, 1, 1], [], []>} : vector<128x128xbf16>, vector<128x128xbf16>, vector<128x128xf32> -> vector<128x128xf32>
    %c0_46 = arith.constant 0 : index
    %c0_47 = arith.constant 0 : index
    %43 = vector.load %arg10[%c0_46, %c0_47] : memref<128x128xf32, #tpu.memory_space<vmem>>, vector<128x128xf32>
    %44 = arith.addf %43, %42 : vector<128x128xf32>
    %c0_48 = arith.constant 0 : index
    %c0_49 = arith.constant 0 : index
    %45 = vector.load %arg10[%c0_48, %c0_49] : memref<128x128xf32, #tpu.memory_space<vmem>>, vector<128x128xf32>
    tpu.vector_store %arg10[%c0_48, %c0_49], %44 {strides = array<i32>} : memref<128x128xf32, #tpu.memory_space<vmem>>, vector<128x128xf32>,
    %c0_50 = arith.constant 0 : index
    %c47 = arith.constant 47 : index
    %c0_51 = arith.constant 0 : index
    %46 = vector.load %arg3[%c0_50, %c47, %c0_51] : memref<1x192x128xbf16, #tpu.memory_space<vmem>>, vector<1x128x128xbf16>
    %47 = vector.shape_cast %46 : vector<1x128x128xbf16> to vector<128x128xbf16>
    %c15_52 = arith.constant 15 : index
    %c0_53 = arith.constant 0 : index
    %c0_54 = arith.constant 0 : index
    %48 = vector.load %arg6[%c15_52, %c0_53, %c0_54] : memref<27x128x128xbf16, #tpu.memory_space<vmem>>, vector<1x128x128xbf16>
    %49 = vector.shape_cast %48 : vector<1x128x128xbf16> to vector<128x128xbf16>
    %cst_55 = arith.constant dense<0.000000e+00> : vector<128x128xf32>
    %50 = tpu.matmul %47, %49, %cst_55 {dimension_numbers = #tpu.dot_dimension_numbers<[1], [0], [0], [1], [0, 0, 1, 1], [], []>} : vector<128x128xbf16>, vector<128x128xbf16>, vector<128x128xf32> -> vector<128x128xf32>
    %c0_56 = arith.constant 0 : index
    %c0_57 = arith.constant 0 : index
    %51 = vector.load %arg10[%c0_56, %c0_57] : memref<128x128xf32, #tpu.memory_space<vmem>>, vector<128x128xf32>
    %52 = arith.addf %51, %50 : vector<128x128xf32>
    %c0_58 = arith.constant 0 : index
    %c0_59 = arith.constant 0 : index
    %53 = vector.load %arg10[%c0_58, %c0_59] : memref<128x128xf32, #tpu.memory_space<vmem>>, vector<128x128xf32>
    tpu.vector_store %arg10[%c0_58, %c0_59], %52 {strides = array<i32>} : memref<128x128xf32, #tpu.memory_space<vmem>>, vector<128x128xf32>,
    %c0_60 = arith.constant 0 : index
    %c48 = arith.constant 48 : index
    %c0_61 = arith.constant 0 : index
    %54 = vector.load %arg3[%c0_60, %c48, %c0_61] : memref<1x192x128xbf16, #tpu.memory_space<vmem>>, vector<1x128x128xbf16>
    %55 = vector.shape_cast %54 : vector<1x128x128xbf16> to vector<128x128xbf16>
    %c16_62 = arith.constant 16 : index
    %c0_63 = arith.constant 0 : index
    %c0_64 = arith.constant 0 : index
    %56 = vector.load %arg6[%c16_62, %c0_63, %c0_64] : memref<27x128x128xbf16, #tpu.memory_space<vmem>>, vector<1x128x128xbf16>
    %57 = vector.shape_cast %56 : vector<1x128x128xbf16> to vector<128x128xbf16>
    %cst_65 = arith.constant dense<0.000000e+00> : vector<128x128xf32>
    %58 = tpu.matmul %55, %57, %cst_65 {dimension_numbers = #tpu.dot_dimension_numbers<[1], [0], [0], [1], [0, 0, 1, 1], [], []>} : vector<128x128xbf16>, vector<128x128xbf16>, vector<128x128xf32> -> vector<128x128xf32>
    %c0_66 = arith.constant 0 : index
    %c0_67 = arith.constant 0 : index
    %59 = vector.load %arg10[%c0_66, %c0_67] : memref<128x128xf32, #tpu.memory_space<vmem>>, vector<128x128xf32>
    %60 = arith.addf %59, %58 : vector<128x128xf32>
    %c0_68 = arith.constant 0 : index
    %c0_69 = arith.constant 0 : index
    %61 = vector.load %arg10[%c0_68, %c0_69] : memref<128x128xf32, #tpu.memory_space<vmem>>, vector<128x128xf32>
    tpu.vector_store %arg10[%c0_68, %c0_69], %60 {strides = array<i32>} : memref<128x128xf32, #tpu.memory_space<vmem>>, vector<128x128xf32>,
    %c0_70 = arith.constant 0 : index
    %c49 = arith.constant 49 : index
    %c0_71 = arith.constant 0 : index
    %62 = vector.load %arg3[%c0_70, %c49, %c0_71] : memref<1x192x128xbf16, #tpu.memory_space<vmem>>, vector<1x128x128xbf16>
    %63 = vector.shape_cast %62 : vector<1x128x128xbf16> to vector<128x128xbf16>
    %c17_72 = arith.constant 17 : index
    %c0_73 = arith.constant 0 : index
    %c0_74 = arith.constant 0 : index
    %64 = vector.load %arg6[%c17_72, %c0_73, %c0_74] : memref<27x128x128xbf16, #tpu.memory_space<vmem>>, vector<1x128x128xbf16>
    %65 = vector.shape_cast %64 : vector<1x128x128xbf16> to vector<128x128xbf16>
    %cst_75 = arith.constant dense<0.000000e+00> : vector<128x128xf32>
    %66 = tpu.matmul %63, %65, %cst_75 {dimension_numbers = #tpu.dot_dimension_numbers<[1], [0], [0], [1], [0, 0, 1, 1], [], []>} : vector<128x128xbf16>, vector<128x128xbf16>, vector<128x128xf32> -> vector<128x128xf32>
    %c0_76 = arith.constant 0 : index
    %c0_77 = arith.constant 0 : index
    %67 = vector.load %arg10[%c0_76, %c0_77] : memref<128x128xf32, #tpu.memory_space<vmem>>, vector<128x128xf32>
    %68 = arith.addf %67, %66 : vector<128x128xf32>
    %c0_78 = arith.constant 0 : index
    %c0_79 = arith.constant 0 : index
    %69 = vector.load %arg10[%c0_78, %c0_79] : memref<128x128xf32, #tpu.memory_space<vmem>>, vector<128x128xf32>
    tpu.vector_store %arg10[%c0_78, %c0_79], %68 {strides = array<i32>} : memref<128x128xf32, #tpu.memory_space<vmem>>, vector<128x128xf32>,
    %c0_i32 = arith.constant 0 : i32
    %70 = arith.cmpi sgt, %arg1, %c0_i32 : i32
    %71 = arith.extui %70 : i1 to i32
    %c0_i32_80 = arith.constant 0 : i32
    %72 = arith.cmpi ne, %71, %c0_i32_80 : i32
    scf.if %72 {
      %c0_97 = arith.constant 0 : index
      %c15_98 = arith.constant 15 : index
      %c0_99 = arith.constant 0 : index
      %95 = vector.load %arg2[%c0_97, %c15_98, %c0_99] : memref<1x192x128xbf16, #tpu.memory_space<vmem>>, vector<1x128x128xbf16>
      %96 = vector.shape_cast %95 : vector<1x128x128xbf16> to vector<128x128xbf16>
      %c0_100 = arith.constant 0 : index
      %c0_101 = arith.constant 0 : index
      %c0_102 = arith.constant 0 : index
      %97 = vector.load %arg6[%c0_100, %c0_101, %c0_102] : memref<27x128x128xbf16, #tpu.memory_space<vmem>>, vector<1x128x128xbf16>
      %98 = vector.shape_cast %97 : vector<1x128x128xbf16> to vector<128x128xbf16>
      %cst_103 = arith.constant dense<0.000000e+00> : vector<128x128xf32>
      %99 = tpu.matmul %96, %98, %cst_103 {dimension_numbers = #tpu.dot_dimension_numbers<[1], [0], [0], [1], [0, 0, 1, 1], [], []>} : vector<128x128xbf16>, vector<128x128xbf16>, vector<128x128xf32> -> vector<128x128xf32>
      %c0_104 = arith.constant 0 : index
      %c0_105 = arith.constant 0 : index
      %100 = vector.load %arg10[%c0_104, %c0_105] : memref<128x128xf32, #tpu.memory_space<vmem>>, vector<128x128xf32>
      %101 = arith.addf %100, %99 : vector<128x128xf32>
      %c0_106 = arith.constant 0 : index
      %c0_107 = arith.constant 0 : index
      %102 = vector.load %arg10[%c0_106, %c0_107] : memref<128x128xf32, #tpu.memory_space<vmem>>, vector<128x128xf32>
      tpu.vector_store %arg10[%c0_106, %c0_107], %101 {strides = array<i32>} : memref<128x128xf32, #tpu.memory_space<vmem>>, vector<128x128xf32>,
      %c0_108 = arith.constant 0 : index
      %c16_109 = arith.constant 16 : index
      %c0_110 = arith.constant 0 : index
      %103 = vector.load %arg2[%c0_108, %c16_109, %c0_110] : memref<1x192x128xbf16, #tpu.memory_space<vmem>>, vector<1x128x128xbf16>
      %104 = vector.shape_cast %103 : vector<1x128x128xbf16> to vector<128x128xbf16>
      %c1 = arith.constant 1 : index
      %c0_111 = arith.constant 0 : index
      %c0_112 = arith.constant 0 : index
      %105 = vector.load %arg6[%c1, %c0_111, %c0_112] : memref<27x128x128xbf16, #tpu.memory_space<vmem>>, vector<1x128x128xbf16>
      %106 = vector.shape_cast %105 : vector<1x128x128xbf16> to vector<128x128xbf16>
      %cst_113 = arith.constant dense<0.000000e+00> : vector<128x128xf32>
      %107 = tpu.matmul %104, %106, %cst_113 {dimension_numbers = #tpu.dot_dimension_numbers<[1], [0], [0], [1], [0, 0, 1, 1], [], []>} : vector<128x128xbf16>, vector<128x128xbf16>, vector<128x128xf32> -> vector<128x128xf32>
      %c0_114 = arith.constant 0 : index
      %c0_115 = arith.constant 0 : index
      %108 = vector.load %arg10[%c0_114, %c0_115] : memref<128x128xf32, #tpu.memory_space<vmem>>, vector<128x128xf32>
      %109 = arith.addf %108, %107 : vector<128x128xf32>
      %c0_116 = arith.constant 0 : index
      %c0_117 = arith.constant 0 : index
      %110 = vector.load %arg10[%c0_116, %c0_117] : memref<128x128xf32, #tpu.memory_space<vmem>>, vector<128x128xf32>
      tpu.vector_store %arg10[%c0_116, %c0_117], %109 {strides = array<i32>} : memref<128x128xf32, #tpu.memory_space<vmem>>, vector<128x128xf32>,
      %c0_118 = arith.constant 0 : index
      %c17_119 = arith.constant 17 : index
      %c0_120 = arith.constant 0 : index
      %111 = vector.load %arg2[%c0_118, %c17_119, %c0_120] : memref<1x192x128xbf16, #tpu.memory_space<vmem>>, vector<1x128x128xbf16>
      %112 = vector.shape_cast %111 : vector<1x128x128xbf16> to vector<128x128xbf16>
      %c2 = arith.constant 2 : index
      %c0_121 = arith.constant 0 : index
      %c0_122 = arith.constant 0 : index
      %113 = vector.load %arg6[%c2, %c0_121, %c0_122] : memref<27x128x128xbf16, #tpu.memory_space<vmem>>, vector<1x128x128xbf16>
      %114 = vector.shape_cast %113 : vector<1x128x128xbf16> to vector<128x128xbf16>
      %cst_123 = arith.constant dense<0.000000e+00> : vector<128x128xf32>
      %115 = tpu.matmul %112, %114, %cst_123 {dimension_numbers = #tpu.dot_dimension_numbers<[1], [0], [0], [1], [0, 0, 1, 1], [], []>} : vector<128x128xbf16>, vector<128x128xbf16>, vector<128x128xf32> -> vector<128x128xf32>
      %c0_124 = arith.constant 0 : index
      %c0_125 = arith.constant 0 : index
      %116 = vector.load %arg10[%c0_124, %c0_125] : memref<128x128xf32, #tpu.memory_space<vmem>>, vector<128x128xf32>
      %117 = arith.addf %116, %115 : vector<128x128xf32>
      %c0_126 = arith.constant 0 : index
      %c0_127 = arith.constant 0 : index
      %118 = vector.load %arg10[%c0_126, %c0_127] : memref<128x128xf32, #tpu.memory_space<vmem>>, vector<128x128xf32>
      tpu.vector_store %arg10[%c0_126, %c0_127], %117 {strides = array<i32>} : memref<128x128xf32, #tpu.memory_space<vmem>>, vector<128x128xf32>,
      %c0_128 = arith.constant 0 : index
      %c31_129 = arith.constant 31 : index
      %c0_130 = arith.constant 0 : index
      %119 = vector.load %arg2[%c0_128, %c31_129, %c0_130] : memref<1x192x128xbf16, #tpu.memory_space<vmem>>, vector<1x128x128xbf16>
      %120 = vector.shape_cast %119 : vector<1x128x128xbf16> to vector<128x128xbf16>
      %c3 = arith.constant 3 : index
      %c0_131 = arith.constant 0 : index
      %c0_132 = arith.constant 0 : index
      %121 = vector.load %arg6[%c3, %c0_131, %c0_132] : memref<27x128x128xbf16, #tpu.memory_space<vmem>>, vector<1x128x128xbf16>
      %122 = vector.shape_cast %121 : vector<1x128x128xbf16> to vector<128x128xbf16>
      %cst_133 = arith.constant dense<0.000000e+00> : vector<128x128xf32>
      %123 = tpu.matmul %120, %122, %cst_133 {dimension_numbers = #tpu.dot_dimension_numbers<[1], [0], [0], [1], [0, 0, 1, 1], [], []>} : vector<128x128xbf16>, vector<128x128xbf16>, vector<128x128xf32> -> vector<128x128xf32>
      %c0_134 = arith.constant 0 : index
      %c0_135 = arith.constant 0 : index
      %124 = vector.load %arg10[%c0_134, %c0_135] : memref<128x128xf32, #tpu.memory_space<vmem>>, vector<128x128xf32>
      %125 = arith.addf %124, %123 : vector<128x128xf32>
      %c0_136 = arith.constant 0 : index
      %c0_137 = arith.constant 0 : index
      %126 = vector.load %arg10[%c0_136, %c0_137] : memref<128x128xf32, #tpu.memory_space<vmem>>, vector<128x128xf32>
      tpu.vector_store %arg10[%c0_136, %c0_137], %125 {strides = array<i32>} : memref<128x128xf32, #tpu.memory_space<vmem>>, vector<128x128xf32>,
      %c0_138 = arith.constant 0 : index
      %c32_139 = arith.constant 32 : index
      %c0_140 = arith.constant 0 : index
      %127 = vector.load %arg2[%c0_138, %c32_139, %c0_140] : memref<1x192x128xbf16, #tpu.memory_space<vmem>>, vector<1x128x128xbf16>
      %128 = vector.shape_cast %127 : vector<1x128x128xbf16> to vector<128x128xbf16>
      %c4 = arith.constant 4 : index
      %c0_141 = arith.constant 0 : index
      %c0_142 = arith.constant 0 : index
      %129 = vector.load %arg6[%c4, %c0_141, %c0_142] : memref<27x128x128xbf16, #tpu.memory_space<vmem>>, vector<1x128x128xbf16>
      %130 = vector.shape_cast %129 : vector<1x128x128xbf16> to vector<128x128xbf16>
      %cst_143 = arith.constant dense<0.000000e+00> : vector<128x128xf32>
      %131 = tpu.matmul %128, %130, %cst_143 {dimension_numbers = #tpu.dot_dimension_numbers<[1], [0], [0], [1], [0, 0, 1, 1], [], []>} : vector<128x128xbf16>, vector<128x128xbf16>, vector<128x128xf32> -> vector<128x128xf32>
      %c0_144 = arith.constant 0 : index
      %c0_145 = arith.constant 0 : index
      %132 = vector.load %arg10[%c0_144, %c0_145] : memref<128x128xf32, #tpu.memory_space<vmem>>, vector<128x128xf32>
      %133 = arith.addf %132, %131 : vector<128x128xf32>
      %c0_146 = arith.constant 0 : index
      %c0_147 = arith.constant 0 : index
      %134 = vector.load %arg10[%c0_146, %c0_147] : memref<128x128xf32, #tpu.memory_space<vmem>>, vector<128x128xf32>
      tpu.vector_store %arg10[%c0_146, %c0_147], %133 {strides = array<i32>} : memref<128x128xf32, #tpu.memory_space<vmem>>, vector<128x128xf32>,
      %c0_148 = arith.constant 0 : index
      %c33_149 = arith.constant 33 : index
      %c0_150 = arith.constant 0 : index
      %135 = vector.load %arg2[%c0_148, %c33_149, %c0_150] : memref<1x192x128xbf16, #tpu.memory_space<vmem>>, vector<1x128x128xbf16>
      %136 = vector.shape_cast %135 : vector<1x128x128xbf16> to vector<128x128xbf16>
      %c5 = arith.constant 5 : index
      %c0_151 = arith.constant 0 : index
      %c0_152 = arith.constant 0 : index
      %137 = vector.load %arg6[%c5, %c0_151, %c0_152] : memref<27x128x128xbf16, #tpu.memory_space<vmem>>, vector<1x128x128xbf16>
      %138 = vector.shape_cast %137 : vector<1x128x128xbf16> to vector<128x128xbf16>
      %cst_153 = arith.constant dense<0.000000e+00> : vector<128x128xf32>
      %139 = tpu.matmul %136, %138, %cst_153 {dimension_numbers = #tpu.dot_dimension_numbers<[1], [0], [0], [1], [0, 0, 1, 1], [], []>} : vector<128x128xbf16>, vector<128x128xbf16>, vector<128x128xf32> -> vector<128x128xf32>
      %c0_154 = arith.constant 0 : index
      %c0_155 = arith.constant 0 : index
      %140 = vector.load %arg10[%c0_154, %c0_155] : memref<128x128xf32, #tpu.memory_space<vmem>>, vector<128x128xf32>
      %141 = arith.addf %140, %139 : vector<128x128xf32>
      %c0_156 = arith.constant 0 : index
      %c0_157 = arith.constant 0 : index
      %142 = vector.load %arg10[%c0_156, %c0_157] : memref<128x128xf32, #tpu.memory_space<vmem>>, vector<128x128xf32>
      tpu.vector_store %arg10[%c0_156, %c0_157], %141 {strides = array<i32>} : memref<128x128xf32, #tpu.memory_space<vmem>>, vector<128x128xf32>,
      %c0_158 = arith.constant 0 : index
      %c47_159 = arith.constant 47 : index
      %c0_160 = arith.constant 0 : index
      %143 = vector.load %arg2[%c0_158, %c47_159, %c0_160] : memref<1x192x128xbf16, #tpu.memory_space<vmem>>, vector<1x128x128xbf16>
      %144 = vector.shape_cast %143 : vector<1x128x128xbf16> to vector<128x128xbf16>
      %c6 = arith.constant 6 : index
      %c0_161 = arith.constant 0 : index
      %c0_162 = arith.constant 0 : index
      %145 = vector.load %arg6[%c6, %c0_161, %c0_162] : memref<27x128x128xbf16, #tpu.memory_space<vmem>>, vector<1x128x128xbf16>
      %146 = vector.shape_cast %145 : vector<1x128x128xbf16> to vector<128x128xbf16>
      %cst_163 = arith.constant dense<0.000000e+00> : vector<128x128xf32>
      %147 = tpu.matmul %144, %146, %cst_163 {dimension_numbers = #tpu.dot_dimension_numbers<[1], [0], [0], [1], [0, 0, 1, 1], [], []>} : vector<128x128xbf16>, vector<128x128xbf16>, vector<128x128xf32> -> vector<128x128xf32>
      %c0_164 = arith.constant 0 : index
      %c0_165 = arith.constant 0 : index
      %148 = vector.load %arg10[%c0_164, %c0_165] : memref<128x128xf32, #tpu.memory_space<vmem>>, vector<128x128xf32>
      %149 = arith.addf %148, %147 : vector<128x128xf32>
      %c0_166 = arith.constant 0 : index
      %c0_167 = arith.constant 0 : index
      %150 = vector.load %arg10[%c0_166, %c0_167] : memref<128x128xf32, #tpu.memory_space<vmem>>, vector<128x128xf32>
      tpu.vector_store %arg10[%c0_166, %c0_167], %149 {strides = array<i32>} : memref<128x128xf32, #tpu.memory_space<vmem>>, vector<128x128xf32>,
      %c0_168 = arith.constant 0 : index
      %c48_169 = arith.constant 48 : index
      %c0_170 = arith.constant 0 : index
      %151 = vector.load %arg2[%c0_168, %c48_169, %c0_170] : memref<1x192x128xbf16, #tpu.memory_space<vmem>>, vector<1x128x128xbf16>
      %152 = vector.shape_cast %151 : vector<1x128x128xbf16> to vector<128x128xbf16>
      %c7 = arith.constant 7 : index
      %c0_171 = arith.constant 0 : index
      %c0_172 = arith.constant 0 : index
      %153 = vector.load %arg6[%c7, %c0_171, %c0_172] : memref<27x128x128xbf16, #tpu.memory_space<vmem>>, vector<1x128x128xbf16>
      %154 = vector.shape_cast %153 : vector<1x128x128xbf16> to vector<128x128xbf16>
      %cst_173 = arith.constant dense<0.000000e+00> : vector<128x128xf32>
      %155 = tpu.matmul %152, %154, %cst_173 {dimension_numbers = #tpu.dot_dimension_numbers<[1], [0], [0], [1], [0, 0, 1, 1], [], []>} : vector<128x128xbf16>, vector<128x128xbf16>, vector<128x128xf32> -> vector<128x128xf32>
      %c0_174 = arith.constant 0 : index
      %c0_175 = arith.constant 0 : index
      %156 = vector.load %arg10[%c0_174, %c0_175] : memref<128x128xf32, #tpu.memory_space<vmem>>, vector<128x128xf32>
      %157 = arith.addf %156, %155 : vector<128x128xf32>
      %c0_176 = arith.constant 0 : index
      %c0_177 = arith.constant 0 : index
      %158 = vector.load %arg10[%c0_176, %c0_177] : memref<128x128xf32, #tpu.memory_space<vmem>>, vector<128x128xf32>
      tpu.vector_store %arg10[%c0_176, %c0_177], %157 {strides = array<i32>} : memref<128x128xf32, #tpu.memory_space<vmem>>, vector<128x128xf32>,
      %c0_178 = arith.constant 0 : index
      %c49_179 = arith.constant 49 : index
      %c0_180 = arith.constant 0 : index
      %159 = vector.load %arg2[%c0_178, %c49_179, %c0_180] : memref<1x192x128xbf16, #tpu.memory_space<vmem>>, vector<1x128x128xbf16>
      %160 = vector.shape_cast %159 : vector<1x128x128xbf16> to vector<128x128xbf16>
      %c8 = arith.constant 8 : index
      %c0_181 = arith.constant 0 : index
      %c0_182 = arith.constant 0 : index
      %161 = vector.load %arg6[%c8, %c0_181, %c0_182] : memref<27x128x128xbf16, #tpu.memory_space<vmem>>, vector<1x128x128xbf16>
      %162 = vector.shape_cast %161 : vector<1x128x128xbf16> to vector<128x128xbf16>
      %cst_183 = arith.constant dense<0.000000e+00> : vector<128x128xf32>
      %163 = tpu.matmul %160, %162, %cst_183 {dimension_numbers = #tpu.dot_dimension_numbers<[1], [0], [0], [1], [0, 0, 1, 1], [], []>} : vector<128x128xbf16>, vector<128x128xbf16>, vector<128x128xf32> -> vector<128x128xf32>
      %c0_184 = arith.constant 0 : index
      %c0_185 = arith.constant 0 : index
      %164 = vector.load %arg10[%c0_184, %c0_185] : memref<128x128xf32, #tpu.memory_space<vmem>>, vector<128x128xf32>
      %165 = arith.addf %164, %163 : vector<128x128xf32>
      %c0_186 = arith.constant 0 : index
      %c0_187 = arith.constant 0 : index
      %166 = vector.load %arg10[%c0_186, %c0_187] : memref<128x128xf32, #tpu.memory_space<vmem>>, vector<128x128xf32>
      tpu.vector_store %arg10[%c0_186, %c0_187], %165 {strides = array<i32>} : memref<128x128xf32, #tpu.memory_space<vmem>>, vector<128x128xf32>,
    } else {
    }
    %c3_i32 = arith.constant 3 : i32
    %73 = arith.cmpi slt, %arg1, %c3_i32 : i32
    %74 = arith.extui %73 : i1 to i32
    %c0_i32_81 = arith.constant 0 : i32
    %75 = arith.cmpi ne, %74, %c0_i32_81 : i32
    scf.if %75 {
      %c0_97 = arith.constant 0 : index
      %c15_98 = arith.constant 15 : index
      %c0_99 = arith.constant 0 : index
      %95 = vector.load %arg4[%c0_97, %c15_98, %c0_99] : memref<1x192x128xbf16, #tpu.memory_space<vmem>>, vector<1x128x128xbf16>
      %96 = vector.shape_cast %95 : vector<1x128x128xbf16> to vector<128x128xbf16>
      %c18 = arith.constant 18 : index
      %c0_100 = arith.constant 0 : index
      %c0_101 = arith.constant 0 : index
      %97 = vector.load %arg6[%c18, %c0_100, %c0_101] : memref<27x128x128xbf16, #tpu.memory_space<vmem>>, vector<1x128x128xbf16>
      %98 = vector.shape_cast %97 : vector<1x128x128xbf16> to vector<128x128xbf16>
      %cst_102 = arith.constant dense<0.000000e+00> : vector<128x128xf32>
      %99 = tpu.matmul %96, %98, %cst_102 {dimension_numbers = #tpu.dot_dimension_numbers<[1], [0], [0], [1], [0, 0, 1, 1], [], []>} : vector<128x128xbf16>, vector<128x128xbf16>, vector<128x128xf32> -> vector<128x128xf32>
      %c0_103 = arith.constant 0 : index
      %c0_104 = arith.constant 0 : index
      %100 = vector.load %arg10[%c0_103, %c0_104] : memref<128x128xf32, #tpu.memory_space<vmem>>, vector<128x128xf32>
      %101 = arith.addf %100, %99 : vector<128x128xf32>
      %c0_105 = arith.constant 0 : index
      %c0_106 = arith.constant 0 : index
      %102 = vector.load %arg10[%c0_105, %c0_106] : memref<128x128xf32, #tpu.memory_space<vmem>>, vector<128x128xf32>
      tpu.vector_store %arg10[%c0_105, %c0_106], %101 {strides = array<i32>} : memref<128x128xf32, #tpu.memory_space<vmem>>, vector<128x128xf32>,
      %c0_107 = arith.constant 0 : index
      %c16_108 = arith.constant 16 : index
      %c0_109 = arith.constant 0 : index
      %103 = vector.load %arg4[%c0_107, %c16_108, %c0_109] : memref<1x192x128xbf16, #tpu.memory_space<vmem>>, vector<1x128x128xbf16>
      %104 = vector.shape_cast %103 : vector<1x128x128xbf16> to vector<128x128xbf16>
      %c19 = arith.constant 19 : index
      %c0_110 = arith.constant 0 : index
      %c0_111 = arith.constant 0 : index
      %105 = vector.load %arg6[%c19, %c0_110, %c0_111] : memref<27x128x128xbf16, #tpu.memory_space<vmem>>, vector<1x128x128xbf16>
      %106 = vector.shape_cast %105 : vector<1x128x128xbf16> to vector<128x128xbf16>
      %cst_112 = arith.constant dense<0.000000e+00> : vector<128x128xf32>
      %107 = tpu.matmul %104, %106, %cst_112 {dimension_numbers = #tpu.dot_dimension_numbers<[1], [0], [0], [1], [0, 0, 1, 1], [], []>} : vector<128x128xbf16>, vector<128x128xbf16>, vector<128x128xf32> -> vector<128x128xf32>
      %c0_113 = arith.constant 0 : index
      %c0_114 = arith.constant 0 : index
      %108 = vector.load %arg10[%c0_113, %c0_114] : memref<128x128xf32, #tpu.memory_space<vmem>>, vector<128x128xf32>
      %109 = arith.addf %108, %107 : vector<128x128xf32>
      %c0_115 = arith.constant 0 : index
      %c0_116 = arith.constant 0 : index
      %110 = vector.load %arg10[%c0_115, %c0_116] : memref<128x128xf32, #tpu.memory_space<vmem>>, vector<128x128xf32>
      tpu.vector_store %arg10[%c0_115, %c0_116], %109 {strides = array<i32>} : memref<128x128xf32, #tpu.memory_space<vmem>>, vector<128x128xf32>,
      %c0_117 = arith.constant 0 : index
      %c17_118 = arith.constant 17 : index
      %c0_119 = arith.constant 0 : index
      %111 = vector.load %arg4[%c0_117, %c17_118, %c0_119] : memref<1x192x128xbf16, #tpu.memory_space<vmem>>, vector<1x128x128xbf16>
      %112 = vector.shape_cast %111 : vector<1x128x128xbf16> to vector<128x128xbf16>
      %c20 = arith.constant 20 : index
      %c0_120 = arith.constant 0 : index
      %c0_121 = arith.constant 0 : index
      %113 = vector.load %arg6[%c20, %c0_120, %c0_121] : memref<27x128x128xbf16, #tpu.memory_space<vmem>>, vector<1x128x128xbf16>
      %114 = vector.shape_cast %113 : vector<1x128x128xbf16> to vector<128x128xbf16>
      %cst_122 = arith.constant dense<0.000000e+00> : vector<128x128xf32>
      %115 = tpu.matmul %112, %114, %cst_122 {dimension_numbers = #tpu.dot_dimension_numbers<[1], [0], [0], [1], [0, 0, 1, 1], [], []>} : vector<128x128xbf16>, vector<128x128xbf16>, vector<128x128xf32> -> vector<128x128xf32>
      %c0_123 = arith.constant 0 : index
      %c0_124 = arith.constant 0 : index
      %116 = vector.load %arg10[%c0_123, %c0_124] : memref<128x128xf32, #tpu.memory_space<vmem>>, vector<128x128xf32>
      %117 = arith.addf %116, %115 : vector<128x128xf32>
      %c0_125 = arith.constant 0 : index
      %c0_126 = arith.constant 0 : index
      %118 = vector.load %arg10[%c0_125, %c0_126] : memref<128x128xf32, #tpu.memory_space<vmem>>, vector<128x128xf32>
      tpu.vector_store %arg10[%c0_125, %c0_126], %117 {strides = array<i32>} : memref<128x128xf32, #tpu.memory_space<vmem>>, vector<128x128xf32>,
      %c0_127 = arith.constant 0 : index
      %c31_128 = arith.constant 31 : index
      %c0_129 = arith.constant 0 : index
      %119 = vector.load %arg4[%c0_127, %c31_128, %c0_129] : memref<1x192x128xbf16, #tpu.memory_space<vmem>>, vector<1x128x128xbf16>
      %120 = vector.shape_cast %119 : vector<1x128x128xbf16> to vector<128x128xbf16>
      %c21 = arith.constant 21 : index
      %c0_130 = arith.constant 0 : index
      %c0_131 = arith.constant 0 : index
      %121 = vector.load %arg6[%c21, %c0_130, %c0_131] : memref<27x128x128xbf16, #tpu.memory_space<vmem>>, vector<1x128x128xbf16>
      %122 = vector.shape_cast %121 : vector<1x128x128xbf16> to vector<128x128xbf16>
      %cst_132 = arith.constant dense<0.000000e+00> : vector<128x128xf32>
      %123 = tpu.matmul %120, %122, %cst_132 {dimension_numbers = #tpu.dot_dimension_numbers<[1], [0], [0], [1], [0, 0, 1, 1], [], []>} : vector<128x128xbf16>, vector<128x128xbf16>, vector<128x128xf32> -> vector<128x128xf32>
      %c0_133 = arith.constant 0 : index
      %c0_134 = arith.constant 0 : index
      %124 = vector.load %arg10[%c0_133, %c0_134] : memref<128x128xf32, #tpu.memory_space<vmem>>, vector<128x128xf32>
      %125 = arith.addf %124, %123 : vector<128x128xf32>
      %c0_135 = arith.constant 0 : index
      %c0_136 = arith.constant 0 : index
      %126 = vector.load %arg10[%c0_135, %c0_136] : memref<128x128xf32, #tpu.memory_space<vmem>>, vector<128x128xf32>
      tpu.vector_store %arg10[%c0_135, %c0_136], %125 {strides = array<i32>} : memref<128x128xf32, #tpu.memory_space<vmem>>, vector<128x128xf32>,
      %c0_137 = arith.constant 0 : index
      %c32_138 = arith.constant 32 : index
      %c0_139 = arith.constant 0 : index
      %127 = vector.load %arg4[%c0_137, %c32_138, %c0_139] : memref<1x192x128xbf16, #tpu.memory_space<vmem>>, vector<1x128x128xbf16>
      %128 = vector.shape_cast %127 : vector<1x128x128xbf16> to vector<128x128xbf16>
      %c22 = arith.constant 22 : index
      %c0_140 = arith.constant 0 : index
      %c0_141 = arith.constant 0 : index
      %129 = vector.load %arg6[%c22, %c0_140, %c0_141] : memref<27x128x128xbf16, #tpu.memory_space<vmem>>, vector<1x128x128xbf16>
      %130 = vector.shape_cast %129 : vector<1x128x128xbf16> to vector<128x128xbf16>
      %cst_142 = arith.constant dense<0.000000e+00> : vector<128x128xf32>
      %131 = tpu.matmul %128, %130, %cst_142 {dimension_numbers = #tpu.dot_dimension_numbers<[1], [0], [0], [1], [0, 0, 1, 1], [], []>} : vector<128x128xbf16>, vector<128x128xbf16>, vector<128x128xf32> -> vector<128x128xf32>
      %c0_143 = arith.constant 0 : index
      %c0_144 = arith.constant 0 : index
      %132 = vector.load %arg10[%c0_143, %c0_144] : memref<128x128xf32, #tpu.memory_space<vmem>>, vector<128x128xf32>
      %133 = arith.addf %132, %131 : vector<128x128xf32>
      %c0_145 = arith.constant 0 : index
      %c0_146 = arith.constant 0 : index
      %134 = vector.load %arg10[%c0_145, %c0_146] : memref<128x128xf32, #tpu.memory_space<vmem>>, vector<128x128xf32>
      tpu.vector_store %arg10[%c0_145, %c0_146], %133 {strides = array<i32>} : memref<128x128xf32, #tpu.memory_space<vmem>>, vector<128x128xf32>,
      %c0_147 = arith.constant 0 : index
      %c33_148 = arith.constant 33 : index
      %c0_149 = arith.constant 0 : index
      %135 = vector.load %arg4[%c0_147, %c33_148, %c0_149] : memref<1x192x128xbf16, #tpu.memory_space<vmem>>, vector<1x128x128xbf16>
      %136 = vector.shape_cast %135 : vector<1x128x128xbf16> to vector<128x128xbf16>
      %c23 = arith.constant 23 : index
      %c0_150 = arith.constant 0 : index
      %c0_151 = arith.constant 0 : index
      %137 = vector.load %arg6[%c23, %c0_150, %c0_151] : memref<27x128x128xbf16, #tpu.memory_space<vmem>>, vector<1x128x128xbf16>
      %138 = vector.shape_cast %137 : vector<1x128x128xbf16> to vector<128x128xbf16>
      %cst_152 = arith.constant dense<0.000000e+00> : vector<128x128xf32>
      %139 = tpu.matmul %136, %138, %cst_152 {dimension_numbers = #tpu.dot_dimension_numbers<[1], [0], [0], [1], [0, 0, 1, 1], [], []>} : vector<128x128xbf16>, vector<128x128xbf16>, vector<128x128xf32> -> vector<128x128xf32>
      %c0_153 = arith.constant 0 : index
      %c0_154 = arith.constant 0 : index
      %140 = vector.load %arg10[%c0_153, %c0_154] : memref<128x128xf32, #tpu.memory_space<vmem>>, vector<128x128xf32>
      %141 = arith.addf %140, %139 : vector<128x128xf32>
      %c0_155 = arith.constant 0 : index
      %c0_156 = arith.constant 0 : index
      %142 = vector.load %arg10[%c0_155, %c0_156] : memref<128x128xf32, #tpu.memory_space<vmem>>, vector<128x128xf32>
      tpu.vector_store %arg10[%c0_155, %c0_156], %141 {strides = array<i32>} : memref<128x128xf32, #tpu.memory_space<vmem>>, vector<128x128xf32>,
      %c0_157 = arith.constant 0 : index
      %c47_158 = arith.constant 47 : index
      %c0_159 = arith.constant 0 : index
      %143 = vector.load %arg4[%c0_157, %c47_158, %c0_159] : memref<1x192x128xbf16, #tpu.memory_space<vmem>>, vector<1x128x128xbf16>
      %144 = vector.shape_cast %143 : vector<1x128x128xbf16> to vector<128x128xbf16>
      %c24 = arith.constant 24 : index
      %c0_160 = arith.constant 0 : index
      %c0_161 = arith.constant 0 : index
      %145 = vector.load %arg6[%c24, %c0_160, %c0_161] : memref<27x128x128xbf16, #tpu.memory_space<vmem>>, vector<1x128x128xbf16>
      %146 = vector.shape_cast %145 : vector<1x128x128xbf16> to vector<128x128xbf16>
      %cst_162 = arith.constant dense<0.000000e+00> : vector<128x128xf32>
      %147 = tpu.matmul %144, %146, %cst_162 {dimension_numbers = #tpu.dot_dimension_numbers<[1], [0], [0], [1], [0, 0, 1, 1], [], []>} : vector<128x128xbf16>, vector<128x128xbf16>, vector<128x128xf32> -> vector<128x128xf32>
      %c0_163 = arith.constant 0 : index
      %c0_164 = arith.constant 0 : index
      %148 = vector.load %arg10[%c0_163, %c0_164] : memref<128x128xf32, #tpu.memory_space<vmem>>, vector<128x128xf32>
      %149 = arith.addf %148, %147 : vector<128x128xf32>
      %c0_165 = arith.constant 0 : index
      %c0_166 = arith.constant 0 : index
      %150 = vector.load %arg10[%c0_165, %c0_166] : memref<128x128xf32, #tpu.memory_space<vmem>>, vector<128x128xf32>
      tpu.vector_store %arg10[%c0_165, %c0_166], %149 {strides = array<i32>} : memref<128x128xf32, #tpu.memory_space<vmem>>, vector<128x128xf32>,
      %c0_167 = arith.constant 0 : index
      %c48_168 = arith.constant 48 : index
      %c0_169 = arith.constant 0 : index
      %151 = vector.load %arg4[%c0_167, %c48_168, %c0_169] : memref<1x192x128xbf16, #tpu.memory_space<vmem>>, vector<1x128x128xbf16>
      %152 = vector.shape_cast %151 : vector<1x128x128xbf16> to vector<128x128xbf16>
      %c25 = arith.constant 25 : index
      %c0_170 = arith.constant 0 : index
      %c0_171 = arith.constant 0 : index
      %153 = vector.load %arg6[%c25, %c0_170, %c0_171] : memref<27x128x128xbf16, #tpu.memory_space<vmem>>, vector<1x128x128xbf16>
      %154 = vector.shape_cast %153 : vector<1x128x128xbf16> to vector<128x128xbf16>
      %cst_172 = arith.constant dense<0.000000e+00> : vector<128x128xf32>
      %155 = tpu.matmul %152, %154, %cst_172 {dimension_numbers = #tpu.dot_dimension_numbers<[1], [0], [0], [1], [0, 0, 1, 1], [], []>} : vector<128x128xbf16>, vector<128x128xbf16>, vector<128x128xf32> -> vector<128x128xf32>
      %c0_173 = arith.constant 0 : index
      %c0_174 = arith.constant 0 : index
      %156 = vector.load %arg10[%c0_173, %c0_174] : memref<128x128xf32, #tpu.memory_space<vmem>>, vector<128x128xf32>
      %157 = arith.addf %156, %155 : vector<128x128xf32>
      %c0_175 = arith.constant 0 : index
      %c0_176 = arith.constant 0 : index
      %158 = vector.load %arg10[%c0_175, %c0_176] : memref<128x128xf32, #tpu.memory_space<vmem>>, vector<128x128xf32>
      tpu.vector_store %arg10[%c0_175, %c0_176], %157 {strides = array<i32>} : memref<128x128xf32, #tpu.memory_space<vmem>>, vector<128x128xf32>,
      %c0_177 = arith.constant 0 : index
      %c49_178 = arith.constant 49 : index
      %c0_179 = arith.constant 0 : index
      %159 = vector.load %arg4[%c0_177, %c49_178, %c0_179] : memref<1x192x128xbf16, #tpu.memory_space<vmem>>, vector<1x128x128xbf16>
      %160 = vector.shape_cast %159 : vector<1x128x128xbf16> to vector<128x128xbf16>
      %c26 = arith.constant 26 : index
      %c0_180 = arith.constant 0 : index
      %c0_181 = arith.constant 0 : index
      %161 = vector.load %arg6[%c26, %c0_180, %c0_181] : memref<27x128x128xbf16, #tpu.memory_space<vmem>>, vector<1x128x128xbf16>
      %162 = vector.shape_cast %161 : vector<1x128x128xbf16> to vector<128x128xbf16>
      %cst_182 = arith.constant dense<0.000000e+00> : vector<128x128xf32>
      %163 = tpu.matmul %160, %162, %cst_182 {dimension_numbers = #tpu.dot_dimension_numbers<[1], [0], [0], [1], [0, 0, 1, 1], [], []>} : vector<128x128xbf16>, vector<128x128xbf16>, vector<128x128xf32> -> vector<128x128xf32>
      %c0_183 = arith.constant 0 : index
      %c0_184 = arith.constant 0 : index
      %164 = vector.load %arg10[%c0_183, %c0_184] : memref<128x128xf32, #tpu.memory_space<vmem>>, vector<128x128xf32>
      %165 = arith.addf %164, %163 : vector<128x128xf32>
      %c0_185 = arith.constant 0 : index
      %c0_186 = arith.constant 0 : index
      %166 = vector.load %arg10[%c0_185, %c0_186] : memref<128x128xf32, #tpu.memory_space<vmem>>, vector<128x128xf32>
      tpu.vector_store %arg10[%c0_185, %c0_186], %165 {strides = array<i32>} : memref<128x128xf32, #tpu.memory_space<vmem>>, vector<128x128xf32>,
    } else {
    }
    %c0_82 = arith.constant 0 : index
    %c0_83 = arith.constant 0 : index
    %76 = vector.load %arg10[%c0_82, %c0_83] : memref<128x128xf32, #tpu.memory_space<vmem>>, vector<128x128xf32>
    %77 = vector.shape_cast %76 : vector<128x128xf32> to vector<8x16x128xf32>
    %c0_84 = arith.constant 0 : index
    %c0_85 = arith.constant 0 : index
    %c0_86 = arith.constant 0 : index
    %78 = vector.load %arg7[%c0_84, %c0_85, %c0_86] : memref<1x16x128xf32, #tpu.memory_space<vmem>>, vector<1x16x128xf32>
    %79 = vector.broadcast %78 : vector<1x16x128xf32> to vector<8x16x128xf32>
    %80 = arith.mulf %77, %79 : vector<8x16x128xf32>
    %c0_87 = arith.constant 0 : index
    %c0_88 = arith.constant 0 : index
    %c0_89 = arith.constant 0 : index
    %81 = vector.load %arg8[%c0_87, %c0_88, %c0_89] : memref<1x16x128xf32, #tpu.memory_space<vmem>>, vector<1x16x128xf32>
    %82 = vector.broadcast %81 : vector<1x16x128xf32> to vector<8x16x128xf32>
    %83 = arith.addf %80, %82 : vector<8x16x128xf32>
    %c0_90 = arith.constant 0 : index
    %c32_91 = arith.constant 32 : index
    %c0_92 = arith.constant 0 : index
    %84 = vector.load %arg5[%c0_90, %c32_91, %c0_92] : memref<1x192x128xbf16, #tpu.memory_space<vmem>>, vector<1x128x128xbf16>
    %85 = vector.shape_cast %84 : vector<1x128x128xbf16> to vector<128x128xbf16>
    %86 = arith.extf %85 : vector<128x128xbf16> to vector<128x128xf32>
    %87 = vector.shape_cast %86 : vector<128x128xf32> to vector<8x16x128xf32>
    %88 = arith.addf %83, %87 : vector<8x16x128xf32>
    %cst_93 = arith.constant 0.000000e+00 : f32
    %89 = vector.broadcast %cst_93 : f32 to vector<8x16x128xf32>
    %90 = arith.maximumf %88, %89 : vector<8x16x128xf32>
    %91 = vector.shape_cast %90 : vector<8x16x128xf32> to vector<128x128xf32>
    %c0_94 = arith.constant 0 : index
    %c0_95 = arith.constant 0 : index
    %c0_96 = arith.constant 0 : index
    %92 = vector.load %arg9[%c0_94, %c0_95, %c0_96] : memref<1x128x128xf32, #tpu.memory_space<vmem>>, vector<1x128x128xf32>
    %93 = vector.shape_cast %92 : vector<1x128x128xf32> to vector<128x128xf32>
    %94 = vector.shape_cast %91 : vector<128x128xf32> to vector<1x128x128xf32>
    tpu.vector_store %arg9[%c0_94, %c0_95, %c0_96], %94 {strides = array<i32>} : memref<1x128x128xf32, #tpu.memory_space<vmem>>, vector<1x128x128xf32>,
    return
  }
  func.func @transform_0(%arg0: i32, %arg1: i32) -> (i32, i32, i32) {
    %c4_i32 = arith.constant 4 : i32
    %0 = arith.muli %arg0, %c4_i32 : i32
    %c1_i32 = arith.constant 1 : i32
    %1 = arith.subi %arg1, %c1_i32 : i32
    %c0_i32 = arith.constant 0 : i32
    %2 = arith.addi %1, %c0_i32 : i32
    %c0_i32_0 = arith.constant 0 : i32
    %c3_i32 = arith.constant 3 : i32
    %3 = arith.maxsi %c0_i32_0, %2 : i32
    %4 = arith.minsi %c3_i32, %3 : i32
    %5 = arith.addi %0, %4 : i32
    %c0_i32_1 = arith.constant 0 : i32
    %c0_i32_2 = arith.constant 0 : i32
    %c0_i32_3 = arith.constant 0 : i32
    return %5, %c0_i32_1, %c0_i32_2 : i32, i32, i32
  }
  func.func @transform_1(%arg0: i32, %arg1: i32) -> (i32, i32, i32) {
    %c4_i32 = arith.constant 4 : i32
    %0 = arith.muli %arg0, %c4_i32 : i32
    %c1_i32 = arith.constant 1 : i32
    %1 = arith.subi %arg1, %c1_i32 : i32
    %c1_i32_0 = arith.constant 1 : i32
    %2 = arith.addi %1, %c1_i32_0 : i32
    %c0_i32 = arith.constant 0 : i32
    %c3_i32 = arith.constant 3 : i32
    %3 = arith.maxsi %c0_i32, %2 : i32
    %4 = arith.minsi %c3_i32, %3 : i32
    %5 = arith.addi %0, %4 : i32
    %c0_i32_1 = arith.constant 0 : i32
    %c0_i32_2 = arith.constant 0 : i32
    %c0_i32_3 = arith.constant 0 : i32
    return %5, %c0_i32_1, %c0_i32_2 : i32, i32, i32
  }
  func.func @transform_2(%arg0: i32, %arg1: i32) -> (i32, i32, i32) {
    %c4_i32 = arith.constant 4 : i32
    %0 = arith.muli %arg0, %c4_i32 : i32
    %c1_i32 = arith.constant 1 : i32
    %1 = arith.subi %arg1, %c1_i32 : i32
    %c2_i32 = arith.constant 2 : i32
    %2 = arith.addi %1, %c2_i32 : i32
    %c0_i32 = arith.constant 0 : i32
    %c3_i32 = arith.constant 3 : i32
    %3 = arith.maxsi %c0_i32, %2 : i32
    %4 = arith.minsi %c3_i32, %3 : i32
    %5 = arith.addi %0, %4 : i32
    %c0_i32_0 = arith.constant 0 : i32
    %c0_i32_1 = arith.constant 0 : i32
    %c0_i32_2 = arith.constant 0 : i32
    return %5, %c0_i32_0, %c0_i32_1 : i32, i32, i32
  }
  func.func @transform_3(%arg0: i32, %arg1: i32) -> (i32, i32, i32) {
    %c4_i32 = arith.constant 4 : i32
    %0 = arith.muli %arg0, %c4_i32 : i32
    %1 = arith.addi %0, %arg1 : i32
    %c0_i32 = arith.constant 0 : i32
    %c0_i32_0 = arith.constant 0 : i32
    %c0_i32_1 = arith.constant 0 : i32
    return %1, %c0_i32, %c0_i32_0 : i32, i32, i32
  }
  func.func @transform_4(%arg0: i32, %arg1: i32) -> (i32, i32, i32) {
    %c0_i32 = arith.constant 0 : i32
    %c0_i32_0 = arith.constant 0 : i32
    %c0_i32_1 = arith.constant 0 : i32
    %c0_i32_2 = arith.constant 0 : i32
    return %c0_i32, %c0_i32_0, %c0_i32_1 : i32, i32, i32
  }
  func.func @transform_5(%arg0: i32, %arg1: i32) -> (i32, i32, i32) {
    %c0_i32 = arith.constant 0 : i32
    %c0_i32_0 = arith.constant 0 : i32
    %c0_i32_1 = arith.constant 0 : i32
    %c0_i32_2 = arith.constant 0 : i32
    return %c0_i32, %c0_i32_0, %c0_i32_1 : i32, i32, i32
  }
  func.func @transform_6(%arg0: i32, %arg1: i32) -> (i32, i32, i32) {
    %c0_i32 = arith.constant 0 : i32
    %c0_i32_0 = arith.constant 0 : i32
    %c0_i32_1 = arith.constant 0 : i32
    %c0_i32_2 = arith.constant 0 : i32
    return %c0_i32, %c0_i32_0, %c0_i32_1 : i32, i32, i32
  }
  func.func @transform_7(%arg0: i32, %arg1: i32) -> (i32, i32, i32) {
    %c4_i32 = arith.constant 4 : i32
    %0 = arith.muli %arg0, %c4_i32 : i32
    %1 = arith.addi %0, %arg1 : i32
    %c0_i32 = arith.constant 0 : i32
    %c0_i32_0 = arith.constant 0 : i32
    %c0_i32_1 = arith.constant 0 : i32
    return %1, %c0_i32, %c0_i32_0 : i32, i32, i32
  }
}

module attributes {stable_mosaic.version = 11 : i64} {
  func.func @kernel(%arg0: i32, %arg1: i32, %arg2: memref<1x192x128xbf16, #tpu.memory_space<vmem>>, %arg3: memref<1x192x128xbf16, #tpu.memory_space<vmem>>, %arg4: memref<1x192x128xbf16, #tpu.memory_space<vmem>>, %arg5: memref<27x128x128xbf16, #tpu.memory_space<vmem>>, %arg6: memref<1x16x128xf32, #tpu.memory_space<vmem>>, %arg7: memref<1x16x128xf32, #tpu.memory_space<vmem>>, %arg8: memref<1x192x128xbf16, #tpu.memory_space<vmem>>, %arg9: memref<128x128xf32, #tpu.memory_space<vmem>>) attributes {dimension_semantics = [#tpu.dimension_semantics<parallel>, #tpu.dimension_semantics<parallel>], iteration_bounds = array<i64: 2, 4>, scalar_prefetch = 0 : i64, scratch_operands = 1 : i64, tpu.core_type = #tpu.core_type<tc>, window_params = [{transform_indices = @transform_0, window_bounds = array<i64: 1, 192, 128>}, {transform_indices = @transform_1, window_bounds = array<i64: 1, 192, 128>}, {transform_indices = @transform_2, window_bounds = array<i64: 1, 192, 128>}, {pipeline_mode = #tpu.pipeline_mode<synchronous>, transform_indices = @transform_3, window_bounds = array<i64: 27, 128, 128>}, {pipeline_mode = #tpu.pipeline_mode<synchronous>, transform_indices = @transform_4, window_bounds = array<i64: 1, 16, 128>}, {pipeline_mode = #tpu.pipeline_mode<synchronous>, transform_indices = @transform_5, window_bounds = array<i64: 1, 16, 128>}, {transform_indices = @transform_6, window_bounds = array<i64: 1, 192, 128>}]} {
    %c0 = arith.constant 0 : index
    %c15 = arith.constant 15 : index
    %c0_0 = arith.constant 0 : index
    %0 = vector.load %arg3[%c0, %c15, %c0_0] : memref<1x192x128xbf16, #tpu.memory_space<vmem>>, vector<1x128x128xbf16>
    %1 = vector.shape_cast %0 : vector<1x128x128xbf16> to vector<128x128xbf16>
    %c9 = arith.constant 9 : index
    %c0_1 = arith.constant 0 : index
    %c0_2 = arith.constant 0 : index
    %2 = vector.load %arg5[%c9, %c0_1, %c0_2] : memref<27x128x128xbf16, #tpu.memory_space<vmem>>, vector<1x128x128xbf16>
    %3 = vector.shape_cast %2 : vector<1x128x128xbf16> to vector<128x128xbf16>
    %cst = arith.constant dense<0.000000e+00> : vector<128x128xf32>
    %4 = tpu.matmul %1, %3, %cst {dimension_numbers = #tpu.dot_dimension_numbers<[1], [0], [0], [1], [0, 0, 1, 1], [], []>} : vector<128x128xbf16>, vector<128x128xbf16>, vector<128x128xf32> -> vector<128x128xf32>
    %c0_3 = arith.constant 0 : index
    %c0_4 = arith.constant 0 : index
    %5 = vector.load %arg9[%c0_3, %c0_4] : memref<128x128xf32, #tpu.memory_space<vmem>>, vector<128x128xf32>
    tpu.vector_store %arg9[%c0_3, %c0_4], %4 {strides = array<i32>} : memref<128x128xf32, #tpu.memory_space<vmem>>, vector<128x128xf32>,
    %c0_5 = arith.constant 0 : index
    %c16 = arith.constant 16 : index
    %c0_6 = arith.constant 0 : index
    %6 = vector.load %arg3[%c0_5, %c16, %c0_6] : memref<1x192x128xbf16, #tpu.memory_space<vmem>>, vector<1x128x128xbf16>
    %7 = vector.shape_cast %6 : vector<1x128x128xbf16> to vector<128x128xbf16>
    %c10 = arith.constant 10 : index
    %c0_7 = arith.constant 0 : index
    %c0_8 = arith.constant 0 : index
    %8 = vector.load %arg5[%c10, %c0_7, %c0_8] : memref<27x128x128xbf16, #tpu.memory_space<vmem>>, vector<1x128x128xbf16>
    %9 = vector.shape_cast %8 : vector<1x128x128xbf16> to vector<128x128xbf16>
    %cst_9 = arith.constant dense<0.000000e+00> : vector<128x128xf32>
    %10 = tpu.matmul %7, %9, %cst_9 {dimension_numbers = #tpu.dot_dimension_numbers<[1], [0], [0], [1], [0, 0, 1, 1], [], []>} : vector<128x128xbf16>, vector<128x128xbf16>, vector<128x128xf32> -> vector<128x128xf32>
    %c0_10 = arith.constant 0 : index
    %c0_11 = arith.constant 0 : index
    %11 = vector.load %arg9[%c0_10, %c0_11] : memref<128x128xf32, #tpu.memory_space<vmem>>, vector<128x128xf32>
    %12 = arith.addf %11, %10 : vector<128x128xf32>
    %c0_12 = arith.constant 0 : index
    %c0_13 = arith.constant 0 : index
    %13 = vector.load %arg9[%c0_12, %c0_13] : memref<128x128xf32, #tpu.memory_space<vmem>>, vector<128x128xf32>
    tpu.vector_store %arg9[%c0_12, %c0_13], %12 {strides = array<i32>} : memref<128x128xf32, #tpu.memory_space<vmem>>, vector<128x128xf32>,
    %c0_14 = arith.constant 0 : index
    %c17 = arith.constant 17 : index
    %c0_15 = arith.constant 0 : index
    %14 = vector.load %arg3[%c0_14, %c17, %c0_15] : memref<1x192x128xbf16, #tpu.memory_space<vmem>>, vector<1x128x128xbf16>
    %15 = vector.shape_cast %14 : vector<1x128x128xbf16> to vector<128x128xbf16>
    %c11 = arith.constant 11 : index
    %c0_16 = arith.constant 0 : index
    %c0_17 = arith.constant 0 : index
    %16 = vector.load %arg5[%c11, %c0_16, %c0_17] : memref<27x128x128xbf16, #tpu.memory_space<vmem>>, vector<1x128x128xbf16>
    %17 = vector.shape_cast %16 : vector<1x128x128xbf16> to vector<128x128xbf16>
    %cst_18 = arith.constant dense<0.000000e+00> : vector<128x128xf32>
    %18 = tpu.matmul %15, %17, %cst_18 {dimension_numbers = #tpu.dot_dimension_numbers<[1], [0], [0], [1], [0, 0, 1, 1], [], []>} : vector<128x128xbf16>, vector<128x128xbf16>, vector<128x128xf32> -> vector<128x128xf32>
    %c0_19 = arith.constant 0 : index
    %c0_20 = arith.constant 0 : index
    %19 = vector.load %arg9[%c0_19, %c0_20] : memref<128x128xf32, #tpu.memory_space<vmem>>, vector<128x128xf32>
    %20 = arith.addf %19, %18 : vector<128x128xf32>
    %c0_21 = arith.constant 0 : index
    %c0_22 = arith.constant 0 : index
    %21 = vector.load %arg9[%c0_21, %c0_22] : memref<128x128xf32, #tpu.memory_space<vmem>>, vector<128x128xf32>
    tpu.vector_store %arg9[%c0_21, %c0_22], %20 {strides = array<i32>} : memref<128x128xf32, #tpu.memory_space<vmem>>, vector<128x128xf32>,
    %c0_23 = arith.constant 0 : index
    %c31 = arith.constant 31 : index
    %c0_24 = arith.constant 0 : index
    %22 = vector.load %arg3[%c0_23, %c31, %c0_24] : memref<1x192x128xbf16, #tpu.memory_space<vmem>>, vector<1x128x128xbf16>
    %23 = vector.shape_cast %22 : vector<1x128x128xbf16> to vector<128x128xbf16>
    %c12 = arith.constant 12 : index
    %c0_25 = arith.constant 0 : index
    %c0_26 = arith.constant 0 : index
    %24 = vector.load %arg5[%c12, %c0_25, %c0_26] : memref<27x128x128xbf16, #tpu.memory_space<vmem>>, vector<1x128x128xbf16>
    %25 = vector.shape_cast %24 : vector<1x128x128xbf16> to vector<128x128xbf16>
    %cst_27 = arith.constant dense<0.000000e+00> : vector<128x128xf32>
    %26 = tpu.matmul %23, %25, %cst_27 {dimension_numbers = #tpu.dot_dimension_numbers<[1], [0], [0], [1], [0, 0, 1, 1], [], []>} : vector<128x128xbf16>, vector<128x128xbf16>, vector<128x128xf32> -> vector<128x128xf32>
    %c0_28 = arith.constant 0 : index
    %c0_29 = arith.constant 0 : index
    %27 = vector.load %arg9[%c0_28, %c0_29] : memref<128x128xf32, #tpu.memory_space<vmem>>, vector<128x128xf32>
    %28 = arith.addf %27, %26 : vector<128x128xf32>
    %c0_30 = arith.constant 0 : index
    %c0_31 = arith.constant 0 : index
    %29 = vector.load %arg9[%c0_30, %c0_31] : memref<128x128xf32, #tpu.memory_space<vmem>>, vector<128x128xf32>
    tpu.vector_store %arg9[%c0_30, %c0_31], %28 {strides = array<i32>} : memref<128x128xf32, #tpu.memory_space<vmem>>, vector<128x128xf32>,
    %c0_32 = arith.constant 0 : index
    %c32 = arith.constant 32 : index
    %c0_33 = arith.constant 0 : index
    %30 = vector.load %arg3[%c0_32, %c32, %c0_33] : memref<1x192x128xbf16, #tpu.memory_space<vmem>>, vector<1x128x128xbf16>
    %31 = vector.shape_cast %30 : vector<1x128x128xbf16> to vector<128x128xbf16>
    %c13 = arith.constant 13 : index
    %c0_34 = arith.constant 0 : index
    %c0_35 = arith.constant 0 : index
    %32 = vector.load %arg5[%c13, %c0_34, %c0_35] : memref<27x128x128xbf16, #tpu.memory_space<vmem>>, vector<1x128x128xbf16>
    %33 = vector.shape_cast %32 : vector<1x128x128xbf16> to vector<128x128xbf16>
    %cst_36 = arith.constant dense<0.000000e+00> : vector<128x128xf32>
    %34 = tpu.matmul %31, %33, %cst_36 {dimension_numbers = #tpu.dot_dimension_numbers<[1], [0], [0], [1], [0, 0, 1, 1], [], []>} : vector<128x128xbf16>, vector<128x128xbf16>, vector<128x128xf32> -> vector<128x128xf32>
    %c0_37 = arith.constant 0 : index
    %c0_38 = arith.constant 0 : index
    %35 = vector.load %arg9[%c0_37, %c0_38] : memref<128x128xf32, #tpu.memory_space<vmem>>, vector<128x128xf32>
    %36 = arith.addf %35, %34 : vector<128x128xf32>
    %c0_39 = arith.constant 0 : index
    %c0_40 = arith.constant 0 : index
    %37 = vector.load %arg9[%c0_39, %c0_40] : memref<128x128xf32, #tpu.memory_space<vmem>>, vector<128x128xf32>
    tpu.vector_store %arg9[%c0_39, %c0_40], %36 {strides = array<i32>} : memref<128x128xf32, #tpu.memory_space<vmem>>, vector<128x128xf32>,
    %c0_41 = arith.constant 0 : index
    %c33 = arith.constant 33 : index
    %c0_42 = arith.constant 0 : index
    %38 = vector.load %arg3[%c0_41, %c33, %c0_42] : memref<1x192x128xbf16, #tpu.memory_space<vmem>>, vector<1x128x128xbf16>
    %39 = vector.shape_cast %38 : vector<1x128x128xbf16> to vector<128x128xbf16>
    %c14 = arith.constant 14 : index
    %c0_43 = arith.constant 0 : index
    %c0_44 = arith.constant 0 : index
    %40 = vector.load %arg5[%c14, %c0_43, %c0_44] : memref<27x128x128xbf16, #tpu.memory_space<vmem>>, vector<1x128x128xbf16>
    %41 = vector.shape_cast %40 : vector<1x128x128xbf16> to vector<128x128xbf16>
    %cst_45 = arith.constant dense<0.000000e+00> : vector<128x128xf32>
    %42 = tpu.matmul %39, %41, %cst_45 {dimension_numbers = #tpu.dot_dimension_numbers<[1], [0], [0], [1], [0, 0, 1, 1], [], []>} : vector<128x128xbf16>, vector<128x128xbf16>, vector<128x128xf32> -> vector<128x128xf32>
    %c0_46 = arith.constant 0 : index
    %c0_47 = arith.constant 0 : index
    %43 = vector.load %arg9[%c0_46, %c0_47] : memref<128x128xf32, #tpu.memory_space<vmem>>, vector<128x128xf32>
    %44 = arith.addf %43, %42 : vector<128x128xf32>
    %c0_48 = arith.constant 0 : index
    %c0_49 = arith.constant 0 : index
    %45 = vector.load %arg9[%c0_48, %c0_49] : memref<128x128xf32, #tpu.memory_space<vmem>>, vector<128x128xf32>
    tpu.vector_store %arg9[%c0_48, %c0_49], %44 {strides = array<i32>} : memref<128x128xf32, #tpu.memory_space<vmem>>, vector<128x128xf32>,
    %c0_50 = arith.constant 0 : index
    %c47 = arith.constant 47 : index
    %c0_51 = arith.constant 0 : index
    %46 = vector.load %arg3[%c0_50, %c47, %c0_51] : memref<1x192x128xbf16, #tpu.memory_space<vmem>>, vector<1x128x128xbf16>
    %47 = vector.shape_cast %46 : vector<1x128x128xbf16> to vector<128x128xbf16>
    %c15_52 = arith.constant 15 : index
    %c0_53 = arith.constant 0 : index
    %c0_54 = arith.constant 0 : index
    %48 = vector.load %arg5[%c15_52, %c0_53, %c0_54] : memref<27x128x128xbf16, #tpu.memory_space<vmem>>, vector<1x128x128xbf16>
    %49 = vector.shape_cast %48 : vector<1x128x128xbf16> to vector<128x128xbf16>
    %cst_55 = arith.constant dense<0.000000e+00> : vector<128x128xf32>
    %50 = tpu.matmul %47, %49, %cst_55 {dimension_numbers = #tpu.dot_dimension_numbers<[1], [0], [0], [1], [0, 0, 1, 1], [], []>} : vector<128x128xbf16>, vector<128x128xbf16>, vector<128x128xf32> -> vector<128x128xf32>
    %c0_56 = arith.constant 0 : index
    %c0_57 = arith.constant 0 : index
    %51 = vector.load %arg9[%c0_56, %c0_57] : memref<128x128xf32, #tpu.memory_space<vmem>>, vector<128x128xf32>
    %52 = arith.addf %51, %50 : vector<128x128xf32>
    %c0_58 = arith.constant 0 : index
    %c0_59 = arith.constant 0 : index
    %53 = vector.load %arg9[%c0_58, %c0_59] : memref<128x128xf32, #tpu.memory_space<vmem>>, vector<128x128xf32>
    tpu.vector_store %arg9[%c0_58, %c0_59], %52 {strides = array<i32>} : memref<128x128xf32, #tpu.memory_space<vmem>>, vector<128x128xf32>,
    %c0_60 = arith.constant 0 : index
    %c48 = arith.constant 48 : index
    %c0_61 = arith.constant 0 : index
    %54 = vector.load %arg3[%c0_60, %c48, %c0_61] : memref<1x192x128xbf16, #tpu.memory_space<vmem>>, vector<1x128x128xbf16>
    %55 = vector.shape_cast %54 : vector<1x128x128xbf16> to vector<128x128xbf16>
    %c16_62 = arith.constant 16 : index
    %c0_63 = arith.constant 0 : index
    %c0_64 = arith.constant 0 : index
    %56 = vector.load %arg5[%c16_62, %c0_63, %c0_64] : memref<27x128x128xbf16, #tpu.memory_space<vmem>>, vector<1x128x128xbf16>
    %57 = vector.shape_cast %56 : vector<1x128x128xbf16> to vector<128x128xbf16>
    %cst_65 = arith.constant dense<0.000000e+00> : vector<128x128xf32>
    %58 = tpu.matmul %55, %57, %cst_65 {dimension_numbers = #tpu.dot_dimension_numbers<[1], [0], [0], [1], [0, 0, 1, 1], [], []>} : vector<128x128xbf16>, vector<128x128xbf16>, vector<128x128xf32> -> vector<128x128xf32>
    %c0_66 = arith.constant 0 : index
    %c0_67 = arith.constant 0 : index
    %59 = vector.load %arg9[%c0_66, %c0_67] : memref<128x128xf32, #tpu.memory_space<vmem>>, vector<128x128xf32>
    %60 = arith.addf %59, %58 : vector<128x128xf32>
    %c0_68 = arith.constant 0 : index
    %c0_69 = arith.constant 0 : index
    %61 = vector.load %arg9[%c0_68, %c0_69] : memref<128x128xf32, #tpu.memory_space<vmem>>, vector<128x128xf32>
    tpu.vector_store %arg9[%c0_68, %c0_69], %60 {strides = array<i32>} : memref<128x128xf32, #tpu.memory_space<vmem>>, vector<128x128xf32>,
    %c0_70 = arith.constant 0 : index
    %c49 = arith.constant 49 : index
    %c0_71 = arith.constant 0 : index
    %62 = vector.load %arg3[%c0_70, %c49, %c0_71] : memref<1x192x128xbf16, #tpu.memory_space<vmem>>, vector<1x128x128xbf16>
    %63 = vector.shape_cast %62 : vector<1x128x128xbf16> to vector<128x128xbf16>
    %c17_72 = arith.constant 17 : index
    %c0_73 = arith.constant 0 : index
    %c0_74 = arith.constant 0 : index
    %64 = vector.load %arg5[%c17_72, %c0_73, %c0_74] : memref<27x128x128xbf16, #tpu.memory_space<vmem>>, vector<1x128x128xbf16>
    %65 = vector.shape_cast %64 : vector<1x128x128xbf16> to vector<128x128xbf16>
    %cst_75 = arith.constant dense<0.000000e+00> : vector<128x128xf32>
    %66 = tpu.matmul %63, %65, %cst_75 {dimension_numbers = #tpu.dot_dimension_numbers<[1], [0], [0], [1], [0, 0, 1, 1], [], []>} : vector<128x128xbf16>, vector<128x128xbf16>, vector<128x128xf32> -> vector<128x128xf32>
    %c0_76 = arith.constant 0 : index
    %c0_77 = arith.constant 0 : index
    %67 = vector.load %arg9[%c0_76, %c0_77] : memref<128x128xf32, #tpu.memory_space<vmem>>, vector<128x128xf32>
    %68 = arith.addf %67, %66 : vector<128x128xf32>
    %c0_78 = arith.constant 0 : index
    %c0_79 = arith.constant 0 : index
    %69 = vector.load %arg9[%c0_78, %c0_79] : memref<128x128xf32, #tpu.memory_space<vmem>>, vector<128x128xf32>
    tpu.vector_store %arg9[%c0_78, %c0_79], %68 {strides = array<i32>} : memref<128x128xf32, #tpu.memory_space<vmem>>, vector<128x128xf32>,
    %c0_i32 = arith.constant 0 : i32
    %70 = arith.cmpi sgt, %arg1, %c0_i32 : i32
    %71 = arith.extui %70 : i1 to i32
    %c0_i32_80 = arith.constant 0 : i32
    %72 = arith.cmpi ne, %71, %c0_i32_80 : i32
    scf.if %72 {
      %c0_101 = arith.constant 0 : index
      %c15_102 = arith.constant 15 : index
      %c0_103 = arith.constant 0 : index
      %99 = vector.load %arg2[%c0_101, %c15_102, %c0_103] : memref<1x192x128xbf16, #tpu.memory_space<vmem>>, vector<1x128x128xbf16>
      %100 = vector.shape_cast %99 : vector<1x128x128xbf16> to vector<128x128xbf16>
      %c0_104 = arith.constant 0 : index
      %c0_105 = arith.constant 0 : index
      %c0_106 = arith.constant 0 : index
      %101 = vector.load %arg5[%c0_104, %c0_105, %c0_106] : memref<27x128x128xbf16, #tpu.memory_space<vmem>>, vector<1x128x128xbf16>
      %102 = vector.shape_cast %101 : vector<1x128x128xbf16> to vector<128x128xbf16>
      %cst_107 = arith.constant dense<0.000000e+00> : vector<128x128xf32>
      %103 = tpu.matmul %100, %102, %cst_107 {dimension_numbers = #tpu.dot_dimension_numbers<[1], [0], [0], [1], [0, 0, 1, 1], [], []>} : vector<128x128xbf16>, vector<128x128xbf16>, vector<128x128xf32> -> vector<128x128xf32>
      %c0_108 = arith.constant 0 : index
      %c0_109 = arith.constant 0 : index
      %104 = vector.load %arg9[%c0_108, %c0_109] : memref<128x128xf32, #tpu.memory_space<vmem>>, vector<128x128xf32>
      %105 = arith.addf %104, %103 : vector<128x128xf32>
      %c0_110 = arith.constant 0 : index
      %c0_111 = arith.constant 0 : index
      %106 = vector.load %arg9[%c0_110, %c0_111] : memref<128x128xf32, #tpu.memory_space<vmem>>, vector<128x128xf32>
      tpu.vector_store %arg9[%c0_110, %c0_111], %105 {strides = array<i32>} : memref<128x128xf32, #tpu.memory_space<vmem>>, vector<128x128xf32>,
      %c0_112 = arith.constant 0 : index
      %c16_113 = arith.constant 16 : index
      %c0_114 = arith.constant 0 : index
      %107 = vector.load %arg2[%c0_112, %c16_113, %c0_114] : memref<1x192x128xbf16, #tpu.memory_space<vmem>>, vector<1x128x128xbf16>
      %108 = vector.shape_cast %107 : vector<1x128x128xbf16> to vector<128x128xbf16>
      %c1 = arith.constant 1 : index
      %c0_115 = arith.constant 0 : index
      %c0_116 = arith.constant 0 : index
      %109 = vector.load %arg5[%c1, %c0_115, %c0_116] : memref<27x128x128xbf16, #tpu.memory_space<vmem>>, vector<1x128x128xbf16>
      %110 = vector.shape_cast %109 : vector<1x128x128xbf16> to vector<128x128xbf16>
      %cst_117 = arith.constant dense<0.000000e+00> : vector<128x128xf32>
      %111 = tpu.matmul %108, %110, %cst_117 {dimension_numbers = #tpu.dot_dimension_numbers<[1], [0], [0], [1], [0, 0, 1, 1], [], []>} : vector<128x128xbf16>, vector<128x128xbf16>, vector<128x128xf32> -> vector<128x128xf32>
      %c0_118 = arith.constant 0 : index
      %c0_119 = arith.constant 0 : index
      %112 = vector.load %arg9[%c0_118, %c0_119] : memref<128x128xf32, #tpu.memory_space<vmem>>, vector<128x128xf32>
      %113 = arith.addf %112, %111 : vector<128x128xf32>
      %c0_120 = arith.constant 0 : index
      %c0_121 = arith.constant 0 : index
      %114 = vector.load %arg9[%c0_120, %c0_121] : memref<128x128xf32, #tpu.memory_space<vmem>>, vector<128x128xf32>
      tpu.vector_store %arg9[%c0_120, %c0_121], %113 {strides = array<i32>} : memref<128x128xf32, #tpu.memory_space<vmem>>, vector<128x128xf32>,
      %c0_122 = arith.constant 0 : index
      %c17_123 = arith.constant 17 : index
      %c0_124 = arith.constant 0 : index
      %115 = vector.load %arg2[%c0_122, %c17_123, %c0_124] : memref<1x192x128xbf16, #tpu.memory_space<vmem>>, vector<1x128x128xbf16>
      %116 = vector.shape_cast %115 : vector<1x128x128xbf16> to vector<128x128xbf16>
      %c2 = arith.constant 2 : index
      %c0_125 = arith.constant 0 : index
      %c0_126 = arith.constant 0 : index
      %117 = vector.load %arg5[%c2, %c0_125, %c0_126] : memref<27x128x128xbf16, #tpu.memory_space<vmem>>, vector<1x128x128xbf16>
      %118 = vector.shape_cast %117 : vector<1x128x128xbf16> to vector<128x128xbf16>
      %cst_127 = arith.constant dense<0.000000e+00> : vector<128x128xf32>
      %119 = tpu.matmul %116, %118, %cst_127 {dimension_numbers = #tpu.dot_dimension_numbers<[1], [0], [0], [1], [0, 0, 1, 1], [], []>} : vector<128x128xbf16>, vector<128x128xbf16>, vector<128x128xf32> -> vector<128x128xf32>
      %c0_128 = arith.constant 0 : index
      %c0_129 = arith.constant 0 : index
      %120 = vector.load %arg9[%c0_128, %c0_129] : memref<128x128xf32, #tpu.memory_space<vmem>>, vector<128x128xf32>
      %121 = arith.addf %120, %119 : vector<128x128xf32>
      %c0_130 = arith.constant 0 : index
      %c0_131 = arith.constant 0 : index
      %122 = vector.load %arg9[%c0_130, %c0_131] : memref<128x128xf32, #tpu.memory_space<vmem>>, vector<128x128xf32>
      tpu.vector_store %arg9[%c0_130, %c0_131], %121 {strides = array<i32>} : memref<128x128xf32, #tpu.memory_space<vmem>>, vector<128x128xf32>,
      %c0_132 = arith.constant 0 : index
      %c31_133 = arith.constant 31 : index
      %c0_134 = arith.constant 0 : index
      %123 = vector.load %arg2[%c0_132, %c31_133, %c0_134] : memref<1x192x128xbf16, #tpu.memory_space<vmem>>, vector<1x128x128xbf16>
      %124 = vector.shape_cast %123 : vector<1x128x128xbf16> to vector<128x128xbf16>
      %c3 = arith.constant 3 : index
      %c0_135 = arith.constant 0 : index
      %c0_136 = arith.constant 0 : index
      %125 = vector.load %arg5[%c3, %c0_135, %c0_136] : memref<27x128x128xbf16, #tpu.memory_space<vmem>>, vector<1x128x128xbf16>
      %126 = vector.shape_cast %125 : vector<1x128x128xbf16> to vector<128x128xbf16>
      %cst_137 = arith.constant dense<0.000000e+00> : vector<128x128xf32>
      %127 = tpu.matmul %124, %126, %cst_137 {dimension_numbers = #tpu.dot_dimension_numbers<[1], [0], [0], [1], [0, 0, 1, 1], [], []>} : vector<128x128xbf16>, vector<128x128xbf16>, vector<128x128xf32> -> vector<128x128xf32>
      %c0_138 = arith.constant 0 : index
      %c0_139 = arith.constant 0 : index
      %128 = vector.load %arg9[%c0_138, %c0_139] : memref<128x128xf32, #tpu.memory_space<vmem>>, vector<128x128xf32>
      %129 = arith.addf %128, %127 : vector<128x128xf32>
      %c0_140 = arith.constant 0 : index
      %c0_141 = arith.constant 0 : index
      %130 = vector.load %arg9[%c0_140, %c0_141] : memref<128x128xf32, #tpu.memory_space<vmem>>, vector<128x128xf32>
      tpu.vector_store %arg9[%c0_140, %c0_141], %129 {strides = array<i32>} : memref<128x128xf32, #tpu.memory_space<vmem>>, vector<128x128xf32>,
      %c0_142 = arith.constant 0 : index
      %c32_143 = arith.constant 32 : index
      %c0_144 = arith.constant 0 : index
      %131 = vector.load %arg2[%c0_142, %c32_143, %c0_144] : memref<1x192x128xbf16, #tpu.memory_space<vmem>>, vector<1x128x128xbf16>
      %132 = vector.shape_cast %131 : vector<1x128x128xbf16> to vector<128x128xbf16>
      %c4 = arith.constant 4 : index
      %c0_145 = arith.constant 0 : index
      %c0_146 = arith.constant 0 : index
      %133 = vector.load %arg5[%c4, %c0_145, %c0_146] : memref<27x128x128xbf16, #tpu.memory_space<vmem>>, vector<1x128x128xbf16>
      %134 = vector.shape_cast %133 : vector<1x128x128xbf16> to vector<128x128xbf16>
      %cst_147 = arith.constant dense<0.000000e+00> : vector<128x128xf32>
      %135 = tpu.matmul %132, %134, %cst_147 {dimension_numbers = #tpu.dot_dimension_numbers<[1], [0], [0], [1], [0, 0, 1, 1], [], []>} : vector<128x128xbf16>, vector<128x128xbf16>, vector<128x128xf32> -> vector<128x128xf32>
      %c0_148 = arith.constant 0 : index
      %c0_149 = arith.constant 0 : index
      %136 = vector.load %arg9[%c0_148, %c0_149] : memref<128x128xf32, #tpu.memory_space<vmem>>, vector<128x128xf32>
      %137 = arith.addf %136, %135 : vector<128x128xf32>
      %c0_150 = arith.constant 0 : index
      %c0_151 = arith.constant 0 : index
      %138 = vector.load %arg9[%c0_150, %c0_151] : memref<128x128xf32, #tpu.memory_space<vmem>>, vector<128x128xf32>
      tpu.vector_store %arg9[%c0_150, %c0_151], %137 {strides = array<i32>} : memref<128x128xf32, #tpu.memory_space<vmem>>, vector<128x128xf32>,
      %c0_152 = arith.constant 0 : index
      %c33_153 = arith.constant 33 : index
      %c0_154 = arith.constant 0 : index
      %139 = vector.load %arg2[%c0_152, %c33_153, %c0_154] : memref<1x192x128xbf16, #tpu.memory_space<vmem>>, vector<1x128x128xbf16>
      %140 = vector.shape_cast %139 : vector<1x128x128xbf16> to vector<128x128xbf16>
      %c5 = arith.constant 5 : index
      %c0_155 = arith.constant 0 : index
      %c0_156 = arith.constant 0 : index
      %141 = vector.load %arg5[%c5, %c0_155, %c0_156] : memref<27x128x128xbf16, #tpu.memory_space<vmem>>, vector<1x128x128xbf16>
      %142 = vector.shape_cast %141 : vector<1x128x128xbf16> to vector<128x128xbf16>
      %cst_157 = arith.constant dense<0.000000e+00> : vector<128x128xf32>
      %143 = tpu.matmul %140, %142, %cst_157 {dimension_numbers = #tpu.dot_dimension_numbers<[1], [0], [0], [1], [0, 0, 1, 1], [], []>} : vector<128x128xbf16>, vector<128x128xbf16>, vector<128x128xf32> -> vector<128x128xf32>
      %c0_158 = arith.constant 0 : index
      %c0_159 = arith.constant 0 : index
      %144 = vector.load %arg9[%c0_158, %c0_159] : memref<128x128xf32, #tpu.memory_space<vmem>>, vector<128x128xf32>
      %145 = arith.addf %144, %143 : vector<128x128xf32>
      %c0_160 = arith.constant 0 : index
      %c0_161 = arith.constant 0 : index
      %146 = vector.load %arg9[%c0_160, %c0_161] : memref<128x128xf32, #tpu.memory_space<vmem>>, vector<128x128xf32>
      tpu.vector_store %arg9[%c0_160, %c0_161], %145 {strides = array<i32>} : memref<128x128xf32, #tpu.memory_space<vmem>>, vector<128x128xf32>,
      %c0_162 = arith.constant 0 : index
      %c47_163 = arith.constant 47 : index
      %c0_164 = arith.constant 0 : index
      %147 = vector.load %arg2[%c0_162, %c47_163, %c0_164] : memref<1x192x128xbf16, #tpu.memory_space<vmem>>, vector<1x128x128xbf16>
      %148 = vector.shape_cast %147 : vector<1x128x128xbf16> to vector<128x128xbf16>
      %c6 = arith.constant 6 : index
      %c0_165 = arith.constant 0 : index
      %c0_166 = arith.constant 0 : index
      %149 = vector.load %arg5[%c6, %c0_165, %c0_166] : memref<27x128x128xbf16, #tpu.memory_space<vmem>>, vector<1x128x128xbf16>
      %150 = vector.shape_cast %149 : vector<1x128x128xbf16> to vector<128x128xbf16>
      %cst_167 = arith.constant dense<0.000000e+00> : vector<128x128xf32>
      %151 = tpu.matmul %148, %150, %cst_167 {dimension_numbers = #tpu.dot_dimension_numbers<[1], [0], [0], [1], [0, 0, 1, 1], [], []>} : vector<128x128xbf16>, vector<128x128xbf16>, vector<128x128xf32> -> vector<128x128xf32>
      %c0_168 = arith.constant 0 : index
      %c0_169 = arith.constant 0 : index
      %152 = vector.load %arg9[%c0_168, %c0_169] : memref<128x128xf32, #tpu.memory_space<vmem>>, vector<128x128xf32>
      %153 = arith.addf %152, %151 : vector<128x128xf32>
      %c0_170 = arith.constant 0 : index
      %c0_171 = arith.constant 0 : index
      %154 = vector.load %arg9[%c0_170, %c0_171] : memref<128x128xf32, #tpu.memory_space<vmem>>, vector<128x128xf32>
      tpu.vector_store %arg9[%c0_170, %c0_171], %153 {strides = array<i32>} : memref<128x128xf32, #tpu.memory_space<vmem>>, vector<128x128xf32>,
      %c0_172 = arith.constant 0 : index
      %c48_173 = arith.constant 48 : index
      %c0_174 = arith.constant 0 : index
      %155 = vector.load %arg2[%c0_172, %c48_173, %c0_174] : memref<1x192x128xbf16, #tpu.memory_space<vmem>>, vector<1x128x128xbf16>
      %156 = vector.shape_cast %155 : vector<1x128x128xbf16> to vector<128x128xbf16>
      %c7 = arith.constant 7 : index
      %c0_175 = arith.constant 0 : index
      %c0_176 = arith.constant 0 : index
      %157 = vector.load %arg5[%c7, %c0_175, %c0_176] : memref<27x128x128xbf16, #tpu.memory_space<vmem>>, vector<1x128x128xbf16>
      %158 = vector.shape_cast %157 : vector<1x128x128xbf16> to vector<128x128xbf16>
      %cst_177 = arith.constant dense<0.000000e+00> : vector<128x128xf32>
      %159 = tpu.matmul %156, %158, %cst_177 {dimension_numbers = #tpu.dot_dimension_numbers<[1], [0], [0], [1], [0, 0, 1, 1], [], []>} : vector<128x128xbf16>, vector<128x128xbf16>, vector<128x128xf32> -> vector<128x128xf32>
      %c0_178 = arith.constant 0 : index
      %c0_179 = arith.constant 0 : index
      %160 = vector.load %arg9[%c0_178, %c0_179] : memref<128x128xf32, #tpu.memory_space<vmem>>, vector<128x128xf32>
      %161 = arith.addf %160, %159 : vector<128x128xf32>
      %c0_180 = arith.constant 0 : index
      %c0_181 = arith.constant 0 : index
      %162 = vector.load %arg9[%c0_180, %c0_181] : memref<128x128xf32, #tpu.memory_space<vmem>>, vector<128x128xf32>
      tpu.vector_store %arg9[%c0_180, %c0_181], %161 {strides = array<i32>} : memref<128x128xf32, #tpu.memory_space<vmem>>, vector<128x128xf32>,
      %c0_182 = arith.constant 0 : index
      %c49_183 = arith.constant 49 : index
      %c0_184 = arith.constant 0 : index
      %163 = vector.load %arg2[%c0_182, %c49_183, %c0_184] : memref<1x192x128xbf16, #tpu.memory_space<vmem>>, vector<1x128x128xbf16>
      %164 = vector.shape_cast %163 : vector<1x128x128xbf16> to vector<128x128xbf16>
      %c8 = arith.constant 8 : index
      %c0_185 = arith.constant 0 : index
      %c0_186 = arith.constant 0 : index
      %165 = vector.load %arg5[%c8, %c0_185, %c0_186] : memref<27x128x128xbf16, #tpu.memory_space<vmem>>, vector<1x128x128xbf16>
      %166 = vector.shape_cast %165 : vector<1x128x128xbf16> to vector<128x128xbf16>
      %cst_187 = arith.constant dense<0.000000e+00> : vector<128x128xf32>
      %167 = tpu.matmul %164, %166, %cst_187 {dimension_numbers = #tpu.dot_dimension_numbers<[1], [0], [0], [1], [0, 0, 1, 1], [], []>} : vector<128x128xbf16>, vector<128x128xbf16>, vector<128x128xf32> -> vector<128x128xf32>
      %c0_188 = arith.constant 0 : index
      %c0_189 = arith.constant 0 : index
      %168 = vector.load %arg9[%c0_188, %c0_189] : memref<128x128xf32, #tpu.memory_space<vmem>>, vector<128x128xf32>
      %169 = arith.addf %168, %167 : vector<128x128xf32>
      %c0_190 = arith.constant 0 : index
      %c0_191 = arith.constant 0 : index
      %170 = vector.load %arg9[%c0_190, %c0_191] : memref<128x128xf32, #tpu.memory_space<vmem>>, vector<128x128xf32>
      tpu.vector_store %arg9[%c0_190, %c0_191], %169 {strides = array<i32>} : memref<128x128xf32, #tpu.memory_space<vmem>>, vector<128x128xf32>,
    } else {
    }
    %c3_i32 = arith.constant 3 : i32
    %73 = arith.cmpi slt, %arg1, %c3_i32 : i32
    %74 = arith.extui %73 : i1 to i32
    %c0_i32_81 = arith.constant 0 : i32
    %75 = arith.cmpi ne, %74, %c0_i32_81 : i32
    scf.if %75 {
      %c0_101 = arith.constant 0 : index
      %c15_102 = arith.constant 15 : index
      %c0_103 = arith.constant 0 : index
      %99 = vector.load %arg4[%c0_101, %c15_102, %c0_103] : memref<1x192x128xbf16, #tpu.memory_space<vmem>>, vector<1x128x128xbf16>
      %100 = vector.shape_cast %99 : vector<1x128x128xbf16> to vector<128x128xbf16>
      %c18 = arith.constant 18 : index
      %c0_104 = arith.constant 0 : index
      %c0_105 = arith.constant 0 : index
      %101 = vector.load %arg5[%c18, %c0_104, %c0_105] : memref<27x128x128xbf16, #tpu.memory_space<vmem>>, vector<1x128x128xbf16>
      %102 = vector.shape_cast %101 : vector<1x128x128xbf16> to vector<128x128xbf16>
      %cst_106 = arith.constant dense<0.000000e+00> : vector<128x128xf32>
      %103 = tpu.matmul %100, %102, %cst_106 {dimension_numbers = #tpu.dot_dimension_numbers<[1], [0], [0], [1], [0, 0, 1, 1], [], []>} : vector<128x128xbf16>, vector<128x128xbf16>, vector<128x128xf32> -> vector<128x128xf32>
      %c0_107 = arith.constant 0 : index
      %c0_108 = arith.constant 0 : index
      %104 = vector.load %arg9[%c0_107, %c0_108] : memref<128x128xf32, #tpu.memory_space<vmem>>, vector<128x128xf32>
      %105 = arith.addf %104, %103 : vector<128x128xf32>
      %c0_109 = arith.constant 0 : index
      %c0_110 = arith.constant 0 : index
      %106 = vector.load %arg9[%c0_109, %c0_110] : memref<128x128xf32, #tpu.memory_space<vmem>>, vector<128x128xf32>
      tpu.vector_store %arg9[%c0_109, %c0_110], %105 {strides = array<i32>} : memref<128x128xf32, #tpu.memory_space<vmem>>, vector<128x128xf32>,
      %c0_111 = arith.constant 0 : index
      %c16_112 = arith.constant 16 : index
      %c0_113 = arith.constant 0 : index
      %107 = vector.load %arg4[%c0_111, %c16_112, %c0_113] : memref<1x192x128xbf16, #tpu.memory_space<vmem>>, vector<1x128x128xbf16>
      %108 = vector.shape_cast %107 : vector<1x128x128xbf16> to vector<128x128xbf16>
      %c19 = arith.constant 19 : index
      %c0_114 = arith.constant 0 : index
      %c0_115 = arith.constant 0 : index
      %109 = vector.load %arg5[%c19, %c0_114, %c0_115] : memref<27x128x128xbf16, #tpu.memory_space<vmem>>, vector<1x128x128xbf16>
      %110 = vector.shape_cast %109 : vector<1x128x128xbf16> to vector<128x128xbf16>
      %cst_116 = arith.constant dense<0.000000e+00> : vector<128x128xf32>
      %111 = tpu.matmul %108, %110, %cst_116 {dimension_numbers = #tpu.dot_dimension_numbers<[1], [0], [0], [1], [0, 0, 1, 1], [], []>} : vector<128x128xbf16>, vector<128x128xbf16>, vector<128x128xf32> -> vector<128x128xf32>
      %c0_117 = arith.constant 0 : index
      %c0_118 = arith.constant 0 : index
      %112 = vector.load %arg9[%c0_117, %c0_118] : memref<128x128xf32, #tpu.memory_space<vmem>>, vector<128x128xf32>
      %113 = arith.addf %112, %111 : vector<128x128xf32>
      %c0_119 = arith.constant 0 : index
      %c0_120 = arith.constant 0 : index
      %114 = vector.load %arg9[%c0_119, %c0_120] : memref<128x128xf32, #tpu.memory_space<vmem>>, vector<128x128xf32>
      tpu.vector_store %arg9[%c0_119, %c0_120], %113 {strides = array<i32>} : memref<128x128xf32, #tpu.memory_space<vmem>>, vector<128x128xf32>,
      %c0_121 = arith.constant 0 : index
      %c17_122 = arith.constant 17 : index
      %c0_123 = arith.constant 0 : index
      %115 = vector.load %arg4[%c0_121, %c17_122, %c0_123] : memref<1x192x128xbf16, #tpu.memory_space<vmem>>, vector<1x128x128xbf16>
      %116 = vector.shape_cast %115 : vector<1x128x128xbf16> to vector<128x128xbf16>
      %c20 = arith.constant 20 : index
      %c0_124 = arith.constant 0 : index
      %c0_125 = arith.constant 0 : index
      %117 = vector.load %arg5[%c20, %c0_124, %c0_125] : memref<27x128x128xbf16, #tpu.memory_space<vmem>>, vector<1x128x128xbf16>
      %118 = vector.shape_cast %117 : vector<1x128x128xbf16> to vector<128x128xbf16>
      %cst_126 = arith.constant dense<0.000000e+00> : vector<128x128xf32>
      %119 = tpu.matmul %116, %118, %cst_126 {dimension_numbers = #tpu.dot_dimension_numbers<[1], [0], [0], [1], [0, 0, 1, 1], [], []>} : vector<128x128xbf16>, vector<128x128xbf16>, vector<128x128xf32> -> vector<128x128xf32>
      %c0_127 = arith.constant 0 : index
      %c0_128 = arith.constant 0 : index
      %120 = vector.load %arg9[%c0_127, %c0_128] : memref<128x128xf32, #tpu.memory_space<vmem>>, vector<128x128xf32>
      %121 = arith.addf %120, %119 : vector<128x128xf32>
      %c0_129 = arith.constant 0 : index
      %c0_130 = arith.constant 0 : index
      %122 = vector.load %arg9[%c0_129, %c0_130] : memref<128x128xf32, #tpu.memory_space<vmem>>, vector<128x128xf32>
      tpu.vector_store %arg9[%c0_129, %c0_130], %121 {strides = array<i32>} : memref<128x128xf32, #tpu.memory_space<vmem>>, vector<128x128xf32>,
      %c0_131 = arith.constant 0 : index
      %c31_132 = arith.constant 31 : index
      %c0_133 = arith.constant 0 : index
      %123 = vector.load %arg4[%c0_131, %c31_132, %c0_133] : memref<1x192x128xbf16, #tpu.memory_space<vmem>>, vector<1x128x128xbf16>
      %124 = vector.shape_cast %123 : vector<1x128x128xbf16> to vector<128x128xbf16>
      %c21 = arith.constant 21 : index
      %c0_134 = arith.constant 0 : index
      %c0_135 = arith.constant 0 : index
      %125 = vector.load %arg5[%c21, %c0_134, %c0_135] : memref<27x128x128xbf16, #tpu.memory_space<vmem>>, vector<1x128x128xbf16>
      %126 = vector.shape_cast %125 : vector<1x128x128xbf16> to vector<128x128xbf16>
      %cst_136 = arith.constant dense<0.000000e+00> : vector<128x128xf32>
      %127 = tpu.matmul %124, %126, %cst_136 {dimension_numbers = #tpu.dot_dimension_numbers<[1], [0], [0], [1], [0, 0, 1, 1], [], []>} : vector<128x128xbf16>, vector<128x128xbf16>, vector<128x128xf32> -> vector<128x128xf32>
      %c0_137 = arith.constant 0 : index
      %c0_138 = arith.constant 0 : index
      %128 = vector.load %arg9[%c0_137, %c0_138] : memref<128x128xf32, #tpu.memory_space<vmem>>, vector<128x128xf32>
      %129 = arith.addf %128, %127 : vector<128x128xf32>
      %c0_139 = arith.constant 0 : index
      %c0_140 = arith.constant 0 : index
      %130 = vector.load %arg9[%c0_139, %c0_140] : memref<128x128xf32, #tpu.memory_space<vmem>>, vector<128x128xf32>
      tpu.vector_store %arg9[%c0_139, %c0_140], %129 {strides = array<i32>} : memref<128x128xf32, #tpu.memory_space<vmem>>, vector<128x128xf32>,
      %c0_141 = arith.constant 0 : index
      %c32_142 = arith.constant 32 : index
      %c0_143 = arith.constant 0 : index
      %131 = vector.load %arg4[%c0_141, %c32_142, %c0_143] : memref<1x192x128xbf16, #tpu.memory_space<vmem>>, vector<1x128x128xbf16>
      %132 = vector.shape_cast %131 : vector<1x128x128xbf16> to vector<128x128xbf16>
      %c22 = arith.constant 22 : index
      %c0_144 = arith.constant 0 : index
      %c0_145 = arith.constant 0 : index
      %133 = vector.load %arg5[%c22, %c0_144, %c0_145] : memref<27x128x128xbf16, #tpu.memory_space<vmem>>, vector<1x128x128xbf16>
      %134 = vector.shape_cast %133 : vector<1x128x128xbf16> to vector<128x128xbf16>
      %cst_146 = arith.constant dense<0.000000e+00> : vector<128x128xf32>
      %135 = tpu.matmul %132, %134, %cst_146 {dimension_numbers = #tpu.dot_dimension_numbers<[1], [0], [0], [1], [0, 0, 1, 1], [], []>} : vector<128x128xbf16>, vector<128x128xbf16>, vector<128x128xf32> -> vector<128x128xf32>
      %c0_147 = arith.constant 0 : index
      %c0_148 = arith.constant 0 : index
      %136 = vector.load %arg9[%c0_147, %c0_148] : memref<128x128xf32, #tpu.memory_space<vmem>>, vector<128x128xf32>
      %137 = arith.addf %136, %135 : vector<128x128xf32>
      %c0_149 = arith.constant 0 : index
      %c0_150 = arith.constant 0 : index
      %138 = vector.load %arg9[%c0_149, %c0_150] : memref<128x128xf32, #tpu.memory_space<vmem>>, vector<128x128xf32>
      tpu.vector_store %arg9[%c0_149, %c0_150], %137 {strides = array<i32>} : memref<128x128xf32, #tpu.memory_space<vmem>>, vector<128x128xf32>,
      %c0_151 = arith.constant 0 : index
      %c33_152 = arith.constant 33 : index
      %c0_153 = arith.constant 0 : index
      %139 = vector.load %arg4[%c0_151, %c33_152, %c0_153] : memref<1x192x128xbf16, #tpu.memory_space<vmem>>, vector<1x128x128xbf16>
      %140 = vector.shape_cast %139 : vector<1x128x128xbf16> to vector<128x128xbf16>
      %c23 = arith.constant 23 : index
      %c0_154 = arith.constant 0 : index
      %c0_155 = arith.constant 0 : index
      %141 = vector.load %arg5[%c23, %c0_154, %c0_155] : memref<27x128x128xbf16, #tpu.memory_space<vmem>>, vector<1x128x128xbf16>
      %142 = vector.shape_cast %141 : vector<1x128x128xbf16> to vector<128x128xbf16>
      %cst_156 = arith.constant dense<0.000000e+00> : vector<128x128xf32>
      %143 = tpu.matmul %140, %142, %cst_156 {dimension_numbers = #tpu.dot_dimension_numbers<[1], [0], [0], [1], [0, 0, 1, 1], [], []>} : vector<128x128xbf16>, vector<128x128xbf16>, vector<128x128xf32> -> vector<128x128xf32>
      %c0_157 = arith.constant 0 : index
      %c0_158 = arith.constant 0 : index
      %144 = vector.load %arg9[%c0_157, %c0_158] : memref<128x128xf32, #tpu.memory_space<vmem>>, vector<128x128xf32>
      %145 = arith.addf %144, %143 : vector<128x128xf32>
      %c0_159 = arith.constant 0 : index
      %c0_160 = arith.constant 0 : index
      %146 = vector.load %arg9[%c0_159, %c0_160] : memref<128x128xf32, #tpu.memory_space<vmem>>, vector<128x128xf32>
      tpu.vector_store %arg9[%c0_159, %c0_160], %145 {strides = array<i32>} : memref<128x128xf32, #tpu.memory_space<vmem>>, vector<128x128xf32>,
      %c0_161 = arith.constant 0 : index
      %c47_162 = arith.constant 47 : index
      %c0_163 = arith.constant 0 : index
      %147 = vector.load %arg4[%c0_161, %c47_162, %c0_163] : memref<1x192x128xbf16, #tpu.memory_space<vmem>>, vector<1x128x128xbf16>
      %148 = vector.shape_cast %147 : vector<1x128x128xbf16> to vector<128x128xbf16>
      %c24 = arith.constant 24 : index
      %c0_164 = arith.constant 0 : index
      %c0_165 = arith.constant 0 : index
      %149 = vector.load %arg5[%c24, %c0_164, %c0_165] : memref<27x128x128xbf16, #tpu.memory_space<vmem>>, vector<1x128x128xbf16>
      %150 = vector.shape_cast %149 : vector<1x128x128xbf16> to vector<128x128xbf16>
      %cst_166 = arith.constant dense<0.000000e+00> : vector<128x128xf32>
      %151 = tpu.matmul %148, %150, %cst_166 {dimension_numbers = #tpu.dot_dimension_numbers<[1], [0], [0], [1], [0, 0, 1, 1], [], []>} : vector<128x128xbf16>, vector<128x128xbf16>, vector<128x128xf32> -> vector<128x128xf32>
      %c0_167 = arith.constant 0 : index
      %c0_168 = arith.constant 0 : index
      %152 = vector.load %arg9[%c0_167, %c0_168] : memref<128x128xf32, #tpu.memory_space<vmem>>, vector<128x128xf32>
      %153 = arith.addf %152, %151 : vector<128x128xf32>
      %c0_169 = arith.constant 0 : index
      %c0_170 = arith.constant 0 : index
      %154 = vector.load %arg9[%c0_169, %c0_170] : memref<128x128xf32, #tpu.memory_space<vmem>>, vector<128x128xf32>
      tpu.vector_store %arg9[%c0_169, %c0_170], %153 {strides = array<i32>} : memref<128x128xf32, #tpu.memory_space<vmem>>, vector<128x128xf32>,
      %c0_171 = arith.constant 0 : index
      %c48_172 = arith.constant 48 : index
      %c0_173 = arith.constant 0 : index
      %155 = vector.load %arg4[%c0_171, %c48_172, %c0_173] : memref<1x192x128xbf16, #tpu.memory_space<vmem>>, vector<1x128x128xbf16>
      %156 = vector.shape_cast %155 : vector<1x128x128xbf16> to vector<128x128xbf16>
      %c25 = arith.constant 25 : index
      %c0_174 = arith.constant 0 : index
      %c0_175 = arith.constant 0 : index
      %157 = vector.load %arg5[%c25, %c0_174, %c0_175] : memref<27x128x128xbf16, #tpu.memory_space<vmem>>, vector<1x128x128xbf16>
      %158 = vector.shape_cast %157 : vector<1x128x128xbf16> to vector<128x128xbf16>
      %cst_176 = arith.constant dense<0.000000e+00> : vector<128x128xf32>
      %159 = tpu.matmul %156, %158, %cst_176 {dimension_numbers = #tpu.dot_dimension_numbers<[1], [0], [0], [1], [0, 0, 1, 1], [], []>} : vector<128x128xbf16>, vector<128x128xbf16>, vector<128x128xf32> -> vector<128x128xf32>
      %c0_177 = arith.constant 0 : index
      %c0_178 = arith.constant 0 : index
      %160 = vector.load %arg9[%c0_177, %c0_178] : memref<128x128xf32, #tpu.memory_space<vmem>>, vector<128x128xf32>
      %161 = arith.addf %160, %159 : vector<128x128xf32>
      %c0_179 = arith.constant 0 : index
      %c0_180 = arith.constant 0 : index
      %162 = vector.load %arg9[%c0_179, %c0_180] : memref<128x128xf32, #tpu.memory_space<vmem>>, vector<128x128xf32>
      tpu.vector_store %arg9[%c0_179, %c0_180], %161 {strides = array<i32>} : memref<128x128xf32, #tpu.memory_space<vmem>>, vector<128x128xf32>,
      %c0_181 = arith.constant 0 : index
      %c49_182 = arith.constant 49 : index
      %c0_183 = arith.constant 0 : index
      %163 = vector.load %arg4[%c0_181, %c49_182, %c0_183] : memref<1x192x128xbf16, #tpu.memory_space<vmem>>, vector<1x128x128xbf16>
      %164 = vector.shape_cast %163 : vector<1x128x128xbf16> to vector<128x128xbf16>
      %c26 = arith.constant 26 : index
      %c0_184 = arith.constant 0 : index
      %c0_185 = arith.constant 0 : index
      %165 = vector.load %arg5[%c26, %c0_184, %c0_185] : memref<27x128x128xbf16, #tpu.memory_space<vmem>>, vector<1x128x128xbf16>
      %166 = vector.shape_cast %165 : vector<1x128x128xbf16> to vector<128x128xbf16>
      %cst_186 = arith.constant dense<0.000000e+00> : vector<128x128xf32>
      %167 = tpu.matmul %164, %166, %cst_186 {dimension_numbers = #tpu.dot_dimension_numbers<[1], [0], [0], [1], [0, 0, 1, 1], [], []>} : vector<128x128xbf16>, vector<128x128xbf16>, vector<128x128xf32> -> vector<128x128xf32>
      %c0_187 = arith.constant 0 : index
      %c0_188 = arith.constant 0 : index
      %168 = vector.load %arg9[%c0_187, %c0_188] : memref<128x128xf32, #tpu.memory_space<vmem>>, vector<128x128xf32>
      %169 = arith.addf %168, %167 : vector<128x128xf32>
      %c0_189 = arith.constant 0 : index
      %c0_190 = arith.constant 0 : index
      %170 = vector.load %arg9[%c0_189, %c0_190] : memref<128x128xf32, #tpu.memory_space<vmem>>, vector<128x128xf32>
      tpu.vector_store %arg9[%c0_189, %c0_190], %169 {strides = array<i32>} : memref<128x128xf32, #tpu.memory_space<vmem>>, vector<128x128xf32>,
    } else {
    }
    %c0_82 = arith.constant 0 : index
    %c0_83 = arith.constant 0 : index
    %76 = vector.load %arg9[%c0_82, %c0_83] : memref<128x128xf32, #tpu.memory_space<vmem>>, vector<128x128xf32>
    %77 = vector.shape_cast %76 : vector<128x128xf32> to vector<8x16x128xf32>
    %c0_84 = arith.constant 0 : index
    %c0_85 = arith.constant 0 : index
    %c0_86 = arith.constant 0 : index
    %78 = vector.load %arg6[%c0_84, %c0_85, %c0_86] : memref<1x16x128xf32, #tpu.memory_space<vmem>>, vector<1x16x128xf32>
    %79 = vector.broadcast %78 : vector<1x16x128xf32> to vector<8x16x128xf32>
    %80 = arith.mulf %77, %79 : vector<8x16x128xf32>
    %c0_87 = arith.constant 0 : index
    %c0_88 = arith.constant 0 : index
    %c0_89 = arith.constant 0 : index
    %81 = vector.load %arg7[%c0_87, %c0_88, %c0_89] : memref<1x16x128xf32, #tpu.memory_space<vmem>>, vector<1x16x128xf32>
    %82 = vector.broadcast %81 : vector<1x16x128xf32> to vector<8x16x128xf32>
    %83 = arith.addf %80, %82 : vector<8x16x128xf32>
    %cst_90 = arith.constant 0.000000e+00 : f32
    %84 = vector.broadcast %cst_90 : f32 to vector<8x16x128xf32>
    %85 = arith.maximumf %83, %84 : vector<8x16x128xf32>
    %86 = arith.truncf %85 : vector<8x16x128xf32> to vector<8x16x128xbf16>
    %87 = vector.shape_cast %86 : vector<8x16x128xbf16> to vector<128x128xbf16>
    %cst_91 = arith.constant 0.000000e+00 : bf16
    %88 = vector.broadcast %cst_91 : bf16 to vector<32x128xbf16>
    %c0_92 = arith.constant 0 : index
    %c0_93 = arith.constant 0 : index
    %c0_94 = arith.constant 0 : index
    %89 = vector.load %arg8[%c0_92, %c0_93, %c0_94] : memref<1x192x128xbf16, #tpu.memory_space<vmem>>, vector<1x32x128xbf16>
    %90 = vector.shape_cast %89 : vector<1x32x128xbf16> to vector<32x128xbf16>
    %91 = vector.shape_cast %88 : vector<32x128xbf16> to vector<1x32x128xbf16>
    tpu.vector_store %arg8[%c0_92, %c0_93, %c0_94], %91 {strides = array<i32>} : memref<1x192x128xbf16, #tpu.memory_space<vmem>>, vector<1x32x128xbf16>,
    %c0_95 = arith.constant 0 : index
    %c32_96 = arith.constant 32 : index
    %c0_97 = arith.constant 0 : index
    %92 = vector.load %arg8[%c0_95, %c32_96, %c0_97] : memref<1x192x128xbf16, #tpu.memory_space<vmem>>, vector<1x128x128xbf16>
    %93 = vector.shape_cast %92 : vector<1x128x128xbf16> to vector<128x128xbf16>
    %94 = vector.shape_cast %87 : vector<128x128xbf16> to vector<1x128x128xbf16>
    tpu.vector_store %arg8[%c0_95, %c32_96, %c0_97], %94 {strides = array<i32>} : memref<1x192x128xbf16, #tpu.memory_space<vmem>>, vector<1x128x128xbf16>,
    %cst_98 = arith.constant 0.000000e+00 : bf16
    %95 = vector.broadcast %cst_98 : bf16 to vector<32x128xbf16>
    %c0_99 = arith.constant 0 : index
    %c160 = arith.constant 160 : index
    %c0_100 = arith.constant 0 : index
    %96 = vector.load %arg8[%c0_99, %c160, %c0_100] : memref<1x192x128xbf16, #tpu.memory_space<vmem>>, vector<1x32x128xbf16>
    %97 = vector.shape_cast %96 : vector<1x32x128xbf16> to vector<32x128xbf16>
    %98 = vector.shape_cast %95 : vector<32x128xbf16> to vector<1x32x128xbf16>
    tpu.vector_store %arg8[%c0_99, %c160, %c0_100], %98 {strides = array<i32>} : memref<1x192x128xbf16, #tpu.memory_space<vmem>>, vector<1x32x128xbf16>,
    return
  }
  func.func @transform_0(%arg0: i32, %arg1: i32) -> (i32, i32, i32) {
    %c4_i32 = arith.constant 4 : i32
    %0 = arith.muli %arg0, %c4_i32 : i32
    %c1_i32 = arith.constant 1 : i32
    %1 = arith.subi %arg1, %c1_i32 : i32
    %c0_i32 = arith.constant 0 : i32
    %2 = arith.addi %1, %c0_i32 : i32
    %c0_i32_0 = arith.constant 0 : i32
    %c3_i32 = arith.constant 3 : i32
    %3 = arith.maxsi %c0_i32_0, %2 : i32
    %4 = arith.minsi %c3_i32, %3 : i32
    %5 = arith.addi %0, %4 : i32
    %c0_i32_1 = arith.constant 0 : i32
    %c0_i32_2 = arith.constant 0 : i32
    %c0_i32_3 = arith.constant 0 : i32
    return %5, %c0_i32_1, %c0_i32_2 : i32, i32, i32
  }
  func.func @transform_1(%arg0: i32, %arg1: i32) -> (i32, i32, i32) {
    %c4_i32 = arith.constant 4 : i32
    %0 = arith.muli %arg0, %c4_i32 : i32
    %c1_i32 = arith.constant 1 : i32
    %1 = arith.subi %arg1, %c1_i32 : i32
    %c1_i32_0 = arith.constant 1 : i32
    %2 = arith.addi %1, %c1_i32_0 : i32
    %c0_i32 = arith.constant 0 : i32
    %c3_i32 = arith.constant 3 : i32
    %3 = arith.maxsi %c0_i32, %2 : i32
    %4 = arith.minsi %c3_i32, %3 : i32
    %5 = arith.addi %0, %4 : i32
    %c0_i32_1 = arith.constant 0 : i32
    %c0_i32_2 = arith.constant 0 : i32
    %c0_i32_3 = arith.constant 0 : i32
    return %5, %c0_i32_1, %c0_i32_2 : i32, i32, i32
  }
  func.func @transform_2(%arg0: i32, %arg1: i32) -> (i32, i32, i32) {
    %c4_i32 = arith.constant 4 : i32
    %0 = arith.muli %arg0, %c4_i32 : i32
    %c1_i32 = arith.constant 1 : i32
    %1 = arith.subi %arg1, %c1_i32 : i32
    %c2_i32 = arith.constant 2 : i32
    %2 = arith.addi %1, %c2_i32 : i32
    %c0_i32 = arith.constant 0 : i32
    %c3_i32 = arith.constant 3 : i32
    %3 = arith.maxsi %c0_i32, %2 : i32
    %4 = arith.minsi %c3_i32, %3 : i32
    %5 = arith.addi %0, %4 : i32
    %c0_i32_0 = arith.constant 0 : i32
    %c0_i32_1 = arith.constant 0 : i32
    %c0_i32_2 = arith.constant 0 : i32
    return %5, %c0_i32_0, %c0_i32_1 : i32, i32, i32
  }
  func.func @transform_3(%arg0: i32, %arg1: i32) -> (i32, i32, i32) {
    %c0_i32 = arith.constant 0 : i32
    %c0_i32_0 = arith.constant 0 : i32
    %c0_i32_1 = arith.constant 0 : i32
    %c0_i32_2 = arith.constant 0 : i32
    return %c0_i32, %c0_i32_0, %c0_i32_1 : i32, i32, i32
  }
  func.func @transform_4(%arg0: i32, %arg1: i32) -> (i32, i32, i32) {
    %c0_i32 = arith.constant 0 : i32
    %c0_i32_0 = arith.constant 0 : i32
    %c0_i32_1 = arith.constant 0 : i32
    %c0_i32_2 = arith.constant 0 : i32
    return %c0_i32, %c0_i32_0, %c0_i32_1 : i32, i32, i32
  }
  func.func @transform_5(%arg0: i32, %arg1: i32) -> (i32, i32, i32) {
    %c0_i32 = arith.constant 0 : i32
    %c0_i32_0 = arith.constant 0 : i32
    %c0_i32_1 = arith.constant 0 : i32
    %c0_i32_2 = arith.constant 0 : i32
    return %c0_i32, %c0_i32_0, %c0_i32_1 : i32, i32, i32
  }
  func.func @transform_6(%arg0: i32, %arg1: i32) -> (i32, i32, i32) {
    %c4_i32 = arith.constant 4 : i32
    %0 = arith.muli %arg0, %c4_i32 : i32
    %1 = arith.addi %0, %arg1 : i32
    %c0_i32 = arith.constant 0 : i32
    %c0_i32_0 = arith.constant 0 : i32
    %c0_i32_1 = arith.constant 0 : i32
    return %1, %c0_i32, %c0_i32_0 : i32, i32, i32
  }
}

</mosaic_0001>

<bundles_post_ra>
// kernel: basic_block_forward.3
= control target key start
LH: loop header
LB: loop body
LE: loop exit
PB: predicated region body
PF: predicated region fallthrough
CT: control target
= control target key end

     0   :  { %s13081_s24 = smov 0   ;;  %s13083_s25 = smov 0   ;;  %s14296_s0 = inlined_call_operand.vmem [shape: bf16[8,192,128], index: 0, kind: input, shape index: {}, may-alias: {0,1,2}]   ;;  %s14297_s1 = inlined_call_operand.vmem [shape: bf16[8,192,128], index: 1, kind: input, shape index: {}, may-alias: {0,1,2}]   ;;  %s14298_s2 = inlined_call_operand.vmem [shape: bf16[8,192,128], index: 2, kind: input, shape index: {}, may-alias: {0,1,2}]   ;;  %s14299_s3 = inlined_call_operand.vmem [shape: bf16[8,192,128], index: 3, kind: input, shape index: {}]   ;;  %s14300_s4 = inlined_call_operand.vmem [shape: bf16[27,128,128], index: 4, kind: input, shape index: {}]   ;;  %s14301_s5 = inlined_call_operand.vmem [shape: f32[1,16,128], index: 5, kind: input, shape index: {}]   ;;  %s14302_s6 = inlined_call_operand.vmem [shape: f32[1,16,128], index: 6, kind: input, shape index: {}]   ;;  %s14303_s7 = inlined_call_operand.vmem [shape: f32[8,128,128], index: 7, kind: output, shape index: {}]  }
   0x1   :  { %s13085_s26 = smov 0   ;;  %s13087_s27 = smov 0  }
   0x2   :  { %s13089_s28 = smov 0  }
   0x3 LB: > { %s26_s29 = sadd.s32 1, %s13031_s26  ;;  %s29_s30 = sadd.s32 1, %s13035_s27  ;;  %s13039_s28 = sphi %s13089_s28, %s17_s28   ;;  %s13035_s27 = sphi %s13087_s27, %s14307_s27   ;;  %s13031_s26 = sphi %s13085_s26, %s14306_s26   ;;  %s13027_s25 = sphi %s13083_s25, %s14305_s25   ;;  %s13023_s24 = sphi %s13081_s24, %s14304_s24  }
   0x4   : > { %p27_p0 = scmp.ge.s32.totalorder %s26_s29, 4  ;;  %p9582_p1 = scmp.ge.s32.totalorder %s13039_s28, 1 }
   0x5   : > { %p371_p2 = scmp.lt.s32.totalorder %s13039_s28, 9 }
   0x6   : > { %s14309_s29 = smov (%p27_p0, %s26_s29), 0  ;;  %s14311_s30 = smov (!%p27_p0, %s29_s30), %s13035_s27 }
   0x7   : > { %p372_p3 = pnand %p9582_p1, %p371_p2  ;;  %p31_p4 = scmp.ge.s32.totalorder %s14311_s30, 2 }
   0x8   : > { %v12551_v0 = vld [vmem:[%s14300_s4 + $0x240] sm:$0xff] (!%p372_p3)   ;;  %s13116_s10 = sshll.u32 (!%p372_p3), %s13027_s25, 2  ;;  %s9584_s13 = sadd.s32 (!%p372_p3), 4294967295, %s13023_s24  ;;  %v12553_v2 = vld [vmem:[%s14300_s4 + $0x248] sm:$0xff] (!%p372_p3)   ;;  %v12555_v4 = vld [vmem:[%s14300_s4 + $0x250] sm:$0xff] (!%p372_p3)  }
   0x9   : > { %s14313_s30 = smov (%p31_p4, %s14311_s30), 0  ;;  %375 = sbr.rel (%p372_p3) target bundleno = 1188 (0x4a4), region = 48 }
   0xa   : > { %v12552_v1 = vld [vmem:[%s14300_s4 + $0x340] sm:$0xff] (!%p372_p3)   ;;  %10971 = vmatprep.subr.bf16.mxu1 (!%p372_p3), %v12551_v0  ;;  %p444_p5 = scmp.gt.s32.totalorder (!%p372_p3), %s9584_s13, 0  ;;  %v12554_v3 = vld [vmem:[%s14300_s4 + $0x348] sm:$0xff] (!%p372_p3)   ;;  %p9585_p6 = scmp.lt.s32.totalorder (!%p372_p3), %s9584_s13, 3  ;;  %v12556_v5 = vld [vmem:[%s14300_s4 + $0x350] sm:$0xff] (!%p372_p3)  }
   0xb   : > { %11099 = vmatprep.subr.bf16.mxu0 (!%p372_p3), %v12552_v1  ;;  %10972 = vmatpush3.bf16.msra.mxu1 (!%p372_p3), %v12551_v0  ;;  %p462_p7 = scmp.gt.s32.totalorder (!%p372_p3), %s13023_s24, 0  ;;  %v12557_v6 = vld [vmem:[%s14300_s4 + $0x258] sm:$0xff] (!%p372_p3)   ;;  %p9592_p8 = scmp.lt.s32.totalorder (!%p372_p3), %s13023_s24, 3  ;;  %v12559_v8 = vld [vmem:[%s14300_s4 + $0x260] sm:$0xff] (!%p372_p3)   ;;  %v12561_v10 = vld [vmem:[%s14300_s4 + $0x268] sm:$0xff] (!%p372_p3)  }
   0xc   : > { %11100 = vmatpush3.bf16.msra.mxu0 (!%p372_p3), %v12552_v1  ;;  %10973 = vmatprep.subr.bf16.mxu1 (!%p372_p3), %v12553_v2  ;;  %v12558_v7 = vld [vmem:[%s14300_s4 + $0x358] sm:$0xff] (!%p372_p3)   ;;  %v12560_v9 = vld [vmem:[%s14300_s4 + $0x360] sm:$0xff] (!%p372_p3)   ;;  %s498_s19 = sadd.s32 (!%p372_p3), %s13023_s24, %s13116_s10  ;;  %v12562_v11 = vld [vmem:[%s14300_s4 + $0x368] sm:$0xff] (!%p372_p3)   ;;  %vm593_vm0 = vsmask.f32 (!%p372_p3), 4352  ;;  %p9904_p1 = scmp.le.s32.totalorder (!%p372_p3), %s13023_s24, 0 }
   0xd   : > { %11101 = vmatprep.subr.bf16.mxu0 (!%p372_p3), %v12554_v3  ;;  %v12563_v12 = vld [vmem:[%s14300_s4 + $0x270] sm:$0xff] (!%p372_p3)   ;;  %p499_p13 = scmp.lt.s32.totalorder (!%p372_p3), %s498_s19, 7  ;;  %v12565_v15 = vld [vmem:[%s14300_s4 + $0x278] sm:$0xff] (!%p372_p3)   ;;  %v12571_v30 = vld [vmem:[%s14300_s4 + $0x280] sm:$0xff] (!%p372_p3)   ;;  %vm1194_vm1 = vsmask.f32 (!%p372_p3), 7424 }
   0xe   : > { %v12564_v13 = vld [vmem:[%s14300_s4 + $0x370] sm:$0xff] (!%p372_p3)   ;;  %v12566_v17 = vld [vmem:[%s14300_s4 + $0x378] sm:$0xff] (!%p372_p3)   ;;  %v12573_v31 = vld [vmem:[%s14300_s4 + $0x380] sm:$0xff] (!%p372_p3)  }
   0xf   : > { %10974 = vmatpush3.bf16.msra.mxu1 (!%p372_p3), %v12553_v2  ;;  %v12574_v45 = vld [vmem:[%s14300_s4 + $0x288] sm:$0xff] (!%p372_p3)   ;;  %v12579_v55 = vld [vmem:[%s14300_s4 + $0x290] sm:$0xff] (!%p372_p3)   ;;  %v12582_v60 = vld [vmem:[%s14300_s4 + $0x298] sm:$0xff] (!%p372_p3)  }
  0x10   : > { %s14315_s13 = smov (!%p444_p5, %s9584_s13), 0  ;;  %11102 = vmatpush3.bf16.msra.mxu0 %v12554_v3  ;;  %10975 = vmatprep.subr.bf16.mxu1 %v12555_v4  ;;  %s14327_s19 = smov (!%p499_p13, %s498_s19), 7  ;;  %v12575_v46 = vld [vmem:[%s14300_s4 + $0x388] sm:$0xff]   ;;  %v12581_v57 = vld [vmem:[%s14300_s4 + $0x390] sm:$0xff]   ;;  %v12583_v1 = vld [vmem:[%s14300_s4 + $0x398] sm:$0xff]  }
  0x11   : > { %s14317_s13 = smov (!%p9585_p6, %s14315_s13), 3  ;;  %11103 = vmatprep.subr.bf16.mxu0 %v12556_v5  ;;  %s12510_s12 = smul.u32 96, %s14327_s19 }
  0x12   : > { %s463_s22 = scalar_select %p462_p7, %s13023_s24, 0 }
  0x13   : > { %s448_s8 = sadd.s32 %s14317_s13, %s13116_s10  ;;  %10976 = vmatpush3.bf16.msra.mxu1 %v12555_v4  ;;  %s479_s13 = sadd.s32 1, %s13023_s24 }
  0x14   : > { %p449_p9 = scmp.lt.s32.totalorder %s448_s8, 7  ;;  %s14319_s22 = smov (!%p9592_p8, %s463_s22), 3  ;;  %11104 = vmatpush3.bf16.msra.mxu0 %v12556_v5  ;;  %10977 = vmatprep.subr.bf16.mxu1 %v12557_v6 }
  0x15   : > { %s466_s15 = sadd.s32 %s14319_s22, %s13116_s10  ;;  %11105 = vmatprep.subr.bf16.mxu0 %v12558_v7  ;;  %p480_p11 = scmp.gt.s32.totalorder %s479_s13, 0 }
  0x16   : > { %s14321_s8 = smov (!%p449_p9, %s448_s8), 7  ;;  %p467_p10 = scmp.lt.s32.totalorder %s466_s15, 7 }
  0x17   : > { %s12507_s18 = smul.u32 96, %s14321_s8  ;;  %10978 = vmatpush3.bf16.msra.mxu1 %v12557_v6  ;;  %p9599_p12 = scmp.lt.s32.totalorder %s479_s13, 3 }
  0x18   : > { %11106 = vmatpush3.bf16.msra.mxu0 %v12558_v7  ;;  %10979 = vmatprep.subr.bf16.mxu1 %v12559_v8  ;;  %s14323_s15 = smov (!%p467_p10, %s466_s15), 7  ;;  %s10498_s14 = sshll.u32 %s14327_s19, 7 }
  0x19   : > { %s13157_s23 = scalar_lea.vmem %s14296_s0, %s12507_s18  ;;  %11107 = vmatprep.subr.bf16.mxu0 %v12560_v9  ;;  %s12508_s16 = smul.u32 96, %s14323_s15 }
  0x1a   : > { %s481_s8 = scalar_select %p480_p11, %s479_s13, 0 }
  0x1b   : > { %10980 = vmatpush3.bf16.msra.mxu1 %v12559_v8  ;;  %s13174_s25 = scalar_lea.vmem %s14297_s1, %s12508_s16  ;;  %s13195_s20 = scalar_lea.vmem %s14303_s7, %s10498_s14 }
  0x1c   : > { %11108 = vmatpush3.bf16.msra.mxu0 %v12560_v9  ;;  %10981 = vmatprep.subr.bf16.mxu1 %v12561_v10  ;;  %s14325_s8 = smov (!%p9599_p12, %s481_s8), 3  ;;  %v12568_v14 = vld [vmem:[%s13174_s25 + $0xc] sm:$0xff]   ;;  %v12567_v18 = vld [vmem:[%s13174_s25 + $0x4] sm:$0xf8]   ;;  %v12570_v25 = vld [vmem:[%s13174_s25 + $0x14] sm:$0xff]  }
  0x1d   : > { %11109 = vmatprep.subr.bf16.mxu0 %v12562_v11  ;;  %v12569_v16 = vld [vmem:[%s13174_s25 + $0x10] sm:$0xff]   ;;  %s484_s11 = sadd.s32 %s14325_s8, %s13116_s10  ;;  %v603_v19 = vshrl.u32 %v12568_v14, 16  ;;  %v606_v20 = vshll.u32 %v12568_v14, 16  ;;  %v595_v21 = vshrl.u32 %v12567_v18, 16  ;;  %v598_v22 = vshll.u32 %v12567_v18, 16  ;;  %s13190_s8 = scalar_lea.vmem %s14299_s3, %s12510_s12  ;;  %v12576_v32 = vld [vmem:[%s13174_s25 + $0x1c] sm:$0xff]  }
  0x1e   : > { %p485_p0 = scmp.lt.s32.totalorder %s484_s11, 7  ;;  %11115 = vmatprep.mubr.bf16.mxu0 %v12569_v16  ;;  %v612_v29 = vshrl.u32 %v12570_v25, 16  ;;  %v615_v33 = vshll.u32 %v12570_v25, 16  ;;  %v12572_v36 = vld [vmem:[%s13174_s25 + $0x18] sm:$0xff]   ;;  %v621_v37 = vshrl.u32 %v12576_v32, 16  ;;  %v624_v38 = vshll.u32 %v12576_v32, 16 }
  0x1f   : > { %10982 = vmatpush3.bf16.msra.mxu1 %v12561_v10  ;;  %v605_v23 = vrot.slane %v603_v19, 3  ;;  %v608_v24 = vrot.slane %v606_v20, 4  ;;  %v597_v26 = vrot.slane %v595_v21, 3  ;;  %v600_v27 = vrot.slane %v598_v22, 4  ;;  %v12578_v40 = vld [vmem:[%s13174_s25 + $0x24] sm:$0xff]   ;;  %v12584_v58 = vld [vmem:[%s13174_s25 + $0x2c] sm:$0xff]  }
  0x20   : > { %11110 = vmatpush3.bf16.msra.mxu0 %v12562_v11  ;;  %10983 = vmatprep.subr.bf16.mxu1 %v12563_v12  ;;  %s14329_s11 = smov (!%p485_p0, %s484_s11), 7  ;;  %v614_v35 = vrot.slane %v612_v29, 3  ;;  %v617_v39 = vrot.slane %v615_v33, 4  ;;  %v623_v42 = vrot.slane %v621_v37, 3  ;;  %v626_v43 = vrot.slane %v624_v38, 4  ;;  %v12577_v51 = vld [vmem:[%s13174_s25 + $0x20] sm:$0xff]  }
  0x21   : > { %11111 = vmatprep.subr.bf16.mxu0 %v12564_v13  ;;  %v609_v28 = vor.u32 %v608_v24, %v605_v23  ;;  %s12509_s22 = smul.u32 96, %s14329_s11  ;;  %v601_v34 = vor.u32 %v600_v27, %v597_v26  ;;  %v630_v47 = vshrl.u32 %v12578_v40, 16  ;;  %v633_v48 = vshll.u32 %v12578_v40, 16  ;;  %v12580_v59 = vld [vmem:[%s13174_s25 + $0x28] sm:$0xff]   ;;  %v12586_v63 = vld [vmem:[%s13174_s25 + $0x34] sm:$0xff]   ;;  %v12587_v10 = vld [vmem:[%s14300_s4 + $0x2a0] sm:$0xff]  }
  0x22   : > { %v618_v44 = vor.u32 %v617_v39, %v614_v35  ;;  %v627_v49 = vor.u32 %v626_v43, %v623_v42  ;;  %v639_v61 = vshrl.u32 %v12584_v58, 16  ;;  %v642_v62 = vshll.u32 %v12584_v58, 16  ;;  %v12585_v4 = vld [vmem:[%s13174_s25 + $0x30] sm:$0xff]   ;;  %v12589_v11 = vld [vmem:[%s14300_s4 + $0x3a0] sm:$0xff]   ;;  %v12590_v16 = vld [vmem:[%s14300_s4 + $0x2a8] sm:$0xff]  }
  0x23   : > { %10984 = vmatpush3.bf16.msra.mxu1 %v12563_v12  ;;  %s13208_s14 = scalar_lea.vmem %s14298_s2, %s12509_s22  ;;  %v610_v41 = vsel %vm593_vm0, %v601_v34, %v609_v28  ;;  %v632_v52 = vrot.slane %v630_v47, 3  ;;  %v635_v53 = vrot.slane %v633_v48, 4  ;;  %v648_v5 = vshrl.u32 %v12586_v63, 16  ;;  %v12592_v14 = vld [vmem:[%s13174_s25 + $0x3c] sm:$0xff]   ;;  %v12594_v19 = vld [vmem:[%s13174_s25 + $0x44] ss:$0 sps:$4 sm:$0xff]  }
  0x24   : > { %11112 = vmatpush3.bf16.msra.mxu0 %v12564_v13  ;;  %10985 = vmatprep.subr.bf16.mxu1 %v12565_v15  ;;  %v619_v50 = vsel %vm593_vm0, %v609_v28, %v618_v44  ;;  %v628_v54 = vsel %vm593_vm0, %v618_v44, %v627_v49  ;;  %v641_v2 = vrot.slane %v639_v61, 3  ;;  %v644_v3 = vrot.slane %v642_v62, 4  ;;  %v12591_v21 = vld [vmem:[%s14300_s4 + $0x3a8] sm:$0xff]   ;;  %v12593_v26 = vld [vmem:[%s13174_s25 + $0x40] sm:$0xff]   ;;  %v12597_v33 = vld [vmem:[%s14300_s4 + $0x3b0] sm:$0xff]  }
  0x25   : > { %11113 = vmatprep.subr.bf16.mxu0 %v12566_v17  ;;  %10987 = vmatprep.mubr.bf16.mxu1 %v610_v41  ;;  %v636_v56 = vor.u32 %v635_v53, %v632_v52  ;;  %v651_v6 = vshll.u32 %v12586_v63, 16  ;;  %v650_v8 = vrot.slane %v648_v5, 3  ;;  %v660_v18 = vshll.u32 %v12592_v14, 16  ;;  %v12596_v34 = vld [vmem:[%s13174_s25 + $0x48] sm:$0xff]   ;;  %v12601_v35 = vld [vmem:[%s13174_s25 + $0x10] sm:$0xff]   ;;  %v12599_v38 = vld [vmem:[%s14300_s4 + $0x3b8] sm:$0xff]  }
  0x26   : > { %v645_v7 = vor.u32 %v644_v3, %v641_v2  ;;  %v666_v24 = vshrl.u32 %v12594_v19, 16  ;;  %v669_v25 = vshll.u32 %v12594_v19, 16  ;;  %v12602_v39 = vld [vmem:[%s13174_s25 + $0x18] sm:$0xff]   ;;  %v2174_v40 = vshrl.u32 %v12601_v35, 16  ;;  %v12600_v42 = vld [vmem:[%s13174_s25 + $0x8] sm:$0xff]   ;;  %v12612_v3 = vld [vmem:[%s14300_s4 + $0x2d0] sm:$0xff]  }
  0x27   : > { %10986 = vmatpush3.bf16.msra.mxu1 %v12565_v15  ;;  %v637_v0 = vsel %vm593_vm0, %v627_v49, %v636_v56  ;;  %v653_v9 = vrot.slane %v651_v6, 4  ;;  %v12588_v15 = vld [vmem:[%s13174_s25 + $0x38] sm:$0xff]   ;;  %v662_v23 = vrot.slane %v660_v18, 4  ;;  %v2176_v41 = vshll.u32 %v12601_v35, 16  ;;  %v12604_v49 = vld [vmem:[%s14300_s4 + $0x2c0] sm:$0xff]   ;;  %v12610_v58 = vld [vmem:[%s13174_s25 + $0x28] sm:$0xff]  }
  0x28   : > { %11114 = vmatpush3.bf16.msra.mxu0 %v12566_v17  ;;  %11003 = vmatprep.subr.bf16.mxu1 %v12571_v30  ;;  %v646_v12 = vsel %vm593_vm0, %v636_v56, %v645_v7  ;;  %v657_v17 = vshrl.u32 %v12592_v14, 16  ;;  %v668_v28 = vrot.slane %v666_v24, 3  ;;  %v671_v29 = vrot.slane %v669_v25, 4  ;;  %v12609_v61 = vld [vmem:[%s13174_s25 + $0x18] sm:$0xff]   ;;  %v12614_v5 = vld [vmem:[%s14300_s4 + $0x3d0] sm:$0xff]   ;;  %v12621_v18 = vld [vmem:[%s13174_s25 + $0x40] sm:$0xff]  }
  0x29   : > { %11131 = vmatprep.subr.bf16.mxu0 %v12573_v31  ;;  %v654_v13 = vor.u32 %v653_v9, %v650_v8  ;;  %v2178_v43 = vrot.slane %v2176_v41, 1  ;;  %v2181_v44 = vshll.u32 %v12602_v39, 16  ;;  %v2197_v63 = vshll.u32 %v12610_v58, 16  ;;  %v12616_v14 = vld [vmem:[%s14300_s4 + $0x3d8] sm:$0xff]   ;;  %v12619_v25 = vld [vmem:[%s13174_s25 + $0x30] sm:$0xff]  }
  0x2a   : > { %10988 = vmatmul.mubr.bf16.vlgmr.msra.gmra.mrb[0].mxu1 %v619_v50  ;;  %v659_v22 = vrot.slane %v657_v17, 3  ;;  %v672_v32 = vor.u32 %v671_v29, %v668_v28  ;;  %v12623_v29 = vld [vmem:[%s14300_s4 + $0x2e8] sm:$0xff]   ;;  %v12630_v41 = vld [vmem:[%s14300_s4 + $0x3f0] sm:$0xff]  }
  0x2b   : > { %11116 = vmatmul.mubr.bf16.vlgmr.msra.gmra.mrb[0].mxu0 %v12572_v36  ;;  %11004 = vmatpush3.bf16.msra.mxu1 %v12571_v30  ;;  %v655_v20 = vsel %vm593_vm0, %v645_v7, %v654_v13  ;;  %v12595_v30 = vld [vmem:[%s14300_s4 + $0x2b0] sm:$0xff]   ;;  %v12598_v36 = vld [vmem:[%s14300_s4 + $0x2b8] sm:$0xff]   ;;  %v2179_v47 = vor.u32 %v2178_v43, %v2174_v40  ;;  %v2183_v48 = vrot.slane %v2181_v44, 1  ;;  %v2199_v2 = vrot.slane %v2197_v63, 1  ;;  %v12611_v7 = vld [vmem:[%s13174_s25 + $0x20] sm:$0xff]  }
  0x2c   : > { %11132 = vmatpush3.bf16.msra.mxu0 %v12573_v31  ;;  %11005 = vmatprep.subr.bf16.mxu1 %v12574_v45  ;;  %v663_v27 = vor.u32 %v662_v23, %v659_v22  ;;  %v2221_v22 = vshll.u32 %v12621_v18, 16  ;;  %v12622_v23 = vld [vmem:[%s14300_s4 + $0x3e0] sm:$0xff]  }
  0x2d   : > { %11133 = vmatprep.subr.bf16.mxu0 %v12575_v46  ;;  %10991 = vmatprep.mubr.bf16.mxu1 %v628_v54  ;;  %v2184_v52 = vsel %vm1194_vm1, %v2179_v47, %v2183_v48  ;;  %v12603_v54 = vld [vmem:[%s13174_s25 + $0x10] sm:$0xff]   ;;  %v12627_v43 = vld [vmem:[%s13174_s25 + $0x40] sm:$0xff]   ;;  %v12632_v47 = vld [vmem:[%s14300_s4 + $0x3f8] sm:$0xff]  }
  0x2e   : > { %11119 = vmatprep.mubr.bf16.mxu0 %v12577_v51  ;;  %v664_v31 = vsel %vm593_vm0, %v654_v13, %v663_v27  ;;  %v673_v37 = vsel %vm593_vm0, %v663_v27, %v672_v32  ;;  %v12606_v51 = vld [vmem:[%s14300_s4 + $0x3c0] sm:$0xff]   ;;  %v2225_v27 = vshrl.u32 %v12621_v18, 16  ;;  %v2223_v28 = vrot.slane %v2221_v22, 1  ;;  %v12624_v32 = vld [vmem:[%s14300_s4 + $0x3e8] sm:$0xff]  }
  0x2f   : > { %11006 = vmatpush3.bf16.msra.mxu1 %v12574_v45  ;;  %v2185_v45 = vshrl.u32 %v12602_v39, 16  ;;  %v12628_v39 = vld [vmem:[%s14300_s4 + $0x2f0] sm:$0xff]   ;;  %v12642_v22 = vld [vmem:[%s14300_s4 + $0x408] sm:$0xff]  }
  0x30   : > { %11134 = vmatpush3.bf16.msra.mxu0 %v12575_v46  ;;  %11007 = vmatprep.subr.bf16.mxu1 %v12579_v55  ;;  %v12605_v46 = vld [vmem:[%s13174_s25 + $0x20] sm:$0xff]  }
  0x31   : > { %11135 = vmatprep.subr.bf16.mxu0 %v12581_v57  ;;  %v2189_v50 = vshll.u32 %v12605_v46, 16  ;;  %v2187_v53 = vor.u32 %v2185_v45, %v2183_v48  ;;  %v12633_v48 = vld [vmem:[%s13174_s25 + $0x8] sm:$0xff]  }
  0x32   : > { %10992 = vmatmul.mubr.bf16.gmra.mrb[4].mxu1 %v637_v0  ;;  %v12613_v0 = vld [vmem:[%s13174_s25 + $0x30] sm:$0xff]  }
  0x33   : > { %11120 = vmatmul.mubr.bf16.gmra.mrb[4].mxu0 %v12580_v59  ;;  %11008 = vmatpush3.bf16.msra.mxu1 %v12579_v55  ;;  %v2193_v55 = vshrl.u32 %v12605_v46, 16  ;;  %v2191_v56 = vrot.slane %v2189_v50, 1  ;;  %v2209_v9 = vshrl.u32 %v12613_v0, 16  ;;  %v12631_v46 = vld [vmem:[%s14300_s4 + $0x2f8] sm:$0xff]  }
  0x34   : > { %11136 = vmatpush3.bf16.msra.mxu0 %v12581_v57  ;;  %11009 = vmatprep.subr.bf16.mxu1 %v12582_v60  ;;  %v12607_v57 = vld [vmem:[%s14300_s4 + $0x2c8] sm:$0xff]  }
  0x35   : > { %11137 = vmatprep.subr.bf16.mxu0 %v12583_v1  ;;  %10995 = vmatprep.mubr.bf16.mxu1 %v646_v12  ;;  %v2192_v59 = vsel %vm1194_vm1, %v2187_v53, %v2191_v56  ;;  %v2195_v62 = vor.u32 %v2193_v55, %v2191_v56  ;;  %v12618_v12 = vld [vmem:[%s13174_s25 + $0x38] sm:$0xff]  }
  0x36   : > { %11123 = vmatprep.mubr.bf16.mxu0 %v12585_v4  ;;  %v2205_v4 = vshll.u32 %v12613_v0, 16  ;;  %v2213_v17 = vshll.u32 %v12618_v12, 16  ;;  %v2217_v19 = vshrl.u32 %v12618_v12, 16  ;;  %v12635_v55 = vld [vmem:[%s13174_s25 + $0x14] sm:$0xf8]  }
  0x37   : > { %11010 = vmatpush3.bf16.msra.mxu1 %v12582_v60  ;;  %v12608_v60 = vld [vmem:[%s14300_s4 + $0x3c8] sm:$0xff]   ;;  %v2200_v6 = vsel %vm1194_vm1, %v2195_v62, %v2199_v2 }
  0x38   : > { %11138 = vmatpush3.bf16.msra.mxu0 %v12583_v1  ;;  %11011 = vmatprep.subr.bf16.mxu1 %v12587_v10  ;;  %v2201_v1 = vshrl.u32 %v12610_v58, 16 }
  0x39   : > { %11139 = vmatprep.subr.bf16.mxu0 %v12589_v11 }
  0x3a   : > { %10996 = vmatmul.mubr.bf16.gmra.mrb[8].mxu1 %v655_v20  ;;  %v2203_v8 = vor.u32 %v2201_v1, %v2199_v2  ;;  %v2215_v20 = vrot.slane %v2213_v17, 1  ;;  %v12638_v1 = vld [vmem:[%s14300_s4 + $0x300] sm:$0xff]   ;;  %v12641_v17 = vld [vmem:[%s14300_s4 + $0x308] sm:$0xff]  }
  0x3b   : > { %11124 = vmatmul.mubr.bf16.gmra.mrb[8].mxu0 %v12588_v15  ;;  %11012 = vmatpush3.bf16.msra.mxu1 %v12587_v10  ;;  %v2207_v10 = vrot.slane %v2205_v4, 1  ;;  %v12617_v15 = vld [vmem:[%s13174_s25 + $0x28] sm:$0xff]  }
  0x3c   : > { %11140 = vmatpush3.bf16.msra.mxu0 %v12589_v11  ;;  %11013 = vmatprep.subr.bf16.mxu1 %v12590_v16  ;;  %v12615_v11 = vld [vmem:[%s14300_s4 + $0x2d8] sm:$0xff]   ;;  %v12639_v2 = vld [vmem:[%s13174_s25 + $0x24] sm:$0xff]  }
  0x3d   : > { %11141 = vmatprep.subr.bf16.mxu0 %v12591_v21  ;;  %10999 = vmatprep.mubr.bf16.mxu1 %v664_v31  ;;  %v2208_v13 = vsel %vm1194_vm1, %v2203_v8, %v2207_v10 }
  0x3e   : > { %11127 = vmatprep.mubr.bf16.mxu0 %v12593_v26  ;;  %v2219_v26 = vor.u32 %v2217_v19, %v2215_v20 }
  0x3f   : > { %11014 = vmatpush3.bf16.msra.mxu1 %v12590_v16  ;;  %v2211_v16 = vor.u32 %v2209_v9, %v2207_v10 }
  0x40   : > { %11142 = vmatpush3.bf16.msra.mxu0 %v12591_v21  ;;  %11015 = vmatprep.subr.bf16.mxu1 %v12595_v30  ;;  %v12620_v21 = vld [vmem:[%s14300_s4 + $0x2e0] sm:$0xff]   ;;  %v2224_v31 = vsel %vm1194_vm1, %v2219_v26, %v2223_v28 }
  0x41   : > { %11143 = vmatprep.subr.bf16.mxu0 %v12597_v33  ;;  %v2216_v24 = vsel %vm1194_vm1, %v2211_v16, %v2215_v20  ;;  %v12643_v20 = vld [vmem:[%s13174_s25 + $0x20] sm:$0xff]  }
  0x42   : > { %11000 = vmatmul.mubr.bf16.gmra.mrb[12].mxu1 %v673_v37  ;;  %v1219_v26 = vshll.u32 %v12643_v20, 16 }
  0x43   : > { %11128 = vmatmul.mubr.bf16.gmra.mrb[12].mxu0 %v12596_v34  ;;  %11016 = vmatpush3.bf16.msra.mxu1 %v12595_v30  ;;  %v12626_v30 = vld [vmem:[%s13174_s25 + $0x48] sm:$0xff]   ;;  %v2227_v34 = vor.u32 %v2225_v27, %v2223_v28 }
  0x44   : > { %11144 = vmatpush3.bf16.msra.mxu0 %v12597_v33  ;;  %11017 = vmatprep.subr.bf16.mxu1 %v12598_v36  ;;  %v12625_v33 = vld [vmem:[%s13174_s25 + $0x38] sm:$0xff]   ;;  %v2229_v35 = vshll.u32 %v12626_v30, 16  ;;  %v2233_v37 = vshrl.u32 %v12626_v30, 16  ;;  %v12645_v27 = vld [vmem:[%s13174_s25 + $0x28] sm:$0xff]  }
  0x45   : > { %11145 = vmatprep.subr.bf16.mxu0 %v12599_v38  ;;  %11019 = vmatprep.mubr.bf16.mxu1 %v12600_v42 }
  0x46   : > { %11147 = vmatprep.mubr.bf16.mxu0 %v2184_v52  ;;  %v1198_v52 = vshll.u32 %v12633_v48, 16 }
  0x47   : > { %11018 = vmatpush3.bf16.msra.mxu1 %v12598_v36  ;;  %v12629_v36 = vld [vmem:[%s13174_s25 + $0x50] ss:$0 sps:$4 sm:$0x11]  }
  0x48   : > { %11146 = vmatpush3.bf16.msra.mxu0 %v12599_v38  ;;  %11035 = vmatprep.subr.bf16.mxu1 %v12604_v49  ;;  %v2231_v38 = vrot.slane %v2229_v35, 1  ;;  %v2237_v40 = vshll.u32 %v12629_v36, 16  ;;  %v1200_v56 = vrot.slane %v1198_v52, 1  ;;  %v12646_v35 = vld [vmem:[%s14300_s4 + $0x310] sm:$0xff]  }
  0x49   : > { %11163 = vmatprep.subr.bf16.mxu0 %v12606_v51 }
  0x4a   : > { %11020 = vmatmul.mubr.bf16.vlgmr.msra.gmra.mrb[0].mxu1 %v12603_v54  ;;  %v2232_v42 = vsel %vm1194_vm1, %v2227_v34, %v2231_v38  ;;  %v2235_v44 = vor.u32 %v2233_v37, %v2231_v38  ;;  %v2239_v45 = vrot.slane %v2237_v40, 1  ;;  %v1227_v34 = vshll.u32 %v12645_v27, 16 }
  0x4b   : > { %11148 = vmatmul.mubr.bf16.vlgmr.msra.gmra.mrb[0].mxu0 %v2192_v59  ;;  %11036 = vmatpush3.bf16.msra.mxu1 %v12604_v49  ;;  %v12634_v49 = vld [vmem:[%s13174_s25 + $0x10] sm:$0xff]   ;;  %v2520_v59 = vshrl.u32 %v12635_v55, 16 }
  0x4c   : > { %11164 = vmatpush3.bf16.msra.mxu0 %v12606_v51  ;;  %11037 = vmatprep.subr.bf16.mxu1 %v12607_v57  ;;  %v2240_v50 = vsel %vm1194_vm1, %v2235_v44, %v2239_v45  ;;  %v1196_v51 = vshrl.u32 %v12633_v48, 16  ;;  %v1203_v53 = vshll.u32 %v12634_v49, 16  ;;  %v1207_v54 = vshrl.u32 %v12634_v49, 16  ;;  %v12649_v48 = vld [vmem:[%s14300_s4 + $0x318] sm:$0xff]  }
  0x4d   : > { %11165 = vmatprep.subr.bf16.mxu0 %v12608_v60  ;;  %11023 = vmatprep.mubr.bf16.mxu1 %v12609_v61  ;;  %v12637_v61 = vld [vmem:[%s13174_s25 + $0x18] sm:$0xff]   ;;  %v2522_v4 = vrot.slane %v2520_v59, 3  ;;  %v1229_v40 = vrot.slane %v1227_v34, 1  ;;  %v1231_v44 = vshrl.u32 %v12645_v27, 16 }
  0x4e   : > { %11151 = vmatprep.mubr.bf16.mxu0 %v2200_v6  ;;  %v1205_v58 = vrot.slane %v1203_v53, 1  ;;  %v1201_v62 = vor.u32 %v1200_v56, %v1196_v51  ;;  %v1211_v6 = vshll.u32 %v12637_v61, 16  ;;  %v12651_v53 = vld [vmem:[%s13174_s25 + $0x30] sm:$0xff]  }
  0x4f   : > { %11038 = vmatpush3.bf16.msra.mxu1 %v12607_v57  ;;  %v12636_v57 = vld [vmem:[%s13174_s25 + $0x1c] sm:$0xff]  }
  0x50   : > { %11166 = vmatpush3.bf16.msra.mxu0 %v12608_v60  ;;  %11039 = vmatprep.subr.bf16.mxu1 %v12612_v3  ;;  %v2523_v60 = vshll.u32 %v12635_v55, 16  ;;  %v2528_v63 = vshrl.u32 %v12636_v57, 16  ;;  %v2531_v0 = vshll.u32 %v12636_v57, 16  ;;  %v1206_v8 = vsel %vm1194_vm1, %v1201_v62, %v1205_v58  ;;  %v12654_v62 = vld [vmem:[%s14300_s4 + $0x320] sm:$0xff]  }
  0x51   : > { %11167 = vmatprep.subr.bf16.mxu0 %v12614_v5  ;;  %v1233_v55 = vor.u32 %v1231_v44, %v1229_v40  ;;  %v1235_v57 = vshll.u32 %v12651_v53, 16 }
  0x52   : > { %11024 = vmatmul.mubr.bf16.gmra.mrb[4].mxu1 %v12611_v7  ;;  %v12640_v7 = vld [vmem:[%s14300_s4 + $0x400] sm:$0xff]   ;;  %v2530_v9 = vrot.slane %v2528_v63, 3  ;;  %v2533_v10 = vrot.slane %v2531_v0, 4 }
  0x53   : > { %11152 = vmatmul.mubr.bf16.gmra.mrb[4].mxu0 %v2208_v13  ;;  %11040 = vmatpush3.bf16.msra.mxu1 %v12612_v3  ;;  %v1209_v3 = vor.u32 %v1207_v54, %v1205_v58  ;;  %v1213_v13 = vrot.slane %v1211_v6, 1  ;;  %v12652_v54 = vld [vmem:[%s13174_s25 + $0x3c] sm:$0xff]   ;;  %v1237_v0 = vrot.slane %v1235_v57, 1 }
  0x54   : > { %11168 = vmatpush3.bf16.msra.mxu0 %v12614_v5  ;;  %11041 = vmatprep.subr.bf16.mxu1 %v12615_v11  ;;  %v2525_v5 = vrot.slane %v2523_v60, 4  ;;  %v2564_v58 = vshrl.u32 %v12652_v54, 16  ;;  %v2567_v59 = vshll.u32 %v12652_v54, 16  ;;  %v12653_v60 = vld [vmem:[%s13174_s25 + $0x38] sm:$0xff]  }
  0x55   : > { %11169 = vmatprep.subr.bf16.mxu0 %v12616_v14  ;;  %11027 = vmatprep.mubr.bf16.mxu1 %v12617_v15  ;;  %v2534_v15 = vor.u32 %v2533_v10, %v2530_v9  ;;  %v1214_v18 = vsel %vm1194_vm1, %v1209_v3, %v1213_v13  ;;  %v12655_v3 = vld [vmem:[%s13174_s25 + $0x44] sm:$0xff]   ;;  %v1238_v6 = vsel %vm1194_vm1, %v1233_v55, %v1237_v0  ;;  %v12670_v57 = vld [vmem:[%s13174_s25 + $0x1c] sm:$0xff]  }
  0x56   : > { %11155 = vmatprep.mubr.bf16.mxu0 %v2216_v24  ;;  %v2526_v12 = vor.u32 %v2525_v5, %v2522_v4  ;;  %v12644_v24 = vld [vmem:[%s13174_s25 + $0x2c] sm:$0xff]   ;;  %v1243_v4 = vshll.u32 %v12653_v60, 16  ;;  %v12656_v5 = vld [vmem:[%s14300_s4 + $0x420] sm:$0xff]   ;;  %v2573_v9 = vshrl.u32 %v12655_v3, 16 }
  0x57   : > { %11042 = vmatpush3.bf16.msra.mxu1 %v12615_v11  ;;  %v2537_v11 = vshrl.u32 %v12639_v2, 16  ;;  %v2549_v30 = vshll.u32 %v12644_v24, 16  ;;  %v12657_v10 = vld [vmem:[%s14300_s4 + $0x328] sm:$0xff]  }
  0x58   : > { %11170 = vmatpush3.bf16.msra.mxu0 %v12616_v14  ;;  %11043 = vmatprep.subr.bf16.mxu1 %v12620_v21  ;;  %v2540_v14 = vshll.u32 %v12639_v2, 16  ;;  %v2569_v2 = vrot.slane %v2567_v59, 4 }
  0x59   : > { %11171 = vmatprep.subr.bf16.mxu0 %v12622_v23  ;;  %v2539_v16 = vrot.slane %v2537_v11, 3  ;;  %v2551_v37 = vrot.slane %v2549_v30, 4  ;;  %v1245_v11 = vrot.slane %v1243_v4, 1 }
  0x5a   : > { %11028 = vmatmul.mubr.bf16.gmra.mrb[8].mxu1 %v12619_v25  ;;  %v2542_v19 = vrot.slane %v2540_v14, 4  ;;  %v2575_v14 = vrot.slane %v2573_v9, 3  ;;  %v12673_v9 = vld [vmem:[%s14300_s4 + $0x448] sm:$0xff]  }
  0x5b   : > { %11156 = vmatmul.mubr.bf16.gmra.mrb[8].mxu0 %v2224_v31  ;;  %11044 = vmatpush3.bf16.msra.mxu1 %v12620_v21  ;;  %v2535_v21 = vsel %vm593_vm0, %v2526_v12, %v2534_v15  ;;  %v2576_v12 = vshll.u32 %v12655_v3, 16  ;;  %v12671_v3 = vld [vmem:[%s13174_s25 + $0x20] sm:$0xff]  }
  0x5c   : > { %11172 = vmatpush3.bf16.msra.mxu0 %v12622_v23  ;;  %11045 = vmatprep.subr.bf16.mxu1 %v12623_v29  ;;  %v1215_v23 = vshrl.u32 %v12637_v61, 16  ;;  %v2543_v25 = vor.u32 %v2542_v19, %v2539_v16  ;;  %v1239_v61 = vshrl.u32 %v12651_v53, 16  ;;  %v1247_v19 = vshrl.u32 %v12653_v60, 16 }
  0x5d   : > { %11173 = vmatprep.subr.bf16.mxu0 %v12624_v32  ;;  %11031 = vmatprep.mubr.bf16.mxu1 %v12625_v33  ;;  %v1223_v33 = vshrl.u32 %v12643_v20, 16  ;;  %v12660_v20 = vld [vmem:[%s13174_s25 + $0x4c] sm:$0xff]  }
  0x5e   : > { %11159 = vmatprep.mubr.bf16.mxu0 %v2232_v42  ;;  %v1217_v28 = vor.u32 %v1215_v23, %v1213_v13  ;;  %v2544_v31 = vsel %vm593_vm0, %v2534_v15, %v2543_v25  ;;  %v12658_v15 = vld [vmem:[%s14300_s4 + $0x428] sm:$0xff]   ;;  %v2585_v27 = vshll.u32 %v12660_v20, 16 }
  0x5f   : > { %11046 = vmatpush3.bf16.msra.mxu1 %v12623_v29  ;;  %v2546_v29 = vshrl.u32 %v12644_v24, 16  ;;  %v2582_v24 = vshrl.u32 %v12660_v20, 16 }
  0x60   : > { %11174 = vmatpush3.bf16.msra.mxu0 %v12624_v32  ;;  %11047 = vmatprep.subr.bf16.mxu1 %v12628_v39  ;;  %v1221_v32 = vrot.slane %v1219_v26, 1  ;;  %v12662_v26 = vld [vmem:[%s14300_s4 + $0x330] sm:$0xff]   ;;  %v2587_v34 = vrot.slane %v2585_v27, 4 }
  0x61   : > { %11175 = vmatprep.subr.bf16.mxu0 %v12630_v41  ;;  %v2548_v36 = vrot.slane %v2546_v29, 3 }
  0x62   : > { %11032 = vmatmul.mubr.bf16.gmra.mrb[12].mxu1 %v12627_v43  ;;  %v1222_v38 = vsel %vm1194_vm1, %v1217_v28, %v1221_v32  ;;  %v12648_v43 = vld [vmem:[%s14300_s4 + $0x410] sm:$0xff]  }
  0x63   : > { %11160 = vmatmul.mubr.bf16.gmra.mrb[12].mxu0 %v2240_v50  ;;  %11048 = vmatpush3.bf16.msra.mxu1 %v12628_v39  ;;  %v1225_v39 = vor.u32 %v1223_v33, %v1221_v32  ;;  %v2552_v42 = vor.u32 %v2551_v37, %v2548_v36  ;;  %v12650_v50 = vld [vmem:[%s14300_s4 + $0x418] sm:$0xff]   ;;  %v12664_v33 = vld [vmem:[%s14300_s4 + $0x430] sm:$0xff]  }
  0x64   : > { %11176 = vmatpush3.bf16.msra.mxu0 %v12630_v41  ;;  %11049 = vmatprep.subr.bf16.mxu1 %v12631_v46  ;;  %v12647_v41 = vld [vmem:[%s13174_s25 + $0x34] sm:$0xff]  }
  0x65   : > { %11177 = vmatprep.subr.bf16.mxu0 %v12632_v47  ;;  %11051 = vmatprep.mubr.bf16.mxu1 %v1206_v8  ;;  %v1230_v45 = vsel %vm1194_vm1, %v1225_v39, %v1229_v40  ;;  %v2553_v49 = vsel %vm593_vm0, %v2543_v25, %v2552_v42  ;;  %v1241_v8 = vor.u32 %v1239_v61, %v1237_v0  ;;  %v12661_v25 = vld [vmem:[%s13174_s25 + $0x48] ss:$0 sps:$4 sm:$0x11]   ;;  %v12665_v36 = vld [vmem:[%s14300_s4 + $0x338] sm:$0xff]   ;;  %v1562_v0 = vshll.u32 %v12670_v57, 16 }
  0x66   : > { %11179 = vmatprep.mubr.bf16.mxu0 %v2535_v21  ;;  %v1259_v32 = vshll.u32 %v12661_v25, 16  ;;  %v12666_v40 = vld [vmem:[%s14300_s4 + $0x438] sm:$0xff]  }
  0x67   : > { %11050 = vmatpush3.bf16.msra.mxu1 %v12631_v46  ;;  %v2555_v46 = vshrl.u32 %v12647_v41, 16  ;;  %v1246_v16 = vsel %vm1194_vm1, %v1241_v8, %v1245_v11 }
  0x68   : > { %11178 = vmatpush3.bf16.msra.mxu0 %v12632_v47  ;;  %11067 = vmatprep.subr.bf16.mxu1 %v12638_v1  ;;  %v2558_v47 = vshll.u32 %v12647_v41, 16  ;;  %v1261_v39 = vrot.slane %v1259_v32, 1 }
  0x69   : > { %11195 = vmatprep.subr.bf16.mxu0 %v12640_v7  ;;  %v2557_v51 = vrot.slane %v2555_v46, 3 }
  0x6a   : > { %11052 = vmatmul.mubr.bf16.vlgmr.msra.gmra.mrb[0].mxu1 %v1214_v18  ;;  %v2560_v52 = vrot.slane %v2558_v47, 4  ;;  %v12659_v18 = vld [vmem:[%s13174_s25 + $0x40] sm:$0xff]  }
  0x6b   : > { %11068 = vmatpush3.bf16.msra.mxu1 %v12638_v1  ;;  %11180 = vmatmul.mubr.bf16.vlgmr.msra.gmra.mrb[0].mxu0 %v2544_v31  ;;  %v2566_v1 = vrot.slane %v2564_v58, 3  ;;  %v1251_v23 = vshll.u32 %v12659_v18, 16  ;;  %v1255_v28 = vshrl.u32 %v12659_v18, 16  ;;  %v2584_v31 = vrot.slane %v2582_v24, 3 }
  0x6c   : > { %11069 = vmatprep.subr.bf16.mxu1 %v12641_v17  ;;  %11196 = vmatpush3.bf16.msra.mxu0 %v12640_v7  ;;  %v2561_v56 = vor.u32 %v2560_v52, %v2557_v51  ;;  %v12669_v51 = vld [vmem:[%s13174_s25 + $0x18] sm:$0xff]  }
  0x6d   : > { %11197 = vmatprep.subr.bf16.mxu0 %v12642_v22  ;;  %11055 = vmatprep.mubr.bf16.mxu1 %v1222_v38  ;;  %v2570_v7 = vor.u32 %v2569_v2, %v2566_v1  ;;  %v1253_v30 = vrot.slane %v1251_v23, 1  ;;  %v2588_v41 = vor.u32 %v2587_v34, %v2584_v31  ;;  %v12680_v23 = vld [vmem:[%s13174_s25 + $0x34] sm:$0xff]  }
  0x6e   : > { %11183 = vmatprep.mubr.bf16.mxu0 %v2553_v49  ;;  %v2562_v63 = vsel %vm593_vm0, %v2552_v42, %v2561_v56  ;;  %v12668_v49 = vld [vmem:[%s13174_s25 + $0x14] sm:$0xff]   ;;  %v1586_v27 = vshrl.u32 %v12680_v23, 16 }
  0x6f   : > { %11070 = vmatpush3.bf16.msra.mxu1 %v12641_v17  ;;  %v2571_v13 = vsel %vm593_vm0, %v2561_v56, %v2570_v7  ;;  %v2578_v17 = vrot.slane %v2576_v12, 4  ;;  %v1257_v38 = vor.u32 %v1255_v28, %v1253_v30  ;;  %v1550_v54 = vshrl.u32 %v12668_v49, 16  ;;  %v12675_v12 = vld [vmem:[%s13174_s25 + $0x28] sm:$0xff]   ;;  %v12679_v31 = vld [vmem:[%s14300_s4 + $0x458] sm:$0xff]  }
  0x70   : > { %11071 = vmatprep.subr.bf16.mxu1 %v12646_v35  ;;  %11198 = vmatpush3.bf16.msra.mxu0 %v12642_v22  ;;  %v1249_v22 = vor.u32 %v1247_v19, %v1245_v11  ;;  %v1553_v55 = vshll.u32 %v12668_v49, 16  ;;  %v1589_v28 = vshll.u32 %v12680_v23, 16  ;;  %v1588_v32 = vrot.slane %v1586_v27, 3 }
  0x71   : > { %11199 = vmatprep.subr.bf16.mxu0 %v12648_v43  ;;  %v2579_v21 = vor.u32 %v2578_v17, %v2575_v14  ;;  %v1262_v44 = vsel %vm1194_vm1, %v1257_v38, %v1261_v39  ;;  %v1552_v60 = vrot.slane %v1550_v54, 3  ;;  %v12686_v39 = vld [vmem:[%s13174_s25 + $0x44] sm:$0xff]  }
  0x72   : > { %11056 = vmatmul.mubr.bf16.gmra.mrb[4].mxu1 %v1230_v45  ;;  %v1254_v37 = vsel %vm1194_vm1, %v1249_v22, %v1253_v30  ;;  %v1555_v61 = vrot.slane %v1553_v55, 4  ;;  %v12678_v22 = vld [vmem:[%s14300_s4 + $0x450] sm:$0xff]   ;;  %v12687_v55 = vld [vmem:[%s13174_s25 + $0x48] sm:$0xff]  }
  0x73   : > { %11072 = vmatpush3.bf16.msra.mxu1 %v12646_v35  ;;  %11184 = vmatmul.mubr.bf16.gmra.mrb[4].mxu0 %v2562_v63  ;;  %v2580_v29 = vsel %vm593_vm0, %v2570_v7, %v2579_v21  ;;  %v12663_v35 = vld [vmem:[%s13174_s25 + $0x54] ss:$0 sps:$4 sm:$0xff]   ;;  %v2589_v45 = vsel %vm593_vm0, %v2579_v21, %v2588_v41  ;;  %v1559_v63 = vshrl.u32 %v12670_v57, 16  ;;  %v12674_v7 = vld [vmem:[%s13174_s25 + $0x24] sm:$0xff]  }
  0x74   : > { %11073 = vmatprep.subr.bf16.mxu1 %v12649_v48  ;;  %11200 = vmatpush3.bf16.msra.mxu0 %v12648_v43  ;;  %v2591_v42 = vshrl.u32 %v12663_v35, 16  ;;  %v2594_v43 = vshll.u32 %v12663_v35, 16  ;;  %v1556_v2 = vor.u32 %v1555_v61, %v1552_v60  ;;  %v1571_v11 = vshll.u32 %v12674_v7, 16  ;;  %v12681_v35 = vld [vmem:[%s13174_s25 + $0x38] sm:$0xff]   ;;  %v12690_v60 = vld [vmem:[%s14300_s4 + $0x470] sm:$0xff]   ;;  %v12693_v61 = vld [vmem:[%s13174_s25 + $0x20] sm:$0xff]  }
  0x75   : > { %11201 = vmatprep.subr.bf16.mxu0 %v12650_v50  ;;  %11059 = vmatprep.mubr.bf16.mxu1 %v1238_v6  ;;  %v1561_v4 = vrot.slane %v1559_v63, 3 }
  0x76   : > { %11187 = vmatprep.mubr.bf16.mxu0 %v2571_v13  ;;  %v2593_v46 = vrot.slane %v2591_v42, 3  ;;  %v2596_v47 = vrot.slane %v2594_v43, 4  ;;  %v12676_v13 = vld [vmem:[%s13174_s25 + $0x2c] sm:$0xff]   ;;  %v1604_v43 = vshrl.u32 %v12686_v39, 16 }
  0x77   : > { %11074 = vmatpush3.bf16.msra.mxu1 %v12649_v48  ;;  %v12667_v48 = vld [vmem:[%s13174_s25 + $0xc] sm:$0xf8]   ;;  %v1577_v17 = vshrl.u32 %v12676_v13, 16  ;;  %v1580_v18 = vshll.u32 %v12676_v13, 16 }
  0x78   : > { %11075 = vmatprep.subr.bf16.mxu1 %v12654_v62  ;;  %11202 = vmatpush3.bf16.msra.mxu0 %v12650_v50  ;;  %v2597_v50 = vor.u32 %v2596_v47, %v2593_v46  ;;  %v1542_v52 = vshrl.u32 %v12667_v48, 16  ;;  %v1545_v53 = vshll.u32 %v12667_v48, 16  ;;  %v12683_v47 = vld [vmem:[%s13174_s25 + $0x40] sm:$0xff]   ;;  %v1606_v48 = vrot.slane %v1604_v43, 3 }
  0x79   : > { %11203 = vmatprep.subr.bf16.mxu0 %v12656_v5  ;;  %v1579_v20 = vrot.slane %v1577_v17, 3  ;;  %v1582_v21 = vrot.slane %v1580_v18, 4  ;;  %v12697_v17 = vld [vmem:[%s13174_s25 + $0x48] sm:$0xff]  }
  0x7a   : > { %11060 = vmatmul.mubr.bf16.gmra.mrb[8].mxu1 %v1246_v16  ;;  %v2598_v56 = vsel %vm593_vm0, %v2588_v41, %v2597_v50  ;;  %v1544_v58 = vrot.slane %v1542_v52, 3  ;;  %v1547_v59 = vrot.slane %v1545_v53, 4  ;;  %v1573_v16 = vrot.slane %v1571_v11, 4  ;;  %v12684_v41 = vld [vmem:[%s14300_s4 + $0x460] sm:$0xff]   ;;  %v12685_v53 = vld [vmem:[%s14300_s4 + $0x468] sm:$0xff]  }
  0x7b   : > { %11076 = vmatpush3.bf16.msra.mxu1 %v12654_v62  ;;  %11188 = vmatmul.mubr.bf16.gmra.mrb[8].mxu0 %v2580_v29  ;;  %v12672_v62 = vld [vmem:[%s14300_s4 + $0x440] sm:$0xff]   ;;  %v1583_v25 = vor.u32 %v1582_v21, %v1579_v20  ;;  %v12698_v20 = vld [vmem:[%s13174_s25 + $0x30] sm:$0xff]  }
  0x7c   : > { %11204 = vmatpush3.bf16.msra.mxu0 %v12656_v5  ;;  %11077 = vmatprep.subr.bf16.mxu1 %v12657_v10  ;;  %v1548_v1 = vor.u32 %v1547_v59, %v1544_v58  ;;  %v1564_v5 = vrot.slane %v1562_v0, 4  ;;  %v12682_v29 = vld [vmem:[%s13174_s25 + $0x3c] sm:$0xff]   ;;  %v12699_v21 = vld [vmem:[%s13174_s25 + $0x50] sm:$0xff]  }
  0x7d   : > { %11205 = vmatprep.subr.bf16.mxu0 %v12658_v15  ;;  %11063 = vmatprep.mubr.bf16.mxu1 %v1254_v37  ;;  %v1595_v34 = vshrl.u32 %v12682_v29, 16  ;;  %v12692_v58 = vld [vmem:[%s13174_s25 + $0x18] sm:$0xff]  }
  0x7e   : > { %11191 = vmatprep.mubr.bf16.mxu0 %v2589_v45  ;;  %v1557_v6 = vsel %vm593_vm0, %v1548_v1, %v1556_v2  ;;  %v1565_v8 = vor.u32 %v1564_v5, %v1561_v4  ;;  %v12688_v45 = vld [vmem:[%s13174_s25 + $0x4c] ss:$0 sps:$4 sm:$0xff]   ;;  %v3154_v63 = vshll.u32 %v12692_v58, 16  ;;  %v12694_v0 = vld [vmem:[%s13174_s25 + $0x38] sm:$0xff]   ;;  %v3159_v4 = vshll.u32 %v12693_v61, 16 }
  0x7f   : > { %11078 = vmatpush3.bf16.msra.mxu1 %v12657_v10  ;;  %v1568_v10 = vshrl.u32 %v12674_v7, 16  ;;  %v1597_v38 = vrot.slane %v1595_v34, 3  ;;  %v1613_v50 = vshrl.u32 %v12688_v45, 16  ;;  %v3163_v5 = vshrl.u32 %v12693_v61, 16 }
  0x80   : > { %11206 = vmatpush3.bf16.msra.mxu0 %v12658_v15  ;;  %11079 = vmatprep.subr.bf16.mxu1 %v12662_v26  ;;  %v1566_v14 = vsel %vm593_vm0, %v1556_v2, %v1565_v8  ;;  %v12689_v2 = vld [vmem:[%s13174_s25 + $0x50] sm:$0xff]   ;;  %v3183_v7 = vshll.u32 %v12694_v0, 16  ;;  %v3161_v11 = vrot.slane %v3159_v4, 1  ;;  %v12700_v34 = vld [vmem:[%s13174_s25 + $0x58] ss:$0 sps:$4 sm:$0x11]  }
  0x81   : > { %11207 = vmatprep.subr.bf16.mxu0 %v12664_v33  ;;  %v1570_v15 = vrot.slane %v1568_v10, 3  ;;  %v3215_v43 = vshll.u32 %v12700_v34, 16 }
  0x82   : > { %11064 = vmatmul.mubr.bf16.gmra.mrb[12].mxu1 %v1262_v44  ;;  %v1607_v44 = vshll.u32 %v12686_v39, 16  ;;  %v3179_v39 = vshrl.u32 %v12698_v20, 16 }
  0x83   : > { %11080 = vmatpush3.bf16.msra.mxu1 %v12662_v26  ;;  %11192 = vmatmul.mubr.bf16.gmra.mrb[12].mxu0 %v2598_v56  ;;  %v1574_v19 = vor.u32 %v1573_v16, %v1570_v15  ;;  %v12677_v26 = vld [vmem:[%s13174_s25 + $0x30] sm:$0xff]   ;;  %v1615_v56 = vrot.slane %v1613_v50, 3  ;;  %v3185_v16 = vrot.slane %v3183_v7, 1 }
  0x84   : > { %11208 = vmatpush3.bf16.msra.mxu0 %v12664_v33  ;;  %11081 = vmatprep.subr.bf16.mxu1 %v12665_v36  ;;  %v1591_v33 = vrot.slane %v1589_v28, 4  ;;  %v1609_v49 = vrot.slane %v1607_v44, 4  ;;  %v3175_v28 = vshll.u32 %v12698_v20, 16 }
  0x85   : > { %11209 = vmatprep.subr.bf16.mxu0 %v12666_v40  ;;  %11211 = vmatprep.mubr.bf16.mxu0 %v12669_v51  ;;  %v1575_v24 = vsel %vm593_vm0, %v1565_v8, %v1574_v19  ;;  %v1584_v30 = vsel %vm593_vm0, %v1574_v19, %v1583_v25  ;;  %v1616_v51 = vshll.u32 %v12688_v45, 16  ;;  %v3187_v8 = vshrl.u32 %v12694_v0, 16 }
  0x86   : > { %11083 = vmatprep.mubr.bf16.mxu1 %v1557_v6  ;;  %v1592_v37 = vor.u32 %v1591_v33, %v1588_v32  ;;  %v1610_v54 = vor.u32 %v1609_v49, %v1606_v48  ;;  %v12695_v6 = vld [vmem:[%s13174_s25 + $0x40] sm:$0xff]   ;;  %v3207_v33 = vshll.u32 %v12699_v21, 16  ;;  %v3217_v48 = vrot.slane %v3215_v43, 1 }
  0x87   : > { %11082 = vmatpush3.bf16.msra.mxu1 %v12665_v36  ;;  %v1598_v36 = vshll.u32 %v12682_v29, 16  ;;  %v1618_v57 = vrot.slane %v1616_v51, 4  ;;  %v3195_v13 = vshrl.u32 %v12695_v6, 16  ;;  %v3189_v23 = vor.u32 %v3187_v8, %v3185_v16 }
  0x88   : > { %11210 = vmatpush3.bf16.msra.mxu0 %v12666_v40  ;;  %11835 = vmatprep.subr.bf16.mxu1 %v12672_v62  ;;  %v1593_v42 = vsel %vm593_vm0, %v1583_v25, %v1592_v37  ;;  %v3203_v29 = vshrl.u32 %v12697_v17, 16 }
  0x89   : > { %11227 = vmatprep.subr.bf16.mxu0 %v12672_v62  ;;  %v1600_v40 = vrot.slane %v1598_v36, 4  ;;  %v1619_v1 = vor.u32 %v1618_v57, %v1615_v56  ;;  %v3177_v36 = vrot.slane %v3175_v28, 1 }
  0x8a   : > { %11084 = vmatmul.mubr.bf16.vlgmr.msra.gmra.mrb[0].mxu1 %v1566_v14  ;;  %v12696_v14 = vld [vmem:[%s13174_s25 + $0x28] sm:$0xff]  }
  0x8b   : > { %11212 = vmatmul.mubr.bf16.vlgmr.msra.gmra.mrb[0].mxu0 %v12671_v3  ;;  %11843 = vmatpush3.bf16.msra.mxu1 %v12672_v62  ;;  %v1601_v46 = vor.u32 %v1600_v40, %v1597_v38  ;;  %v3156_v3 = vrot.slane %v3154_v63, 1  ;;  %v1620_v15 = vsel %vm593_vm0, %v1610_v54, %v1619_v1  ;;  %v3167_v19 = vshll.u32 %v12696_v14, 16 }
  0x8c   : > { %11228 = vmatpush3.bf16.msra.mxu0 %v12672_v62  ;;  %11836 = vmatprep.subr.bf16.mxu1 %v12673_v9  ;;  %v3152_v62 = vshrl.u32 %v12692_v58, 16  ;;  %v3171_v25 = vshrl.u32 %v12696_v14, 16  ;;  %v3209_v38 = vrot.slane %v3207_v33, 1 }
  0x8d   : > { %11229 = vmatprep.subr.bf16.mxu0 %v12673_v9  ;;  %11215 = vmatprep.mubr.bf16.mxu0 %v12675_v12  ;;  %v1602_v52 = vsel %vm593_vm0, %v1592_v37, %v1601_v46  ;;  %v1611_v59 = vsel %vm593_vm0, %v1601_v46, %v1610_v54  ;;  %v3191_v12 = vshll.u32 %v12695_v6, 16  ;;  %v3169_v27 = vrot.slane %v3167_v19, 1 }
  0x8e   : > { %11087 = vmatprep.mubr.bf16.mxu1 %v1575_v24  ;;  %v3157_v10 = vor.u32 %v3156_v3, %v3152_v62  ;;  %v3199_v24 = vshll.u32 %v12697_v17, 16  ;;  %v3181_v46 = vor.u32 %v3179_v39, %v3177_v36 }
  0x8f   : > { %11844 = vmatpush3.bf16.msra.mxu1 %v12673_v9  ;;  %v3193_v18 = vrot.slane %v3191_v12, 1 }
  0x90   : > { %11230 = vmatpush3.bf16.msra.mxu0 %v12673_v9  ;;  %11837 = vmatprep.subr.bf16.mxu1 %v12678_v22  ;;  %v12691_v9 = vld [vmem:[%s14300_s4 + $0x478] sm:$0xff]   ;;  %v3201_v32 = vrot.slane %v3199_v24, 1  ;;  %v3186_v49 = vsel %vm1194_vm1, %v3181_v46, %v3185_v16 }
  0x91   : > { %11231 = vmatprep.subr.bf16.mxu0 %v12678_v22 }
  0x92   : > { %11088 = vmatmul.mubr.bf16.gmra.mrb[4].mxu1 %v1584_v30  ;;  %v3194_v30 = vsel %vm1194_vm1, %v3189_v23, %v3193_v18  ;;  %v3205_v37 = vor.u32 %v3203_v29, %v3201_v32 }
  0x93   : > { %11216 = vmatmul.mubr.bf16.gmra.mrb[4].mxu0 %v12677_v26  ;;  %11845 = vmatpush3.bf16.msra.mxu1 %v12678_v22  ;;  %v3165_v26 = vor.u32 %v3163_v5, %v3161_v11 }
  0x94   : > { %11232 = vmatpush3.bf16.msra.mxu0 %v12678_v22  ;;  %11838 = vmatprep.subr.bf16.mxu1 %v12679_v31  ;;  %v3162_v22 = vsel %vm1194_vm1, %v3157_v10, %v3161_v11  ;;  %v3210_v45 = vsel %vm1194_vm1, %v3205_v37, %v3209_v38 }
  0x95   : > { %11233 = vmatprep.subr.bf16.mxu0 %v12679_v31  ;;  %11091 = vmatprep.mubr.bf16.mxu1 %v1593_v42  ;;  %v3170_v40 = vsel %vm1194_vm1, %v3165_v26, %v3169_v27  ;;  %v3211_v42 = vshrl.u32 %v12699_v21, 16 }
  0x96   : > { %11219 = vmatprep.mubr.bf16.mxu0 %v12681_v35  ;;  %v3173_v35 = vor.u32 %v3171_v25, %v3169_v27 }
  0x97   : > { %11846 = vmatpush3.bf16.msra.mxu1 %v12679_v31 }
  0x98   : > { %11234 = vmatpush3.bf16.msra.mxu0 %v12679_v31  ;;  %11839 = vmatprep.subr.bf16.mxu1 %v12684_v41  ;;  %v3197_v31 = vor.u32 %v3195_v13, %v3193_v18  ;;  %v3178_v44 = vsel %vm1194_vm1, %v3173_v35, %v3177_v36 }
  0x99   : > { %11235 = vmatprep.subr.bf16.mxu0 %v12684_v41 }
  0x9a   : > { %11092 = vmatmul.mubr.bf16.gmra.mrb[8].mxu1 %v1602_v52 }
  0x9b   : > { %11220 = vmatmul.mubr.bf16.gmra.mrb[8].mxu0 %v12683_v47  ;;  %11847 = vmatpush3.bf16.msra.mxu1 %v12684_v41  ;;  %v3213_v47 = vor.u32 %v3211_v42, %v3209_v38 }
  0x9c   : > { %11236 = vmatpush3.bf16.msra.mxu0 %v12684_v41  ;;  %11840 = vmatprep.subr.bf16.mxu1 %v12685_v53  ;;  %v3202_v41 = vsel %vm1194_vm1, %v3197_v31, %v3201_v32 }
  0x9d   : > { %11237 = vmatprep.subr.bf16.mxu0 %v12685_v53  ;;  %11095 = vmatprep.mubr.bf16.mxu1 %v1611_v59  ;;  %v3218_v50 = vsel %vm1194_vm1, %v3213_v47, %v3217_v48 }
  0x9e   : > { %11223 = vmatprep.mubr.bf16.mxu0 %v12687_v55 }
  0x9f   : > { %11848 = vmatpush3.bf16.msra.mxu1 %v12685_v53 }
  0xa0   : > { %11238 = vmatpush3.bf16.msra.mxu0 %v12685_v53  ;;  %11841 = vmatprep.subr.bf16.mxu1 %v12690_v60 }
  0xa1   : > { %11239 = vmatprep.subr.bf16.mxu0 %v12690_v60 }
  0xa2   : > { %11096 = vmatmul.mubr.bf16.gmra.mrb[12].mxu1 %v1620_v15 }
  0xa3   : > { %11224 = vmatmul.mubr.bf16.gmra.mrb[12].mxu0 %v12689_v2  ;;  %11849 = vmatpush3.bf16.msra.mxu1 %v12690_v60 }
  0xa4   : > { %11240 = vmatpush3.bf16.msra.mxu0 %v12690_v60  ;;  %11842 = vmatprep.subr.bf16.mxu1 %v12691_v9 }
  0xa5   : > { %11241 = vmatprep.subr.bf16.mxu0 %v12691_v9  ;;  %11243 = vmatprep.mubr.bf16.mxu0 %v3162_v22 }
  0xa6   : > { %11251 = vmatprep.mubr.bf16.mxu1 %v3194_v30 }
  0xa7   : > { %11850 = vmatpush3.bf16.msra.mxu1 %v12691_v9 }
  0xa8   : > { %11242 = vmatpush3.bf16.msra.mxu0 %v12691_v9 }
  0xaa   : > { %11252 = vmatmul.mubr.bf16.vlgmr.msra.gmra.mrb[16].mxu1 %v3202_v41 }
  0xab   : > { %11244 = vmatmul.mubr.bf16.vlgmr.msra.gmra.mrb[0].mxu0 %v3170_v40  ;;  %11255 = vmatprep.mubr.bf16.mxu1 %v3210_v45 }
  0xac   : > { %11247 = vmatprep.mubr.bf16.mxu0 %v3178_v44 }
  0xb2   : > { %11256 = vmatmul.mubr.bf16.gmra.mrb[20].mxu1 %v3218_v50 }
  0xb3   : > { %11248 = vmatmul.mubr.bf16.gmra.mrb[4].mxu0 %v3186_v49 }
 0x15d   : > { %v11085_v51 = vpop.f32.mrb[0].mxu1 }
 0x15e   : > { %v1711_v52 = vpop.f32.mrb[1].mxu1 }
 0x15f   : > { %v11086_v53 = vpop.f32.mrb[2].mxu1 }
 0x160   : > { %v1714_v54 = vpop.f32.mrb[3].mxu1 }
 0x165   : > { %v11089_v55 = vpop.f32.mrb[4].mxu1 }
 0x166   : > { %v1727_v56 = vpop.f32.mrb[5].mxu1 }
 0x167   : > { %v11090_v57 = vpop.f32.mrb[6].mxu1 }
 0x168   : > { %v13492_v58 = vpop.f32.mrb[7].mxu1 }
 0x16d   : > { %v11093_v59 = vpop.f32.mrb[8].mxu1 }
 0x16e   : > { %v11221_v60 = vpop.f32.mrb[8].mxu0  ;;  %v1743_v62 = vpop.f32.mrb[9].mxu1 }
 0x16f   : > { %v11877_v61 = vadd.f32 %v11221_v60, %v11093_v59  ;;  %v2995_v63 = vpop.f32.mrb[9].mxu0  ;;  %v11094_v1 = vpop.f32.mrb[10].mxu1  ;;  %v12709_v59 = vld [vmem:[%s14300_s4 + $0x20] sm:$0xff] (!%p9904_p1)  }
 0x170   : > { %v11883_v0 = vadd.f32 %v2995_v63, %v1743_v62  ;;  %v11222_v2 = vpop.f32.mrb[10].mxu0  ;;  %v1746_v4 = vpop.f32.mrb[11].mxu1  ;;  %v12710_v60 = vld [vmem:[%s14300_s4 + $0x120] sm:$0xff] (!%p9904_p1)   ;;  %v12712_v62 = vld [vmem:[%s14300_s4 + $0x128] sm:$0xff] (!%p9904_p1)  }
 0x171   : > { %v11889_v3 = vadd.f32 %v11222_v2, %v11094_v1  ;;  %v2998_v5 = vpop.f32.mrb[11].mxu0  ;;  %v12717_v63 = vld [vmem:[%s13157_s23 + $0x4] sm:$0xf8] (!%p9904_p1)   ;;  %v12713_v1 = vld [vmem:[%s14300_s4 + $0x30] sm:$0xff] (!%p9904_p1)  }
 0x172   : > { %v11895_v6 = vadd.f32 %v2998_v5, %v1746_v4  ;;  %v12719_v2 = vld [vmem:[%s13157_s23 + $0x10] sm:$0xff] (!%p9904_p1)   ;;  %v3501_v4 = vshrl.u32 (!%p9904_p1), %v12717_v63, 16  ;;  %v3504_v5 = vshll.u32 (!%p9904_p1), %v12717_v63, 16  ;;  %v12737_v63 = vld [vmem:[%s14300_s4 + $0x60] sm:$0xff] (!%p9904_p1)  }
 0x173   : > { %11403 = vmatprep.mubr.bf16.mxu0 (!%p9904_p1), %v12719_v2  ;;  %v12744_v2 = vld [vmem:[%s13157_s23 + $0x44] ss:$0 sps:$4 sm:$0xff] (!%p9904_p1)  }
 0x175   : > { %v11097_v7 = vpop.f32.mrb[12].mxu1 }
 0x176   : > { %v11225_v8 = vpop.f32.mrb[12].mxu0  ;;  %v1759_v10 = vpop.f32.mrb[13].mxu1 }
 0x177   : > { %v11901_v9 = vadd.f32 %v11225_v8, %v11097_v7  ;;  %v3011_v11 = vpop.f32.mrb[13].mxu0  ;;  %v11098_v13 = vpop.f32.mrb[14].mxu1  ;;  %v12720_v8 = vld [vmem:[%s13157_s23 + $0x14] sm:$0xff] (!%p9904_p1)  }
 0x178   : > { %v11907_v12 = vadd.f32 %v3011_v11, %v1759_v10  ;;  %v11226_v14 = vpop.f32.mrb[14].mxu0  ;;  %v1762_v16 = vpop.f32.mrb[15].mxu1  ;;  %v3506_v10 = vrot.slane (!%p9904_p1), %v3504_v5, 4 }
 0x179   : > { %v11913_v15 = vadd.f32 %v11226_v14, %v11098_v13  ;;  %v3014_v17 = vpop.f32.mrb[15].mxu0  ;;  %v3518_v13 = vshrl.u32 (!%p9904_p1), %v12720_v8, 16  ;;  %v3521_v14 = vshll.u32 (!%p9904_p1), %v12720_v8, 16  ;;  %v3572_v8 = vshrl.u32 (!%p9904_p1), %v12744_v2, 16 }
 0x17a   : > { %v11919_v18 = vadd.f32 %v3014_v17, %v1762_v16  ;;  %v12715_v17 = vld [vmem:[%s14300_s4 + $0x38] sm:$0xff] (!%p9904_p1)  }
 0x17d   : > { %v11253_v20 = vpop.f32.mrb[16].mxu1 }
 0x17e   : > { %v11245_v19 = vpop.f32.mrb[0].mxu0  ;;  %v11880_v22 = vadd.f32 %v11877_v61, %v11253_v20  ;;  %v3341_v24 = vpop.f32.mrb[17].mxu1  ;;  %v12711_v61 = vld [vmem:[%s14300_s4 + $0x28] sm:$0xff] (!%p9904_p1)   ;;  %v3523_v20 = vrot.slane (!%p9904_p1), %v3521_v14, 4  ;;  %v3574_v14 = vrot.slane (!%p9904_p1), %v3572_v8, 3  ;;  %v12770_v8 = vld [vmem:[%s14300_s4 + $0xa0] sm:$0xff] (!%p9904_p1)  }
 0x17f   : > { %v11853_v21 = vadd.f32 %v11245_v19, %v11085_v51  ;;  %v3309_v23 = vpop.f32.mrb[1].mxu0  ;;  %v11886_v26 = vadd.f32 %v11883_v0, %v3341_v24  ;;  %v11254_v28 = vpop.f32.mrb[18].mxu1  ;;  %v12701_v51 = vld [vmem:[%s14300_s4] sm:$0xff] (!%p9904_p1)   ;;  %v12718_v0 = vld [vmem:[%s13157_s23 + $0xc] sm:$0xff] (!%p9904_p1)   ;;  %v3520_v19 = vrot.slane (!%p9904_p1), %v3518_v13, 3 }
 0x180   : > { %v11856_v25 = vadd.f32 %v3309_v23, %v1711_v52  ;;  %v11246_v27 = vpop.f32.mrb[2].mxu0  ;;  %3414 = vst [vmem:[#allocation2 + $0x50] sm:$0xff] %v11880_v22  ;;  %v11892_v30 = vadd.f32 %v11889_v3, %v11254_v28  ;;  %v3344_v32 = vpop.f32.mrb[19].mxu1  ;;  %v12702_v52 = vld [vmem:[%s14300_s4 + $0x100] sm:$0xff] (!%p9904_p1)   ;;  %11259 = vmatprep.subr.bf16.mxu1 (!%p9904_p1), %v12701_v51  ;;  %v12714_v3 = vld [vmem:[%s14300_s4 + $0x130] sm:$0xff] (!%p9904_p1)   ;;  %v3512_v7 = vshll.u32 (!%p9904_p1), %v12718_v0, 16 }
 0x181   : > { %3406 = vst [vmem:[#allocation2 + $0x10] sm:$0xff] %v11853_v21  ;;  %v11859_v29 = vadd.f32 %v11246_v27, %v11086_v53  ;;  %v3312_v31 = vpop.f32.mrb[3].mxu0  ;;  %3412 = vst [vmem:[#allocation2 + $0x40] sm:$0xff] %v11886_v26  ;;  %v11898_v34 = vadd.f32 %v11895_v6, %v3344_v32  ;;  %v12703_v53 = vld [vmem:[%s14300_s4 + $0x8] sm:$0xff] (!%p9904_p1)   ;;  %11387 = vmatprep.subr.bf16.mxu0 (!%p9904_p1), %v12702_v52  ;;  %11260 = vmatpush3.bf16.msra.mxu1 (!%p9904_p1), %v12701_v51  ;;  %v3509_v6 = vshrl.u32 (!%p9904_p1), %v12718_v0, 16  ;;  %v12726_v23 = vld [vmem:[%s13157_s23 + $0x1c] sm:$0xff] (!%p9904_p1)  }
 0x182   : > { %3404 = vst [vmem:[#allocation2] sm:$0xff] %v11856_v25  ;;  %v11862_v33 = vadd.f32 %v3312_v31, %v1714_v54  ;;  %3415 = vst [vmem:[#allocation2 + $0x58] sm:$0xff] %v11892_v30  ;;  %v12704_v54 = vld [vmem:[%s14300_s4 + $0x108] sm:$0xff] (!%p9904_p1)   ;;  %11388 = vmatpush3.bf16.msra.mxu0 (!%p9904_p1), %v12702_v52  ;;  %11261 = vmatprep.subr.bf16.mxu1 (!%p9904_p1), %v12703_v53  ;;  %v3524_v22 = vor.u32 (!%p9904_p1), %v3523_v20, %v3520_v19  ;;  %v12721_v24 = vld [vmem:[%s14300_s4 + $0x40] sm:$0xff] (!%p9904_p1)   ;;  %v3527_v26 = vshrl.u32 (!%p9904_p1), %v12726_v23, 16 }
 0x183   : > { %3407 = vst [vmem:[#allocation2 + $0x18] sm:$0xff] %v11859_v29  ;;  %3413 = vst [vmem:[#allocation2 + $0x48] sm:$0xff] %v11898_v34  ;;  %11389 = vmatprep.subr.bf16.mxu0 (!%p9904_p1), %v12704_v54  ;;  %v3511_v11 = vrot.slane (!%p9904_p1), %v3509_v6, 3  ;;  %v12723_v25 = vld [vmem:[%s14300_s4 + $0x140] sm:$0xff] (!%p9904_p1)   ;;  %v3530_v27 = vshll.u32 (!%p9904_p1), %v12726_v23, 16  ;;  %v12722_v30 = vld [vmem:[%s13157_s23 + $0x18] sm:$0xff] (!%p9904_p1)  }
 0x184   : > { %3405 = vst [vmem:[#allocation2 + $0x8] sm:$0xff] %v11862_v33  ;;  %v12728_v28 = vld [vmem:[%s13157_s23 + $0x24] sm:$0xff] (!%p9904_p1)   ;;  %v3529_v32 = vrot.slane (!%p9904_p1), %v3527_v26, 3  ;;  %v12742_v0 = vld [vmem:[%s13157_s23 + $0x3c] sm:$0xff] (!%p9904_p1)   ;;  %v12747_v20 = vld [vmem:[%s14300_s4 + $0x170] sm:$0xff] (!%p9904_p1)  }
 0x185   : > { %v11257_v36 = vpop.f32.mrb[20].mxu1  ;;  %11262 = vmatpush3.bf16.msra.mxu1 (!%p9904_p1), %v12703_v53  ;;  %v12724_v31 = vld [vmem:[%s14300_s4 + $0x48] sm:$0xff] (!%p9904_p1)   ;;  %v3532_v33 = vrot.slane (!%p9904_p1), %v3530_v27, 4  ;;  %v3536_v34 = vshrl.u32 (!%p9904_p1), %v12728_v28, 16  ;;  %v12738_v6 = vld [vmem:[%s13157_s23 + $0x38] sm:$0xff] (!%p9904_p1)   ;;  %v12743_v13 = vld [vmem:[%s13157_s23 + $0x40] sm:$0xff] (!%p9904_p1)  }
 0x186   : > { %v11249_v35 = vpop.f32.mrb[4].mxu0  ;;  %v11904_v38 = vadd.f32 %v11901_v9, %v11257_v36  ;;  %v3357_v40 = vpop.f32.mrb[21].mxu1  ;;  %3423 = sbr.rel (%p9904_p1) target bundleno = 771 (0x303), region = 52  ;;  %11390 = vmatpush3.bf16.msra.mxu0 (!%p9904_p1), %v12704_v54  ;;  %v3503_v9 = vrot.slane (!%p9904_p1), %v3501_v4, 3  ;;  %v12725_v36 = vld [vmem:[%s14300_s4 + $0x148] sm:$0xff] (!%p9904_p1)   ;;  %v3566_v4 = vshll.u32 (!%p9904_p1), %v12742_v0, 16 }
 0x187   : > { %v11865_v37 = vadd.f32 %v11249_v35, %v11089_v55  ;;  %v3325_v39 = vpop.f32.mrb[5].mxu0  ;;  %v11910_v42 = vadd.f32 %v11907_v12, %v3357_v40  ;;  %v11258_v44 = vpop.f32.mrb[22].mxu1  ;;  %v12705_v55 = vld [vmem:[%s14300_s4 + $0x10] sm:$0xff] (!%p9904_p1)   ;;  %v3514_v12 = vrot.slane (!%p9904_p1), %v3512_v7, 4  ;;  %v3539_v35 = vshll.u32 (!%p9904_p1), %v12728_v28, 16  ;;  %v12740_v7 = vld [vmem:[%s14300_s4 + $0x68] sm:$0xff] (!%p9904_p1)  }
 0x188   : > { %v11868_v41 = vadd.f32 %v3325_v39, %v1727_v56  ;;  %v11250_v43 = vpop.f32.mrb[6].mxu0  ;;  %3418 = vst [vmem:[#allocation2 + $0x70] sm:$0xff] %v11904_v38  ;;  %v11916_v46 = vadd.f32 %v11913_v15, %v11258_v44  ;;  %v3360_v48 = vpop.f32.mrb[23].mxu1  ;;  %v12706_v56 = vld [vmem:[%s14300_s4 + $0x110] sm:$0xff] (!%p9904_p1)   ;;  %11263 = vmatprep.subr.bf16.mxu1 (!%p9904_p1), %v12705_v55  ;;  %v3507_v15 = vor.u32 (!%p9904_p1), %v3506_v10, %v3503_v9  ;;  %v12727_v38 = vld [vmem:[%s13157_s23 + $0x20] sm:$0xff] (!%p9904_p1)   ;;  %v3538_v39 = vrot.slane (!%p9904_p1), %v3536_v34, 3 }
 0x189   : > { %3410 = vst [vmem:[#allocation2 + $0x30] sm:$0xff] %v11865_v37  ;;  %v11871_v45 = vadd.f32 %v11250_v43, %v11090_v57  ;;  %v3328_v47 = vpop.f32.mrb[7].mxu0  ;;  %3416 = vst [vmem:[#allocation2 + $0x60] sm:$0xff] %v11910_v42  ;;  %v11922_v50 = vadd.f32 %v11919_v18, %v3360_v48  ;;  %v12707_v57 = vld [vmem:[%s14300_s4 + $0x18] sm:$0xff] (!%p9904_p1)   ;;  %11391 = vmatprep.subr.bf16.mxu0 (!%p9904_p1), %v12706_v56  ;;  %11264 = vmatpush3.bf16.msra.mxu1 (!%p9904_p1), %v12705_v55  ;;  %v3541_v40 = vrot.slane (!%p9904_p1), %v3539_v35, 4  ;;  %v12734_v43 = vld [vmem:[%s13157_s23 + $0x2c] sm:$0xff] (!%p9904_p1)  }
 0x18a   : > { %3408 = vst [vmem:[#allocation2 + $0x20] sm:$0xff] %v11868_v41  ;;  %v11874_v49 = vadd.f32 %v3328_v47, %v13492_v58  ;;  %3419 = vst [vmem:[#allocation2 + $0x78] sm:$0xff] %v11916_v46  ;;  %v12708_v58 = vld [vmem:[%s14300_s4 + $0x118] sm:$0xff] (!%p9904_p1)   ;;  %11392 = vmatpush3.bf16.msra.mxu0 (!%p9904_p1), %v12706_v56  ;;  %11265 = vmatprep.subr.bf16.mxu1 (!%p9904_p1), %v12707_v57  ;;  %v3515_v16 = vor.u32 (!%p9904_p1), %v3514_v12, %v3511_v11  ;;  %v12729_v44 = vld [vmem:[%s14300_s4 + $0x50] sm:$0xff] (!%p9904_p1)   ;;  %v3545_v47 = vshrl.u32 (!%p9904_p1), %v12734_v43, 16 }
 0x18b   : > { %3411 = vst [vmem:[#allocation2 + $0x38] sm:$0xff] %v11871_v45  ;;  %3417 = vst [vmem:[#allocation2 + $0x68] sm:$0xff] %v11922_v50  ;;  %11393 = vmatprep.subr.bf16.mxu0 (!%p9904_p1), %v12708_v58  ;;  %v12716_v18 = vld [vmem:[%s14300_s4 + $0x138] sm:$0xff] (!%p9904_p1)   ;;  %v3533_v37 = vor.u32 (!%p9904_p1), %v3532_v33, %v3529_v32  ;;  %v3542_v42 = vor.u32 (!%p9904_p1), %v3541_v40, %v3538_v39  ;;  %v12730_v45 = vld [vmem:[%s13157_s23 + $0x28] sm:$0xff] (!%p9904_p1)   ;;  %v3548_v48 = vshll.u32 (!%p9904_p1), %v12734_v43, 16  ;;  %v3575_v9 = vshll.u32 (!%p9904_p1), %v12744_v2, 16 }
 0x18c   : > { %3409 = vst [vmem:[#allocation2 + $0x28] sm:$0xff] %v11874_v49  ;;  %v3516_v21 = vsel (!%p9904_p1), %vm593_vm0, %v3507_v15, %v3515_v16  ;;  %v3525_v29 = vsel (!%p9904_p1), %vm593_vm0, %v3515_v16, %v3524_v22  ;;  %v12731_v46 = vld [vmem:[%s14300_s4 + $0x150] sm:$0xff] (!%p9904_p1)   ;;  %v3547_v51 = vrot.slane (!%p9904_p1), %v3545_v47, 3  ;;  %v12732_v55 = vld [vmem:[%s14300_s4 + $0x58] sm:$0xff] (!%p9904_p1)   ;;  %v3568_v11 = vrot.slane (!%p9904_p1), %v3566_v4, 4  ;;  %v12741_v12 = vld [vmem:[%s14300_s4 + $0x168] sm:$0xff] (!%p9904_p1)  }
 0x18d   : > { %11266 = vmatpush3.bf16.msra.mxu1 %v12707_v57  ;;  %11275 = vmatprep.mubr.bf16.mxu1 %v3516_v21  ;;  %v3534_v41 = vsel %vm593_vm0, %v3524_v22, %v3533_v37  ;;  %v12736_v49 = vld [vmem:[%s13157_s23 + $0x34] sm:$0xff]   ;;  %v3543_v50 = vsel %vm593_vm0, %v3533_v37, %v3542_v42  ;;  %v3550_v52 = vrot.slane %v3548_v48, 4  ;;  %v3577_v15 = vrot.slane %v3575_v9, 4  ;;  %v12746_v21 = vld [vmem:[%s13157_s23 + $0x48] sm:$0xff]   ;;  %v12755_v34 = vld [vmem:[%s13157_s23 + $0x20] sm:$0xff]  }
 0x18e   : > { %11394 = vmatpush3.bf16.msra.mxu0 %v12708_v58  ;;  %11267 = vmatprep.subr.bf16.mxu1 %v12709_v59  ;;  %v3554_v53 = vshrl.u32 %v12736_v49, 16  ;;  %v3557_v54 = vshll.u32 %v12736_v49, 16  ;;  %v12733_v56 = vld [vmem:[%s14300_s4 + $0x158] sm:$0xff]   ;;  %v12735_v58 = vld [vmem:[%s13157_s23 + $0x30] sm:$0xff]   ;;  %v5126_v39 = vshll.u32 %v12755_v34, 16  ;;  %v12756_v40 = vld [vmem:[%s14300_s4 + $0x180] sm:$0xff]  }
 0x18f   : > { %11395 = vmatprep.subr.bf16.mxu0 %v12710_v60  ;;  %v3551_v57 = vor.u32 %v3550_v52, %v3547_v51  ;;  %v12748_v22 = vld [vmem:[%s14300_s4 + $0x78] sm:$0xff]   ;;  %v12751_v23 = vld [vmem:[%s13157_s23 + $0x10] sm:$0xff]   ;;  %v12758_v47 = vld [vmem:[%s14300_s4 + $0x188] sm:$0xff]  }
 0x190   : > { %v12749_v26 = vld [vmem:[%s14300_s4 + $0x178] sm:$0xff]   ;;  %v5111_v27 = vshrl.u32 %v12751_v23, 16  ;;  %v5113_v28 = vshll.u32 %v12751_v23, 16  ;;  %v12753_v37 = vld [vmem:[%s13157_s23 + $0x10] sm:$0xff]   ;;  %v5128_v43 = vrot.slane %v5126_v39, 1  ;;  %v12767_v2 = vld [vmem:[%s13157_s23 + $0x28] sm:$0xff]  }
 0x191   : > { %11268 = vmatpush3.bf16.msra.mxu1 %v12709_v59  ;;  %v3556_v59 = vrot.slane %v3554_v53, 3  ;;  %v12759_v48 = vld [vmem:[%s13157_s23 + $0x18] sm:$0xff]   ;;  %v12763_v51 = vld [vmem:[%s13157_s23 + $0x30] sm:$0xff]  }
 0x192   : > { %11396 = vmatpush3.bf16.msra.mxu0 %v12710_v60  ;;  %11269 = vmatprep.subr.bf16.mxu1 %v12711_v61  ;;  %v3559_v60 = vrot.slane %v3557_v54, 4  ;;  %v5115_v32 = vrot.slane %v5113_v28, 1  ;;  %v12761_v54 = vld [vmem:[%s13157_s23 + $0x20] sm:$0xff]  }
 0x193   : > { %11397 = vmatprep.subr.bf16.mxu0 %v12712_v62  ;;  %v12777_v28 = vld [vmem:[%s13157_s23 + $0x40] sm:$0xff]  }
 0x194   : > { %v5116_v35 = vor.u32 %v5115_v32, %v5111_v27  ;;  %v12780_v27 = vld [vmem:[%s14300_s4 + $0x1b0] sm:$0xff]  }
 0x195   : > { %11270 = vmatpush3.bf16.msra.mxu1 %v12711_v61  ;;  %v3552_v61 = vsel %vm593_vm0, %v3542_v42, %v3551_v57 }
 0x196   : > { %11398 = vmatpush3.bf16.msra.mxu0 %v12712_v62  ;;  %11271 = vmatprep.subr.bf16.mxu1 %v12713_v1  ;;  %v3560_v62 = vor.u32 %v3559_v60, %v3556_v59  ;;  %v12764_v59 = vld [vmem:[%s14300_s4 + $0x190] sm:$0xff]   ;;  %v5146_v60 = vshrl.u32 %v12763_v51, 16 }
 0x197   : > { %11399 = vmatprep.subr.bf16.mxu0 %v12714_v3 }
 0x198   : > { %v3561_v5 = vsel %vm593_vm0, %v3551_v57, %v3560_v62 }
 0x199   : > { %11272 = vmatpush3.bf16.msra.mxu1 %v12713_v1  ;;  %v12739_v1 = vld [vmem:[%s14300_s4 + $0x160] sm:$0xff]  }
 0x19a   : > { %11400 = vmatpush3.bf16.msra.mxu0 %v12714_v3  ;;  %11273 = vmatprep.subr.bf16.mxu1 %v12715_v17  ;;  %v3563_v3 = vshrl.u32 %v12742_v0, 16 }
 0x19b   : > { %11401 = vmatprep.subr.bf16.mxu0 %v12716_v18 }
 0x19c   : > { %v3565_v10 = vrot.slane %v3563_v3, 3 }
 0x19d   : > { %11274 = vmatpush3.bf16.msra.mxu1 %v12715_v17  ;;  %v3578_v17 = vor.u32 %v3577_v15, %v3574_v14  ;;  %v12769_v14 = vld [vmem:[%s13157_s23 + $0x30] sm:$0xff]  }
 0x19e   : > { %11402 = vmatpush3.bf16.msra.mxu0 %v12716_v18  ;;  %11291 = vmatprep.subr.bf16.mxu1 %v12721_v24  ;;  %v3569_v16 = vor.u32 %v3568_v11, %v3565_v10  ;;  %v12745_v18 = vld [vmem:[%s14300_s4 + $0x70] sm:$0xff]  }
 0x19f   : > { %11419 = vmatprep.subr.bf16.mxu0 %v12723_v25 }
 0x1a0   : > { %11276 = vmatmul.mubr.bf16.vlgmr.msra.gmra.mrb[0].mxu1 %v3525_v29  ;;  %v3570_v19 = vsel %vm593_vm0, %v3560_v62, %v3569_v16  ;;  %v12765_v62 = vld [vmem:[%s14300_s4 + $0x98] sm:$0xff]  }
 0x1a1   : > { %11404 = vmatmul.mubr.bf16.vlgmr.msra.gmra.mrb[0].mxu0 %v12722_v30  ;;  %11292 = vmatpush3.bf16.msra.mxu1 %v12721_v24  ;;  %v12752_v24 = vld [vmem:[%s13157_s23 + $0x18] sm:$0xff]  }
 0x1a2   : > { %11420 = vmatpush3.bf16.msra.mxu0 %v12723_v25  ;;  %11293 = vmatprep.subr.bf16.mxu1 %v12724_v31  ;;  %v3579_v25 = vsel %vm593_vm0, %v3569_v16, %v3578_v17  ;;  %v5118_v29 = vshll.u32 %v12752_v24, 16  ;;  %v5122_v30 = vshrl.u32 %v12752_v24, 16  ;;  %v12776_v16 = vld [vmem:[%s13157_s23 + $0x48] sm:$0xff]   ;;  %v12778_v24 = vld [vmem:[%s14300_s4 + $0xb0] sm:$0xff]  }
 0x1a3   : > { %11421 = vmatprep.subr.bf16.mxu0 %v12725_v36  ;;  %11279 = vmatprep.mubr.bf16.mxu1 %v3534_v41  ;;  %v5130_v41 = vshrl.u32 %v12755_v34, 16  ;;  %v5170_v23 = vshrl.u32 %v12776_v16, 16  ;;  %v12781_v34 = vld [vmem:[%s14300_s4 + $0xb8] sm:$0xff]  }
 0x1a4   : > { %11407 = vmatprep.mubr.bf16.mxu0 %v12727_v38  ;;  %v5120_v33 = vrot.slane %v5118_v29, 1  ;;  %v12754_v38 = vld [vmem:[%s14300_s4 + $0x80] sm:$0xff]  }
 0x1a5   : > { %11294 = vmatpush3.bf16.msra.mxu1 %v12724_v31  ;;  %v12750_v31 = vld [vmem:[%s13157_s23 + $0x8] sm:$0xff]   ;;  %v5132_v49 = vor.u32 %v5130_v41, %v5128_v43 }
 0x1a6   : > { %11422 = vmatpush3.bf16.msra.mxu0 %v12725_v36  ;;  %11295 = vmatprep.subr.bf16.mxu1 %v12729_v44  ;;  %v5124_v36 = vor.u32 %v5122_v30, %v5120_v33  ;;  %v5121_v42 = vsel %vm1194_vm1, %v5116_v35, %v5120_v33  ;;  %v12783_v30 = vld [vmem:[%s13157_s23 + $0x8] sm:$0xff]   ;;  %v12784_v35 = vld [vmem:[%s13157_s23 + $0x10] sm:$0xff]  }
 0x1a7   : > { %11423 = vmatprep.subr.bf16.mxu0 %v12731_v46  ;;  %v4144_v41 = vshrl.u32 %v12784_v35, 16 }
 0x1a8   : > { %11280 = vmatmul.mubr.bf16.gmra.mrb[4].mxu1 %v3543_v50 }
 0x1a9   : > { %11408 = vmatmul.mubr.bf16.gmra.mrb[4].mxu0 %v12730_v45  ;;  %11296 = vmatpush3.bf16.msra.mxu1 %v12729_v44  ;;  %v12757_v44 = vld [vmem:[%s14300_s4 + $0x88] sm:$0xff]  }
 0x1aa   : > { %11424 = vmatpush3.bf16.msra.mxu0 %v12731_v46  ;;  %11297 = vmatprep.subr.bf16.mxu1 %v12732_v55  ;;  %v12760_v45 = vld [vmem:[%s13157_s23 + $0x28] sm:$0xff]   ;;  %v5129_v46 = vsel %vm1194_vm1, %v5124_v36, %v5128_v43  ;;  %v12782_v36 = vld [vmem:[%s14300_s4 + $0x1b8] sm:$0xff]  }
 0x1ab   : > { %11425 = vmatprep.subr.bf16.mxu0 %v12733_v56  ;;  %11283 = vmatprep.mubr.bf16.mxu1 %v3552_v61  ;;  %v5134_v50 = vshll.u32 %v12760_v45, 16  ;;  %v5138_v52 = vshrl.u32 %v12760_v45, 16  ;;  %v12785_v43 = vld [vmem:[%s13157_s23 + $0x14] sm:$0xf8]  }
 0x1ac   : > { %11411 = vmatprep.mubr.bf16.mxu0 %v12735_v58 }
 0x1ad   : > { %11298 = vmatpush3.bf16.msra.mxu1 %v12732_v55  ;;  %v5136_v53 = vrot.slane %v5134_v50, 1  ;;  %v12762_v55 = vld [vmem:[%s14300_s4 + $0x90] sm:$0xff]  }
 0x1ae   : > { %11426 = vmatpush3.bf16.msra.mxu0 %v12733_v56  ;;  %11299 = vmatprep.subr.bf16.mxu1 %v12737_v63  ;;  %v5142_v56 = vshll.u32 %v12763_v51, 16  ;;  %v12788_v51 = vld [vmem:[%s14300_s4 + $0xc0] sm:$0xff]  }
 0x1af   : > { %11427 = vmatprep.subr.bf16.mxu0 %v12739_v1  ;;  %v5137_v57 = vsel %vm1194_vm1, %v5132_v49, %v5136_v53  ;;  %v5140_v58 = vor.u32 %v5138_v52, %v5136_v53  ;;  %v5460_v49 = vshll.u32 %v12785_v43, 16 }
 0x1b0   : > { %11284 = vmatmul.mubr.bf16.gmra.mrb[8].mxu1 %v3561_v5  ;;  %v5144_v61 = vrot.slane %v5142_v56, 1  ;;  %v12771_v5 = vld [vmem:[%s13157_s23 + $0x40] sm:$0xff]  }
 0x1b1   : > { %11412 = vmatmul.mubr.bf16.gmra.mrb[8].mxu0 %v12738_v6  ;;  %11300 = vmatpush3.bf16.msra.mxu1 %v12737_v63  ;;  %v12768_v63 = vld [vmem:[%s13157_s23 + $0x38] sm:$0xff]   ;;  %v5158_v9 = vshll.u32 %v12771_v5, 16 }
 0x1b2   : > { %11428 = vmatpush3.bf16.msra.mxu0 %v12739_v1  ;;  %11301 = vmatprep.subr.bf16.mxu1 %v12740_v7  ;;  %v5145_v0 = vsel %vm1194_vm1, %v5140_v58, %v5144_v61  ;;  %v12766_v1 = vld [vmem:[%s14300_s4 + $0x198] sm:$0xff]   ;;  %v5148_v3 = vor.u32 %v5146_v60, %v5144_v61  ;;  %v5150_v4 = vshll.u32 %v12768_v63, 16  ;;  %v5154_v6 = vshrl.u32 %v12768_v63, 16 }
 0x1b3   : > { %11429 = vmatprep.subr.bf16.mxu0 %v12741_v12  ;;  %11287 = vmatprep.mubr.bf16.mxu1 %v3570_v19  ;;  %v5160_v15 = vrot.slane %v5158_v9, 1  ;;  %v12774_v19 = vld [vmem:[%s14300_s4 + $0x1a8] sm:$0xff]  }
 0x1b4   : > { %11415 = vmatprep.mubr.bf16.mxu0 %v12743_v13  ;;  %v5162_v13 = vshrl.u32 %v12771_v5, 16  ;;  %v12792_v9 = vld [vmem:[%s14300_s4 + $0x1c8] sm:$0xff]  }
 0x1b5   : > { %11302 = vmatpush3.bf16.msra.mxu1 %v12740_v7  ;;  %v5152_v7 = vrot.slane %v5150_v4, 1  ;;  %v12791_v4 = vld [vmem:[%s14300_s4 + $0xc8] sm:$0xff]  }
 0x1b6   : > { %11430 = vmatpush3.bf16.msra.mxu0 %v12741_v12  ;;  %11303 = vmatprep.subr.bf16.mxu1 %v12745_v18  ;;  %v12772_v12 = vld [vmem:[%s14300_s4 + $0x1a0] sm:$0xff]  }
 0x1b7   : > { %11431 = vmatprep.subr.bf16.mxu0 %v12747_v20  ;;  %v5153_v10 = vsel %vm1194_vm1, %v5148_v3, %v5152_v7  ;;  %v5156_v11 = vor.u32 %v5154_v6, %v5152_v7 }
 0x1b8   : > { %11288 = vmatmul.mubr.bf16.gmra.mrb[12].mxu1 %v3579_v25  ;;  %v12779_v25 = vld [vmem:[%s13157_s23 + $0x50] ss:$0 sps:$4 sm:$0x11]  }
 0x1b9   : > { %11416 = vmatmul.mubr.bf16.gmra.mrb[12].mxu0 %v12746_v21  ;;  %11304 = vmatpush3.bf16.msra.mxu1 %v12745_v18  ;;  %v5161_v17 = vsel %vm1194_vm1, %v5156_v11, %v5160_v15  ;;  %v12773_v18 = vld [vmem:[%s14300_s4 + $0xa8] sm:$0xff]   ;;  %v5164_v21 = vor.u32 %v5162_v13, %v5160_v15  ;;  %v5174_v29 = vshll.u32 %v12779_v25, 16 }
 0x1ba   : > { %11432 = vmatpush3.bf16.msra.mxu0 %v12747_v20  ;;  %11305 = vmatprep.subr.bf16.mxu1 %v12748_v22  ;;  %v12775_v20 = vld [vmem:[%s13157_s23 + $0x38] sm:$0xff]   ;;  %v12795_v15 = vld [vmem:[%s13157_s23 + $0x28] sm:$0xff]  }
 0x1bb   : > { %11433 = vmatprep.subr.bf16.mxu0 %v12749_v26  ;;  %11307 = vmatprep.mubr.bf16.mxu1 %v12750_v31  ;;  %v5176_v33 = vrot.slane %v5174_v29, 1 }
 0x1bc   : > { %11435 = vmatprep.mubr.bf16.mxu0 %v5121_v42 }
 0x1bd   : > { %11306 = vmatpush3.bf16.msra.mxu1 %v12748_v22  ;;  %v5166_v22 = vshll.u32 %v12776_v16, 16 }
 0x1be   : > { %11434 = vmatpush3.bf16.msra.mxu0 %v12749_v26  ;;  %11323 = vmatprep.subr.bf16.mxu1 %v12754_v38 }
 0x1bf   : > { %11451 = vmatprep.subr.bf16.mxu0 %v12756_v40  ;;  %v5168_v26 = vrot.slane %v5166_v22, 1  ;;  %v4164_v22 = vshll.u32 %v12795_v15, 16 }
 0x1c0   : > { %11308 = vmatmul.mubr.bf16.vlgmr.msra.gmra.mrb[0].mxu1 %v12753_v37  ;;  %v4133_v37 = vshrl.u32 %v12783_v30, 16 }
 0x1c1   : > { %11436 = vmatmul.mubr.bf16.vlgmr.msra.gmra.mrb[0].mxu0 %v5129_v46  ;;  %11324 = vmatpush3.bf16.msra.mxu1 %v12754_v38  ;;  %v5169_v31 = vsel %vm1194_vm1, %v5164_v21, %v5168_v26  ;;  %v5172_v32 = vor.u32 %v5170_v23, %v5168_v26  ;;  %v4135_v38 = vshll.u32 %v12783_v30, 16  ;;  %v12787_v46 = vld [vmem:[%s13157_s23 + $0x18] sm:$0xff]   ;;  %v4166_v29 = vrot.slane %v4164_v22, 1 }
 0x1c2   : > { %11452 = vmatpush3.bf16.msra.mxu0 %v12756_v40  ;;  %11325 = vmatprep.subr.bf16.mxu1 %v12757_v44  ;;  %v4140_v40 = vshll.u32 %v12784_v35, 16  ;;  %v4152_v5 = vshrl.u32 %v12787_v46, 16  ;;  %v12797_v23 = vld [vmem:[%s13157_s23 + $0x34] sm:$0xff]  }
 0x1c3   : > { %11453 = vmatprep.subr.bf16.mxu0 %v12758_v47  ;;  %11311 = vmatprep.mubr.bf16.mxu1 %v12759_v48  ;;  %v5177_v39 = vsel %vm1194_vm1, %v5172_v32, %v5176_v33  ;;  %v4137_v42 = vrot.slane %v4135_v38, 1  ;;  %v5457_v48 = vshrl.u32 %v12785_v43, 16  ;;  %v5492_v30 = vshrl.u32 %v12797_v23, 16  ;;  %v12799_v33 = vld [vmem:[%s14300_s4 + $0xd8] sm:$0xff]  }
 0x1c4   : > { %11439 = vmatprep.mubr.bf16.mxu0 %v5137_v57  ;;  %v4142_v45 = vrot.slane %v4140_v40, 1  ;;  %v5462_v57 = vrot.slane %v5460_v49, 4  ;;  %v5495_v32 = vshll.u32 %v12797_v23, 16  ;;  %v4168_v40 = vshrl.u32 %v12795_v15, 16  ;;  %v12815_v23 = vld [vmem:[%s14300_s4 + $0xf8] sm:$0xff]  }
 0x1c5   : > { %11326 = vmatpush3.bf16.msra.mxu1 %v12757_v44  ;;  %v12786_v44 = vld [vmem:[%s13157_s23 + $0x1c] sm:$0xff]   ;;  %v5459_v56 = vrot.slane %v5457_v48, 3  ;;  %v5494_v35 = vrot.slane %v5492_v30, 3 }
 0x1c6   : > { %11454 = vmatpush3.bf16.msra.mxu0 %v12758_v47  ;;  %11327 = vmatprep.subr.bf16.mxu1 %v12762_v55  ;;  %v4138_v47 = vor.u32 %v4137_v42, %v4133_v37  ;;  %v5465_v50 = vshrl.u32 %v12786_v44, 16  ;;  %v4146_v52 = vor.u32 %v4144_v41, %v4142_v45  ;;  %v5468_v53 = vshll.u32 %v12786_v44, 16  ;;  %v12802_v41 = vld [vmem:[%s13157_s23 + $0x3c] sm:$0xff]  }
 0x1c7   : > { %11455 = vmatprep.subr.bf16.mxu0 %v12764_v59  ;;  %v5463_v63 = vor.u32 %v5462_v57, %v5459_v56  ;;  %v5497_v38 = vrot.slane %v5495_v32, 4  ;;  %v4170_v43 = vor.u32 %v4168_v40, %v4166_v29  ;;  %v5504_v48 = vshll.u32 %v12802_v41, 16  ;;  %v12806_v56 = vld [vmem:[%s14300_s4 + $0x1e0] sm:$0xff]   ;;  %v12816_v30 = vld [vmem:[%s14300_s4 + $0x1f8] sm:$0xff]  }
 0x1c8   : > { %11312 = vmatmul.mubr.bf16.gmra.mrb[4].mxu1 %v12761_v54  ;;  %v4148_v54 = vshll.u32 %v12787_v46, 16  ;;  %v5467_v58 = vrot.slane %v5465_v50, 3  ;;  %v5470_v60 = vrot.slane %v5468_v53, 4  ;;  %v12803_v46 = vld [vmem:[%s13157_s23 + $0x38] sm:$0xff]  }
 0x1c9   : > { %11440 = vmatmul.mubr.bf16.gmra.mrb[4].mxu0 %v5145_v0  ;;  %11328 = vmatpush3.bf16.msra.mxu1 %v12762_v55  ;;  %v4143_v55 = vsel %vm1194_vm1, %v4138_v47, %v4142_v45  ;;  %v5498_v42 = vor.u32 %v5497_v38, %v5494_v35  ;;  %v5501_v45 = vshrl.u32 %v12802_v41, 16  ;;  %v12804_v47 = vld [vmem:[%s14300_s4 + $0xe0] sm:$0xff]   ;;  %v4180_v53 = vshll.u32 %v12803_v46, 16 }
 0x1ca   : > { %11456 = vmatpush3.bf16.msra.mxu0 %v12764_v59  ;;  %11329 = vmatprep.subr.bf16.mxu1 %v12765_v62  ;;  %v12789_v59 = vld [vmem:[%s13157_s23 + $0x24] sm:$0xff]   ;;  %v4150_v61 = vrot.slane %v4148_v54, 1 }
 0x1cb   : > { %11457 = vmatprep.subr.bf16.mxu0 %v12766_v1  ;;  %11315 = vmatprep.mubr.bf16.mxu1 %v12767_v2  ;;  %v5474_v0 = vshrl.u32 %v12789_v59, 16  ;;  %v5471_v2 = vor.u32 %v5470_v60, %v5467_v58  ;;  %v12805_v54 = vld [vmem:[%s13157_s23 + $0x44] sm:$0xff]  }
 0x1cc   : > { %11443 = vmatprep.mubr.bf16.mxu0 %v5153_v10  ;;  %v4151_v3 = vsel %vm1194_vm1, %v4146_v52, %v4150_v61  ;;  %v12793_v10 = vld [vmem:[%s13157_s23 + $0x20] sm:$0xff]   ;;  %v4154_v13 = vor.u32 %v4152_v5, %v4150_v61  ;;  %v5503_v52 = vrot.slane %v5501_v45, 3  ;;  %v5510_v60 = vshrl.u32 %v12805_v54, 16 }
 0x1cd   : > { %11330 = vmatpush3.bf16.msra.mxu1 %v12765_v62  ;;  %v12790_v62 = vld [vmem:[%s14300_s4 + $0x1c0] sm:$0xff]   ;;  %v5476_v6 = vrot.slane %v5474_v0, 3  ;;  %v4160_v16 = vshrl.u32 %v12793_v10, 16 }
 0x1ce   : > { %11458 = vmatpush3.bf16.msra.mxu0 %v12766_v1  ;;  %11331 = vmatprep.subr.bf16.mxu1 %v12770_v8  ;;  %v5477_v1 = vshll.u32 %v12789_v59, 16  ;;  %v4182_v59 = vrot.slane %v4180_v53, 1  ;;  %v12809_v5 = vld [vmem:[%s13157_s23 + $0x40] sm:$0xff]  }
 0x1cf   : > { %11459 = vmatprep.subr.bf16.mxu0 %v12772_v12  ;;  %v4192_v15 = vshrl.u32 %v12809_v5, 16  ;;  %v12820_v45 = vld [vmem:[%s13157_s23 + $0x1c] sm:$0xff]  }
 0x1d0   : > { %11316 = vmatmul.mubr.bf16.gmra.mrb[8].mxu1 %v12769_v14  ;;  %v5479_v7 = vrot.slane %v5477_v1, 4  ;;  %v4156_v14 = vshll.u32 %v12793_v10, 16  ;;  %v5512_v1 = vrot.slane %v5510_v60, 3  ;;  %v4188_v10 = vshll.u32 %v12809_v5, 16 }
 0x1d1   : > { %11444 = vmatmul.mubr.bf16.gmra.mrb[8].mxu0 %v5161_v17  ;;  %11332 = vmatpush3.bf16.msra.mxu1 %v12770_v8  ;;  %v5472_v8 = vsel %vm593_vm0, %v5463_v63, %v5471_v2  ;;  %v12796_v17 = vld [vmem:[%s14300_s4 + $0xd0] sm:$0xff]   ;;  %v12807_v63 = vld [vmem:[%s14300_s4 + $0xe8] sm:$0xff]  }
 0x1d2   : > { %11460 = vmatpush3.bf16.msra.mxu0 %v12772_v12  ;;  %11333 = vmatprep.subr.bf16.mxu1 %v12773_v18  ;;  %v5480_v11 = vor.u32 %v5479_v7, %v5476_v6  ;;  %v12794_v12 = vld [vmem:[%s13157_s23 + $0x2c] sm:$0xff]   ;;  %v4158_v21 = vrot.slane %v4156_v14, 1  ;;  %v4184_v6 = vshrl.u32 %v12803_v46, 16 }
 0x1d3   : > { %11461 = vmatprep.subr.bf16.mxu0 %v12774_v19  ;;  %11319 = vmatprep.mubr.bf16.mxu1 %v12775_v20  ;;  %v5486_v20 = vshll.u32 %v12794_v12, 16  ;;  %v12810_v7 = vld [vmem:[%s13157_s23 + $0x4c] sm:$0xff]  }
 0x1d4   : > { %11447 = vmatprep.mubr.bf16.mxu0 %v5169_v31  ;;  %v5522_v14 = vshll.u32 %v12810_v7, 16 }
 0x1d5   : > { %11334 = vmatpush3.bf16.msra.mxu1 %v12773_v18  ;;  %v5481_v18 = vsel %vm593_vm0, %v5471_v2, %v5480_v11  ;;  %v5488_v26 = vrot.slane %v5486_v20, 4  ;;  %v12808_v2 = vld [vmem:[%s14300_s4 + $0x1e8] sm:$0xff]   ;;  %v12813_v20 = vld [vmem:[%s13157_s23 + $0x54] ss:$0 sps:$4 sm:$0xff]  }
 0x1d6   : > { %11462 = vmatpush3.bf16.msra.mxu0 %v12774_v19  ;;  %11335 = vmatprep.subr.bf16.mxu1 %v12778_v24  ;;  %v5483_v19 = vshrl.u32 %v12794_v12, 16  ;;  %v12811_v12 = vld [vmem:[%s13157_s23 + $0x48] ss:$0 sps:$4 sm:$0x11]   ;;  %v5524_v22 = vrot.slane %v5522_v14, 4 }
 0x1d7   : > { %11463 = vmatprep.subr.bf16.mxu0 %v12780_v27 }
 0x1d8   : > { %11320 = vmatmul.mubr.bf16.gmra.mrb[12].mxu1 %v12777_v28  ;;  %v5485_v25 = vrot.slane %v5483_v19, 3  ;;  %v4162_v28 = vor.u32 %v4160_v16, %v4158_v21  ;;  %v4196_v19 = vshll.u32 %v12811_v12, 16 }
 0x1d9   : > { %11448 = vmatmul.mubr.bf16.gmra.mrb[12].mxu0 %v5177_v39  ;;  %11336 = vmatpush3.bf16.msra.mxu1 %v12778_v24  ;;  %v12798_v24 = vld [vmem:[%s14300_s4 + $0x1d0] sm:$0xff]  }
 0x1da   : > { %11464 = vmatpush3.bf16.msra.mxu0 %v12780_v27  ;;  %11337 = vmatprep.subr.bf16.mxu1 %v12781_v34  ;;  %v4159_v27 = vsel %vm1194_vm1, %v4154_v13, %v4158_v21  ;;  %v5489_v31 = vor.u32 %v5488_v26, %v5485_v25  ;;  %v12801_v39 = vld [vmem:[%s13157_s23 + $0x30] sm:$0xff]   ;;  %v4198_v26 = vrot.slane %v4196_v19, 1 }
 0x1db   : > { %11465 = vmatprep.subr.bf16.mxu0 %v12782_v36  ;;  %11339 = vmatprep.mubr.bf16.mxu1 %v4143_v55  ;;  %v4172_v44 = vshll.u32 %v12801_v39, 16  ;;  %v4176_v49 = vshrl.u32 %v12801_v39, 16  ;;  %v5506_v55 = vrot.slane %v5504_v48, 4  ;;  %v12812_v13 = vld [vmem:[%s14300_s4 + $0xf0] sm:$0xff]  }
 0x1dc   : > { %11467 = vmatprep.mubr.bf16.mxu0 %v5472_v8  ;;  %v5490_v37 = vsel %vm593_vm0, %v5480_v11, %v5489_v31  ;;  %v5499_v50 = vsel %vm593_vm0, %v5489_v31, %v5498_v42  ;;  %v5519_v11 = vshrl.u32 %v12810_v7, 16  ;;  %v12814_v21 = vld [vmem:[%s14300_s4 + $0x1f0] sm:$0xff]  }
 0x1dd   : > { %11338 = vmatpush3.bf16.msra.mxu1 %v12781_v34  ;;  %v4167_v34 = vsel %vm1194_vm1, %v4162_v28, %v4166_v29  ;;  %v5507_v61 = vor.u32 %v5506_v55, %v5503_v52  ;;  %v5531_v29 = vshll.u32 %v12813_v20, 16  ;;  %v4499_v52 = vshll.u32 %v12820_v45, 16  ;;  %v12824_v55 = vld [vmem:[%s13157_s23 + $0x24] sm:$0xff]  }
 0x1de   : > { %11466 = vmatpush3.bf16.msra.mxu0 %v12782_v36  ;;  %11355 = vmatprep.subr.bf16.mxu1 %v12788_v51  ;;  %v12800_v36 = vld [vmem:[%s14300_s4 + $0x1d8] sm:$0xff]   ;;  %v4508_v60 = vshll.u32 %v12824_v55, 16 }
 0x1df   : > { %11483 = vmatprep.subr.bf16.mxu0 %v12790_v62  ;;  %v5533_v35 = vrot.slane %v5531_v29, 4 }
 0x1e0   : > { %11340 = vmatmul.mubr.bf16.vlgmr.msra.gmra.mrb[0].mxu1 %v4151_v3  ;;  %v5508_v3 = vsel %vm593_vm0, %v5498_v42, %v5507_v61 }
 0x1e1   : > { %11356 = vmatpush3.bf16.msra.mxu1 %v12788_v51  ;;  %11468 = vmatmul.mubr.bf16.vlgmr.msra.gmra.mrb[0].mxu0 %v5481_v18  ;;  %v4174_v51 = vrot.slane %v4172_v44, 1  ;;  %v5521_v18 = vrot.slane %v5519_v11, 3 }
 0x1e2   : > { %11357 = vmatprep.subr.bf16.mxu1 %v12791_v4  ;;  %11484 = vmatpush3.bf16.msra.mxu0 %v12790_v62  ;;  %v5513_v62 = vshll.u32 %v12805_v54, 16 }
 0x1e3   : > { %11485 = vmatprep.subr.bf16.mxu0 %v12792_v9  ;;  %11343 = vmatprep.mubr.bf16.mxu1 %v4159_v27  ;;  %v4175_v57 = vsel %vm1194_vm1, %v4170_v43, %v4174_v51  ;;  %v4178_v58 = vor.u32 %v4176_v49, %v4174_v51  ;;  %v5528_v27 = vshrl.u32 %v12813_v20, 16  ;;  %v5525_v28 = vor.u32 %v5524_v22, %v5521_v18  ;;  %v12822_v51 = vld [vmem:[%s14300_s4 + $0x200] sm:$0xff]   ;;  %v12829_v18 = vld [vmem:[%s14300_s4 + $0x218] sm:$0xff]  }
 0x1e4   : > { %11471 = vmatprep.mubr.bf16.mxu0 %v5490_v37  ;;  %v12817_v37 = vld [vmem:[%s13157_s23 + $0xc] sm:$0xf8]   ;;  %v12831_v22 = vld [vmem:[%s13157_s23 + $0x38] sm:$0xff]  }
 0x1e5   : > { %11358 = vmatpush3.bf16.msra.mxu1 %v12791_v4  ;;  %v4183_v0 = vsel %vm1194_vm1, %v4178_v58, %v4182_v59  ;;  %v5515_v4 = vrot.slane %v5513_v62, 4  ;;  %v5530_v32 = vrot.slane %v5528_v27, 3  ;;  %v4479_v41 = vshrl.u32 %v12817_v37, 16  ;;  %v12826_v62 = vld [vmem:[%s13157_s23 + $0x2c] sm:$0xff]  }
 0x1e6   : > { %11359 = vmatprep.subr.bf16.mxu1 %v12796_v17  ;;  %11486 = vmatpush3.bf16.msra.mxu0 %v12792_v9  ;;  %v4186_v9 = vor.u32 %v4184_v6, %v4182_v59  ;;  %v4482_v42 = vshll.u32 %v12817_v37, 16  ;;  %v4505_v59 = vshrl.u32 %v12824_v55, 16  ;;  %v4517_v5 = vshll.u32 %v12826_v62, 16  ;;  %v12845_v55 = vld [vmem:[%s13157_s23 + $0x38] sm:$0xff]  }
 0x1e7   : > { %11487 = vmatprep.subr.bf16.mxu0 %v12798_v24  ;;  %v5516_v8 = vor.u32 %v5515_v4, %v5512_v1  ;;  %v5534_v40 = vor.u32 %v5533_v35, %v5530_v32  ;;  %v4510_v1 = vrot.slane %v4508_v60, 4  ;;  %v4514_v4 = vshrl.u32 %v12826_v62, 16  ;;  %v12847_v62 = vld [vmem:[%s13157_s23 + $0x48] sm:$0xff]  }
 0x1e8   : > { %11344 = vmatmul.mubr.bf16.gmra.mrb[4].mxu1 %v4167_v34  ;;  %v4484_v48 = vrot.slane %v4482_v42, 4  ;;  %v12837_v42 = vld [vmem:[%s13157_s23 + $0x48] sm:$0xff]   ;;  %v6120_v60 = vshll.u32 %v12845_v55, 16 }
 0x1e9   : > { %11360 = vmatpush3.bf16.msra.mxu1 %v12796_v17  ;;  %11472 = vmatmul.mubr.bf16.gmra.mrb[4].mxu0 %v5499_v50  ;;  %v5517_v16 = vsel %vm593_vm0, %v5507_v61, %v5516_v8  ;;  %v4190_v17 = vrot.slane %v4188_v10, 1  ;;  %v5526_v34 = vsel %vm593_vm0, %v5516_v8, %v5525_v28  ;;  %v5535_v46 = vsel %vm593_vm0, %v5525_v28, %v5534_v40  ;;  %v12830_v10 = vld [vmem:[%s13157_s23 + $0x34] sm:$0xff]  }
 0x1ea   : > { %11361 = vmatprep.subr.bf16.mxu1 %v12799_v33  ;;  %11488 = vmatpush3.bf16.msra.mxu0 %v12798_v24  ;;  %v4496_v50 = vshrl.u32 %v12820_v45, 16  ;;  %v4516_v7 = vrot.slane %v4514_v4, 3  ;;  %v4519_v8 = vrot.slane %v4517_v5, 4  ;;  %v4523_v14 = vshrl.u32 %v12830_v10, 16  ;;  %v12842_v45 = vld [vmem:[%s13157_s23 + $0x18] sm:$0xff]  }
 0x1eb   : > { %11489 = vmatprep.subr.bf16.mxu0 %v12800_v36  ;;  %11347 = vmatprep.mubr.bf16.mxu1 %v4175_v57  ;;  %v4191_v24 = vsel %vm1194_vm1, %v4186_v9, %v4190_v17  ;;  %v4194_v25 = vor.u32 %v4192_v15, %v4190_v17  ;;  %v12821_v57 = vld [vmem:[%s13157_s23 + $0x20] sm:$0xff]   ;;  %v12828_v9 = vld [vmem:[%s14300_s4 + $0x210] sm:$0xff]   ;;  %v4526_v15 = vshll.u32 %v12830_v10, 16  ;;  %v6122_v5 = vrot.slane %v6120_v60, 1 }
 0x1ec   : > { %11475 = vmatprep.mubr.bf16.mxu0 %v5508_v3  ;;  %v4498_v54 = vrot.slane %v4496_v50, 3  ;;  %v4520_v12 = vor.u32 %v4519_v8, %v4516_v7  ;;  %v4525_v19 = vrot.slane %v4523_v14, 3  ;;  %v12841_v7 = vld [vmem:[%s14300_s4 + $0x238] sm:$0xff]  }
 0x1ed   : > { %11362 = vmatpush3.bf16.msra.mxu1 %v12799_v33  ;;  %v4199_v31 = vsel %vm1194_vm1, %v4194_v25, %v4198_v26  ;;  %v12818_v33 = vld [vmem:[%s13157_s23 + $0x14] sm:$0xff]   ;;  %v4528_v20 = vrot.slane %v4526_v15, 4  ;;  %v12836_v26 = vld [vmem:[%s13157_s23 + $0x44] sm:$0xff]  }
 0x1ee   : > { %11363 = vmatprep.subr.bf16.mxu1 %v12804_v47  ;;  %11490 = vmatpush3.bf16.msra.mxu0 %v12800_v36  ;;  %v12819_v36 = vld [vmem:[%s13157_s23 + $0x18] sm:$0xff]   ;;  %v4487_v38 = vshrl.u32 %v12818_v33, 16  ;;  %v4490_v39 = vshll.u32 %v12818_v33, 16  ;;  %v4541_v29 = vshrl.u32 %v12836_v26, 16  ;;  %v12833_v33 = vld [vmem:[%s13157_s23 + $0x40] sm:$0xff]  }
 0x1ef   : > { %11491 = vmatprep.subr.bf16.mxu0 %v12806_v56 }
 0x1f0   : > { %11348 = vmatmul.mubr.bf16.gmra.mrb[8].mxu1 %v4183_v0  ;;  %v4489_v43 = vrot.slane %v4487_v38, 3  ;;  %v4492_v44 = vrot.slane %v4490_v39, 4  ;;  %v4507_v0 = vrot.slane %v4505_v59, 3  ;;  %v4543_v35 = vrot.slane %v4541_v29, 3  ;;  %v12835_v39 = vld [vmem:[%s14300_s4 + $0x228] sm:$0xff]  }
 0x1f1   : > { %11364 = vmatpush3.bf16.msra.mxu1 %v12804_v47  ;;  %11476 = vmatmul.mubr.bf16.gmra.mrb[8].mxu0 %v5517_v16  ;;  %v4481_v47 = vrot.slane %v4479_v41, 3  ;;  %v12832_v16 = vld [vmem:[%s13157_s23 + $0x3c] sm:$0xff]  }
 0x1f2   : > { %11365 = vmatprep.subr.bf16.mxu1 %v12807_v63  ;;  %11492 = vmatpush3.bf16.msra.mxu0 %v12806_v56  ;;  %v4493_v49 = vor.u32 %v4492_v44, %v4489_v43  ;;  %v4501_v56 = vrot.slane %v4499_v52, 4  ;;  %v4511_v6 = vor.u32 %v4510_v1, %v4507_v0  ;;  %v12840_v52 = vld [vmem:[%s14300_s4 + $0x230] sm:$0xff]  }
 0x1f3   : > { %11493 = vmatprep.subr.bf16.mxu0 %v12808_v2  ;;  %11351 = vmatprep.mubr.bf16.mxu1 %v4191_v24  ;;  %v4485_v53 = vor.u32 %v4484_v48, %v4481_v47  ;;  %v4529_v24 = vor.u32 %v4528_v20, %v4525_v19  ;;  %v6089_v47 = vshrl.u32 %v12842_v45, 16  ;;  %v6091_v48 = vshll.u32 %v12842_v45, 16 }
 0x1f4   : > { %11479 = vmatprep.mubr.bf16.mxu0 %v5526_v34  ;;  %v4502_v61 = vor.u32 %v4501_v56, %v4498_v54  ;;  %v4521_v17 = vsel %vm593_vm0, %v4511_v6, %v4520_v12  ;;  %v12834_v34 = vld [vmem:[%s14300_s4 + $0x220] sm:$0xff]   ;;  %v12839_v56 = vld [vmem:[%s13157_s23 + $0x50] sm:$0xff]  }
 0x1f5   : > { %11366 = vmatpush3.bf16.msra.mxu1 %v12807_v63  ;;  %v4494_v58 = vsel %vm593_vm0, %v4485_v53, %v4493_v49  ;;  %v12823_v63 = vld [vmem:[%s14300_s4 + $0x208] sm:$0xff]   ;;  %v4530_v28 = vsel %vm593_vm0, %v4520_v12, %v4529_v24  ;;  %v6093_v53 = vrot.slane %v6091_v48, 1  ;;  %v12849_v12 = vld [vmem:[%s13157_s23 + $0x50] sm:$0xff]  }
 0x1f6   : > { %11367 = vmatprep.subr.bf16.mxu1 %v12812_v13  ;;  %11494 = vmatpush3.bf16.msra.mxu0 %v12808_v2  ;;  %v12825_v2 = vld [vmem:[%s13157_s23 + $0x28] sm:$0xff]   ;;  %v4503_v3 = vsel %vm593_vm0, %v4493_v49, %v4502_v61  ;;  %v4512_v11 = vsel %vm593_vm0, %v4502_v61, %v4511_v6  ;;  %v6124_v61 = vshrl.u32 %v12845_v55, 16  ;;  %v6136_v6 = vshll.u32 %v12847_v62, 16 }
 0x1f7   : > { %11495 = vmatprep.subr.bf16.mxu0 %v12814_v21  ;;  %v12844_v49 = vld [vmem:[%s13157_s23 + $0x28] sm:$0xff]   ;;  %v6144_v20 = vshll.u32 %v12849_v12, 16  ;;  %v6148_v29 = vshrl.u32 %v12849_v12, 16 }
 0x1f8   : > { %11352 = vmatmul.mubr.bf16.gmra.mrb[12].mxu1 %v4199_v31  ;;  %v12838_v31 = vld [vmem:[%s13157_s23 + $0x4c] ss:$0 sps:$4 sm:$0xff]   ;;  %v6104_v59 = vshll.u32 %v12844_v49, 16 }
 0x1f9   : > { %11368 = vmatpush3.bf16.msra.mxu1 %v12812_v13  ;;  %11480 = vmatmul.mubr.bf16.gmra.mrb[12].mxu0 %v5535_v46  ;;  %v12827_v13 = vld [vmem:[%s13157_s23 + $0x30] sm:$0xff]   ;;  %v4550_v37 = vshrl.u32 %v12838_v31, 16  ;;  %v4553_v38 = vshll.u32 %v12838_v31, 16  ;;  %v12843_v46 = vld [vmem:[%s13157_s23 + $0x20] sm:$0xff]  }
 0x1fa   : > { %11496 = vmatpush3.bf16.msra.mxu0 %v12814_v21  ;;  %11369 = vmatprep.subr.bf16.mxu1 %v12815_v23  ;;  %v4532_v21 = vshrl.u32 %v12832_v16, 16  ;;  %v6096_v54 = vshll.u32 %v12843_v46, 16  ;;  %v6106_v15 = vrot.slane %v6104_v59, 1 }
 0x1fb   : > { %11497 = vmatprep.subr.bf16.mxu0 %v12816_v30  ;;  %11499 = vmatprep.mubr.bf16.mxu0 %v12819_v36  ;;  %v4552_v43 = vrot.slane %v4550_v37, 3  ;;  %v4555_v44 = vrot.slane %v4553_v38, 4 }
 0x1fc   : > { %11371 = vmatprep.mubr.bf16.mxu1 %v4494_v58  ;;  %v4534_v25 = vrot.slane %v4532_v21, 3  ;;  %v12846_v58 = vld [vmem:[%s13157_s23 + $0x40] sm:$0xff]   ;;  %v6098_v0 = vrot.slane %v6096_v54, 1  ;;  %v12850_v21 = vld [vmem:[%s13157_s23 + $0x58] ss:$0 sps:$4 sm:$0x11]  }
 0x1fd   : > { %11370 = vmatpush3.bf16.msra.mxu1 %v12815_v23  ;;  %v4535_v23 = vshll.u32 %v12832_v16, 16  ;;  %v6128_v1 = vshll.u32 %v12846_v58, 16  ;;  %v6138_v16 = vrot.slane %v6136_v6, 1  ;;  %v3742_v54 = vld [vmem:[#allocation2 + $0x48] sm:$0xff]  ;;  %v3748_v6 = vld [vmem:[#allocation2 + $0x78] sm:$0xff] }
 0x1fe   : > { %11498 = vmatpush3.bf16.msra.mxu0 %v12816_v30  ;;  %12027 = vmatprep.subr.bf16.mxu1 %v12822_v51  ;;  %v4544_v30 = vshll.u32 %v12836_v26, 16 }
 0x1ff   : > { %11515 = vmatprep.subr.bf16.mxu0 %v12822_v51  ;;  %v4537_v27 = vrot.slane %v4535_v23, 4  ;;  %v6130_v8 = vrot.slane %v6128_v1, 1 }
 0x200   : > { %11372 = vmatmul.mubr.bf16.vlgmr.msra.gmra.mrb[0].mxu1 %v4503_v3  ;;  %v4546_v36 = vrot.slane %v4544_v30, 4  ;;  %v12848_v3 = vld [vmem:[%s13157_s23 + $0x30] sm:$0xff]   ;;  %v6152_v30 = vshll.u32 %v12850_v21, 16  ;;  %v3733_v21 = vld [vmem:[#allocation2] sm:$0xff] }
 0x201   : > { %11500 = vmatmul.mubr.bf16.vlgmr.msra.gmra.mrb[0].mxu0 %v12821_v57  ;;  %12035 = vmatpush3.bf16.msra.mxu1 %v12822_v51  ;;  %v4538_v32 = vor.u32 %v4537_v27, %v4534_v25  ;;  %v6100_v57 = vshrl.u32 %v12843_v46, 16  ;;  %v6112_v10 = vshll.u32 %v12848_v3, 16  ;;  %v6146_v25 = vrot.slane %v6144_v20, 1  ;;  %v3743_v46 = vld [vmem:[#allocation2 + $0x50] sm:$0xff] }
 0x202   : > { %11516 = vmatpush3.bf16.msra.mxu0 %v12822_v51  ;;  %12028 = vmatprep.subr.bf16.mxu1 %v12823_v63  ;;  %v4547_v41 = vor.u32 %v4546_v36, %v4543_v35  ;;  %v4556_v51 = vor.u32 %v4555_v44, %v4552_v43  ;;  %v6116_v26 = vshrl.u32 %v12848_v3, 16  ;;  %v6154_v35 = vrot.slane %v6152_v30, 1  ;;  %v3745_v3 = vld [vmem:[#allocation2 + $0x60] sm:$0xff] }
 0x203   : > { %11517 = vmatprep.subr.bf16.mxu0 %v12823_v63  ;;  %11375 = vmatprep.mubr.bf16.mxu1 %v4512_v11  ;;  %v4539_v40 = vsel %vm593_vm0, %v4529_v24, %v4538_v32  ;;  %v6126_v11 = vor.u32 %v6124_v61, %v6122_v5  ;;  %v6114_v23 = vrot.slane %v6112_v10, 1  ;;  %v3746_v10 = vld [vmem:[#allocation2 + $0x68] sm:$0xff] }
 0x204   : > { %11503 = vmatprep.mubr.bf16.mxu0 %v12825_v2  ;;  %v4548_v50 = vsel %vm593_vm0, %v4538_v32, %v4547_v41  ;;  %v6132_v2 = vshrl.u32 %v12846_v58, 16  ;;  %v4557_v4 = vsel %vm593_vm0, %v4547_v41, %v4556_v51 }
 0x205   : > { %12036 = vmatpush3.bf16.msra.mxu1 %v12823_v63 }
 0x206   : > { %11518 = vmatpush3.bf16.msra.mxu0 %v12823_v63  ;;  %12029 = vmatprep.subr.bf16.mxu1 %v12828_v9  ;;  %v6094_v63 = vor.u32 %v6093_v53, %v6089_v47  ;;  %v6134_v19 = vor.u32 %v6132_v2, %v6130_v8  ;;  %v3741_v47 = vld [vmem:[#allocation2 + $0x40] sm:$0xff]  ;;  %v3747_v2 = vld [vmem:[#allocation2 + $0x70] sm:$0xff] }
 0x207   : > { %11519 = vmatprep.subr.bf16.mxu0 %v12828_v9 }
 0x208   : > { %11376 = vmatmul.mubr.bf16.gmra.mrb[4].mxu1 %v4521_v17  ;;  %v6099_v14 = vsel %vm1194_vm1, %v6094_v63, %v6098_v0  ;;  %v6102_v17 = vor.u32 %v6100_v57, %v6098_v0 }
 0x209   : > { %11504 = vmatmul.mubr.bf16.gmra.mrb[4].mxu0 %v12827_v13  ;;  %12037 = vmatpush3.bf16.msra.mxu1 %v12828_v9  ;;  %v6140_v13 = vshrl.u32 %v12847_v62, 16 }
 0x20a   : > { %11520 = vmatpush3.bf16.msra.mxu0 %v12828_v9  ;;  %12030 = vmatprep.subr.bf16.mxu1 %v12829_v18  ;;  %v6108_v9 = vshrl.u32 %v12844_v49, 16  ;;  %v6107_v27 = vsel %vm1194_vm1, %v6102_v17, %v6106_v15 }
 0x20b   : > { %11521 = vmatprep.subr.bf16.mxu0 %v12829_v18  ;;  %11379 = vmatprep.mubr.bf16.mxu1 %v4530_v28  ;;  %v6142_v24 = vor.u32 %v6140_v13, %v6138_v16  ;;  %v6139_v28 = vsel %vm1194_vm1, %v6134_v19, %v6138_v16 }
 0x20c   : > { %11507 = vmatprep.mubr.bf16.mxu0 %v12831_v22  ;;  %v6110_v22 = vor.u32 %v6108_v9, %v6106_v15 }
 0x20d   : > { %12038 = vmatpush3.bf16.msra.mxu1 %v12829_v18  ;;  %v6147_v32 = vsel %vm1194_vm1, %v6142_v24, %v6146_v25 }
 0x20e   : > { %11522 = vmatpush3.bf16.msra.mxu0 %v12829_v18  ;;  %12031 = vmatprep.subr.bf16.mxu1 %v12834_v34  ;;  %v6131_v18 = vsel %vm1194_vm1, %v6126_v11, %v6130_v8  ;;  %v6115_v31 = vsel %vm1194_vm1, %v6110_v22, %v6114_v23 }
 0x20f   : > { %11523 = vmatprep.subr.bf16.mxu0 %v12834_v34 }
 0x210   : > { %11380 = vmatmul.mubr.bf16.gmra.mrb[8].mxu1 %v4539_v40 }
 0x211   : > { %11508 = vmatmul.mubr.bf16.gmra.mrb[8].mxu0 %v12833_v33  ;;  %12039 = vmatpush3.bf16.msra.mxu1 %v12834_v34  ;;  %v6118_v33 = vor.u32 %v6116_v26, %v6114_v23  ;;  %v3736_v23 = vld [vmem:[#allocation2 + $0x18] sm:$0xff]  ;;  %v3734_v26 = vld [vmem:[#allocation2 + $0x8] sm:$0xff] }
 0x212   : > { %11524 = vmatpush3.bf16.msra.mxu0 %v12834_v34  ;;  %12032 = vmatprep.subr.bf16.mxu1 %v12835_v39  ;;  %v6150_v34 = vor.u32 %v6148_v29, %v6146_v25 }
 0x213   : > { %11525 = vmatprep.subr.bf16.mxu0 %v12835_v39  ;;  %11383 = vmatprep.mubr.bf16.mxu1 %v4548_v50  ;;  %v6123_v36 = vsel %vm1194_vm1, %v6118_v33, %v6122_v5  ;;  %v3744_v50 = vld [vmem:[#allocation2 + $0x58] sm:$0xff] }
 0x214   : > { %11511 = vmatprep.mubr.bf16.mxu0 %v12837_v42  ;;  %v6155_v37 = vsel %vm1194_vm1, %v6150_v34, %v6154_v35 }
 0x215   : > { %12040 = vmatpush3.bf16.msra.mxu1 %v12835_v39 }
 0x216   : > { %11526 = vmatpush3.bf16.msra.mxu0 %v12835_v39  ;;  %12033 = vmatprep.subr.bf16.mxu1 %v12840_v52 }
 0x217   : > { %11527 = vmatprep.subr.bf16.mxu0 %v12840_v52 }
 0x218   : > { %11384 = vmatmul.mubr.bf16.gmra.mrb[12].mxu1 %v4557_v4 }
 0x219   : > { %11512 = vmatmul.mubr.bf16.gmra.mrb[12].mxu0 %v12839_v56  ;;  %12041 = vmatpush3.bf16.msra.mxu1 %v12840_v52 }
 0x21a   : > { %11528 = vmatpush3.bf16.msra.mxu0 %v12840_v52  ;;  %12034 = vmatprep.subr.bf16.mxu1 %v12841_v7 }
 0x21b   : > { %11529 = vmatprep.subr.bf16.mxu0 %v12841_v7  ;;  %11531 = vmatprep.mubr.bf16.mxu0 %v6099_v14 }
 0x21c   : > { %11539 = vmatprep.mubr.bf16.mxu1 %v6131_v18  ;;  %v3735_v18 = vld [vmem:[#allocation2 + $0x10] sm:$0xff] }
 0x21d   : > { %12042 = vmatpush3.bf16.msra.mxu1 %v12841_v7 }
 0x21e   : > { %11530 = vmatpush3.bf16.msra.mxu0 %v12841_v7 }
 0x220   : > { %11540 = vmatmul.mubr.bf16.vlgmr.msra.gmra.mrb[16].mxu1 %v6139_v28 }
 0x221   : > { %11532 = vmatmul.mubr.bf16.vlgmr.msra.gmra.mrb[0].mxu0 %v6107_v27  ;;  %11543 = vmatprep.mubr.bf16.mxu1 %v6147_v32 }
 0x222   : > { %11535 = vmatprep.mubr.bf16.mxu0 %v6115_v31 }
 0x228   : > { %11544 = vmatmul.mubr.bf16.gmra.mrb[20].mxu1 %v6155_v37 }
 0x229   : > { %11536 = vmatmul.mubr.bf16.gmra.mrb[4].mxu0 %v6123_v36 }
 0x2d3   : > { %v11373_v38 = vpop.f32.mrb[0].mxu1 }
 0x2d4   : > { %v4648_v39 = vpop.f32.mrb[1].mxu1  ;;  %v12045_v25 = vadd.f32 %v11373_v38, %v3735_v18 }
 0x2d5   : > { %v11374_v40 = vpop.f32.mrb[2].mxu1  ;;  %v12051_v27 = vadd.f32 %v4648_v39, %v3733_v21 }
 0x2d6   : > { %v4651_v41 = vpop.f32.mrb[3].mxu1  ;;  %v12057_v30 = vadd.f32 %v11374_v40, %v3736_v23 }
 0x2d7   : > { %v12063_v35 = vadd.f32 %v4651_v41, %v3734_v26 }
 0x2db   : > { %v13838_v42 = vpop.f32.mrb[4].mxu1 }
 0x2dc   : > { %v13840_v43 = vpop.f32.mrb[5].mxu1 }
 0x2dd   : > { %v13842_v44 = vpop.f32.mrb[6].mxu1 }
 0x2de   : > { %v13844_v45 = vpop.f32.mrb[7].mxu1 }
 0x2e3   : > { %v11381_v48 = vpop.f32.mrb[8].mxu1 }
 0x2e4   : > { %v11509_v49 = vpop.f32.mrb[8].mxu0  ;;  %v12093_v51 = vadd.f32 %v11381_v48, %v3743_v46  ;;  %v4680_v52 = vpop.f32.mrb[9].mxu1 }
 0x2e5   : > { %v5932_v53 = vpop.f32.mrb[9].mxu0  ;;  %v12102_v55 = vadd.f32 %v4680_v52, %v3741_v47  ;;  %v11382_v56 = vpop.f32.mrb[10].mxu1  ;;  %v3737_v52 = vld [vmem:[#allocation2 + $0x20] sm:$0xff] }
 0x2e6   : > { %v11510_v57 = vpop.f32.mrb[10].mxu0  ;;  %v12096_v58 = vadd.f32 %v12093_v51, %v11509_v49  ;;  %v12111_v59 = vadd.f32 %v11382_v56, %v3744_v50  ;;  %v4683_v60 = vpop.f32.mrb[11].mxu1  ;;  %v3739_v51 = vld [vmem:[#allocation2 + $0x30] sm:$0xff] }
 0x2e7   : > { %v5935_v61 = vpop.f32.mrb[11].mxu0  ;;  %v12105_v62 = vadd.f32 %v12102_v55, %v5932_v53  ;;  %v12120_v63 = vadd.f32 %v4683_v60, %v3742_v54  ;;  %v3740_v53 = vld [vmem:[#allocation2 + $0x38] sm:$0xff]  ;;  %v12069_v41 = vadd.f32 %v13838_v42, %v3739_v51  ;;  %v3738_v54 = vld [vmem:[#allocation2 + $0x28] sm:$0xff]  ;;  %v12075_v55 = vadd.f32 %v13840_v43, %v3737_v52 }
 0x2e8   : > { %v12114_v0 = vadd.f32 %v12111_v59, %v11510_v57 }
 0x2e9   : > { %v12123_v1 = vadd.f32 %v12120_v63, %v5935_v61  ;;  %v12087_v63 = vadd.f32 %v13844_v45, %v3738_v54 }
 0x2eb   : > { %v11385_v4 = vpop.f32.mrb[12].mxu1 }
 0x2ec   : > { %v11513_v5 = vpop.f32.mrb[12].mxu0  ;;  %v12129_v7 = vadd.f32 %v11385_v4, %v3747_v2  ;;  %v4696_v8 = vpop.f32.mrb[13].mxu1 }
 0x2ed   : > { %v5948_v9 = vpop.f32.mrb[13].mxu0  ;;  %v12138_v11 = vadd.f32 %v4696_v8, %v3745_v3  ;;  %v11386_v12 = vpop.f32.mrb[14].mxu1 }
 0x2ee   : > { %v11514_v13 = vpop.f32.mrb[14].mxu0  ;;  %v12132_v14 = vadd.f32 %v12129_v7, %v11513_v5  ;;  %v12147_v15 = vadd.f32 %v11386_v12, %v3748_v6  ;;  %v4699_v16 = vpop.f32.mrb[15].mxu1 }
 0x2ef   : > { %v5951_v17 = vpop.f32.mrb[15].mxu0  ;;  %v12141_v19 = vadd.f32 %v12138_v11, %v5948_v9  ;;  %v12156_v20 = vadd.f32 %v4699_v16, %v3746_v10 }
 0x2f0   : > { %v12150_v22 = vadd.f32 %v12147_v15, %v11514_v13 }
 0x2f1   : > { %v12159_v24 = vadd.f32 %v12156_v20, %v5951_v17 }
 0x2f3   : > { %v11541_v29 = vpop.f32.mrb[16].mxu1 }
 0x2f4   : > { %v11533_v28 = vpop.f32.mrb[0].mxu0  ;;  %v12099_v33 = vadd.f32 %v12096_v58, %v11541_v29  ;;  %v6278_v34 = vpop.f32.mrb[17].mxu1  ;;  %v12081_v58 = vadd.f32 %v13842_v44, %v3740_v53 }
 0x2f5   : > { %v12048_v31 = vadd.f32 %v12045_v25, %v11533_v28  ;;  %v6246_v32 = vpop.f32.mrb[1].mxu0  ;;  %v12108_v46 = vadd.f32 %v12105_v62, %v6278_v34  ;;  %v11542_v47 = vpop.f32.mrb[18].mxu1 }
 0x2f6   : > { %v12054_v36 = vadd.f32 %v12051_v27, %v6246_v32  ;;  %v11534_v37 = vpop.f32.mrb[2].mxu0  ;;  %6351 = vst [vmem:[#allocation2 + $0x50] sm:$0xff] %v12099_v33  ;;  %v12117_v50 = vadd.f32 %v12114_v0, %v11542_v47  ;;  %v6281_v38 = vpop.f32.mrb[19].mxu1 }
 0x2f7   : > { %6343 = vst [vmem:[#allocation2 + $0x10] sm:$0xff] %v12048_v31  ;;  %v12060_v48 = vadd.f32 %v12057_v30, %v11534_v37  ;;  %v6249_v49 = vpop.f32.mrb[3].mxu0  ;;  %6349 = vst [vmem:[#allocation2 + $0x40] sm:$0xff] %v12108_v46  ;;  %v12126_v40 = vadd.f32 %v12123_v1, %v6281_v38 }
 0x2f8   : > { %6341 = vst [vmem:[#allocation2] sm:$0xff] %v12054_v36  ;;  %v12066_v39 = vadd.f32 %v12063_v35, %v6249_v49  ;;  %6352 = vst [vmem:[#allocation2 + $0x58] sm:$0xff] %v12117_v50 }
 0x2f9   : > { %6344 = vst [vmem:[#allocation2 + $0x18] sm:$0xff] %v12060_v48  ;;  %6350 = vst [vmem:[#allocation2 + $0x48] sm:$0xff] %v12126_v40 }
 0x2fa   : > { %6342 = vst [vmem:[#allocation2 + $0x8] sm:$0xff] %v12066_v39 }
 0x2fb   : > { %v11545_v57 = vpop.f32.mrb[20].mxu1 }
 0x2fc   : > { %v11537_v56 = vpop.f32.mrb[4].mxu0  ;;  %v12135_v61 = vadd.f32 %v12132_v14, %v11545_v57  ;;  %v6294_v62 = vpop.f32.mrb[21].mxu1 }
 0x2fd   : > { %v12072_v59 = vadd.f32 %v12069_v41, %v11537_v56  ;;  %v6262_v60 = vpop.f32.mrb[5].mxu0  ;;  %v12144_v2 = vadd.f32 %v12141_v19, %v6294_v62  ;;  %v11546_v3 = vpop.f32.mrb[22].mxu1 }
 0x2fe   : > { %v12078_v0 = vadd.f32 %v12075_v55, %v6262_v60  ;;  %v11538_v1 = vpop.f32.mrb[6].mxu0  ;;  %6355 = vst [vmem:[#allocation2 + $0x70] sm:$0xff] %v12135_v61  ;;  %v12153_v5 = vadd.f32 %v12150_v22, %v11546_v3  ;;  %v6297_v43 = vpop.f32.mrb[23].mxu1 }
 0x2ff   : > { %6347 = vst [vmem:[#allocation2 + $0x30] sm:$0xff] %v12072_v59  ;;  %v12084_v4 = vadd.f32 %v12081_v58, %v11538_v1  ;;  %v6265_v42 = vpop.f32.mrb[7].mxu0  ;;  %6353 = vst [vmem:[#allocation2 + $0x60] sm:$0xff] %v12144_v2  ;;  %v12162_v44 = vadd.f32 %v12159_v24, %v6297_v43 }
 0x300   : > { %6345 = vst [vmem:[#allocation2 + $0x20] sm:$0xff] %v12078_v0  ;;  %v12090_v6 = vadd.f32 %v12087_v63, %v6265_v42  ;;  %6356 = vst [vmem:[#allocation2 + $0x78] sm:$0xff] %v12153_v5 }
 0x301   : > { %6348 = vst [vmem:[#allocation2 + $0x38] sm:$0xff] %v12084_v4  ;;  %6354 = vst [vmem:[#allocation2 + $0x68] sm:$0xff] %v12162_v44 }
 0x302   : > { %6346 = vst [vmem:[#allocation2 + $0x28] sm:$0xff] %v12090_v6 }
 0x303 PF: > { %p10183_p2 = scmp.ge.s32.totalorder %s13023_s24, 3 }
 0x304   : > { %v12851_v45 = vld [vmem:[%s14300_s4 + $0x480] sm:$0xff] (!%p10183_p2)   ;;  %v12853_v8 = vld [vmem:[%s14300_s4 + $0x488] sm:$0xff] (!%p10183_p2)   ;;  %v12855_v10 = vld [vmem:[%s14300_s4 + $0x490] sm:$0xff] (!%p10183_p2)  }
 0x305   : > { %6360 = sbr.rel (%p10183_p2) target bundleno = 1160 (0x488), region = 56  ;;  %v12852_v7 = vld [vmem:[%s14300_s4 + $0x580] sm:$0xff] (!%p10183_p2)   ;;  %11547 = vmatprep.subr.bf16.mxu1 (!%p10183_p2), %v12851_v45  ;;  %v12854_v9 = vld [vmem:[%s14300_s4 + $0x588] sm:$0xff] (!%p10183_p2)   ;;  %v12856_v11 = vld [vmem:[%s14300_s4 + $0x590] sm:$0xff] (!%p10183_p2)  }
 0x306   : > { %11675 = vmatprep.subr.bf16.mxu0 (!%p10183_p2), %v12852_v7  ;;  %11548 = vmatpush3.bf16.msra.mxu1 (!%p10183_p2), %v12851_v45  ;;  %v12857_v12 = vld [vmem:[%s14300_s4 + $0x498] sm:$0xff] (!%p10183_p2)   ;;  %v12859_v14 = vld [vmem:[%s14300_s4 + $0x4a0] sm:$0xff] (!%p10183_p2)   ;;  %v12861_v16 = vld [vmem:[%s14300_s4 + $0x4a8] sm:$0xff] (!%p10183_p2)  }
 0x307   : > { %11676 = vmatpush3.bf16.msra.mxu0 (!%p10183_p2), %v12852_v7  ;;  %11549 = vmatprep.subr.bf16.mxu1 (!%p10183_p2), %v12853_v8  ;;  %v12858_v13 = vld [vmem:[%s14300_s4 + $0x598] sm:$0xff] (!%p10183_p2)   ;;  %v12860_v15 = vld [vmem:[%s14300_s4 + $0x5a0] sm:$0xff] (!%p10183_p2)   ;;  %v12862_v17 = vld [vmem:[%s14300_s4 + $0x5a8] sm:$0xff] (!%p10183_p2)  }
 0x308   : > { %11677 = vmatprep.subr.bf16.mxu0 (!%p10183_p2), %v12854_v9  ;;  %v12867_v18 = vld [vmem:[%s13208_s14 + $0x4] sm:$0xf8] (!%p10183_p2)   ;;  %v12868_v19 = vld [vmem:[%s13208_s14 + $0xc] sm:$0xff] (!%p10183_p2)   ;;  %v12870_v27 = vld [vmem:[%s13208_s14 + $0x14] sm:$0xff] (!%p10183_p2)  }
 0x309   : > { %v12863_v20 = vld [vmem:[%s14300_s4 + $0x4b0] sm:$0xff] (!%p10183_p2)   ;;  %v6439_v23 = vshrl.u32 (!%p10183_p2), %v12867_v18, 16  ;;  %v6442_v24 = vshll.u32 (!%p10183_p2), %v12867_v18, 16  ;;  %v6447_v25 = vshrl.u32 (!%p10183_p2), %v12868_v19, 16  ;;  %v6450_v26 = vshll.u32 (!%p10183_p2), %v12868_v19, 16  ;;  %v12865_v36 = vld [vmem:[%s14300_s4 + $0x4b8] sm:$0xff] (!%p10183_p2)  }
 0x30a   : > { %11550 = vmatpush3.bf16.msra.mxu1 (!%p10183_p2), %v12853_v8  ;;  %v12869_v21 = vld [vmem:[%s13208_s14 + $0x10] sm:$0xff] (!%p10183_p2)   ;;  %v6456_v32 = vshrl.u32 (!%p10183_p2), %v12870_v27, 16  ;;  %v6459_v33 = vshll.u32 (!%p10183_p2), %v12870_v27, 16  ;;  %v12866_v37 = vld [vmem:[%s14300_s4 + $0x5b8] sm:$0xff] (!%p10183_p2)   ;;  %v12871_v38 = vld [vmem:[%s14300_s4 + $0x4c0] sm:$0xff] (!%p10183_p2)  }
 0x30b   : > { %11678 = vmatpush3.bf16.msra.mxu0 (!%p10183_p2), %v12854_v9  ;;  %11551 = vmatprep.subr.bf16.mxu1 (!%p10183_p2), %v12855_v10  ;;  %v12864_v22 = vld [vmem:[%s14300_s4 + $0x5b0] sm:$0xff] (!%p10183_p2)   ;;  %v6441_v28 = vrot.slane (!%p10183_p2), %v6439_v23, 3  ;;  %v6444_v29 = vrot.slane (!%p10183_p2), %v6442_v24, 4  ;;  %v6449_v30 = vrot.slane (!%p10183_p2), %v6447_v25, 3  ;;  %v6452_v31 = vrot.slane (!%p10183_p2), %v6450_v26, 4  ;;  %v12876_v50 = vld [vmem:[%s13208_s14 + $0x1c] sm:$0xff] (!%p10183_p2)  }
 0x30c   : > { %11679 = vmatprep.subr.bf16.mxu0 %v12856_v11  ;;  %11691 = vmatprep.mubr.bf16.mxu0 %v12869_v21  ;;  %v6458_v46 = vrot.slane %v6456_v32, 3  ;;  %v6461_v47 = vrot.slane %v6459_v33, 4  ;;  %v12873_v51 = vld [vmem:[%s14300_s4 + $0x5c0] sm:$0xff]   ;;  %v6465_v39 = vshrl.u32 %v12876_v50, 16  ;;  %v6468_v40 = vshll.u32 %v12876_v50, 16  ;;  %v12872_v41 = vld [vmem:[%s13208_s14 + $0x18] sm:$0xff]  }
 0x30d   : > { %v6445_v34 = vor.u32 %v6444_v29, %v6441_v28  ;;  %v6453_v35 = vor.u32 %v6452_v31, %v6449_v30  ;;  %v12878_v52 = vld [vmem:[%s13208_s14 + $0x24] sm:$0xff]   ;;  %v12884_v2 = vld [vmem:[%s13208_s14 + $0x2c] sm:$0xff]   ;;  %v12886_v6 = vld [vmem:[%s13208_s14 + $0x34] sm:$0xff]  }
 0x30e   : > { %11552 = vmatpush3.bf16.msra.mxu1 %v12855_v10  ;;  %v6462_v49 = vor.u32 %v6461_v47, %v6458_v46  ;;  %v12874_v54 = vld [vmem:[%s14300_s4 + $0x4c8] sm:$0xff]   ;;  %v6467_v55 = vrot.slane %v6465_v39, 3  ;;  %v6470_v56 = vrot.slane %v6468_v40, 4  ;;  %v6474_v57 = vshrl.u32 %v12878_v52, 16  ;;  %v12877_v61 = vld [vmem:[%s13208_s14 + $0x20] sm:$0xff]   ;;  %v12879_v3 = vld [vmem:[%s14300_s4 + $0x4d0] sm:$0xff]  }
 0x30f   : > { %11680 = vmatpush3.bf16.msra.mxu0 %v12856_v11  ;;  %11553 = vmatprep.subr.bf16.mxu1 %v12857_v12  ;;  %v6454_v48 = vsel %vm593_vm0, %v6445_v34, %v6453_v35  ;;  %v6477_v58 = vshll.u32 %v12878_v52, 16  ;;  %v12875_v59 = vld [vmem:[%s14300_s4 + $0x5c8] sm:$0xff]   ;;  %v12881_v42 = vld [vmem:[%s14300_s4 + $0x5d0] sm:$0xff]   ;;  %v6483_v5 = vshrl.u32 %v12884_v2, 16  ;;  %v6486_v43 = vshll.u32 %v12884_v2, 16  ;;  %v12882_v10 = vld [vmem:[%s14300_s4 + $0x4d8] sm:$0xff]  }
 0x310   : > { %11681 = vmatprep.subr.bf16.mxu0 %v12858_v13  ;;  %11563 = vmatprep.mubr.bf16.mxu1 %v6454_v48  ;;  %v6463_v53 = vsel %vm593_vm0, %v6453_v35, %v6462_v49  ;;  %v6471_v60 = vor.u32 %v6470_v56, %v6467_v55  ;;  %v6476_v62 = vrot.slane %v6474_v57, 3  ;;  %v12880_v4 = vld [vmem:[%s13208_s14 + $0x28] sm:$0xff]   ;;  %v6492_v8 = vshrl.u32 %v12886_v6, 16  ;;  %v12883_v11 = vld [vmem:[%s14300_s4 + $0x5d8] sm:$0xff]   ;;  %v12887_v18 = vld [vmem:[%s14300_s4 + $0x4e0] sm:$0xff]  }
 0x311   : > { %v6479_v63 = vrot.slane %v6477_v58, 4  ;;  %v6485_v45 = vrot.slane %v6483_v5, 3  ;;  %v6488_v7 = vrot.slane %v6486_v43, 4  ;;  %v6495_v9 = vshll.u32 %v12886_v6, 16  ;;  %v12892_v19 = vld [vmem:[%s13208_s14 + $0x3c] sm:$0xff]   ;;  %v12890_v26 = vld [vmem:[%s14300_s4 + $0x4e8] sm:$0xff]  }
 0x312   : > { %11554 = vmatpush3.bf16.msra.mxu1 %v12857_v12  ;;  %v6472_v0 = vsel %vm593_vm0, %v6462_v49, %v6471_v60  ;;  %v12894_v21 = vld [vmem:[%s13208_s14 + $0x44] ss:$0 sps:$4 sm:$0xff]   ;;  %v6504_v23 = vshll.u32 %v12892_v19, 16  ;;  %v12888_v25 = vld [vmem:[%s13208_s14 + $0x38] sm:$0xff]   ;;  %v12891_v31 = vld [vmem:[%s14300_s4 + $0x5e8] sm:$0xff]  }
 0x313   : > { %11682 = vmatpush3.bf16.msra.mxu0 %v12858_v13  ;;  %11555 = vmatprep.subr.bf16.mxu1 %v12859_v14  ;;  %v6480_v1 = vor.u32 %v6479_v63, %v6476_v62  ;;  %v6489_v12 = vor.u32 %v6488_v7, %v6485_v45  ;;  %v12885_v13 = vld [vmem:[%s13208_s14 + $0x30] sm:$0xff]   ;;  %v6510_v27 = vshrl.u32 %v12894_v21, 16  ;;  %v6513_v28 = vshll.u32 %v12894_v21, 16  ;;  %v12893_v32 = vld [vmem:[%s13208_s14 + $0x40] sm:$0xff]   ;;  %v12896_v48 = vld [vmem:[%s13208_s14 + $0x48] sm:$0xff]  }
 0x314   : > { %11683 = vmatprep.subr.bf16.mxu0 %v12860_v15  ;;  %v6506_v30 = vrot.slane %v6504_v23, 4  ;;  %v12897_v47 = vld [vmem:[%s14300_s4 + $0x5f0] sm:$0xff]   ;;  %v12898_v49 = vld [vmem:[%s14300_s4 + $0x4f8] sm:$0xff]   ;;  %v12905_v57 = vld [vmem:[%s13208_s14 + $0x20] sm:$0xff]  }
 0x315   : > { %v6481_v44 = vsel %vm593_vm0, %v6471_v60, %v6480_v1  ;;  %v6512_v33 = vrot.slane %v6510_v27, 3  ;;  %v6515_v34 = vrot.slane %v6513_v28, 4  ;;  %v12901_v50 = vld [vmem:[%s13208_s14 + $0x10] sm:$0xff]   ;;  %v12899_v39 = vld [vmem:[%s14300_s4 + $0x5f8] sm:$0xff]   ;;  %v8064_v62 = vshll.u32 %v12905_v57, 16  ;;  %v12906_v63 = vld [vmem:[%s14300_s4 + $0x600] sm:$0xff]  }
 0x316   : > { %11556 = vmatpush3.bf16.msra.mxu1 %v12859_v14  ;;  %v6494_v14 = vrot.slane %v6492_v8, 3  ;;  %v8049_v40 = vshrl.u32 %v12901_v50, 16  ;;  %v8051_v52 = vshll.u32 %v12901_v50, 16  ;;  %v12903_v60 = vld [vmem:[%s13208_s14 + $0x10] sm:$0xff]   ;;  %v12908_v5 = vld [vmem:[%s14300_s4 + $0x608] sm:$0xff]   ;;  %v12909_v43 = vld [vmem:[%s13208_s14 + $0x18] sm:$0xff]  }
 0x317   : > { %11684 = vmatpush3.bf16.msra.mxu0 %v12860_v15  ;;  %11557 = vmatprep.subr.bf16.mxu1 %v12861_v16  ;;  %v6497_v15 = vrot.slane %v6495_v9, 4  ;;  %v8066_v2 = vrot.slane %v8064_v62, 1  ;;  %v12913_v45 = vld [vmem:[%s13208_s14 + $0x30] sm:$0xff]   ;;  %v12911_v9 = vld [vmem:[%s13208_s14 + $0x20] sm:$0xff]   ;;  %v12917_v21 = vld [vmem:[%s13208_s14 + $0x28] sm:$0xff]  }
 0x318   : > { %11685 = vmatprep.subr.bf16.mxu0 %v12862_v17  ;;  %v8053_v55 = vrot.slane %v8051_v52, 1  ;;  %v12920_v27 = vld [vmem:[%s14300_s4 + $0x520] sm:$0xff]  }
 0x319   : > { %v12927_v52 = vld [vmem:[%s13208_s14 + $0x40] sm:$0xff]  }
 0x31a   : > { %11558 = vmatpush3.bf16.msra.mxu1 %v12861_v16  ;;  %v6490_v16 = vsel %vm593_vm0, %v6480_v1, %v6489_v12  ;;  %v8054_v58 = vor.u32 %v8053_v55, %v8049_v40  ;;  %v12930_v40 = vld [vmem:[%s14300_s4 + $0x630] sm:$0xff]  }
 0x31b   : > { %11686 = vmatpush3.bf16.msra.mxu0 %v12862_v17  ;;  %11559 = vmatprep.subr.bf16.mxu1 %v12863_v20  ;;  %v6498_v17 = vor.u32 %v6497_v15, %v6494_v14  ;;  %v12914_v14 = vld [vmem:[%s14300_s4 + $0x610] sm:$0xff]   ;;  %v8084_v15 = vshrl.u32 %v12913_v45, 16 }
 0x31c   : > { %11687 = vmatprep.subr.bf16.mxu0 %v12864_v22 }
 0x31d   : > { %v6499_v24 = vsel %vm593_vm0, %v6489_v12, %v6498_v17 }
 0x31e   : > { %11560 = vmatpush3.bf16.msra.mxu1 %v12863_v20  ;;  %v12889_v20 = vld [vmem:[%s14300_s4 + $0x5e0] sm:$0xff]  }
 0x31f   : > { %11688 = vmatpush3.bf16.msra.mxu0 %v12864_v22  ;;  %11561 = vmatprep.subr.bf16.mxu1 %v12865_v36  ;;  %v6501_v22 = vshrl.u32 %v12892_v19, 16 }
 0x320   : > { %11689 = vmatprep.subr.bf16.mxu0 %v12866_v37 }
 0x321   : > { %v6503_v29 = vrot.slane %v6501_v22, 3 }
 0x322   : > { %11562 = vmatpush3.bf16.msra.mxu1 %v12865_v36  ;;  %v6516_v36 = vor.u32 %v6515_v34, %v6512_v33  ;;  %v12919_v33 = vld [vmem:[%s13208_s14 + $0x30] sm:$0xff]  }
 0x323   : > { %11690 = vmatpush3.bf16.msra.mxu0 %v12866_v37  ;;  %11579 = vmatprep.subr.bf16.mxu1 %v12871_v38  ;;  %v6507_v35 = vor.u32 %v6506_v30, %v6503_v29  ;;  %v12895_v37 = vld [vmem:[%s14300_s4 + $0x4f0] sm:$0xff]  }
 0x324   : > { %11707 = vmatprep.subr.bf16.mxu0 %v12873_v51 }
 0x325   : > { %11564 = vmatmul.mubr.bf16.vlgmr.msra.gmra.mrb[0].mxu1 %v6463_v53  ;;  %v6508_v46 = vsel %vm593_vm0, %v6498_v17, %v6507_v35  ;;  %v12915_v17 = vld [vmem:[%s14300_s4 + $0x518] sm:$0xff]  }
 0x326   : > { %11692 = vmatmul.mubr.bf16.vlgmr.msra.gmra.mrb[0].mxu0 %v12872_v41  ;;  %11580 = vmatpush3.bf16.msra.mxu1 %v12871_v38  ;;  %v12902_v38 = vld [vmem:[%s13208_s14 + $0x18] sm:$0xff]  }
 0x327   : > { %11708 = vmatpush3.bf16.msra.mxu0 %v12873_v51  ;;  %11581 = vmatprep.subr.bf16.mxu1 %v12874_v54  ;;  %v6517_v51 = vsel %vm593_vm0, %v6507_v35, %v6516_v36  ;;  %v8056_v53 = vshll.u32 %v12902_v38, 16  ;;  %v8060_v41 = vshrl.u32 %v12902_v38, 16  ;;  %v12926_v35 = vld [vmem:[%s13208_s14 + $0x48] sm:$0xff]   ;;  %v12928_v38 = vld [vmem:[%s14300_s4 + $0x530] sm:$0xff]  }
 0x328   : > { %11709 = vmatprep.subr.bf16.mxu0 %v12875_v59  ;;  %11567 = vmatprep.mubr.bf16.mxu1 %v6472_v0  ;;  %v8068_v0 = vshrl.u32 %v12905_v57, 16  ;;  %v8108_v50 = vshrl.u32 %v12926_v35, 16  ;;  %v12931_v57 = vld [vmem:[%s14300_s4 + $0x538] sm:$0xff]  }
 0x329   : > { %11695 = vmatprep.mubr.bf16.mxu0 %v12877_v61  ;;  %v8058_v56 = vrot.slane %v8056_v53, 1  ;;  %v12904_v61 = vld [vmem:[%s14300_s4 + $0x500] sm:$0xff]  }
 0x32a   : > { %11582 = vmatpush3.bf16.msra.mxu1 %v12874_v54  ;;  %v12900_v54 = vld [vmem:[%s13208_s14 + $0x8] sm:$0xff]   ;;  %v8070_v6 = vor.u32 %v8068_v0, %v8066_v2 }
 0x32b   : > { %11710 = vmatpush3.bf16.msra.mxu0 %v12875_v59  ;;  %11583 = vmatprep.subr.bf16.mxu1 %v12879_v3  ;;  %v8062_v59 = vor.u32 %v8060_v41, %v8058_v56  ;;  %v8059_v1 = vsel %vm1194_vm1, %v8054_v58, %v8058_v56  ;;  %v12933_v41 = vld [vmem:[%s13208_s14 + $0x8] sm:$0xff]   ;;  %v12934_v58 = vld [vmem:[%s13208_s14 + $0x10] sm:$0xff]  }
 0x32c   : > { %11711 = vmatprep.subr.bf16.mxu0 %v12881_v42  ;;  %v7082_v0 = vshrl.u32 %v12934_v58, 16 }
 0x32d   : > { %11568 = vmatmul.mubr.bf16.gmra.mrb[4].mxu1 %v6481_v44 }
 0x32e   : > { %11696 = vmatmul.mubr.bf16.gmra.mrb[4].mxu0 %v12880_v4  ;;  %11584 = vmatpush3.bf16.msra.mxu1 %v12879_v3  ;;  %v12907_v3 = vld [vmem:[%s14300_s4 + $0x508] sm:$0xff]  }
 0x32f   : > { %11712 = vmatpush3.bf16.msra.mxu0 %v12881_v42  ;;  %11585 = vmatprep.subr.bf16.mxu1 %v12882_v10  ;;  %v12910_v4 = vld [vmem:[%s13208_s14 + $0x28] sm:$0xff]   ;;  %v8067_v42 = vsel %vm1194_vm1, %v8062_v59, %v8066_v2  ;;  %v12932_v59 = vld [vmem:[%s14300_s4 + $0x638] sm:$0xff]  }
 0x330   : > { %11713 = vmatprep.subr.bf16.mxu0 %v12883_v11  ;;  %11571 = vmatprep.mubr.bf16.mxu1 %v6490_v16  ;;  %v8072_v44 = vshll.u32 %v12910_v4, 16  ;;  %v8076_v7 = vshrl.u32 %v12910_v4, 16  ;;  %v12935_v2 = vld [vmem:[%s13208_s14 + $0x14] sm:$0xf8]  }
 0x331   : > { %11699 = vmatprep.mubr.bf16.mxu0 %v12885_v13 }
 0x332   : > { %11586 = vmatpush3.bf16.msra.mxu1 %v12882_v10  ;;  %v8074_v8 = vrot.slane %v8072_v44, 1  ;;  %v12912_v10 = vld [vmem:[%s14300_s4 + $0x510] sm:$0xff]  }
 0x333   : > { %11714 = vmatpush3.bf16.msra.mxu0 %v12883_v11  ;;  %11587 = vmatprep.subr.bf16.mxu1 %v12887_v18  ;;  %v8080_v11 = vshll.u32 %v12913_v45, 16  ;;  %v12938_v45 = vld [vmem:[%s14300_s4 + $0x540] sm:$0xff]  }
 0x334   : > { %11715 = vmatprep.subr.bf16.mxu0 %v12889_v20  ;;  %v8075_v12 = vsel %vm1194_vm1, %v8070_v6, %v8074_v8  ;;  %v8078_v13 = vor.u32 %v8076_v7, %v8074_v8  ;;  %v8398_v6 = vshll.u32 %v12935_v2, 16 }
 0x335   : > { %11572 = vmatmul.mubr.bf16.gmra.mrb[8].mxu1 %v6499_v24  ;;  %v8082_v16 = vrot.slane %v8080_v11, 1  ;;  %v12921_v24 = vld [vmem:[%s13208_s14 + $0x40] sm:$0xff]  }
 0x336   : > { %11700 = vmatmul.mubr.bf16.gmra.mrb[8].mxu0 %v12888_v25  ;;  %11588 = vmatpush3.bf16.msra.mxu1 %v12887_v18  ;;  %v12918_v18 = vld [vmem:[%s13208_s14 + $0x38] sm:$0xff]   ;;  %v8096_v28 = vshll.u32 %v12921_v24, 16 }
 0x337   : > { %11716 = vmatpush3.bf16.msra.mxu0 %v12889_v20  ;;  %11589 = vmatprep.subr.bf16.mxu1 %v12890_v26  ;;  %v8083_v19 = vsel %vm1194_vm1, %v8078_v13, %v8082_v16  ;;  %v12916_v20 = vld [vmem:[%s14300_s4 + $0x618] sm:$0xff]   ;;  %v8086_v22 = vor.u32 %v8084_v15, %v8082_v16  ;;  %v8088_v23 = vshll.u32 %v12918_v18, 16  ;;  %v8092_v25 = vshrl.u32 %v12918_v18, 16 }
 0x338   : > { %11717 = vmatprep.subr.bf16.mxu0 %v12891_v31  ;;  %11575 = vmatprep.mubr.bf16.mxu1 %v6508_v46  ;;  %v8098_v34 = vrot.slane %v8096_v28, 1  ;;  %v12924_v46 = vld [vmem:[%s14300_s4 + $0x628] sm:$0xff]  }
 0x339   : > { %11703 = vmatprep.mubr.bf16.mxu0 %v12893_v32  ;;  %v8100_v32 = vshrl.u32 %v12921_v24, 16  ;;  %v12942_v28 = vld [vmem:[%s14300_s4 + $0x648] sm:$0xff]  }
 0x33a   : > { %11590 = vmatpush3.bf16.msra.mxu1 %v12890_v26  ;;  %v8090_v26 = vrot.slane %v8088_v23, 1  ;;  %v12941_v23 = vld [vmem:[%s14300_s4 + $0x548] sm:$0xff]  }
 0x33b   : > { %11718 = vmatpush3.bf16.msra.mxu0 %v12891_v31  ;;  %11591 = vmatprep.subr.bf16.mxu1 %v12895_v37  ;;  %v12922_v31 = vld [vmem:[%s14300_s4 + $0x620] sm:$0xff]  }
 0x33c   : > { %11719 = vmatprep.subr.bf16.mxu0 %v12897_v47  ;;  %v8091_v29 = vsel %vm1194_vm1, %v8086_v22, %v8090_v26  ;;  %v8094_v30 = vor.u32 %v8092_v25, %v8090_v26 }
 0x33d   : > { %11576 = vmatmul.mubr.bf16.gmra.mrb[12].mxu1 %v6517_v51  ;;  %v12929_v51 = vld [vmem:[%s13208_s14 + $0x50] ss:$0 sps:$4 sm:$0x11]  }
 0x33e   : > { %11704 = vmatmul.mubr.bf16.gmra.mrb[12].mxu0 %v12896_v48  ;;  %11592 = vmatpush3.bf16.msra.mxu1 %v12895_v37  ;;  %v8099_v36 = vsel %vm1194_vm1, %v8094_v30, %v8098_v34  ;;  %v12923_v37 = vld [vmem:[%s14300_s4 + $0x528] sm:$0xff]   ;;  %v8102_v48 = vor.u32 %v8100_v32, %v8098_v34  ;;  %v8112_v53 = vshll.u32 %v12929_v51, 16 }
 0x33f   : > { %11720 = vmatpush3.bf16.msra.mxu0 %v12897_v47  ;;  %11593 = vmatprep.subr.bf16.mxu1 %v12898_v49  ;;  %v12925_v47 = vld [vmem:[%s13208_s14 + $0x38] sm:$0xff]   ;;  %v12945_v34 = vld [vmem:[%s13208_s14 + $0x28] sm:$0xff]  }
 0x340   : > { %11721 = vmatprep.subr.bf16.mxu0 %v12899_v39  ;;  %11595 = vmatprep.mubr.bf16.mxu1 %v12900_v54  ;;  %v8114_v56 = vrot.slane %v8112_v53, 1 }
 0x341   : > { %11723 = vmatprep.mubr.bf16.mxu0 %v8059_v1 }
 0x342   : > { %11594 = vmatpush3.bf16.msra.mxu1 %v12898_v49  ;;  %v8104_v49 = vshll.u32 %v12926_v35, 16 }
 0x343   : > { %11722 = vmatpush3.bf16.msra.mxu0 %v12899_v39  ;;  %11611 = vmatprep.subr.bf16.mxu1 %v12904_v61 }
 0x344   : > { %11739 = vmatprep.subr.bf16.mxu0 %v12906_v63  ;;  %v8106_v39 = vrot.slane %v8104_v49, 1  ;;  %v7102_v49 = vshll.u32 %v12945_v34, 16 }
 0x345   : > { %11596 = vmatmul.mubr.bf16.vlgmr.msra.gmra.mrb[0].mxu1 %v12903_v60  ;;  %v7071_v60 = vshrl.u32 %v12933_v41, 16 }
 0x346   : > { %11724 = vmatmul.mubr.bf16.vlgmr.msra.gmra.mrb[0].mxu0 %v8067_v42  ;;  %11612 = vmatpush3.bf16.msra.mxu1 %v12904_v61  ;;  %v8107_v54 = vsel %vm1194_vm1, %v8102_v48, %v8106_v39  ;;  %v8110_v55 = vor.u32 %v8108_v50, %v8106_v39  ;;  %v7073_v61 = vshll.u32 %v12933_v41, 16  ;;  %v12937_v42 = vld [vmem:[%s13208_s14 + $0x18] sm:$0xff]   ;;  %v7104_v53 = vrot.slane %v7102_v49, 1 }
 0x347   : > { %11740 = vmatpush3.bf16.msra.mxu0 %v12906_v63  ;;  %11613 = vmatprep.subr.bf16.mxu1 %v12907_v3  ;;  %v7078_v63 = vshll.u32 %v12934_v58, 16  ;;  %v7090_v24 = vshrl.u32 %v12937_v42, 16  ;;  %v12947_v50 = vld [vmem:[%s13208_s14 + $0x34] sm:$0xff]  }
 0x348   : > { %11741 = vmatprep.subr.bf16.mxu0 %v12908_v5  ;;  %11599 = vmatprep.mubr.bf16.mxu1 %v12909_v43  ;;  %v8115_v62 = vsel %vm1194_vm1, %v8110_v55, %v8114_v56  ;;  %v7075_v1 = vrot.slane %v7073_v61, 1  ;;  %v8395_v43 = vshrl.u32 %v12935_v2, 16  ;;  %v8430_v41 = vshrl.u32 %v12947_v50, 16  ;;  %v12949_v56 = vld [vmem:[%s14300_s4 + $0x558] sm:$0xff]  }
 0x349   : > { %11727 = vmatprep.mubr.bf16.mxu0 %v8075_v12  ;;  %v7080_v4 = vrot.slane %v7078_v63, 1  ;;  %v8400_v12 = vrot.slane %v8398_v6, 4  ;;  %v8433_v55 = vshll.u32 %v12947_v50, 16  ;;  %v7106_v63 = vshrl.u32 %v12945_v34, 16  ;;  %v12965_v50 = vld [vmem:[%s14300_s4 + $0x578] sm:$0xff]  }
 0x34a   : > { %11614 = vmatpush3.bf16.msra.mxu1 %v12907_v3  ;;  %v12936_v3 = vld [vmem:[%s13208_s14 + $0x1c] sm:$0xff]   ;;  %v8397_v11 = vrot.slane %v8395_v43, 3  ;;  %v8432_v58 = vrot.slane %v8430_v41, 3 }
 0x34b   : > { %11742 = vmatpush3.bf16.msra.mxu0 %v12908_v5  ;;  %11615 = vmatprep.subr.bf16.mxu1 %v12912_v10  ;;  %v7076_v5 = vor.u32 %v7075_v1, %v7071_v60  ;;  %v8403_v44 = vshrl.u32 %v12936_v3, 16  ;;  %v7084_v7 = vor.u32 %v7082_v0, %v7080_v4  ;;  %v8406_v8 = vshll.u32 %v12936_v3, 16  ;;  %v12952_v0 = vld [vmem:[%s13208_s14 + $0x3c] sm:$0xff]  }
 0x34c   : > { %11743 = vmatprep.subr.bf16.mxu0 %v12914_v14  ;;  %v8401_v18 = vor.u32 %v8400_v12, %v8397_v11  ;;  %v8435_v61 = vrot.slane %v8433_v55, 4  ;;  %v7108_v2 = vor.u32 %v7106_v63, %v7104_v53  ;;  %v8442_v43 = vshll.u32 %v12952_v0, 16  ;;  %v12956_v11 = vld [vmem:[%s14300_s4 + $0x660] sm:$0xff]   ;;  %v12966_v41 = vld [vmem:[%s14300_s4 + $0x678] sm:$0xff]  }
 0x34d   : > { %11600 = vmatmul.mubr.bf16.gmra.mrb[4].mxu1 %v12911_v9  ;;  %v7086_v9 = vshll.u32 %v12937_v42, 16  ;;  %v8405_v13 = vrot.slane %v8403_v44, 3  ;;  %v8408_v15 = vrot.slane %v8406_v8, 4  ;;  %v12953_v42 = vld [vmem:[%s13208_s14 + $0x38] sm:$0xff]  }
 0x34e   : > { %11728 = vmatmul.mubr.bf16.gmra.mrb[4].mxu0 %v8083_v19  ;;  %11616 = vmatpush3.bf16.msra.mxu1 %v12912_v10  ;;  %v7081_v10 = vsel %vm1194_vm1, %v7076_v5, %v7080_v4  ;;  %v8436_v1 = vor.u32 %v8435_v61, %v8432_v58  ;;  %v8439_v4 = vshrl.u32 %v12952_v0, 16  ;;  %v12954_v5 = vld [vmem:[%s14300_s4 + $0x560] sm:$0xff]   ;;  %v7118_v8 = vshll.u32 %v12953_v42, 16 }
 0x34f   : > { %11744 = vmatpush3.bf16.msra.mxu0 %v12914_v14  ;;  %11617 = vmatprep.subr.bf16.mxu1 %v12915_v17  ;;  %v12939_v14 = vld [vmem:[%s13208_s14 + $0x24] sm:$0xff]   ;;  %v7088_v16 = vrot.slane %v7086_v9, 1 }
 0x350   : > { %11745 = vmatprep.subr.bf16.mxu0 %v12916_v20  ;;  %11603 = vmatprep.mubr.bf16.mxu1 %v12917_v21  ;;  %v8412_v19 = vshrl.u32 %v12939_v14, 16  ;;  %v8409_v21 = vor.u32 %v8408_v15, %v8405_v13  ;;  %v12955_v9 = vld [vmem:[%s13208_s14 + $0x44] sm:$0xff]  }
 0x351   : > { %11731 = vmatprep.mubr.bf16.mxu0 %v8091_v29  ;;  %v7089_v22 = vsel %vm1194_vm1, %v7084_v7, %v7088_v16  ;;  %v12943_v29 = vld [vmem:[%s13208_s14 + $0x20] sm:$0xff]   ;;  %v7092_v32 = vor.u32 %v7090_v24, %v7088_v16  ;;  %v8441_v7 = vrot.slane %v8439_v4, 3  ;;  %v8448_v15 = vshrl.u32 %v12955_v9, 16 }
 0x352   : > { %11618 = vmatpush3.bf16.msra.mxu1 %v12915_v17  ;;  %v12940_v17 = vld [vmem:[%s14300_s4 + $0x640] sm:$0xff]   ;;  %v8414_v25 = vrot.slane %v8412_v19, 3  ;;  %v7098_v35 = vshrl.u32 %v12943_v29, 16 }
 0x353   : > { %11746 = vmatpush3.bf16.msra.mxu0 %v12916_v20  ;;  %11619 = vmatprep.subr.bf16.mxu1 %v12920_v27  ;;  %v8415_v20 = vshll.u32 %v12939_v14, 16  ;;  %v7120_v14 = vrot.slane %v7118_v8, 1  ;;  %v12959_v24 = vld [vmem:[%s13208_s14 + $0x40] sm:$0xff]  }
 0x354   : > { %11747 = vmatprep.subr.bf16.mxu0 %v12922_v31  ;;  %v7130_v34 = vshrl.u32 %v12959_v24, 16  ;;  %v12970_v4 = vld [vmem:[%s13208_s14 + $0x1c] sm:$0xff]  }
 0x355   : > { %11604 = vmatmul.mubr.bf16.gmra.mrb[8].mxu1 %v12919_v33  ;;  %v8417_v26 = vrot.slane %v8415_v20, 4  ;;  %v7094_v33 = vshll.u32 %v12943_v29, 16  ;;  %v8450_v20 = vrot.slane %v8448_v15, 3  ;;  %v7126_v29 = vshll.u32 %v12959_v24, 16 }
 0x356   : > { %11732 = vmatmul.mubr.bf16.gmra.mrb[8].mxu0 %v8099_v36  ;;  %11620 = vmatpush3.bf16.msra.mxu1 %v12920_v27  ;;  %v8410_v27 = vsel %vm593_vm0, %v8401_v18, %v8409_v21  ;;  %v12946_v36 = vld [vmem:[%s14300_s4 + $0x550] sm:$0xff]   ;;  %v12957_v18 = vld [vmem:[%s14300_s4 + $0x568] sm:$0xff]  }
 0x357   : > { %11748 = vmatpush3.bf16.msra.mxu0 %v12922_v31  ;;  %11621 = vmatprep.subr.bf16.mxu1 %v12923_v37  ;;  %v8418_v30 = vor.u32 %v8417_v26, %v8414_v25  ;;  %v12944_v31 = vld [vmem:[%s13208_s14 + $0x2c] sm:$0xff]   ;;  %v7096_v48 = vrot.slane %v7094_v33, 1  ;;  %v7122_v25 = vshrl.u32 %v12953_v42, 16 }
 0x358   : > { %11749 = vmatprep.subr.bf16.mxu0 %v12924_v46  ;;  %11607 = vmatprep.mubr.bf16.mxu1 %v12925_v47  ;;  %v8424_v47 = vshll.u32 %v12944_v31, 16  ;;  %v12960_v26 = vld [vmem:[%s13208_s14 + $0x4c] sm:$0xff]  }
 0x359   : > { %11735 = vmatprep.mubr.bf16.mxu0 %v8107_v54  ;;  %v8460_v33 = vshll.u32 %v12960_v26, 16 }
 0x35a   : > { %11622 = vmatpush3.bf16.msra.mxu1 %v12923_v37  ;;  %v8419_v37 = vsel %vm593_vm0, %v8409_v21, %v8418_v30  ;;  %v8426_v39 = vrot.slane %v8424_v47, 4  ;;  %v12958_v21 = vld [vmem:[%s14300_s4 + $0x668] sm:$0xff]   ;;  %v12963_v47 = vld [vmem:[%s13208_s14 + $0x54] ss:$0 sps:$4 sm:$0xff]  }
 0x35b   : > { %11750 = vmatpush3.bf16.msra.mxu0 %v12924_v46  ;;  %11623 = vmatprep.subr.bf16.mxu1 %v12928_v38  ;;  %v8421_v46 = vshrl.u32 %v12944_v31, 16  ;;  %v12961_v31 = vld [vmem:[%s13208_s14 + $0x48] ss:$0 sps:$4 sm:$0x11]   ;;  %v8462_v49 = vrot.slane %v8460_v33, 4 }
 0x35c   : > { %11751 = vmatprep.subr.bf16.mxu0 %v12930_v40 }
 0x35d   : > { %11608 = vmatmul.mubr.bf16.gmra.mrb[12].mxu1 %v12927_v52  ;;  %v8423_v51 = vrot.slane %v8421_v46, 3  ;;  %v7100_v52 = vor.u32 %v7098_v35, %v7096_v48  ;;  %v7134_v46 = vshll.u32 %v12961_v31, 16 }
 0x35e   : > { %11736 = vmatmul.mubr.bf16.gmra.mrb[12].mxu0 %v8115_v62  ;;  %11624 = vmatpush3.bf16.msra.mxu1 %v12928_v38  ;;  %v12948_v38 = vld [vmem:[%s14300_s4 + $0x650] sm:$0xff]  }
 0x35f   : > { %11752 = vmatpush3.bf16.msra.mxu0 %v12930_v40  ;;  %11625 = vmatprep.subr.bf16.mxu1 %v12931_v57  ;;  %v7097_v40 = vsel %vm1194_vm1, %v7092_v32, %v7096_v48  ;;  %v8427_v54 = vor.u32 %v8426_v39, %v8423_v51  ;;  %v12951_v62 = vld [vmem:[%s13208_s14 + $0x30] sm:$0xff]   ;;  %v7136_v39 = vrot.slane %v7134_v46, 1 }
 0x360   : > { %11753 = vmatprep.subr.bf16.mxu0 %v12932_v59  ;;  %11627 = vmatprep.mubr.bf16.mxu1 %v7081_v10  ;;  %v7110_v3 = vshll.u32 %v12951_v62, 16  ;;  %v7114_v6 = vshrl.u32 %v12951_v62, 16  ;;  %v8444_v10 = vrot.slane %v8442_v43, 4  ;;  %v12962_v32 = vld [vmem:[%s14300_s4 + $0x570] sm:$0xff]  }
 0x361   : > { %11755 = vmatprep.mubr.bf16.mxu0 %v8410_v27  ;;  %v8428_v60 = vsel %vm593_vm0, %v8418_v30, %v8427_v54  ;;  %v8437_v44 = vsel %vm593_vm0, %v8427_v54, %v8436_v1  ;;  %v8457_v30 = vshrl.u32 %v12960_v26, 16  ;;  %v12964_v48 = vld [vmem:[%s14300_s4 + $0x670] sm:$0xff]  }
 0x362   : > { %11626 = vmatpush3.bf16.msra.mxu1 %v12931_v57  ;;  %v7105_v57 = vsel %vm1194_vm1, %v7100_v52, %v7104_v53  ;;  %v8445_v16 = vor.u32 %v8444_v10, %v8441_v7  ;;  %v8469_v53 = vshll.u32 %v12963_v47, 16  ;;  %v7437_v7 = vshll.u32 %v12970_v4, 16  ;;  %v12974_v10 = vld [vmem:[%s13208_s14 + $0x24] sm:$0xff]  }
 0x363   : > { %11754 = vmatpush3.bf16.msra.mxu0 %v12932_v59  ;;  %11643 = vmatprep.subr.bf16.mxu1 %v12938_v45  ;;  %v12950_v59 = vld [vmem:[%s14300_s4 + $0x658] sm:$0xff]   ;;  %v7446_v15 = vshll.u32 %v12974_v10, 16 }
 0x364   : > { %11771 = vmatprep.subr.bf16.mxu0 %v12940_v17  ;;  %v8471_v58 = vrot.slane %v8469_v53, 4 }
 0x365   : > { %11628 = vmatmul.mubr.bf16.vlgmr.msra.gmra.mrb[0].mxu1 %v7089_v22  ;;  %v8446_v22 = vsel %vm593_vm0, %v8436_v1, %v8445_v16 }
 0x366   : > { %11644 = vmatpush3.bf16.msra.mxu1 %v12938_v45  ;;  %11756 = vmatmul.mubr.bf16.vlgmr.msra.gmra.mrb[0].mxu0 %v8419_v37  ;;  %v7112_v45 = vrot.slane %v7110_v3, 1  ;;  %v8459_v37 = vrot.slane %v8457_v30, 3 }
 0x367   : > { %11645 = vmatprep.subr.bf16.mxu1 %v12941_v23  ;;  %11772 = vmatpush3.bf16.msra.mxu0 %v12940_v17  ;;  %v8451_v17 = vshll.u32 %v12955_v9, 16 }
 0x368   : > { %11773 = vmatprep.subr.bf16.mxu0 %v12942_v28  ;;  %11631 = vmatprep.mubr.bf16.mxu1 %v7097_v40  ;;  %v7113_v12 = vsel %vm1194_vm1, %v7108_v2, %v7112_v45  ;;  %v7116_v13 = vor.u32 %v7114_v6, %v7112_v45  ;;  %v8466_v40 = vshrl.u32 %v12963_v47, 16  ;;  %v8463_v52 = vor.u32 %v8462_v49, %v8459_v37  ;;  %v12972_v45 = vld [vmem:[%s14300_s4 + $0x680] sm:$0xff]   ;;  %v12979_v37 = vld [vmem:[%s14300_s4 + $0x698] sm:$0xff]  }
 0x369   : > { %11759 = vmatprep.mubr.bf16.mxu0 %v8428_v60  ;;  %v12967_v60 = vld [vmem:[%s13208_s14 + $0xc] sm:$0xf8]   ;;  %v12981_v49 = vld [vmem:[%s13208_s14 + $0x38] sm:$0xff]  }
 0x36a   : > { %11646 = vmatpush3.bf16.msra.mxu1 %v12941_v23  ;;  %v7121_v19 = vsel %vm1194_vm1, %v7116_v13, %v7120_v14  ;;  %v8453_v23 = vrot.slane %v8451_v17, 4  ;;  %v8468_v55 = vrot.slane %v8466_v40, 3  ;;  %v7417_v0 = vshrl.u32 %v12967_v60, 16  ;;  %v12976_v17 = vld [vmem:[%s13208_s14 + $0x2c] sm:$0xff]  }
 0x36b   : > { %11647 = vmatprep.subr.bf16.mxu1 %v12946_v36  ;;  %11774 = vmatpush3.bf16.msra.mxu0 %v12942_v28  ;;  %v7124_v28 = vor.u32 %v7122_v25, %v7120_v14  ;;  %v7420_v1 = vshll.u32 %v12967_v60, 16  ;;  %v7443_v14 = vshrl.u32 %v12974_v10, 16  ;;  %v7455_v24 = vshll.u32 %v12976_v17, 16  ;;  %v12995_v10 = vld [vmem:[%s13208_s14 + $0x38] sm:$0xff]  }
 0x36c   : > { %11775 = vmatprep.subr.bf16.mxu0 %v12948_v38  ;;  %v8454_v27 = vor.u32 %v8453_v23, %v8450_v20  ;;  %v8472_v63 = vor.u32 %v8471_v58, %v8468_v55  ;;  %v7448_v20 = vrot.slane %v7446_v15, 4  ;;  %v7452_v23 = vshrl.u32 %v12976_v17, 16  ;;  %v12997_v17 = vld [vmem:[%s13208_s14 + $0x48] sm:$0xff]  }
 0x36d   : > { %11632 = vmatmul.mubr.bf16.gmra.mrb[4].mxu1 %v7105_v57  ;;  %v7422_v43 = vrot.slane %v7420_v1, 4  ;;  %v12987_v1 = vld [vmem:[%s13208_s14 + $0x48] sm:$0xff]   ;;  %v9058_v15 = vshll.u32 %v12995_v10, 16 }
 0x36e   : > { %11648 = vmatpush3.bf16.msra.mxu1 %v12946_v36  ;;  %11760 = vmatmul.mubr.bf16.gmra.mrb[4].mxu0 %v8437_v44  ;;  %v8455_v35 = vsel %vm593_vm0, %v8445_v16, %v8454_v27  ;;  %v7128_v36 = vrot.slane %v7126_v29, 1  ;;  %v8464_v57 = vsel %vm593_vm0, %v8454_v27, %v8463_v52  ;;  %v8473_v42 = vsel %vm593_vm0, %v8463_v52, %v8472_v63  ;;  %v12980_v29 = vld [vmem:[%s13208_s14 + $0x34] sm:$0xff]  }
 0x36f   : > { %11649 = vmatprep.subr.bf16.mxu1 %v12949_v56  ;;  %11776 = vmatpush3.bf16.msra.mxu0 %v12948_v38  ;;  %v7434_v44 = vshrl.u32 %v12970_v4, 16  ;;  %v7454_v26 = vrot.slane %v7452_v23, 3  ;;  %v7457_v27 = vrot.slane %v7455_v24, 4  ;;  %v7461_v33 = vshrl.u32 %v12980_v29, 16  ;;  %v12992_v4 = vld [vmem:[%s13208_s14 + $0x18] sm:$0xff]  }
 0x370   : > { %11777 = vmatprep.subr.bf16.mxu0 %v12950_v59  ;;  %11635 = vmatprep.mubr.bf16.mxu1 %v7113_v12  ;;  %v7129_v38 = vsel %vm1194_vm1, %v7124_v28, %v7128_v36  ;;  %v7132_v51 = vor.u32 %v7130_v34, %v7128_v36  ;;  %v12971_v12 = vld [vmem:[%s13208_s14 + $0x20] sm:$0xff]   ;;  %v12978_v28 = vld [vmem:[%s14300_s4 + $0x690] sm:$0xff]   ;;  %v7464_v34 = vshll.u32 %v12980_v29, 16  ;;  %v9060_v24 = vrot.slane %v9058_v15, 1 }
 0x371   : > { %11763 = vmatprep.mubr.bf16.mxu0 %v8446_v22  ;;  %v7436_v9 = vrot.slane %v7434_v44, 3  ;;  %v7458_v31 = vor.u32 %v7457_v27, %v7454_v26  ;;  %v7463_v46 = vrot.slane %v7461_v33, 3  ;;  %v12991_v26 = vld [vmem:[%s14300_s4 + $0x6b8] sm:$0xff]  }
 0x372   : > { %11650 = vmatpush3.bf16.msra.mxu1 %v12949_v56  ;;  %v7137_v54 = vsel %vm1194_vm1, %v7132_v51, %v7136_v39  ;;  %v12968_v56 = vld [vmem:[%s13208_s14 + $0x14] sm:$0xff]   ;;  %v7466_v47 = vrot.slane %v7464_v34, 4  ;;  %v12986_v39 = vld [vmem:[%s13208_s14 + $0x44] sm:$0xff]  }
 0x373   : > { %11651 = vmatprep.subr.bf16.mxu1 %v12954_v5  ;;  %11778 = vmatpush3.bf16.msra.mxu0 %v12950_v59  ;;  %v12969_v59 = vld [vmem:[%s13208_s14 + $0x18] sm:$0xff]   ;;  %v7425_v61 = vshrl.u32 %v12968_v56, 16  ;;  %v7428_v62 = vshll.u32 %v12968_v56, 16  ;;  %v7479_v53 = vshrl.u32 %v12986_v39, 16  ;;  %v12983_v56 = vld [vmem:[%s13208_s14 + $0x40] sm:$0xff]  }
 0x374   : > { %11779 = vmatprep.subr.bf16.mxu0 %v12956_v11 }
 0x375   : > { %11636 = vmatmul.mubr.bf16.gmra.mrb[8].mxu1 %v7121_v19  ;;  %v7427_v2 = vrot.slane %v7425_v61, 3  ;;  %v7430_v3 = vrot.slane %v7428_v62, 4  ;;  %v7445_v19 = vrot.slane %v7443_v14, 3  ;;  %v7481_v58 = vrot.slane %v7479_v53, 3  ;;  %v12985_v62 = vld [vmem:[%s14300_s4 + $0x6a8] sm:$0xff]  }
 0x376   : > { %11652 = vmatpush3.bf16.msra.mxu1 %v12954_v5  ;;  %11764 = vmatmul.mubr.bf16.gmra.mrb[8].mxu0 %v8455_v35  ;;  %v7419_v5 = vrot.slane %v7417_v0, 3  ;;  %v12982_v35 = vld [vmem:[%s13208_s14 + $0x3c] sm:$0xff]  }
 0x377   : > { %11653 = vmatprep.subr.bf16.mxu1 %v12957_v18  ;;  %11780 = vmatpush3.bf16.msra.mxu0 %v12956_v11  ;;  %v7431_v6 = vor.u32 %v7430_v3, %v7427_v2  ;;  %v7439_v11 = vrot.slane %v7437_v7, 4  ;;  %v7449_v25 = vor.u32 %v7448_v20, %v7445_v19  ;;  %v12990_v7 = vld [vmem:[%s14300_s4 + $0x6b0] sm:$0xff]  }
 0x378   : > { %11781 = vmatprep.subr.bf16.mxu0 %v12958_v21  ;;  %11639 = vmatprep.mubr.bf16.mxu1 %v7129_v38  ;;  %v7423_v8 = vor.u32 %v7422_v43, %v7419_v5  ;;  %v7467_v38 = vor.u32 %v7466_v47, %v7463_v46  ;;  %v9027_v5 = vshrl.u32 %v12992_v4, 16  ;;  %v9029_v43 = vshll.u32 %v12992_v4, 16 }
 0x379   : > { %11767 = vmatprep.mubr.bf16.mxu0 %v8464_v57  ;;  %v7440_v16 = vor.u32 %v7439_v11, %v7436_v9  ;;  %v7459_v36 = vsel %vm593_vm0, %v7449_v25, %v7458_v31  ;;  %v12984_v57 = vld [vmem:[%s14300_s4 + $0x6a0] sm:$0xff]   ;;  %v12989_v11 = vld [vmem:[%s13208_s14 + $0x50] sm:$0xff]  }
 0x37a   : > { %11654 = vmatpush3.bf16.msra.mxu1 %v12957_v18  ;;  %v7432_v13 = vsel %vm593_vm0, %v7423_v8, %v7431_v6  ;;  %v12973_v18 = vld [vmem:[%s14300_s4 + $0x688] sm:$0xff]   ;;  %v7468_v52 = vsel %vm593_vm0, %v7458_v31, %v7467_v38  ;;  %v9031_v8 = vrot.slane %v9029_v43, 1  ;;  %v12999_v31 = vld [vmem:[%s13208_s14 + $0x50] sm:$0xff]  }
 0x37b   : > { %11655 = vmatprep.subr.bf16.mxu1 %v12962_v32  ;;  %11782 = vmatpush3.bf16.msra.mxu0 %v12958_v21  ;;  %v12975_v21 = vld [vmem:[%s13208_s14 + $0x28] sm:$0xff]   ;;  %v7441_v22 = vsel %vm593_vm0, %v7431_v6, %v7440_v16  ;;  %v7450_v30 = vsel %vm593_vm0, %v7440_v16, %v7449_v25  ;;  %v9062_v16 = vshrl.u32 %v12995_v10, 16  ;;  %v9074_v25 = vshll.u32 %v12997_v17, 16 }
 0x37c   : > { %11783 = vmatprep.subr.bf16.mxu0 %v12964_v48  ;;  %v12994_v6 = vld [vmem:[%s13208_s14 + $0x28] sm:$0xff]   ;;  %v9082_v47 = vshll.u32 %v12999_v31, 16  ;;  %v9086_v53 = vshrl.u32 %v12999_v31, 16 }
 0x37d   : > { %11640 = vmatmul.mubr.bf16.gmra.mrb[12].mxu1 %v7137_v54  ;;  %v12988_v54 = vld [vmem:[%s13208_s14 + $0x4c] ss:$0 sps:$4 sm:$0xff]   ;;  %v9042_v14 = vshll.u32 %v12994_v6, 16 }
 0x37e   : > { %11656 = vmatpush3.bf16.msra.mxu1 %v12962_v32  ;;  %11768 = vmatmul.mubr.bf16.gmra.mrb[12].mxu0 %v8473_v42  ;;  %v12977_v32 = vld [vmem:[%s13208_s14 + $0x30] sm:$0xff]   ;;  %v7488_v60 = vshrl.u32 %v12988_v54, 16  ;;  %v7491_v61 = vshll.u32 %v12988_v54, 16  ;;  %v12993_v42 = vld [vmem:[%s13208_s14 + $0x20] sm:$0xff]  }
 0x37f   : > { %11784 = vmatpush3.bf16.msra.mxu0 %v12964_v48  ;;  %11657 = vmatprep.subr.bf16.mxu1 %v12965_v50  ;;  %v7470_v48 = vshrl.u32 %v12982_v35, 16  ;;  %v9034_v9 = vshll.u32 %v12993_v42, 16  ;;  %v9044_v34 = vrot.slane %v9042_v14, 1 }
 0x380   : > { %11785 = vmatprep.subr.bf16.mxu0 %v12966_v41  ;;  %11787 = vmatprep.mubr.bf16.mxu0 %v12969_v59  ;;  %v7490_v2 = vrot.slane %v7488_v60, 3  ;;  %v7493_v3 = vrot.slane %v7491_v61, 4 }
 0x381   : > { %11659 = vmatprep.mubr.bf16.mxu1 %v7432_v13  ;;  %v7472_v51 = vrot.slane %v7470_v48, 3  ;;  %v12996_v13 = vld [vmem:[%s13208_s14 + $0x40] sm:$0xff]   ;;  %v9036_v19 = vrot.slane %v9034_v9, 1  ;;  %v13000_v48 = vld [vmem:[%s13208_s14 + $0x58] ss:$0 sps:$4 sm:$0x11]  }
 0x382   : > { %11658 = vmatpush3.bf16.msra.mxu1 %v12965_v50  ;;  %v7473_v50 = vshll.u32 %v12982_v35, 16  ;;  %v9066_v20 = vshll.u32 %v12996_v13, 16  ;;  %v9076_v35 = vrot.slane %v9074_v25, 1  ;;  %v6680_v9 = vld [vmem:[#allocation2 + $0x48] sm:$0xff]  ;;  %v6686_v25 = vld [vmem:[#allocation2 + $0x78] sm:$0xff] }
 0x383   : > { %11786 = vmatpush3.bf16.msra.mxu0 %v12966_v41  ;;  %12267 = vmatprep.subr.bf16.mxu1 %v12972_v45  ;;  %v7482_v41 = vshll.u32 %v12986_v39, 16 }
 0x384   : > { %11803 = vmatprep.subr.bf16.mxu0 %v12972_v45  ;;  %v7475_v40 = vrot.slane %v7473_v50, 4  ;;  %v9068_v27 = vrot.slane %v9066_v20, 1 }
 0x385   : > { %11660 = vmatmul.mubr.bf16.vlgmr.msra.gmra.mrb[0].mxu1 %v7441_v22  ;;  %v7484_v59 = vrot.slane %v7482_v41, 4  ;;  %v12998_v22 = vld [vmem:[%s13208_s14 + $0x30] sm:$0xff]   ;;  %v9090_v41 = vshll.u32 %v13000_v48, 16  ;;  %v6671_v48 = vld [vmem:[#allocation2] sm:$0xff] }
 0x386   : > { %11788 = vmatmul.mubr.bf16.vlgmr.msra.gmra.mrb[0].mxu0 %v12971_v12  ;;  %12275 = vmatpush3.bf16.msra.mxu1 %v12972_v45  ;;  %v7476_v55 = vor.u32 %v7475_v40, %v7472_v51  ;;  %v9038_v12 = vshrl.u32 %v12993_v42, 16  ;;  %v9050_v29 = vshll.u32 %v12998_v22, 16  ;;  %v9084_v51 = vrot.slane %v9082_v47, 1  ;;  %v6681_v42 = vld [vmem:[#allocation2 + $0x50] sm:$0xff] }
 0x387   : > { %11804 = vmatpush3.bf16.msra.mxu0 %v12972_v45  ;;  %12268 = vmatprep.subr.bf16.mxu1 %v12973_v18  ;;  %v7485_v0 = vor.u32 %v7484_v59, %v7481_v58  ;;  %v7494_v45 = vor.u32 %v7493_v3, %v7490_v2  ;;  %v9054_v39 = vshrl.u32 %v12998_v22, 16  ;;  %v9092_v58 = vrot.slane %v9090_v41, 1  ;;  %v6683_v22 = vld [vmem:[#allocation2 + $0x60] sm:$0xff] }
 0x388   : > { %11805 = vmatprep.subr.bf16.mxu0 %v12973_v18  ;;  %11663 = vmatprep.mubr.bf16.mxu1 %v7450_v30  ;;  %v7477_v63 = vsel %vm593_vm0, %v7467_v38, %v7476_v55  ;;  %v9064_v30 = vor.u32 %v9062_v16, %v9060_v24  ;;  %v9052_v50 = vrot.slane %v9050_v29, 1  ;;  %v6684_v29 = vld [vmem:[#allocation2 + $0x68] sm:$0xff] }
 0x389   : > { %11791 = vmatprep.mubr.bf16.mxu0 %v12975_v21  ;;  %v7486_v44 = vsel %vm593_vm0, %v7476_v55, %v7485_v0  ;;  %v9070_v21 = vshrl.u32 %v12996_v13, 16  ;;  %v7495_v23 = vsel %vm593_vm0, %v7485_v0, %v7494_v45 }
 0x38a   : > { %12276 = vmatpush3.bf16.msra.mxu1 %v12973_v18 }
 0x38b   : > { %11806 = vmatpush3.bf16.msra.mxu0 %v12973_v18  ;;  %12269 = vmatprep.subr.bf16.mxu1 %v12978_v28  ;;  %v9032_v18 = vor.u32 %v9031_v8, %v9027_v5  ;;  %v9072_v46 = vor.u32 %v9070_v21, %v9068_v27  ;;  %v6679_v5 = vld [vmem:[#allocation2 + $0x40] sm:$0xff]  ;;  %v6685_v21 = vld [vmem:[#allocation2 + $0x70] sm:$0xff] }
 0x38c   : > { %11807 = vmatprep.subr.bf16.mxu0 %v12978_v28 }
 0x38d   : > { %11664 = vmatmul.mubr.bf16.gmra.mrb[4].mxu1 %v7459_v36  ;;  %v9037_v33 = vsel %vm1194_vm1, %v9032_v18, %v9036_v19  ;;  %v9040_v36 = vor.u32 %v9038_v12, %v9036_v19 }
 0x38e   : > { %11792 = vmatmul.mubr.bf16.gmra.mrb[4].mxu0 %v12977_v32  ;;  %12277 = vmatpush3.bf16.msra.mxu1 %v12978_v28  ;;  %v9078_v32 = vshrl.u32 %v12997_v17, 16 }
 0x38f   : > { %11808 = vmatpush3.bf16.msra.mxu0 %v12978_v28  ;;  %12270 = vmatprep.subr.bf16.mxu1 %v12979_v37  ;;  %v9046_v28 = vshrl.u32 %v12994_v6, 16  ;;  %v9045_v40 = vsel %vm1194_vm1, %v9040_v36, %v9044_v34 }
 0x390   : > { %11809 = vmatprep.subr.bf16.mxu0 %v12979_v37  ;;  %11667 = vmatprep.mubr.bf16.mxu1 %v7468_v52  ;;  %v9080_v38 = vor.u32 %v9078_v32, %v9076_v35  ;;  %v9077_v52 = vsel %vm1194_vm1, %v9072_v46, %v9076_v35 }
 0x391   : > { %11795 = vmatprep.mubr.bf16.mxu0 %v12981_v49  ;;  %v9048_v49 = vor.u32 %v9046_v28, %v9044_v34 }
 0x392   : > { %12278 = vmatpush3.bf16.msra.mxu1 %v12979_v37  ;;  %v9085_v55 = vsel %vm1194_vm1, %v9080_v38, %v9084_v51 }
 0x393   : > { %11810 = vmatpush3.bf16.msra.mxu0 %v12979_v37  ;;  %12271 = vmatprep.subr.bf16.mxu1 %v12984_v57  ;;  %v9069_v37 = vsel %vm1194_vm1, %v9064_v30, %v9068_v27  ;;  %v9053_v54 = vsel %vm1194_vm1, %v9048_v49, %v9052_v50 }
 0x394   : > { %11811 = vmatprep.subr.bf16.mxu0 %v12984_v57 }
 0x395   : > { %11668 = vmatmul.mubr.bf16.gmra.mrb[8].mxu1 %v7477_v63 }
 0x396   : > { %11796 = vmatmul.mubr.bf16.gmra.mrb[8].mxu0 %v12983_v56  ;;  %12279 = vmatpush3.bf16.msra.mxu1 %v12984_v57  ;;  %v9056_v56 = vor.u32 %v9054_v39, %v9052_v50  ;;  %v6674_v50 = vld [vmem:[#allocation2 + $0x18] sm:$0xff]  ;;  %v6672_v39 = vld [vmem:[#allocation2 + $0x8] sm:$0xff] }
 0x397   : > { %11812 = vmatpush3.bf16.msra.mxu0 %v12984_v57  ;;  %12272 = vmatprep.subr.bf16.mxu1 %v12985_v62  ;;  %v9088_v57 = vor.u32 %v9086_v53, %v9084_v51 }
 0x398   : > { %11813 = vmatprep.subr.bf16.mxu0 %v12985_v62  ;;  %11671 = vmatprep.mubr.bf16.mxu1 %v7486_v44  ;;  %v9061_v59 = vsel %vm1194_vm1, %v9056_v56, %v9060_v24  ;;  %v6682_v44 = vld [vmem:[#allocation2 + $0x58] sm:$0xff] }
 0x399   : > { %11799 = vmatprep.mubr.bf16.mxu0 %v12987_v1  ;;  %v9093_v60 = vsel %vm1194_vm1, %v9088_v57, %v9092_v58 }
 0x39a   : > { %12280 = vmatpush3.bf16.msra.mxu1 %v12985_v62 }
 0x39b   : > { %11814 = vmatpush3.bf16.msra.mxu0 %v12985_v62  ;;  %12273 = vmatprep.subr.bf16.mxu1 %v12990_v7 }
 0x39c   : > { %11815 = vmatprep.subr.bf16.mxu0 %v12990_v7 }
 0x39d   : > { %11672 = vmatmul.mubr.bf16.gmra.mrb[12].mxu1 %v7495_v23 }
 0x39e   : > { %11800 = vmatmul.mubr.bf16.gmra.mrb[12].mxu0 %v12989_v11  ;;  %12281 = vmatpush3.bf16.msra.mxu1 %v12990_v7 }
 0x39f   : > { %11816 = vmatpush3.bf16.msra.mxu0 %v12990_v7  ;;  %12274 = vmatprep.subr.bf16.mxu1 %v12991_v26 }
 0x3a0   : > { %11817 = vmatprep.subr.bf16.mxu0 %v12991_v26  ;;  %11819 = vmatprep.mubr.bf16.mxu0 %v9037_v33 }
 0x3a1   : > { %11827 = vmatprep.mubr.bf16.mxu1 %v9069_v37  ;;  %v6673_v37 = vld [vmem:[#allocation2 + $0x10] sm:$0xff] }
 0x3a2   : > { %12282 = vmatpush3.bf16.msra.mxu1 %v12991_v26 }
 0x3a3   : > { %11818 = vmatpush3.bf16.msra.mxu0 %v12991_v26 }
 0x3a5   : > { %11828 = vmatmul.mubr.bf16.vlgmr.msra.gmra.mrb[16].mxu1 %v9077_v52 }
 0x3a6   : > { %11820 = vmatmul.mubr.bf16.vlgmr.msra.gmra.mrb[0].mxu0 %v9045_v40  ;;  %11831 = vmatprep.mubr.bf16.mxu1 %v9085_v55 }
 0x3a7   : > { %11823 = vmatprep.mubr.bf16.mxu0 %v9053_v54 }
 0x3ad   : > { %11832 = vmatmul.mubr.bf16.gmra.mrb[20].mxu1 %v9093_v60 }
 0x3ae   : > { %11824 = vmatmul.mubr.bf16.gmra.mrb[4].mxu0 %v9061_v59 }
 0x458   : > { %v11661_v61 = vpop.f32.mrb[0].mxu1 }
 0x459   : > { %v7586_v62 = vpop.f32.mrb[1].mxu1  ;;  %v12285_v51 = vadd.f32 %v11661_v61, %v6673_v37 }
 0x45a   : > { %v11662_v63 = vpop.f32.mrb[2].mxu1  ;;  %v12291_v40 = vadd.f32 %v7586_v62, %v6671_v48 }
 0x45b   : > { %v7589_v0 = vpop.f32.mrb[3].mxu1  ;;  %v12297_v41 = vadd.f32 %v11662_v63, %v6674_v50 }
 0x45c   : > { %v12303_v58 = vadd.f32 %v7589_v0, %v6672_v39 }
 0x460   : > { %v14193_v1 = vpop.f32.mrb[4].mxu1 }
 0x461   : > { %v14195_v2 = vpop.f32.mrb[5].mxu1 }
 0x462   : > { %v14197_v3 = vpop.f32.mrb[6].mxu1 }
 0x463   : > { %v14199_v4 = vpop.f32.mrb[7].mxu1 }
 0x468   : > { %v11669_v43 = vpop.f32.mrb[8].mxu1 }
 0x469   : > { %v11797_v6 = vpop.f32.mrb[8].mxu0  ;;  %v12333_v45 = vadd.f32 %v11669_v43, %v6681_v42  ;;  %v7618_v7 = vpop.f32.mrb[9].mxu1 }
 0x46a   : > { %v8870_v8 = vpop.f32.mrb[9].mxu0  ;;  %v12342_v10 = vadd.f32 %v7618_v7, %v6679_v5  ;;  %v11670_v11 = vpop.f32.mrb[10].mxu1  ;;  %v6675_v7 = vld [vmem:[#allocation2 + $0x20] sm:$0xff] }
 0x46b   : > { %v11798_v12 = vpop.f32.mrb[10].mxu0  ;;  %v12336_v13 = vadd.f32 %v12333_v45, %v11797_v6  ;;  %v12351_v14 = vadd.f32 %v11670_v11, %v6682_v44  ;;  %v7621_v15 = vpop.f32.mrb[11].mxu1  ;;  %v6677_v45 = vld [vmem:[#allocation2 + $0x30] sm:$0xff] }
 0x46c   : > { %v8873_v16 = vpop.f32.mrb[11].mxu0  ;;  %v12345_v17 = vadd.f32 %v12342_v10, %v8870_v8  ;;  %v12360_v18 = vadd.f32 %v7621_v15, %v6680_v9  ;;  %v6678_v8 = vld [vmem:[#allocation2 + $0x38] sm:$0xff]  ;;  %v12309_v0 = vadd.f32 %v14193_v1, %v6677_v45  ;;  %v6676_v9 = vld [vmem:[#allocation2 + $0x28] sm:$0xff]  ;;  %v12315_v10 = vadd.f32 %v14195_v2, %v6675_v7 }
 0x46d   : > { %v12354_v19 = vadd.f32 %v12351_v14, %v11798_v12 }
 0x46e   : > { %v12363_v20 = vadd.f32 %v12360_v18, %v8873_v16  ;;  %v12327_v18 = vadd.f32 %v14199_v4, %v6676_v9 }
 0x470   : > { %v11673_v23 = vpop.f32.mrb[12].mxu1 }
 0x471   : > { %v11801_v24 = vpop.f32.mrb[12].mxu0  ;;  %v12369_v26 = vadd.f32 %v11673_v23, %v6685_v21  ;;  %v7634_v27 = vpop.f32.mrb[13].mxu1 }
 0x472   : > { %v8886_v28 = vpop.f32.mrb[13].mxu0  ;;  %v12378_v30 = vadd.f32 %v7634_v27, %v6683_v22  ;;  %v11674_v31 = vpop.f32.mrb[14].mxu1 }
 0x473   : > { %v11802_v32 = vpop.f32.mrb[14].mxu0  ;;  %v12372_v33 = vadd.f32 %v12369_v26, %v11801_v24  ;;  %v12387_v34 = vadd.f32 %v11674_v31, %v6686_v25  ;;  %v7637_v35 = vpop.f32.mrb[15].mxu1 }
 0x474   : > { %v8889_v36 = vpop.f32.mrb[15].mxu0  ;;  %v12381_v46 = vadd.f32 %v12378_v30, %v8886_v28  ;;  %v12396_v47 = vadd.f32 %v7637_v35, %v6684_v29 }
 0x475   : > { %v12390_v49 = vadd.f32 %v12387_v34, %v11802_v32 }
 0x476   : > { %v12399_v38 = vadd.f32 %v12396_v47, %v8889_v36 }
 0x478   : > { %v11829_v53 = vpop.f32.mrb[16].mxu1 }
 0x479   : > { %v11821_v52 = vpop.f32.mrb[0].mxu0  ;;  %v12339_v56 = vadd.f32 %v12336_v13, %v11829_v53  ;;  %v9216_v57 = vpop.f32.mrb[17].mxu1  ;;  %v12321_v13 = vadd.f32 %v14197_v3, %v6678_v8 }
 0x47a   : > { %v12288_v54 = vadd.f32 %v12285_v51, %v11821_v52  ;;  %v9184_v55 = vpop.f32.mrb[1].mxu0  ;;  %v12348_v42 = vadd.f32 %v12345_v17, %v9216_v57  ;;  %v11830_v5 = vpop.f32.mrb[18].mxu1 }
 0x47b   : > { %v12294_v59 = vadd.f32 %v12291_v40, %v9184_v55  ;;  %v11822_v60 = vpop.f32.mrb[2].mxu0  ;;  %9289 = vst [vmem:[#allocation2 + $0x50] sm:$0xff] %v12339_v56  ;;  %v12357_v44 = vadd.f32 %v12354_v19, %v11830_v5  ;;  %v9219_v61 = vpop.f32.mrb[19].mxu1 }
 0x47c   : > { %9281 = vst [vmem:[#allocation2 + $0x10] sm:$0xff] %v12288_v54  ;;  %v12300_v43 = vadd.f32 %v12297_v41, %v11822_v60  ;;  %v9187_v6 = vpop.f32.mrb[3].mxu0  ;;  %9287 = vst [vmem:[#allocation2 + $0x40] sm:$0xff] %v12348_v42  ;;  %v12366_v63 = vadd.f32 %v12363_v20, %v9219_v61 }
 0x47d   : > { %9279 = vst [vmem:[#allocation2] sm:$0xff] %v12294_v59  ;;  %v12306_v62 = vadd.f32 %v12303_v58, %v9187_v6  ;;  %9290 = vst [vmem:[#allocation2 + $0x58] sm:$0xff] %v12357_v44 }
 0x47e   : > { %9282 = vst [vmem:[#allocation2 + $0x18] sm:$0xff] %v12300_v43  ;;  %9288 = vst [vmem:[#allocation2 + $0x48] sm:$0xff] %v12366_v63 }
 0x47f   : > { %9280 = vst [vmem:[#allocation2 + $0x8] sm:$0xff] %v12306_v62 }
 0x480   : > { %v11833_v12 = vpop.f32.mrb[20].mxu1 }
 0x481   : > { %v11825_v11 = vpop.f32.mrb[4].mxu0  ;;  %v12375_v16 = vadd.f32 %v12372_v33, %v11833_v12  ;;  %v9232_v17 = vpop.f32.mrb[21].mxu1 }
 0x482   : > { %v12312_v14 = vadd.f32 %v12309_v0, %v11825_v11  ;;  %v9200_v15 = vpop.f32.mrb[5].mxu0  ;;  %v12384_v21 = vadd.f32 %v12381_v46, %v9232_v17  ;;  %v11834_v22 = vpop.f32.mrb[22].mxu1 }
 0x483   : > { %v12318_v19 = vadd.f32 %v12315_v10, %v9200_v15  ;;  %v11826_v20 = vpop.f32.mrb[6].mxu0  ;;  %9293 = vst [vmem:[#allocation2 + $0x70] sm:$0xff] %v12375_v16  ;;  %v12393_v24 = vadd.f32 %v12390_v49, %v11834_v22  ;;  %v9235_v2 = vpop.f32.mrb[23].mxu1 }
 0x484   : > { %9285 = vst [vmem:[#allocation2 + $0x30] sm:$0xff] %v12312_v14  ;;  %v12324_v23 = vadd.f32 %v12321_v13, %v11826_v20  ;;  %v9203_v1 = vpop.f32.mrb[7].mxu0  ;;  %9291 = vst [vmem:[#allocation2 + $0x60] sm:$0xff] %v12384_v21  ;;  %v12402_v3 = vadd.f32 %v12399_v38, %v9235_v2 }
 0x485   : > { %9283 = vst [vmem:[#allocation2 + $0x20] sm:$0xff] %v12318_v19  ;;  %v12330_v25 = vadd.f32 %v12327_v18, %v9203_v1  ;;  %9294 = vst [vmem:[#allocation2 + $0x78] sm:$0xff] %v12393_v24 }
 0x486   : > { %9286 = vst [vmem:[#allocation2 + $0x38] sm:$0xff] %v12324_v23  ;;  %9292 = vst [vmem:[#allocation2 + $0x68] sm:$0xff] %v12402_v3 }
 0x487   : > { %9284 = vst [vmem:[#allocation2 + $0x28] sm:$0xff] %v12330_v25 }
 0x488 PF: > { %v9295_v4 = vld [vmem:[#allocation2] sm:$0xff]  ;;  %v10531_v29 = vld [vmem:[%s13190_s8 + $0x10] sm:$0xff]   ;;  %v9296_v30 = vld [vmem:[#allocation2 + $0x8] sm:$0xff] }
 0x489   : > { %v14208_v26 = vld [vmem:[%s14301_s5] sm:$0xff]  ;;  %v14220_v31 = vld [vmem:[%s14301_s5 + $0x8] sm:$0xff]  ;;  %v10501_v32 = vunpack.c.l.bf16 %v10531_v29  ;;  %v10502_v35 = vunpack.c.h.bf16 %v10531_v29  ;;  %v9297_v36 = vld [vmem:[#allocation2 + $0x10] sm:$0xff] }
 0x48a   : > { %v14213_v27 = vld [vmem:[%s14302_s6] sm:$0xff]  ;;  %v9313_v28 = vmul.f32 %v14208_v26, %v9295_v4  ;;  %v9314_v33 = vmul.f32 %v14220_v31, %v9296_v30  ;;  %v14226_v34 = vld [vmem:[%s14302_s6 + $0x8] sm:$0xff]  ;;  %v10532_v37 = vld [vmem:[%s13190_s8 + $0x18] sm:$0xff]   ;;  %v9315_v47 = vmul.f32 %v14208_v26, %v9297_v36 }
 0x48b   : > { %v10505_v48 = vunpack.c.l.bf16 %v10532_v37  ;;  %v9298_v49 = vld [vmem:[#allocation2 + $0x18] sm:$0xff]  ;;  %v10506_v50 = vunpack.c.h.bf16 %v10532_v37  ;;  %v10533_v51 = vld [vmem:[%s13190_s8 + $0x20] sm:$0xff]   ;;  %v9301_v54 = vld [vmem:[#allocation2 + $0x30] sm:$0xff] }
 0x48c   : > { %v9331_v46 = vadd.f32 %v14213_v27, %v9313_v28  ;;  %v9299_v38 = vld [vmem:[#allocation2 + $0x20] sm:$0xff]  ;;  %v9332_v39 = vadd.f32 %v14226_v34, %v9314_v33  ;;  %v9316_v40 = vmul.f32 %v14220_v31, %v9298_v49  ;;  %v10509_v53 = vunpack.c.l.bf16 %v10533_v51  ;;  %v10534_v55 = vld [vmem:[%s13190_s8 + $0x28] sm:$0xff]   ;;  %v10535_v10 = vld [vmem:[%s13190_s8 + $0x30] sm:$0xff]  }
 0x48d   : > { %v9317_v52 = vmul.f32 %v14208_v26, %v9299_v38  ;;  %v9333_v57 = vadd.f32 %v14213_v27, %v9315_v47  ;;  %v10510_v59 = vunpack.c.h.bf16 %v10533_v51  ;;  %v9319_v43 = vmul.f32 %v14208_v26, %v9301_v54  ;;  %v9302_v6 = vld [vmem:[#allocation2 + $0x38] sm:$0xff]  ;;  %v9303_v63 = vld [vmem:[#allocation2 + $0x40] sm:$0xff]  ;;  %v9304_v11 = vld [vmem:[#allocation2 + $0x48] sm:$0xff] }
 0x48e   : > { %v9300_v41 = vld [vmem:[#allocation2 + $0x28] sm:$0xff]  ;;  %v9379_v56 = vadd.f32 %v10501_v32, %v9331_v46  ;;  %v9380_v60 = vadd.f32 %v10502_v35, %v9332_v39  ;;  %v9334_v42 = vadd.f32 %v14226_v34, %v9316_v40  ;;  %v10513_v62 = vunpack.c.l.bf16 %v10534_v55  ;;  %v9305_v16 = vld [vmem:[#allocation2 + $0x50] sm:$0xff]  ;;  %v10536_v21 = vld [vmem:[%s13190_s8 + $0x38] sm:$0xff]  }
 0x48f   : > { %v9318_v58 = vmul.f32 %v14220_v31, %v9300_v41  ;;  %v9335_v5 = vadd.f32 %v14213_v27, %v9317_v52  ;;  %v9381_v61 = vadd.f32 %v10505_v48, %v9333_v57  ;;  %v9337_v9 = vadd.f32 %v14213_v27, %v9319_v43  ;;  %v9306_v22 = vld [vmem:[#allocation2 + $0x58] sm:$0xff]  ;;  %v9307_v25 = vld [vmem:[#allocation2 + $0x60] sm:$0xff]  ;;  %v9308_v37 = vld [vmem:[#allocation2 + $0x68] sm:$0xff] }
 0x490   : > { %v9395_v44 = vmax.f32 %v9379_v56, 0.0  ;;  %v9396_v7 = vmax.f32 %v9380_v60, 0.0  ;;  %v9382_v8 = vadd.f32 %v10506_v50, %v9334_v42  ;;  %v9320_v14 = vmul.f32 %v14220_v31, %v9302_v6  ;;  %v10537_v30 = vld [vmem:[%s13190_s8 + $0x40] sm:$0xff]   ;;  %v9309_v50 = vld [vmem:[#allocation2 + $0x70] sm:$0xff]  ;;  %v10538_v52 = vld [vmem:[%s13190_s8 + $0x48] sm:$0xff]  }
 0x491   : > { %v9336_v45 = vadd.f32 %v14226_v34, %v9318_v58  ;;  %v9383_v0 = vadd.f32 %v10509_v53, %v9335_v5  ;;  %v9397_v12 = vmax.f32 %v9381_v61, 0.0  ;;  %v10514_v15 = vunpack.c.h.bf16 %v10534_v55  ;;  %v9310_v56 = vld [vmem:[#allocation2 + $0x78] sm:$0xff] }
 0x492   : > { %9411 = vst [vmem:[%s13195_s20] sm:$0xff] %v9395_v44  ;;  %9412 = vst [vmem:[%s13195_s20 + $0x8] sm:$0xff] %v9396_v7  ;;  %v9398_v17 = vmax.f32 %v9382_v8, 0.0  ;;  %v9385_v19 = vadd.f32 %v10513_v62, %v9337_v9  ;;  %v9321_v20 = vmul.f32 %v14208_v26, %v9303_v63  ;;  %v9338_v1 = vadd.f32 %v14226_v34, %v9320_v14 }
 0x493   : > { %v9384_v13 = vadd.f32 %v10510_v59, %v9336_v45  ;;  %v9399_v18 = vmax.f32 %v9383_v0, 0.0  ;;  %9413 = vst [vmem:[%s13195_s20 + $0x10] sm:$0xff] %v9397_v12  ;;  %v10517_v24 = vunpack.c.l.bf16 %v10535_v10  ;;  %v9322_v2 = vmul.f32 %v14220_v31, %v9304_v11 }
 0x494   : > { %9414 = vst [vmem:[%s13195_s20 + $0x18] sm:$0xff] %v9398_v17  ;;  %v9401_v3 = vmax.f32 %v9385_v19, 0.0  ;;  %v9339_v4 = vadd.f32 %v14213_v27, %v9321_v20  ;;  %v10518_v28 = vunpack.c.h.bf16 %v10535_v10  ;;  %v9323_v29 = vmul.f32 %v14208_v26, %v9305_v16 }
 0x495   : > { %v9400_v23 = vmax.f32 %v9384_v13, 0.0  ;;  %9415 = vst [vmem:[%s13195_s20 + $0x20] sm:$0xff] %v9399_v18  ;;  %v9386_v32 = vadd.f32 %v10514_v15, %v9338_v1  ;;  %v9340_v33 = vadd.f32 %v14226_v34, %v9322_v2  ;;  %v10521_v35 = vunpack.c.l.bf16 %v10536_v21 }
 0x496   : > { %v9324_v36 = vmul.f32 %v14220_v31, %v9306_v22  ;;  %9417 = vst [vmem:[%s13195_s20 + $0x30] sm:$0xff] %v9401_v3  ;;  %v9387_v46 = vadd.f32 %v10517_v24, %v9339_v4  ;;  %v9341_v47 = vadd.f32 %v14213_v27, %v9323_v29  ;;  %v10522_v48 = vunpack.c.h.bf16 %v10536_v21 }
 0x497   : > { %9416 = vst [vmem:[%s13195_s20 + $0x28] sm:$0xff] %v9400_v23  ;;  %v9325_v49 = vmul.f32 %v14208_v26, %v9307_v25  ;;  %v9402_v38 = vmax.f32 %v9386_v32, 0.0  ;;  %v9388_v51 = vadd.f32 %v10518_v28, %v9340_v33  ;;  %v10525_v40 = vunpack.c.l.bf16 %v10537_v30 }
 0x498   : > { %v9342_v39 = vadd.f32 %v14226_v34, %v9324_v36  ;;  %v9403_v53 = vmax.f32 %v9387_v46, 0.0  ;;  %v9389_v41 = vadd.f32 %v10521_v35, %v9341_v47  ;;  %v9326_v55 = vmul.f32 %v14220_v31, %v9308_v37 }
 0x499   : > { %v9343_v54 = vadd.f32 %v14213_v27, %v9325_v49  ;;  %9418 = vst [vmem:[%s13195_s20 + $0x38] sm:$0xff] %v9402_v38  ;;  %v9404_v57 = vmax.f32 %v9388_v51, 0.0  ;;  %v10526_v59 = vunpack.c.h.bf16 %v10537_v30  ;;  %v9327_v60 = vmul.f32 %v14208_v26, %v9309_v50 }
 0x49a   : > { %v9390_v58 = vadd.f32 %v10522_v48, %v9342_v39  ;;  %9419 = vst [vmem:[%s13195_s20 + $0x40] sm:$0xff] %v9403_v53  ;;  %v9405_v42 = vmax.f32 %v9389_v41, 0.0  ;;  %v9344_v43 = vadd.f32 %v14226_v34, %v9326_v55  ;;  %v10529_v6 = vunpack.c.l.bf16 %v10538_v52 }
 0x49b   : > { %v9391_v5 = vadd.f32 %v10525_v40, %v9343_v54  ;;  %9420 = vst [vmem:[%s13195_s20 + $0x48] sm:$0xff] %v9404_v57  ;;  %v9345_v61 = vadd.f32 %v14213_v27, %v9327_v60  ;;  %v9328_v45 = vmul.f32 %v14220_v31, %v9310_v56  ;;  %v10530_v62 = vunpack.c.h.bf16 %v10538_v52 }
 0x49c   : > { %v9406_v44 = vmax.f32 %v9390_v58, 0.0  ;;  %9421 = vst [vmem:[%s13195_s20 + $0x50] sm:$0xff] %v9405_v42  ;;  %v9392_v26 = vadd.f32 %v10526_v59, %v9344_v43 }
 0x49d   : > { %v9407_v63 = vmax.f32 %v9391_v5, 0.0  ;;  %v9393_v7 = vadd.f32 %v10529_v6, %v9345_v61  ;;  %v9346_v8 = vadd.f32 %v14226_v34, %v9328_v45 }
 0x49e   : > { %9422 = vst [vmem:[%s13195_s20 + $0x58] sm:$0xff] %v9406_v44  ;;  %v9408_v0 = vmax.f32 %v9392_v26, 0.0 }
 0x49f   : > { %9423 = vst [vmem:[%s13195_s20 + $0x60] sm:$0xff] %v9407_v63  ;;  %v9409_v9 = vmax.f32 %v9393_v7, 0.0  ;;  %v9394_v10 = vadd.f32 %v10530_v62, %v9346_v8 }
 0x4a0   : > { %9424 = vst [vmem:[%s13195_s20 + $0x68] sm:$0xff] %v9408_v0 }
 0x4a1   : > { %9425 = vst [vmem:[%s13195_s20 + $0x70] sm:$0xff] %v9409_v9  ;;  %v9410_v11 = vmax.f32 %v9394_v10, 0.0 }
 0x4a3   : > { %9426 = vst [vmem:[%s13195_s20 + $0x78] sm:$0xff] %v9410_v11 }
 0x4a4 PF: > { %s17_s28 = sadd.s32 1, %s13039_s28   ;;  %s14304_s24 = smov %s13031_s26 }
 0x4a5   : > { %p14_p3 = scmp.ge.s32.totalorder %s17_s28, 10   ;;  %s14305_s25 = smov %s13035_s27 }
 0x4a6   : > { %s14306_s26 = smov %s14309_s29  ;;  %s14307_s27 = smov %s14313_s30 }
 0x4a7   :  { %16 = sbr.rel (!%p14_p3) target bundleno = 3 (0x3), region = 121 }

// kernel: basic_block_forward.2
= control target key start
LH: loop header
LB: loop body
LE: loop exit
PB: predicated region body
PF: predicated region fallthrough
CT: control target
= control target key end

     0   :  { %s13063_s21 = smov 0   ;;  %s13065_s22 = smov 0   ;;  %s14255_s0 = inlined_call_operand.vmem [shape: bf16[8,192,128], index: 0, kind: input, shape index: {}, may-alias: {0,1,2}]   ;;  %s14256_s1 = inlined_call_operand.vmem [shape: bf16[8,192,128], index: 1, kind: input, shape index: {}, may-alias: {0,1,2}]   ;;  %s14257_s2 = inlined_call_operand.vmem [shape: bf16[8,192,128], index: 2, kind: input, shape index: {}, may-alias: {0,1,2}]   ;;  %s14258_s3 = inlined_call_operand.vmem [shape: bf16[27,128,128], index: 3, kind: input, shape index: {}]   ;;  %s14259_s4 = inlined_call_operand.vmem [shape: f32[1,16,128], index: 4, kind: input, shape index: {}]   ;;  %s14260_s5 = inlined_call_operand.vmem [shape: f32[1,16,128], index: 5, kind: input, shape index: {}]   ;;  %s14261_s6 = inlined_call_operand.vmem [shape: bf16[8,192,128], index: 6, kind: output, shape index: {}]  }
   0x1   :  { %s13067_s23 = smov 0   ;;  %s13069_s24 = smov 0  }
   0x2   :  { %s13071_s25 = smov 0  }
   0x3 LB: > { %s25_s26 = sadd.s32 1, %s13017_s23  ;;  %s28_s27 = sadd.s32 1, %s13021_s24  ;;  %s13025_s25 = sphi %s13071_s25, %s16_s25   ;;  %s13021_s24 = sphi %s13069_s24, %s14265_s24   ;;  %s13017_s23 = sphi %s13067_s23, %s14264_s23   ;;  %s13013_s22 = sphi %s13065_s22, %s14263_s22   ;;  %s13009_s21 = sphi %s13063_s21, %s14262_s21  }
   0x4   : > { %p26_p0 = scmp.ge.s32.totalorder %s25_s26, 4  ;;  %p9531_p1 = scmp.ge.s32.totalorder %s13025_s25, 1 }
   0x5   : > { %p328_p2 = scmp.lt.s32.totalorder %s13025_s25, 9 }
   0x6   : > { %s14267_s26 = smov (%p26_p0, %s25_s26), 0  ;;  %s14269_s27 = smov (!%p26_p0, %s28_s27), %s13021_s24 }
   0x7   : > { %p329_p3 = pnand %p9531_p1, %p328_p2  ;;  %p30_p4 = scmp.ge.s32.totalorder %s14269_s27, 2 }
   0x8   : > { %v12537_v0 = vld [vmem:[%s14258_s3 + $0x240] sm:$0xff] (!%p329_p3)   ;;  %s13098_s30 = sshll.u32 (!%p329_p3), %s13013_s22, 2  ;;  %s9533_s9 = sadd.s32 (!%p329_p3), 4294967295, %s13009_s21  ;;  %v12539_v2 = vld [vmem:[%s14258_s3 + $0x248] sm:$0xff] (!%p329_p3)   ;;  %v12541_v4 = vld [vmem:[%s14258_s3 + $0x250] sm:$0xff] (!%p329_p3)  }
   0x9   : > { %s14271_s27 = smov (%p30_p4, %s14269_s27), 0  ;;  %332 = sbr.rel (%p329_p3) target bundleno = 1182 (0x49e), region = 44 }
   0xa   : > { %v12538_v1 = vld [vmem:[%s14258_s3 + $0x340] sm:$0xff] (!%p329_p3)   ;;  %10956 = vmatprep.subr.bf16.mxu1 (!%p329_p3), %v12537_v0  ;;  %p392_p5 = scmp.gt.s32.totalorder (!%p329_p3), %s9533_s9, 0  ;;  %v12540_v3 = vld [vmem:[%s14258_s3 + $0x348] sm:$0xff] (!%p329_p3)   ;;  %p9534_p6 = scmp.lt.s32.totalorder (!%p329_p3), %s9533_s9, 3  ;;  %v12542_v5 = vld [vmem:[%s14258_s3 + $0x350] sm:$0xff] (!%p329_p3)  }
   0xb   : > { %11084 = vmatprep.subr.bf16.mxu0 (!%p329_p3), %v12538_v1  ;;  %10957 = vmatpush3.bf16.msra.mxu1 (!%p329_p3), %v12537_v0  ;;  %p410_p7 = scmp.gt.s32.totalorder (!%p329_p3), %s13009_s21, 0  ;;  %v12543_v6 = vld [vmem:[%s14258_s3 + $0x258] sm:$0xff] (!%p329_p3)   ;;  %p9541_p8 = scmp.lt.s32.totalorder (!%p329_p3), %s13009_s21, 3  ;;  %v12545_v8 = vld [vmem:[%s14258_s3 + $0x260] sm:$0xff] (!%p329_p3)   ;;  %v12547_v10 = vld [vmem:[%s14258_s3 + $0x268] sm:$0xff] (!%p329_p3)  }
   0xc   : > { %11085 = vmatpush3.bf16.msra.mxu0 (!%p329_p3), %v12538_v1  ;;  %10958 = vmatprep.subr.bf16.mxu1 (!%p329_p3), %v12539_v2  ;;  %v12544_v7 = vld [vmem:[%s14258_s3 + $0x358] sm:$0xff] (!%p329_p3)   ;;  %v12546_v9 = vld [vmem:[%s14258_s3 + $0x360] sm:$0xff] (!%p329_p3)   ;;  %s446_s14 = sadd.s32 (!%p329_p3), %s13009_s21, %s13098_s30  ;;  %v12548_v11 = vld [vmem:[%s14258_s3 + $0x368] sm:$0xff] (!%p329_p3)   ;;  %vm532_vm0 = vsmask.f32 (!%p329_p3), 4352  ;;  %p9850_p1 = scmp.le.s32.totalorder (!%p329_p3), %s13009_s21, 0 }
   0xd   : > { %11086 = vmatprep.subr.bf16.mxu0 (!%p329_p3), %v12540_v3  ;;  %v12549_v12 = vld [vmem:[%s14258_s3 + $0x270] sm:$0xff] (!%p329_p3)   ;;  %p447_p13 = scmp.lt.s32.totalorder (!%p329_p3), %s446_s14, 7  ;;  %v12551_v15 = vld [vmem:[%s14258_s3 + $0x278] sm:$0xff] (!%p329_p3)   ;;  %v12557_v29 = vld [vmem:[%s14258_s3 + $0x280] sm:$0xff] (!%p329_p3)   ;;  %vm1133_vm1 = vsmask.f32 (!%p329_p3), 7424 }
   0xe   : > { %v12550_v13 = vld [vmem:[%s14258_s3 + $0x370] sm:$0xff] (!%p329_p3)   ;;  %v12552_v17 = vld [vmem:[%s14258_s3 + $0x378] sm:$0xff] (!%p329_p3)   ;;  %v12559_v33 = vld [vmem:[%s14258_s3 + $0x380] sm:$0xff] (!%p329_p3)  }
   0xf   : > { %10959 = vmatpush3.bf16.msra.mxu1 (!%p329_p3), %v12539_v2  ;;  %v12560_v41 = vld [vmem:[%s14258_s3 + $0x288] sm:$0xff] (!%p329_p3)   ;;  %v12565_v55 = vld [vmem:[%s14258_s3 + $0x290] sm:$0xff] (!%p329_p3)   ;;  %v12568_v60 = vld [vmem:[%s14258_s3 + $0x298] sm:$0xff] (!%p329_p3)  }
  0x10   : > { %s14273_s9 = smov (!%p392_p5, %s9533_s9), 0  ;;  %11087 = vmatpush3.bf16.msra.mxu0 %v12540_v3  ;;  %10960 = vmatprep.subr.bf16.mxu1 %v12541_v4  ;;  %s14285_s14 = smov (!%p447_p13, %s446_s14), 7  ;;  %v12561_v46 = vld [vmem:[%s14258_s3 + $0x388] sm:$0xff]   ;;  %v12567_v56 = vld [vmem:[%s14258_s3 + $0x390] sm:$0xff]   ;;  %v12569_v1 = vld [vmem:[%s14258_s3 + $0x398] sm:$0xff]  }
  0x11   : > { %s14275_s9 = smov (!%p9534_p6, %s14273_s9), 3  ;;  %11088 = vmatprep.subr.bf16.mxu0 %v12542_v5  ;;  %s12495_s28 = smul.u32 96, %s14285_s14 }
  0x12   : > { %s411_s18 = scalar_select %p410_p7, %s13009_s21, 0 }
  0x13   : > { %s396_s22 = sadd.s32 %s14275_s9, %s13098_s30  ;;  %10961 = vmatpush3.bf16.msra.mxu1 %v12541_v4  ;;  %s427_s9 = sadd.s32 1, %s13009_s21 }
  0x14   : > { %p397_p9 = scmp.lt.s32.totalorder %s396_s22, 7  ;;  %s14277_s18 = smov (!%p9541_p8, %s411_s18), 3  ;;  %11089 = vmatpush3.bf16.msra.mxu0 %v12542_v5  ;;  %10962 = vmatprep.subr.bf16.mxu1 %v12543_v6 }
  0x15   : > { %s414_s10 = sadd.s32 %s14277_s18, %s13098_s30  ;;  %11090 = vmatprep.subr.bf16.mxu0 %v12544_v7  ;;  %p428_p11 = scmp.gt.s32.totalorder %s427_s9, 0 }
  0x16   : > { %s14279_s22 = smov (!%p397_p9, %s396_s22), 7  ;;  %p415_p10 = scmp.lt.s32.totalorder %s414_s10, 7 }
  0x17   : > { %s12492_s13 = smul.u32 96, %s14279_s22  ;;  %10963 = vmatpush3.bf16.msra.mxu1 %v12543_v6  ;;  %p9548_p12 = scmp.lt.s32.totalorder %s427_s9, 3 }
  0x18   : > { %11091 = vmatpush3.bf16.msra.mxu0 %v12544_v7  ;;  %10964 = vmatprep.subr.bf16.mxu1 %v12545_v8  ;;  %s14281_s10 = smov (!%p415_p10, %s414_s10), 7 }
  0x19   : > { %s13139_s17 = scalar_lea.vmem %s14255_s0, %s12492_s13  ;;  %11092 = vmatprep.subr.bf16.mxu0 %v12546_v9  ;;  %s12493_s8 = smul.u32 96, %s14281_s10 }
  0x1a   : > { %s429_s22 = scalar_select %p428_p11, %s427_s9, 0 }
  0x1b   : > { %10965 = vmatpush3.bf16.msra.mxu1 %v12545_v8  ;;  %s13156_s16 = scalar_lea.vmem %s14256_s1, %s12493_s8 }
  0x1c   : > { %11093 = vmatpush3.bf16.msra.mxu0 %v12546_v9  ;;  %10966 = vmatprep.subr.bf16.mxu1 %v12547_v10  ;;  %s14283_s22 = smov (!%p9548_p12, %s429_s22), 3  ;;  %v12554_v14 = vld [vmem:[%s13156_s16 + $0xc] sm:$0xff]   ;;  %v12553_v18 = vld [vmem:[%s13156_s16 + $0x4] sm:$0xf8]   ;;  %v12556_v25 = vld [vmem:[%s13156_s16 + $0x14] sm:$0xff]  }
  0x1d   : > { %11094 = vmatprep.subr.bf16.mxu0 %v12548_v11  ;;  %v12555_v16 = vld [vmem:[%s13156_s16 + $0x10] sm:$0xff]   ;;  %s432_s20 = sadd.s32 %s14283_s22, %s13098_s30  ;;  %v542_v19 = vshrl.u32 %v12554_v14, 16  ;;  %v545_v20 = vshll.u32 %v12554_v14, 16  ;;  %v534_v21 = vshrl.u32 %v12553_v18, 16  ;;  %v537_v22 = vshll.u32 %v12553_v18, 16  ;;  %s13172_s30 = scalar_lea.vmem %s14261_s6, %s12495_s28  ;;  %v12562_v30 = vld [vmem:[%s13156_s16 + $0x1c] sm:$0xff]  }
  0x1e   : > { %p433_p0 = scmp.lt.s32.totalorder %s432_s20, 7  ;;  %11100 = vmatprep.mubr.bf16.mxu0 %v12555_v16  ;;  %v551_v31 = vshrl.u32 %v12556_v25, 16  ;;  %v554_v32 = vshll.u32 %v12556_v25, 16  ;;  %v560_v35 = vshrl.u32 %v12562_v30, 16  ;;  %v563_v36 = vshll.u32 %v12562_v30, 16  ;;  %v12558_v40 = vld [vmem:[%s13156_s16 + $0x18] sm:$0xff]  }
  0x1f   : > { %10967 = vmatpush3.bf16.msra.mxu1 %v12547_v10  ;;  %v544_v23 = vrot.slane %v542_v19, 3  ;;  %v547_v24 = vrot.slane %v545_v20, 4  ;;  %v536_v26 = vrot.slane %v534_v21, 3  ;;  %v539_v27 = vrot.slane %v537_v22, 4  ;;  %v12564_v44 = vld [vmem:[%s13156_s16 + $0x24] sm:$0xff]   ;;  %v12570_v58 = vld [vmem:[%s13156_s16 + $0x2c] sm:$0xff]  }
  0x20   : > { %11095 = vmatpush3.bf16.msra.mxu0 %v12548_v11  ;;  %10968 = vmatprep.subr.bf16.mxu1 %v12549_v12  ;;  %s14287_s20 = smov (!%p433_p0, %s432_s20), 7  ;;  %v553_v37 = vrot.slane %v551_v31, 3  ;;  %v556_v38 = vrot.slane %v554_v32, 4  ;;  %v562_v42 = vrot.slane %v560_v35, 3  ;;  %v565_v43 = vrot.slane %v563_v36, 4  ;;  %v12563_v51 = vld [vmem:[%s13156_s16 + $0x20] sm:$0xff]  }
  0x21   : > { %11096 = vmatprep.subr.bf16.mxu0 %v12550_v13  ;;  %v548_v28 = vor.u32 %v547_v24, %v544_v23  ;;  %s12494_s14 = smul.u32 96, %s14287_s20  ;;  %v540_v34 = vor.u32 %v539_v27, %v536_v26  ;;  %v569_v48 = vshrl.u32 %v12564_v44, 16  ;;  %v572_v49 = vshll.u32 %v12564_v44, 16  ;;  %v12566_v59 = vld [vmem:[%s13156_s16 + $0x28] sm:$0xff]   ;;  %v12572_v63 = vld [vmem:[%s13156_s16 + $0x34] sm:$0xff]   ;;  %v12573_v10 = vld [vmem:[%s14258_s3 + $0x2a0] sm:$0xff]  }
  0x22   : > { %v557_v45 = vor.u32 %v556_v38, %v553_v37  ;;  %v566_v47 = vor.u32 %v565_v43, %v562_v42  ;;  %v578_v61 = vshrl.u32 %v12570_v58, 16  ;;  %v581_v62 = vshll.u32 %v12570_v58, 16  ;;  %v12571_v4 = vld [vmem:[%s13156_s16 + $0x30] sm:$0xff]   ;;  %v12575_v11 = vld [vmem:[%s14258_s3 + $0x3a0] sm:$0xff]   ;;  %v12576_v16 = vld [vmem:[%s14258_s3 + $0x2a8] sm:$0xff]  }
  0x23   : > { %10969 = vmatpush3.bf16.msra.mxu1 %v12549_v12  ;;  %s13184_s10 = scalar_lea.vmem %s14257_s2, %s12494_s14  ;;  %v549_v39 = vsel %vm532_vm0, %v540_v34, %v548_v28  ;;  %v571_v53 = vrot.slane %v569_v48, 3  ;;  %v574_v54 = vrot.slane %v572_v49, 4  ;;  %v587_v5 = vshrl.u32 %v12572_v63, 16  ;;  %v12578_v14 = vld [vmem:[%s13156_s16 + $0x3c] sm:$0xff]   ;;  %v12580_v19 = vld [vmem:[%s13156_s16 + $0x44] ss:$0 sps:$4 sm:$0xff]  }
  0x24   : > { %11097 = vmatpush3.bf16.msra.mxu0 %v12550_v13  ;;  %10970 = vmatprep.subr.bf16.mxu1 %v12551_v15  ;;  %v558_v50 = vsel %vm532_vm0, %v548_v28, %v557_v45  ;;  %v567_v52 = vsel %vm532_vm0, %v557_v45, %v566_v47  ;;  %v580_v2 = vrot.slane %v578_v61, 3  ;;  %v583_v3 = vrot.slane %v581_v62, 4  ;;  %v12577_v21 = vld [vmem:[%s14258_s3 + $0x3a8] sm:$0xff]   ;;  %v12579_v26 = vld [vmem:[%s13156_s16 + $0x40] sm:$0xff]   ;;  %v12581_v30 = vld [vmem:[%s14258_s3 + $0x2b0] sm:$0xff]  }
  0x25   : > { %11098 = vmatprep.subr.bf16.mxu0 %v12552_v17  ;;  %10972 = vmatprep.mubr.bf16.mxu1 %v549_v39  ;;  %v575_v57 = vor.u32 %v574_v54, %v571_v53  ;;  %v590_v6 = vshll.u32 %v12572_v63, 16  ;;  %v589_v8 = vrot.slane %v587_v5, 3  ;;  %v599_v18 = vshll.u32 %v12578_v14, 16  ;;  %v12582_v34 = vld [vmem:[%s13156_s16 + $0x48] sm:$0xff]   ;;  %v12587_v35 = vld [vmem:[%s13156_s16 + $0x10] sm:$0xff]   ;;  %v12584_v36 = vld [vmem:[%s14258_s3 + $0x2b8] sm:$0xff]  }
  0x26   : > { %v584_v7 = vor.u32 %v583_v3, %v580_v2  ;;  %v605_v24 = vshrl.u32 %v12580_v19, 16  ;;  %v608_v25 = vshll.u32 %v12580_v19, 16  ;;  %v12585_v38 = vld [vmem:[%s14258_s3 + $0x3b8] sm:$0xff]   ;;  %v12586_v42 = vld [vmem:[%s13156_s16 + $0x8] sm:$0xff]   ;;  %v12590_v49 = vld [vmem:[%s14258_s3 + $0x2c0] sm:$0xff]  }
  0x27   : > { %10971 = vmatpush3.bf16.msra.mxu1 %v12551_v15  ;;  %v576_v0 = vsel %vm532_vm0, %v566_v47, %v575_v57  ;;  %v592_v9 = vrot.slane %v590_v6, 4  ;;  %v12574_v15 = vld [vmem:[%s13156_s16 + $0x38] sm:$0xff]   ;;  %v601_v23 = vrot.slane %v599_v18, 4  ;;  %v12589_v54 = vld [vmem:[%s13156_s16 + $0x10] sm:$0xff]   ;;  %v12596_v58 = vld [vmem:[%s13156_s16 + $0x28] sm:$0xff]  }
  0x28   : > { %11099 = vmatpush3.bf16.msra.mxu0 %v12552_v17  ;;  %10988 = vmatprep.subr.bf16.mxu1 %v12557_v29  ;;  %v585_v12 = vsel %vm532_vm0, %v575_v57, %v584_v7  ;;  %v596_v17 = vshrl.u32 %v12578_v14, 16  ;;  %v607_v28 = vrot.slane %v605_v24, 3  ;;  %v12588_v39 = vld [vmem:[%s13156_s16 + $0x18] sm:$0xff]   ;;  %v12593_v57 = vld [vmem:[%s14258_s3 + $0x2c8] sm:$0xff]   ;;  %v2136_v63 = vshll.u32 %v12596_v58, 16  ;;  %v12598_v3 = vld [vmem:[%s14258_s3 + $0x2d0] sm:$0xff]  }
  0x29   : > { %11116 = vmatprep.subr.bf16.mxu0 %v12559_v33  ;;  %v593_v13 = vor.u32 %v592_v9, %v589_v8  ;;  %v2120_v44 = vshll.u32 %v12588_v39, 16  ;;  %v2124_v45 = vshrl.u32 %v12588_v39, 16  ;;  %v12595_v61 = vld [vmem:[%s13156_s16 + $0x18] sm:$0xff]   ;;  %v12600_v5 = vld [vmem:[%s14258_s3 + $0x3d0] sm:$0xff]   ;;  %v12607_v18 = vld [vmem:[%s13156_s16 + $0x40] sm:$0xff]  }
  0x2a   : > { %10973 = vmatmul.mubr.bf16.vlgmr.msra.gmra.mrb[0].mxu1 %v558_v50  ;;  %v598_v22 = vrot.slane %v596_v17, 3  ;;  %v2138_v2 = vrot.slane %v2136_v63, 1  ;;  %v12602_v14 = vld [vmem:[%s14258_s3 + $0x3d8] sm:$0xff]   ;;  %v12614_v39 = vld [vmem:[%s14258_s3 + $0x2f0] sm:$0xff]  }
  0x2b   : > { %11101 = vmatmul.mubr.bf16.vlgmr.msra.gmra.mrb[0].mxu0 %v12558_v40  ;;  %10989 = vmatpush3.bf16.msra.mxu1 %v12557_v29  ;;  %v594_v20 = vsel %vm532_vm0, %v584_v7, %v593_v13  ;;  %v610_v29 = vrot.slane %v608_v25, 4  ;;  %v2113_v40 = vshrl.u32 %v12587_v35, 16  ;;  %v2122_v48 = vrot.slane %v2120_v44, 1  ;;  %v12597_v7 = vld [vmem:[%s13156_s16 + $0x20] sm:$0xff]   ;;  %v12605_v25 = vld [vmem:[%s13156_s16 + $0x30] sm:$0xff]  }
  0x2c   : > { %11117 = vmatpush3.bf16.msra.mxu0 %v12559_v33  ;;  %10990 = vmatprep.subr.bf16.mxu1 %v12560_v41  ;;  %v602_v27 = vor.u32 %v601_v23, %v598_v22  ;;  %v12583_v33 = vld [vmem:[%s14258_s3 + $0x3b0] sm:$0xff]   ;;  %v2160_v22 = vshll.u32 %v12607_v18, 16  ;;  %v12608_v23 = vld [vmem:[%s14258_s3 + $0x3e0] sm:$0xff]  }
  0x2d   : > { %11118 = vmatprep.subr.bf16.mxu0 %v12561_v46  ;;  %10976 = vmatprep.mubr.bf16.mxu1 %v567_v52  ;;  %v611_v32 = vor.u32 %v610_v29, %v607_v28  ;;  %v2126_v53 = vor.u32 %v2124_v45, %v2122_v48  ;;  %v12609_v29 = vld [vmem:[%s14258_s3 + $0x2e8] sm:$0xff]  }
  0x2e   : > { %11104 = vmatprep.mubr.bf16.mxu0 %v12563_v51  ;;  %v603_v31 = vsel %vm532_vm0, %v593_v13, %v602_v27  ;;  %v12592_v51 = vld [vmem:[%s14258_s3 + $0x3c0] sm:$0xff]   ;;  %v2162_v28 = vrot.slane %v2160_v22, 1  ;;  %v12628_v22 = vld [vmem:[%s14258_s3 + $0x408] sm:$0xff]  }
  0x2f   : > { %10991 = vmatpush3.bf16.msra.mxu1 %v12560_v41  ;;  %v612_v37 = vsel %vm532_vm0, %v602_v27, %v611_v32  ;;  %v2115_v41 = vshll.u32 %v12587_v35, 16  ;;  %v2164_v27 = vshrl.u32 %v12607_v18, 16  ;;  %v12610_v32 = vld [vmem:[%s14258_s3 + $0x3e8] sm:$0xff]  }
  0x30   : > { %11119 = vmatpush3.bf16.msra.mxu0 %v12561_v46  ;;  %10992 = vmatprep.subr.bf16.mxu1 %v12565_v55  ;;  %v12591_v46 = vld [vmem:[%s13156_s16 + $0x20] sm:$0xff]  }
  0x31   : > { %11120 = vmatprep.subr.bf16.mxu0 %v12567_v56  ;;  %v2117_v43 = vrot.slane %v2115_v41, 1  ;;  %v2128_v50 = vshll.u32 %v12591_v46, 16  ;;  %v12616_v41 = vld [vmem:[%s14258_s3 + $0x3f0] sm:$0xff]  }
  0x32   : > { %10977 = vmatmul.mubr.bf16.gmra.mrb[4].mxu1 %v576_v0  ;;  %v12599_v0 = vld [vmem:[%s13156_s16 + $0x30] sm:$0xff]  }
  0x33   : > { %11105 = vmatmul.mubr.bf16.gmra.mrb[4].mxu0 %v12566_v59  ;;  %10993 = vmatpush3.bf16.msra.mxu1 %v12565_v55  ;;  %v2118_v47 = vor.u32 %v2117_v43, %v2113_v40  ;;  %v2132_v55 = vshrl.u32 %v12591_v46, 16  ;;  %v2148_v9 = vshrl.u32 %v12599_v0, 16  ;;  %v12613_v43 = vld [vmem:[%s13156_s16 + $0x40] sm:$0xff]   ;;  %v12617_v46 = vld [vmem:[%s14258_s3 + $0x2f8] sm:$0xff]  }
  0x34   : > { %11121 = vmatpush3.bf16.msra.mxu0 %v12567_v56  ;;  %10994 = vmatprep.subr.bf16.mxu1 %v12568_v60  ;;  %v2130_v56 = vrot.slane %v2128_v50, 1 }
  0x35   : > { %11122 = vmatprep.subr.bf16.mxu0 %v12569_v1  ;;  %10980 = vmatprep.mubr.bf16.mxu1 %v585_v12  ;;  %v2123_v52 = vsel %vm1133_vm1, %v2118_v47, %v2122_v48  ;;  %v12604_v12 = vld [vmem:[%s13156_s16 + $0x38] sm:$0xff]   ;;  %v12619_v48 = vld [vmem:[%s13156_s16 + $0x8] sm:$0xff]  }
  0x36   : > { %11108 = vmatprep.mubr.bf16.mxu0 %v12571_v4  ;;  %v2131_v59 = vsel %vm1133_vm1, %v2126_v53, %v2130_v56  ;;  %v2134_v62 = vor.u32 %v2132_v55, %v2130_v56  ;;  %v2144_v4 = vshll.u32 %v12599_v0, 16  ;;  %v2152_v17 = vshll.u32 %v12604_v12, 16  ;;  %v12618_v47 = vld [vmem:[%s14258_s3 + $0x3f8] sm:$0xff]  }
  0x37   : > { %10995 = vmatpush3.bf16.msra.mxu1 %v12568_v60  ;;  %v12594_v60 = vld [vmem:[%s14258_s3 + $0x3c8] sm:$0xff]   ;;  %v2156_v19 = vshrl.u32 %v12604_v12, 16  ;;  %v12621_v55 = vld [vmem:[%s13156_s16 + $0x14] sm:$0xf8]  }
  0x38   : > { %11123 = vmatpush3.bf16.msra.mxu0 %v12569_v1  ;;  %10996 = vmatprep.subr.bf16.mxu1 %v12573_v10  ;;  %v2140_v1 = vshrl.u32 %v12596_v58, 16  ;;  %v2139_v6 = vsel %vm1133_vm1, %v2134_v62, %v2138_v2 }
  0x39   : > { %11124 = vmatprep.subr.bf16.mxu0 %v12575_v11 }
  0x3a   : > { %10981 = vmatmul.mubr.bf16.gmra.mrb[8].mxu1 %v594_v20  ;;  %v2142_v8 = vor.u32 %v2140_v1, %v2138_v2  ;;  %v2154_v20 = vrot.slane %v2152_v17, 1  ;;  %v12624_v1 = vld [vmem:[%s14258_s3 + $0x300] sm:$0xff]   ;;  %v12627_v17 = vld [vmem:[%s14258_s3 + $0x308] sm:$0xff]  }
  0x3b   : > { %11109 = vmatmul.mubr.bf16.gmra.mrb[8].mxu0 %v12574_v15  ;;  %10997 = vmatpush3.bf16.msra.mxu1 %v12573_v10  ;;  %v2146_v10 = vrot.slane %v2144_v4, 1  ;;  %v12603_v15 = vld [vmem:[%s13156_s16 + $0x28] sm:$0xff]  }
  0x3c   : > { %11125 = vmatpush3.bf16.msra.mxu0 %v12575_v11  ;;  %10998 = vmatprep.subr.bf16.mxu1 %v12576_v16  ;;  %v12601_v11 = vld [vmem:[%s14258_s3 + $0x2d8] sm:$0xff]   ;;  %v12625_v2 = vld [vmem:[%s13156_s16 + $0x24] sm:$0xff]  }
  0x3d   : > { %11126 = vmatprep.subr.bf16.mxu0 %v12577_v21  ;;  %10984 = vmatprep.mubr.bf16.mxu1 %v603_v31  ;;  %v2147_v13 = vsel %vm1133_vm1, %v2142_v8, %v2146_v10 }
  0x3e   : > { %11112 = vmatprep.mubr.bf16.mxu0 %v12579_v26  ;;  %v2158_v26 = vor.u32 %v2156_v19, %v2154_v20 }
  0x3f   : > { %10999 = vmatpush3.bf16.msra.mxu1 %v12576_v16  ;;  %v2150_v16 = vor.u32 %v2148_v9, %v2146_v10 }
  0x40   : > { %11127 = vmatpush3.bf16.msra.mxu0 %v12577_v21  ;;  %11000 = vmatprep.subr.bf16.mxu1 %v12581_v30  ;;  %v12606_v21 = vld [vmem:[%s14258_s3 + $0x2e0] sm:$0xff]   ;;  %v2163_v31 = vsel %vm1133_vm1, %v2158_v26, %v2162_v28 }
  0x41   : > { %11128 = vmatprep.subr.bf16.mxu0 %v12583_v33  ;;  %v2155_v24 = vsel %vm1133_vm1, %v2150_v16, %v2154_v20  ;;  %v12629_v20 = vld [vmem:[%s13156_s16 + $0x20] sm:$0xff]  }
  0x42   : > { %10985 = vmatmul.mubr.bf16.gmra.mrb[12].mxu1 %v612_v37  ;;  %v1158_v26 = vshll.u32 %v12629_v20, 16 }
  0x43   : > { %11113 = vmatmul.mubr.bf16.gmra.mrb[12].mxu0 %v12582_v34  ;;  %11001 = vmatpush3.bf16.msra.mxu1 %v12581_v30  ;;  %v12612_v30 = vld [vmem:[%s13156_s16 + $0x48] sm:$0xff]   ;;  %v2166_v34 = vor.u32 %v2164_v27, %v2162_v28 }
  0x44   : > { %11129 = vmatpush3.bf16.msra.mxu0 %v12583_v33  ;;  %11002 = vmatprep.subr.bf16.mxu1 %v12584_v36  ;;  %v12611_v33 = vld [vmem:[%s13156_s16 + $0x38] sm:$0xff]   ;;  %v2168_v35 = vshll.u32 %v12612_v30, 16  ;;  %v2172_v37 = vshrl.u32 %v12612_v30, 16  ;;  %v12631_v27 = vld [vmem:[%s13156_s16 + $0x28] sm:$0xff]  }
  0x45   : > { %11130 = vmatprep.subr.bf16.mxu0 %v12585_v38  ;;  %11004 = vmatprep.mubr.bf16.mxu1 %v12586_v42 }
  0x46   : > { %11132 = vmatprep.mubr.bf16.mxu0 %v2123_v52  ;;  %v1137_v52 = vshll.u32 %v12619_v48, 16 }
  0x47   : > { %11003 = vmatpush3.bf16.msra.mxu1 %v12584_v36  ;;  %v12615_v36 = vld [vmem:[%s13156_s16 + $0x50] ss:$0 sps:$4 sm:$0x11]  }
  0x48   : > { %11131 = vmatpush3.bf16.msra.mxu0 %v12585_v38  ;;  %11020 = vmatprep.subr.bf16.mxu1 %v12590_v49  ;;  %v2170_v38 = vrot.slane %v2168_v35, 1  ;;  %v2176_v40 = vshll.u32 %v12615_v36, 16  ;;  %v1139_v56 = vrot.slane %v1137_v52, 1  ;;  %v12632_v35 = vld [vmem:[%s14258_s3 + $0x310] sm:$0xff]  }
  0x49   : > { %11148 = vmatprep.subr.bf16.mxu0 %v12592_v51 }
  0x4a   : > { %11005 = vmatmul.mubr.bf16.vlgmr.msra.gmra.mrb[0].mxu1 %v12589_v54  ;;  %v2171_v42 = vsel %vm1133_vm1, %v2166_v34, %v2170_v38  ;;  %v2174_v44 = vor.u32 %v2172_v37, %v2170_v38  ;;  %v2178_v45 = vrot.slane %v2176_v40, 1  ;;  %v1166_v34 = vshll.u32 %v12631_v27, 16 }
  0x4b   : > { %11133 = vmatmul.mubr.bf16.vlgmr.msra.gmra.mrb[0].mxu0 %v2131_v59  ;;  %11021 = vmatpush3.bf16.msra.mxu1 %v12590_v49  ;;  %v12620_v49 = vld [vmem:[%s13156_s16 + $0x10] sm:$0xff]   ;;  %v2459_v59 = vshrl.u32 %v12621_v55, 16 }
  0x4c   : > { %11149 = vmatpush3.bf16.msra.mxu0 %v12592_v51  ;;  %11022 = vmatprep.subr.bf16.mxu1 %v12593_v57  ;;  %v2179_v50 = vsel %vm1133_vm1, %v2174_v44, %v2178_v45  ;;  %v1135_v51 = vshrl.u32 %v12619_v48, 16  ;;  %v1142_v53 = vshll.u32 %v12620_v49, 16  ;;  %v1146_v54 = vshrl.u32 %v12620_v49, 16  ;;  %v12635_v48 = vld [vmem:[%s14258_s3 + $0x318] sm:$0xff]  }
  0x4d   : > { %11150 = vmatprep.subr.bf16.mxu0 %v12594_v60  ;;  %11008 = vmatprep.mubr.bf16.mxu1 %v12595_v61  ;;  %v12623_v61 = vld [vmem:[%s13156_s16 + $0x18] sm:$0xff]   ;;  %v2461_v4 = vrot.slane %v2459_v59, 3  ;;  %v1168_v40 = vrot.slane %v1166_v34, 1  ;;  %v1170_v44 = vshrl.u32 %v12631_v27, 16 }
  0x4e   : > { %11136 = vmatprep.mubr.bf16.mxu0 %v2139_v6  ;;  %v1144_v58 = vrot.slane %v1142_v53, 1  ;;  %v1140_v62 = vor.u32 %v1139_v56, %v1135_v51  ;;  %v1150_v6 = vshll.u32 %v12623_v61, 16  ;;  %v12637_v53 = vld [vmem:[%s13156_s16 + $0x30] sm:$0xff]  }
  0x4f   : > { %11023 = vmatpush3.bf16.msra.mxu1 %v12593_v57  ;;  %v12622_v57 = vld [vmem:[%s13156_s16 + $0x1c] sm:$0xff]  }
  0x50   : > { %11151 = vmatpush3.bf16.msra.mxu0 %v12594_v60  ;;  %11024 = vmatprep.subr.bf16.mxu1 %v12598_v3  ;;  %v2462_v60 = vshll.u32 %v12621_v55, 16  ;;  %v2467_v63 = vshrl.u32 %v12622_v57, 16  ;;  %v2470_v0 = vshll.u32 %v12622_v57, 16  ;;  %v1145_v8 = vsel %vm1133_vm1, %v1140_v62, %v1144_v58  ;;  %v12640_v62 = vld [vmem:[%s14258_s3 + $0x320] sm:$0xff]  }
  0x51   : > { %11152 = vmatprep.subr.bf16.mxu0 %v12600_v5  ;;  %v1172_v55 = vor.u32 %v1170_v44, %v1168_v40  ;;  %v1174_v57 = vshll.u32 %v12637_v53, 16 }
  0x52   : > { %11009 = vmatmul.mubr.bf16.gmra.mrb[4].mxu1 %v12597_v7  ;;  %v12626_v7 = vld [vmem:[%s14258_s3 + $0x400] sm:$0xff]   ;;  %v2469_v9 = vrot.slane %v2467_v63, 3  ;;  %v2472_v10 = vrot.slane %v2470_v0, 4 }
  0x53   : > { %11137 = vmatmul.mubr.bf16.gmra.mrb[4].mxu0 %v2147_v13  ;;  %11025 = vmatpush3.bf16.msra.mxu1 %v12598_v3  ;;  %v1148_v3 = vor.u32 %v1146_v54, %v1144_v58  ;;  %v1152_v13 = vrot.slane %v1150_v6, 1  ;;  %v12638_v54 = vld [vmem:[%s13156_s16 + $0x3c] sm:$0xff]   ;;  %v1176_v0 = vrot.slane %v1174_v57, 1 }
  0x54   : > { %11153 = vmatpush3.bf16.msra.mxu0 %v12600_v5  ;;  %11026 = vmatprep.subr.bf16.mxu1 %v12601_v11  ;;  %v2464_v5 = vrot.slane %v2462_v60, 4  ;;  %v2503_v58 = vshrl.u32 %v12638_v54, 16  ;;  %v2506_v59 = vshll.u32 %v12638_v54, 16  ;;  %v12639_v60 = vld [vmem:[%s13156_s16 + $0x38] sm:$0xff]  }
  0x55   : > { %11154 = vmatprep.subr.bf16.mxu0 %v12602_v14  ;;  %11012 = vmatprep.mubr.bf16.mxu1 %v12603_v15  ;;  %v2473_v15 = vor.u32 %v2472_v10, %v2469_v9  ;;  %v1153_v18 = vsel %vm1133_vm1, %v1148_v3, %v1152_v13  ;;  %v12641_v3 = vld [vmem:[%s13156_s16 + $0x44] sm:$0xff]   ;;  %v1177_v6 = vsel %vm1133_vm1, %v1172_v55, %v1176_v0  ;;  %v12656_v57 = vld [vmem:[%s13156_s16 + $0x1c] sm:$0xff]  }
  0x56   : > { %11140 = vmatprep.mubr.bf16.mxu0 %v2155_v24  ;;  %v2465_v12 = vor.u32 %v2464_v5, %v2461_v4  ;;  %v12630_v24 = vld [vmem:[%s13156_s16 + $0x2c] sm:$0xff]   ;;  %v1182_v4 = vshll.u32 %v12639_v60, 16  ;;  %v12642_v5 = vld [vmem:[%s14258_s3 + $0x420] sm:$0xff]   ;;  %v2512_v9 = vshrl.u32 %v12641_v3, 16 }
  0x57   : > { %11027 = vmatpush3.bf16.msra.mxu1 %v12601_v11  ;;  %v2476_v11 = vshrl.u32 %v12625_v2, 16  ;;  %v2488_v30 = vshll.u32 %v12630_v24, 16  ;;  %v12643_v10 = vld [vmem:[%s14258_s3 + $0x328] sm:$0xff]  }
  0x58   : > { %11155 = vmatpush3.bf16.msra.mxu0 %v12602_v14  ;;  %11028 = vmatprep.subr.bf16.mxu1 %v12606_v21  ;;  %v2479_v14 = vshll.u32 %v12625_v2, 16  ;;  %v2508_v2 = vrot.slane %v2506_v59, 4 }
  0x59   : > { %11156 = vmatprep.subr.bf16.mxu0 %v12608_v23  ;;  %v2478_v16 = vrot.slane %v2476_v11, 3  ;;  %v2490_v37 = vrot.slane %v2488_v30, 4  ;;  %v1184_v11 = vrot.slane %v1182_v4, 1 }
  0x5a   : > { %11013 = vmatmul.mubr.bf16.gmra.mrb[8].mxu1 %v12605_v25  ;;  %v2481_v19 = vrot.slane %v2479_v14, 4  ;;  %v2514_v14 = vrot.slane %v2512_v9, 3  ;;  %v12659_v9 = vld [vmem:[%s14258_s3 + $0x448] sm:$0xff]  }
  0x5b   : > { %11141 = vmatmul.mubr.bf16.gmra.mrb[8].mxu0 %v2163_v31  ;;  %11029 = vmatpush3.bf16.msra.mxu1 %v12606_v21  ;;  %v2474_v21 = vsel %vm532_vm0, %v2465_v12, %v2473_v15  ;;  %v2515_v12 = vshll.u32 %v12641_v3, 16  ;;  %v12657_v3 = vld [vmem:[%s13156_s16 + $0x20] sm:$0xff]  }
  0x5c   : > { %11157 = vmatpush3.bf16.msra.mxu0 %v12608_v23  ;;  %11030 = vmatprep.subr.bf16.mxu1 %v12609_v29  ;;  %v1154_v23 = vshrl.u32 %v12623_v61, 16  ;;  %v2482_v25 = vor.u32 %v2481_v19, %v2478_v16  ;;  %v1178_v61 = vshrl.u32 %v12637_v53, 16  ;;  %v1186_v19 = vshrl.u32 %v12639_v60, 16 }
  0x5d   : > { %11158 = vmatprep.subr.bf16.mxu0 %v12610_v32  ;;  %11016 = vmatprep.mubr.bf16.mxu1 %v12611_v33  ;;  %v1162_v33 = vshrl.u32 %v12629_v20, 16  ;;  %v12646_v20 = vld [vmem:[%s13156_s16 + $0x4c] sm:$0xff]  }
  0x5e   : > { %11144 = vmatprep.mubr.bf16.mxu0 %v2171_v42  ;;  %v1156_v28 = vor.u32 %v1154_v23, %v1152_v13  ;;  %v2483_v31 = vsel %vm532_vm0, %v2473_v15, %v2482_v25  ;;  %v12644_v15 = vld [vmem:[%s14258_s3 + $0x428] sm:$0xff]   ;;  %v2524_v27 = vshll.u32 %v12646_v20, 16 }
  0x5f   : > { %11031 = vmatpush3.bf16.msra.mxu1 %v12609_v29  ;;  %v2485_v29 = vshrl.u32 %v12630_v24, 16  ;;  %v2521_v24 = vshrl.u32 %v12646_v20, 16 }
  0x60   : > { %11159 = vmatpush3.bf16.msra.mxu0 %v12610_v32  ;;  %11032 = vmatprep.subr.bf16.mxu1 %v12614_v39  ;;  %v1160_v32 = vrot.slane %v1158_v26, 1  ;;  %v12648_v26 = vld [vmem:[%s14258_s3 + $0x330] sm:$0xff]   ;;  %v2526_v34 = vrot.slane %v2524_v27, 4 }
  0x61   : > { %11160 = vmatprep.subr.bf16.mxu0 %v12616_v41  ;;  %v2487_v36 = vrot.slane %v2485_v29, 3 }
  0x62   : > { %11017 = vmatmul.mubr.bf16.gmra.mrb[12].mxu1 %v12613_v43  ;;  %v1161_v38 = vsel %vm1133_vm1, %v1156_v28, %v1160_v32  ;;  %v12634_v43 = vld [vmem:[%s14258_s3 + $0x410] sm:$0xff]  }
  0x63   : > { %11145 = vmatmul.mubr.bf16.gmra.mrb[12].mxu0 %v2179_v50  ;;  %11033 = vmatpush3.bf16.msra.mxu1 %v12614_v39  ;;  %v1164_v39 = vor.u32 %v1162_v33, %v1160_v32  ;;  %v2491_v42 = vor.u32 %v2490_v37, %v2487_v36  ;;  %v12636_v50 = vld [vmem:[%s14258_s3 + $0x418] sm:$0xff]   ;;  %v12650_v33 = vld [vmem:[%s14258_s3 + $0x430] sm:$0xff]  }
  0x64   : > { %11161 = vmatpush3.bf16.msra.mxu0 %v12616_v41  ;;  %11034 = vmatprep.subr.bf16.mxu1 %v12617_v46  ;;  %v12633_v41 = vld [vmem:[%s13156_s16 + $0x34] sm:$0xff]  }
  0x65   : > { %11162 = vmatprep.subr.bf16.mxu0 %v12618_v47  ;;  %11036 = vmatprep.mubr.bf16.mxu1 %v1145_v8  ;;  %v1169_v45 = vsel %vm1133_vm1, %v1164_v39, %v1168_v40  ;;  %v2492_v49 = vsel %vm532_vm0, %v2482_v25, %v2491_v42  ;;  %v1180_v8 = vor.u32 %v1178_v61, %v1176_v0  ;;  %v12647_v25 = vld [vmem:[%s13156_s16 + $0x48] ss:$0 sps:$4 sm:$0x11]   ;;  %v12651_v36 = vld [vmem:[%s14258_s3 + $0x338] sm:$0xff]   ;;  %v1501_v0 = vshll.u32 %v12656_v57, 16 }
  0x66   : > { %11164 = vmatprep.mubr.bf16.mxu0 %v2474_v21  ;;  %v1198_v32 = vshll.u32 %v12647_v25, 16  ;;  %v12652_v40 = vld [vmem:[%s14258_s3 + $0x438] sm:$0xff]  }
  0x67   : > { %11035 = vmatpush3.bf16.msra.mxu1 %v12617_v46  ;;  %v2494_v46 = vshrl.u32 %v12633_v41, 16  ;;  %v1185_v16 = vsel %vm1133_vm1, %v1180_v8, %v1184_v11 }
  0x68   : > { %11163 = vmatpush3.bf16.msra.mxu0 %v12618_v47  ;;  %11052 = vmatprep.subr.bf16.mxu1 %v12624_v1  ;;  %v2497_v47 = vshll.u32 %v12633_v41, 16  ;;  %v1200_v39 = vrot.slane %v1198_v32, 1 }
  0x69   : > { %11180 = vmatprep.subr.bf16.mxu0 %v12626_v7  ;;  %v2496_v51 = vrot.slane %v2494_v46, 3 }
  0x6a   : > { %11037 = vmatmul.mubr.bf16.vlgmr.msra.gmra.mrb[0].mxu1 %v1153_v18  ;;  %v2499_v52 = vrot.slane %v2497_v47, 4  ;;  %v12645_v18 = vld [vmem:[%s13156_s16 + $0x40] sm:$0xff]  }
  0x6b   : > { %11053 = vmatpush3.bf16.msra.mxu1 %v12624_v1  ;;  %11165 = vmatmul.mubr.bf16.vlgmr.msra.gmra.mrb[0].mxu0 %v2483_v31  ;;  %v2505_v1 = vrot.slane %v2503_v58, 3  ;;  %v1190_v23 = vshll.u32 %v12645_v18, 16  ;;  %v1194_v28 = vshrl.u32 %v12645_v18, 16  ;;  %v2523_v31 = vrot.slane %v2521_v24, 3 }
  0x6c   : > { %11054 = vmatprep.subr.bf16.mxu1 %v12627_v17  ;;  %11181 = vmatpush3.bf16.msra.mxu0 %v12626_v7  ;;  %v2500_v56 = vor.u32 %v2499_v52, %v2496_v51  ;;  %v12655_v51 = vld [vmem:[%s13156_s16 + $0x18] sm:$0xff]  }
  0x6d   : > { %11182 = vmatprep.subr.bf16.mxu0 %v12628_v22  ;;  %11040 = vmatprep.mubr.bf16.mxu1 %v1161_v38  ;;  %v2509_v7 = vor.u32 %v2508_v2, %v2505_v1  ;;  %v1192_v30 = vrot.slane %v1190_v23, 1  ;;  %v2527_v41 = vor.u32 %v2526_v34, %v2523_v31  ;;  %v12666_v23 = vld [vmem:[%s13156_s16 + $0x34] sm:$0xff]  }
  0x6e   : > { %11168 = vmatprep.mubr.bf16.mxu0 %v2492_v49  ;;  %v2501_v63 = vsel %vm532_vm0, %v2491_v42, %v2500_v56  ;;  %v12654_v49 = vld [vmem:[%s13156_s16 + $0x14] sm:$0xff]   ;;  %v1525_v27 = vshrl.u32 %v12666_v23, 16 }
  0x6f   : > { %11055 = vmatpush3.bf16.msra.mxu1 %v12627_v17  ;;  %v2510_v13 = vsel %vm532_vm0, %v2500_v56, %v2509_v7  ;;  %v2517_v17 = vrot.slane %v2515_v12, 4  ;;  %v1196_v38 = vor.u32 %v1194_v28, %v1192_v30  ;;  %v1489_v54 = vshrl.u32 %v12654_v49, 16  ;;  %v12661_v12 = vld [vmem:[%s13156_s16 + $0x28] sm:$0xff]   ;;  %v12665_v31 = vld [vmem:[%s14258_s3 + $0x458] sm:$0xff]  }
  0x70   : > { %11056 = vmatprep.subr.bf16.mxu1 %v12632_v35  ;;  %11183 = vmatpush3.bf16.msra.mxu0 %v12628_v22  ;;  %v1188_v22 = vor.u32 %v1186_v19, %v1184_v11  ;;  %v1492_v55 = vshll.u32 %v12654_v49, 16  ;;  %v1528_v28 = vshll.u32 %v12666_v23, 16  ;;  %v1527_v32 = vrot.slane %v1525_v27, 3 }
  0x71   : > { %11184 = vmatprep.subr.bf16.mxu0 %v12634_v43  ;;  %v2518_v21 = vor.u32 %v2517_v17, %v2514_v14  ;;  %v1201_v44 = vsel %vm1133_vm1, %v1196_v38, %v1200_v39  ;;  %v1491_v60 = vrot.slane %v1489_v54, 3  ;;  %v12672_v39 = vld [vmem:[%s13156_s16 + $0x44] sm:$0xff]  }
  0x72   : > { %11041 = vmatmul.mubr.bf16.gmra.mrb[4].mxu1 %v1169_v45  ;;  %v1193_v37 = vsel %vm1133_vm1, %v1188_v22, %v1192_v30  ;;  %v1494_v61 = vrot.slane %v1492_v55, 4  ;;  %v12664_v22 = vld [vmem:[%s14258_s3 + $0x450] sm:$0xff]   ;;  %v12673_v55 = vld [vmem:[%s13156_s16 + $0x48] sm:$0xff]  }
  0x73   : > { %11057 = vmatpush3.bf16.msra.mxu1 %v12632_v35  ;;  %11169 = vmatmul.mubr.bf16.gmra.mrb[4].mxu0 %v2501_v63  ;;  %v2519_v29 = vsel %vm532_vm0, %v2509_v7, %v2518_v21  ;;  %v12649_v35 = vld [vmem:[%s13156_s16 + $0x54] ss:$0 sps:$4 sm:$0xff]   ;;  %v2528_v45 = vsel %vm532_vm0, %v2518_v21, %v2527_v41  ;;  %v1498_v63 = vshrl.u32 %v12656_v57, 16  ;;  %v12660_v7 = vld [vmem:[%s13156_s16 + $0x24] sm:$0xff]  }
  0x74   : > { %11058 = vmatprep.subr.bf16.mxu1 %v12635_v48  ;;  %11185 = vmatpush3.bf16.msra.mxu0 %v12634_v43  ;;  %v2530_v42 = vshrl.u32 %v12649_v35, 16  ;;  %v2533_v43 = vshll.u32 %v12649_v35, 16  ;;  %v1495_v2 = vor.u32 %v1494_v61, %v1491_v60  ;;  %v1510_v11 = vshll.u32 %v12660_v7, 16  ;;  %v12667_v35 = vld [vmem:[%s13156_s16 + $0x38] sm:$0xff]   ;;  %v12676_v60 = vld [vmem:[%s14258_s3 + $0x470] sm:$0xff]   ;;  %v12679_v61 = vld [vmem:[%s13156_s16 + $0x20] sm:$0xff]  }
  0x75   : > { %11186 = vmatprep.subr.bf16.mxu0 %v12636_v50  ;;  %11044 = vmatprep.mubr.bf16.mxu1 %v1177_v6  ;;  %v1500_v4 = vrot.slane %v1498_v63, 3 }
  0x76   : > { %11172 = vmatprep.mubr.bf16.mxu0 %v2510_v13  ;;  %v2532_v46 = vrot.slane %v2530_v42, 3  ;;  %v2535_v47 = vrot.slane %v2533_v43, 4  ;;  %v12662_v13 = vld [vmem:[%s13156_s16 + $0x2c] sm:$0xff]   ;;  %v1543_v43 = vshrl.u32 %v12672_v39, 16 }
  0x77   : > { %11059 = vmatpush3.bf16.msra.mxu1 %v12635_v48  ;;  %v12653_v48 = vld [vmem:[%s13156_s16 + $0xc] sm:$0xf8]   ;;  %v1516_v17 = vshrl.u32 %v12662_v13, 16  ;;  %v1519_v18 = vshll.u32 %v12662_v13, 16 }
  0x78   : > { %11060 = vmatprep.subr.bf16.mxu1 %v12640_v62  ;;  %11187 = vmatpush3.bf16.msra.mxu0 %v12636_v50  ;;  %v2536_v50 = vor.u32 %v2535_v47, %v2532_v46  ;;  %v1481_v52 = vshrl.u32 %v12653_v48, 16  ;;  %v1484_v53 = vshll.u32 %v12653_v48, 16  ;;  %v12669_v47 = vld [vmem:[%s13156_s16 + $0x40] sm:$0xff]   ;;  %v1545_v48 = vrot.slane %v1543_v43, 3 }
  0x79   : > { %11188 = vmatprep.subr.bf16.mxu0 %v12642_v5  ;;  %v1518_v20 = vrot.slane %v1516_v17, 3  ;;  %v1521_v21 = vrot.slane %v1519_v18, 4  ;;  %v12683_v17 = vld [vmem:[%s13156_s16 + $0x48] sm:$0xff]  }
  0x7a   : > { %11045 = vmatmul.mubr.bf16.gmra.mrb[8].mxu1 %v1185_v16  ;;  %v2537_v56 = vsel %vm532_vm0, %v2527_v41, %v2536_v50  ;;  %v1483_v58 = vrot.slane %v1481_v52, 3  ;;  %v1486_v59 = vrot.slane %v1484_v53, 4  ;;  %v1512_v16 = vrot.slane %v1510_v11, 4  ;;  %v12670_v41 = vld [vmem:[%s14258_s3 + $0x460] sm:$0xff]   ;;  %v12671_v53 = vld [vmem:[%s14258_s3 + $0x468] sm:$0xff]  }
  0x7b   : > { %11061 = vmatpush3.bf16.msra.mxu1 %v12640_v62  ;;  %11173 = vmatmul.mubr.bf16.gmra.mrb[8].mxu0 %v2519_v29  ;;  %v12658_v62 = vld [vmem:[%s14258_s3 + $0x440] sm:$0xff]   ;;  %v1522_v25 = vor.u32 %v1521_v21, %v1518_v20  ;;  %v12684_v20 = vld [vmem:[%s13156_s16 + $0x30] sm:$0xff]  }
  0x7c   : > { %11189 = vmatpush3.bf16.msra.mxu0 %v12642_v5  ;;  %11062 = vmatprep.subr.bf16.mxu1 %v12643_v10  ;;  %v1487_v1 = vor.u32 %v1486_v59, %v1483_v58  ;;  %v1503_v5 = vrot.slane %v1501_v0, 4  ;;  %v12668_v29 = vld [vmem:[%s13156_s16 + $0x3c] sm:$0xff]   ;;  %v12685_v21 = vld [vmem:[%s13156_s16 + $0x50] sm:$0xff]  }
  0x7d   : > { %11190 = vmatprep.subr.bf16.mxu0 %v12644_v15  ;;  %11048 = vmatprep.mubr.bf16.mxu1 %v1193_v37  ;;  %v1534_v34 = vshrl.u32 %v12668_v29, 16  ;;  %v12678_v58 = vld [vmem:[%s13156_s16 + $0x18] sm:$0xff]  }
  0x7e   : > { %11176 = vmatprep.mubr.bf16.mxu0 %v2528_v45  ;;  %v1496_v6 = vsel %vm532_vm0, %v1487_v1, %v1495_v2  ;;  %v1504_v8 = vor.u32 %v1503_v5, %v1500_v4  ;;  %v12674_v45 = vld [vmem:[%s13156_s16 + $0x4c] ss:$0 sps:$4 sm:$0xff]   ;;  %v3093_v63 = vshll.u32 %v12678_v58, 16  ;;  %v12680_v0 = vld [vmem:[%s13156_s16 + $0x38] sm:$0xff]   ;;  %v3098_v4 = vshll.u32 %v12679_v61, 16 }
  0x7f   : > { %11063 = vmatpush3.bf16.msra.mxu1 %v12643_v10  ;;  %v1507_v10 = vshrl.u32 %v12660_v7, 16  ;;  %v1536_v38 = vrot.slane %v1534_v34, 3  ;;  %v1552_v50 = vshrl.u32 %v12674_v45, 16  ;;  %v3102_v5 = vshrl.u32 %v12679_v61, 16 }
  0x80   : > { %11191 = vmatpush3.bf16.msra.mxu0 %v12644_v15  ;;  %11064 = vmatprep.subr.bf16.mxu1 %v12648_v26  ;;  %v1505_v14 = vsel %vm532_vm0, %v1495_v2, %v1504_v8  ;;  %v12675_v2 = vld [vmem:[%s13156_s16 + $0x50] sm:$0xff]   ;;  %v3122_v7 = vshll.u32 %v12680_v0, 16  ;;  %v3100_v11 = vrot.slane %v3098_v4, 1  ;;  %v12686_v34 = vld [vmem:[%s13156_s16 + $0x58] ss:$0 sps:$4 sm:$0x11]  }
  0x81   : > { %11192 = vmatprep.subr.bf16.mxu0 %v12650_v33  ;;  %v1509_v15 = vrot.slane %v1507_v10, 3  ;;  %v3154_v43 = vshll.u32 %v12686_v34, 16 }
  0x82   : > { %11049 = vmatmul.mubr.bf16.gmra.mrb[12].mxu1 %v1201_v44  ;;  %v1546_v44 = vshll.u32 %v12672_v39, 16  ;;  %v3118_v39 = vshrl.u32 %v12684_v20, 16 }
  0x83   : > { %11065 = vmatpush3.bf16.msra.mxu1 %v12648_v26  ;;  %11177 = vmatmul.mubr.bf16.gmra.mrb[12].mxu0 %v2537_v56  ;;  %v1513_v19 = vor.u32 %v1512_v16, %v1509_v15  ;;  %v12663_v26 = vld [vmem:[%s13156_s16 + $0x30] sm:$0xff]   ;;  %v1554_v56 = vrot.slane %v1552_v50, 3  ;;  %v3124_v16 = vrot.slane %v3122_v7, 1 }
  0x84   : > { %11193 = vmatpush3.bf16.msra.mxu0 %v12650_v33  ;;  %11066 = vmatprep.subr.bf16.mxu1 %v12651_v36  ;;  %v1530_v33 = vrot.slane %v1528_v28, 4  ;;  %v1548_v49 = vrot.slane %v1546_v44, 4  ;;  %v3114_v28 = vshll.u32 %v12684_v20, 16 }
  0x85   : > { %11194 = vmatprep.subr.bf16.mxu0 %v12652_v40  ;;  %11196 = vmatprep.mubr.bf16.mxu0 %v12655_v51  ;;  %v1514_v24 = vsel %vm532_vm0, %v1504_v8, %v1513_v19  ;;  %v1523_v30 = vsel %vm532_vm0, %v1513_v19, %v1522_v25  ;;  %v1555_v51 = vshll.u32 %v12674_v45, 16  ;;  %v3126_v8 = vshrl.u32 %v12680_v0, 16 }
  0x86   : > { %11068 = vmatprep.mubr.bf16.mxu1 %v1496_v6  ;;  %v1531_v37 = vor.u32 %v1530_v33, %v1527_v32  ;;  %v1549_v54 = vor.u32 %v1548_v49, %v1545_v48  ;;  %v12681_v6 = vld [vmem:[%s13156_s16 + $0x40] sm:$0xff]   ;;  %v3146_v33 = vshll.u32 %v12685_v21, 16  ;;  %v3156_v48 = vrot.slane %v3154_v43, 1 }
  0x87   : > { %11067 = vmatpush3.bf16.msra.mxu1 %v12651_v36  ;;  %v1537_v36 = vshll.u32 %v12668_v29, 16  ;;  %v1557_v57 = vrot.slane %v1555_v51, 4  ;;  %v3134_v13 = vshrl.u32 %v12681_v6, 16  ;;  %v3128_v23 = vor.u32 %v3126_v8, %v3124_v16 }
  0x88   : > { %11195 = vmatpush3.bf16.msra.mxu0 %v12652_v40  ;;  %11820 = vmatprep.subr.bf16.mxu1 %v12658_v62  ;;  %v1532_v42 = vsel %vm532_vm0, %v1522_v25, %v1531_v37  ;;  %v3142_v29 = vshrl.u32 %v12683_v17, 16 }
  0x89   : > { %11212 = vmatprep.subr.bf16.mxu0 %v12658_v62  ;;  %v1539_v40 = vrot.slane %v1537_v36, 4  ;;  %v1558_v1 = vor.u32 %v1557_v57, %v1554_v56  ;;  %v3116_v36 = vrot.slane %v3114_v28, 1 }
  0x8a   : > { %11069 = vmatmul.mubr.bf16.vlgmr.msra.gmra.mrb[0].mxu1 %v1505_v14  ;;  %v12682_v14 = vld [vmem:[%s13156_s16 + $0x28] sm:$0xff]  }
  0x8b   : > { %11197 = vmatmul.mubr.bf16.vlgmr.msra.gmra.mrb[0].mxu0 %v12657_v3  ;;  %11828 = vmatpush3.bf16.msra.mxu1 %v12658_v62  ;;  %v1540_v46 = vor.u32 %v1539_v40, %v1536_v38  ;;  %v3095_v3 = vrot.slane %v3093_v63, 1  ;;  %v1559_v15 = vsel %vm532_vm0, %v1549_v54, %v1558_v1  ;;  %v3106_v19 = vshll.u32 %v12682_v14, 16 }
  0x8c   : > { %11213 = vmatpush3.bf16.msra.mxu0 %v12658_v62  ;;  %11821 = vmatprep.subr.bf16.mxu1 %v12659_v9  ;;  %v3091_v62 = vshrl.u32 %v12678_v58, 16  ;;  %v3110_v25 = vshrl.u32 %v12682_v14, 16  ;;  %v3148_v38 = vrot.slane %v3146_v33, 1 }
  0x8d   : > { %11214 = vmatprep.subr.bf16.mxu0 %v12659_v9  ;;  %11200 = vmatprep.mubr.bf16.mxu0 %v12661_v12  ;;  %v1541_v52 = vsel %vm532_vm0, %v1531_v37, %v1540_v46  ;;  %v1550_v59 = vsel %vm532_vm0, %v1540_v46, %v1549_v54  ;;  %v3130_v12 = vshll.u32 %v12681_v6, 16  ;;  %v3108_v27 = vrot.slane %v3106_v19, 1 }
  0x8e   : > { %11072 = vmatprep.mubr.bf16.mxu1 %v1514_v24  ;;  %v3096_v10 = vor.u32 %v3095_v3, %v3091_v62  ;;  %v3138_v24 = vshll.u32 %v12683_v17, 16  ;;  %v3120_v46 = vor.u32 %v3118_v39, %v3116_v36 }
  0x8f   : > { %11829 = vmatpush3.bf16.msra.mxu1 %v12659_v9  ;;  %v3132_v18 = vrot.slane %v3130_v12, 1 }
  0x90   : > { %11215 = vmatpush3.bf16.msra.mxu0 %v12659_v9  ;;  %11822 = vmatprep.subr.bf16.mxu1 %v12664_v22  ;;  %v12677_v9 = vld [vmem:[%s14258_s3 + $0x478] sm:$0xff]   ;;  %v3140_v32 = vrot.slane %v3138_v24, 1  ;;  %v3125_v49 = vsel %vm1133_vm1, %v3120_v46, %v3124_v16 }
  0x91   : > { %11216 = vmatprep.subr.bf16.mxu0 %v12664_v22 }
  0x92   : > { %11073 = vmatmul.mubr.bf16.gmra.mrb[4].mxu1 %v1523_v30  ;;  %v3133_v30 = vsel %vm1133_vm1, %v3128_v23, %v3132_v18  ;;  %v3144_v37 = vor.u32 %v3142_v29, %v3140_v32 }
  0x93   : > { %11201 = vmatmul.mubr.bf16.gmra.mrb[4].mxu0 %v12663_v26  ;;  %11830 = vmatpush3.bf16.msra.mxu1 %v12664_v22  ;;  %v3104_v26 = vor.u32 %v3102_v5, %v3100_v11 }
  0x94   : > { %11217 = vmatpush3.bf16.msra.mxu0 %v12664_v22  ;;  %11823 = vmatprep.subr.bf16.mxu1 %v12665_v31  ;;  %v3101_v22 = vsel %vm1133_vm1, %v3096_v10, %v3100_v11  ;;  %v3149_v45 = vsel %vm1133_vm1, %v3144_v37, %v3148_v38 }
  0x95   : > { %11218 = vmatprep.subr.bf16.mxu0 %v12665_v31  ;;  %11076 = vmatprep.mubr.bf16.mxu1 %v1532_v42  ;;  %v3109_v40 = vsel %vm1133_vm1, %v3104_v26, %v3108_v27  ;;  %v3150_v42 = vshrl.u32 %v12685_v21, 16 }
  0x96   : > { %11204 = vmatprep.mubr.bf16.mxu0 %v12667_v35  ;;  %v3112_v35 = vor.u32 %v3110_v25, %v3108_v27 }
  0x97   : > { %11831 = vmatpush3.bf16.msra.mxu1 %v12665_v31 }
  0x98   : > { %11219 = vmatpush3.bf16.msra.mxu0 %v12665_v31  ;;  %11824 = vmatprep.subr.bf16.mxu1 %v12670_v41  ;;  %v3136_v31 = vor.u32 %v3134_v13, %v3132_v18  ;;  %v3117_v44 = vsel %vm1133_vm1, %v3112_v35, %v3116_v36 }
  0x99   : > { %11220 = vmatprep.subr.bf16.mxu0 %v12670_v41 }
  0x9a   : > { %11077 = vmatmul.mubr.bf16.gmra.mrb[8].mxu1 %v1541_v52 }
  0x9b   : > { %11205 = vmatmul.mubr.bf16.gmra.mrb[8].mxu0 %v12669_v47  ;;  %11832 = vmatpush3.bf16.msra.mxu1 %v12670_v41  ;;  %v3152_v47 = vor.u32 %v3150_v42, %v3148_v38 }
  0x9c   : > { %11221 = vmatpush3.bf16.msra.mxu0 %v12670_v41  ;;  %11825 = vmatprep.subr.bf16.mxu1 %v12671_v53  ;;  %v3141_v41 = vsel %vm1133_vm1, %v3136_v31, %v3140_v32 }
  0x9d   : > { %11222 = vmatprep.subr.bf16.mxu0 %v12671_v53  ;;  %11080 = vmatprep.mubr.bf16.mxu1 %v1550_v59  ;;  %v3157_v50 = vsel %vm1133_vm1, %v3152_v47, %v3156_v48 }
  0x9e   : > { %11208 = vmatprep.mubr.bf16.mxu0 %v12673_v55 }
  0x9f   : > { %11833 = vmatpush3.bf16.msra.mxu1 %v12671_v53 }
  0xa0   : > { %11223 = vmatpush3.bf16.msra.mxu0 %v12671_v53  ;;  %11826 = vmatprep.subr.bf16.mxu1 %v12676_v60 }
  0xa1   : > { %11224 = vmatprep.subr.bf16.mxu0 %v12676_v60 }
  0xa2   : > { %11081 = vmatmul.mubr.bf16.gmra.mrb[12].mxu1 %v1559_v15 }
  0xa3   : > { %11209 = vmatmul.mubr.bf16.gmra.mrb[12].mxu0 %v12675_v2  ;;  %11834 = vmatpush3.bf16.msra.mxu1 %v12676_v60 }
  0xa4   : > { %11225 = vmatpush3.bf16.msra.mxu0 %v12676_v60  ;;  %11827 = vmatprep.subr.bf16.mxu1 %v12677_v9 }
  0xa5   : > { %11226 = vmatprep.subr.bf16.mxu0 %v12677_v9  ;;  %11228 = vmatprep.mubr.bf16.mxu0 %v3101_v22 }
  0xa6   : > { %11236 = vmatprep.mubr.bf16.mxu1 %v3133_v30 }
  0xa7   : > { %11835 = vmatpush3.bf16.msra.mxu1 %v12677_v9 }
  0xa8   : > { %11227 = vmatpush3.bf16.msra.mxu0 %v12677_v9 }
  0xaa   : > { %11237 = vmatmul.mubr.bf16.vlgmr.msra.gmra.mrb[16].mxu1 %v3141_v41 }
  0xab   : > { %11229 = vmatmul.mubr.bf16.vlgmr.msra.gmra.mrb[0].mxu0 %v3109_v40  ;;  %11240 = vmatprep.mubr.bf16.mxu1 %v3149_v45 }
  0xac   : > { %11232 = vmatprep.mubr.bf16.mxu0 %v3117_v44 }
  0xb2   : > { %11241 = vmatmul.mubr.bf16.gmra.mrb[20].mxu1 %v3157_v50 }
  0xb3   : > { %11233 = vmatmul.mubr.bf16.gmra.mrb[4].mxu0 %v3125_v49 }
 0x15d   : > { %v11070_v51 = vpop.f32.mrb[0].mxu1 }
 0x15e   : > { %v1650_v52 = vpop.f32.mrb[1].mxu1 }
 0x15f   : > { %v11071_v53 = vpop.f32.mrb[2].mxu1 }
 0x160   : > { %v1653_v54 = vpop.f32.mrb[3].mxu1 }
 0x165   : > { %v11074_v55 = vpop.f32.mrb[4].mxu1 }
 0x166   : > { %v1666_v56 = vpop.f32.mrb[5].mxu1 }
 0x167   : > { %v11075_v57 = vpop.f32.mrb[6].mxu1 }
 0x168   : > { %v13469_v58 = vpop.f32.mrb[7].mxu1 }
 0x16d   : > { %v11078_v59 = vpop.f32.mrb[8].mxu1 }
 0x16e   : > { %v11206_v60 = vpop.f32.mrb[8].mxu0  ;;  %v1682_v62 = vpop.f32.mrb[9].mxu1 }
 0x16f   : > { %v11862_v61 = vadd.f32 %v11206_v60, %v11078_v59  ;;  %v2934_v63 = vpop.f32.mrb[9].mxu0  ;;  %v11079_v1 = vpop.f32.mrb[10].mxu1  ;;  %v12695_v59 = vld [vmem:[%s14258_s3 + $0x20] sm:$0xff] (!%p9850_p1)  }
 0x170   : > { %v11868_v0 = vadd.f32 %v2934_v63, %v1682_v62  ;;  %v11207_v2 = vpop.f32.mrb[10].mxu0  ;;  %v1685_v4 = vpop.f32.mrb[11].mxu1  ;;  %v12696_v60 = vld [vmem:[%s14258_s3 + $0x120] sm:$0xff] (!%p9850_p1)   ;;  %v12698_v62 = vld [vmem:[%s14258_s3 + $0x128] sm:$0xff] (!%p9850_p1)  }
 0x171   : > { %v11874_v3 = vadd.f32 %v11207_v2, %v11079_v1  ;;  %v2937_v5 = vpop.f32.mrb[11].mxu0  ;;  %v12703_v63 = vld [vmem:[%s13139_s17 + $0x4] sm:$0xf8] (!%p9850_p1)   ;;  %v12699_v1 = vld [vmem:[%s14258_s3 + $0x30] sm:$0xff] (!%p9850_p1)  }
 0x172   : > { %v11880_v6 = vadd.f32 %v2937_v5, %v1685_v4  ;;  %v12705_v2 = vld [vmem:[%s13139_s17 + $0x10] sm:$0xff] (!%p9850_p1)   ;;  %v3440_v4 = vshrl.u32 (!%p9850_p1), %v12703_v63, 16  ;;  %v3443_v5 = vshll.u32 (!%p9850_p1), %v12703_v63, 16  ;;  %v12723_v63 = vld [vmem:[%s14258_s3 + $0x60] sm:$0xff] (!%p9850_p1)  }
 0x173   : > { %11388 = vmatprep.mubr.bf16.mxu0 (!%p9850_p1), %v12705_v2  ;;  %v12730_v2 = vld [vmem:[%s13139_s17 + $0x44] ss:$0 sps:$4 sm:$0xff] (!%p9850_p1)  }
 0x175   : > { %v11082_v7 = vpop.f32.mrb[12].mxu1 }
 0x176   : > { %v11210_v8 = vpop.f32.mrb[12].mxu0  ;;  %v1698_v10 = vpop.f32.mrb[13].mxu1 }
 0x177   : > { %v11886_v9 = vadd.f32 %v11210_v8, %v11082_v7  ;;  %v2950_v11 = vpop.f32.mrb[13].mxu0  ;;  %v11083_v13 = vpop.f32.mrb[14].mxu1  ;;  %v12706_v8 = vld [vmem:[%s13139_s17 + $0x14] sm:$0xff] (!%p9850_p1)  }
 0x178   : > { %v11892_v12 = vadd.f32 %v2950_v11, %v1698_v10  ;;  %v11211_v14 = vpop.f32.mrb[14].mxu0  ;;  %v1701_v16 = vpop.f32.mrb[15].mxu1  ;;  %v3445_v10 = vrot.slane (!%p9850_p1), %v3443_v5, 4 }
 0x179   : > { %v11898_v15 = vadd.f32 %v11211_v14, %v11083_v13  ;;  %v2953_v17 = vpop.f32.mrb[15].mxu0  ;;  %v3457_v13 = vshrl.u32 (!%p9850_p1), %v12706_v8, 16  ;;  %v3460_v14 = vshll.u32 (!%p9850_p1), %v12706_v8, 16  ;;  %v3511_v8 = vshrl.u32 (!%p9850_p1), %v12730_v2, 16 }
 0x17a   : > { %v11904_v18 = vadd.f32 %v2953_v17, %v1701_v16  ;;  %v12701_v17 = vld [vmem:[%s14258_s3 + $0x38] sm:$0xff] (!%p9850_p1)  }
 0x17d   : > { %v11238_v20 = vpop.f32.mrb[16].mxu1 }
 0x17e   : > { %v11230_v19 = vpop.f32.mrb[0].mxu0  ;;  %v11865_v22 = vadd.f32 %v11862_v61, %v11238_v20  ;;  %v3280_v24 = vpop.f32.mrb[17].mxu1  ;;  %v12697_v61 = vld [vmem:[%s14258_s3 + $0x28] sm:$0xff] (!%p9850_p1)   ;;  %v3462_v20 = vrot.slane (!%p9850_p1), %v3460_v14, 4  ;;  %v3513_v14 = vrot.slane (!%p9850_p1), %v3511_v8, 3  ;;  %v12756_v8 = vld [vmem:[%s14258_s3 + $0xa0] sm:$0xff] (!%p9850_p1)  }
 0x17f   : > { %v11838_v21 = vadd.f32 %v11230_v19, %v11070_v51  ;;  %v3248_v23 = vpop.f32.mrb[1].mxu0  ;;  %v11871_v26 = vadd.f32 %v11868_v0, %v3280_v24  ;;  %v11239_v28 = vpop.f32.mrb[18].mxu1  ;;  %v12687_v51 = vld [vmem:[%s14258_s3] sm:$0xff] (!%p9850_p1)   ;;  %v12704_v0 = vld [vmem:[%s13139_s17 + $0xc] sm:$0xff] (!%p9850_p1)   ;;  %v3459_v19 = vrot.slane (!%p9850_p1), %v3457_v13, 3 }
 0x180   : > { %v11841_v25 = vadd.f32 %v3248_v23, %v1650_v52  ;;  %v11231_v27 = vpop.f32.mrb[2].mxu0  ;;  %3353 = vst [vmem:[#allocation2 + $0x50] sm:$0xff] %v11865_v22  ;;  %v11877_v30 = vadd.f32 %v11874_v3, %v11239_v28  ;;  %v3283_v32 = vpop.f32.mrb[19].mxu1  ;;  %v12688_v52 = vld [vmem:[%s14258_s3 + $0x100] sm:$0xff] (!%p9850_p1)   ;;  %11244 = vmatprep.subr.bf16.mxu1 (!%p9850_p1), %v12687_v51  ;;  %v12700_v3 = vld [vmem:[%s14258_s3 + $0x130] sm:$0xff] (!%p9850_p1)   ;;  %v3451_v7 = vshll.u32 (!%p9850_p1), %v12704_v0, 16 }
 0x181   : > { %3345 = vst [vmem:[#allocation2 + $0x10] sm:$0xff] %v11838_v21  ;;  %v11844_v29 = vadd.f32 %v11231_v27, %v11071_v53  ;;  %v3251_v31 = vpop.f32.mrb[3].mxu0  ;;  %3351 = vst [vmem:[#allocation2 + $0x40] sm:$0xff] %v11871_v26  ;;  %v11883_v34 = vadd.f32 %v11880_v6, %v3283_v32  ;;  %v12689_v53 = vld [vmem:[%s14258_s3 + $0x8] sm:$0xff] (!%p9850_p1)   ;;  %11372 = vmatprep.subr.bf16.mxu0 (!%p9850_p1), %v12688_v52  ;;  %11245 = vmatpush3.bf16.msra.mxu1 (!%p9850_p1), %v12687_v51  ;;  %v3448_v6 = vshrl.u32 (!%p9850_p1), %v12704_v0, 16  ;;  %v12712_v23 = vld [vmem:[%s13139_s17 + $0x1c] sm:$0xff] (!%p9850_p1)  }
 0x182   : > { %3343 = vst [vmem:[#allocation2] sm:$0xff] %v11841_v25  ;;  %v11847_v33 = vadd.f32 %v3251_v31, %v1653_v54  ;;  %3354 = vst [vmem:[#allocation2 + $0x58] sm:$0xff] %v11877_v30  ;;  %v12690_v54 = vld [vmem:[%s14258_s3 + $0x108] sm:$0xff] (!%p9850_p1)   ;;  %11373 = vmatpush3.bf16.msra.mxu0 (!%p9850_p1), %v12688_v52  ;;  %11246 = vmatprep.subr.bf16.mxu1 (!%p9850_p1), %v12689_v53  ;;  %v3463_v22 = vor.u32 (!%p9850_p1), %v3462_v20, %v3459_v19  ;;  %v12707_v24 = vld [vmem:[%s14258_s3 + $0x40] sm:$0xff] (!%p9850_p1)   ;;  %v3466_v26 = vshrl.u32 (!%p9850_p1), %v12712_v23, 16 }
 0x183   : > { %3346 = vst [vmem:[#allocation2 + $0x18] sm:$0xff] %v11844_v29  ;;  %3352 = vst [vmem:[#allocation2 + $0x48] sm:$0xff] %v11883_v34  ;;  %11374 = vmatprep.subr.bf16.mxu0 (!%p9850_p1), %v12690_v54  ;;  %v3450_v11 = vrot.slane (!%p9850_p1), %v3448_v6, 3  ;;  %v12709_v25 = vld [vmem:[%s14258_s3 + $0x140] sm:$0xff] (!%p9850_p1)   ;;  %v3469_v27 = vshll.u32 (!%p9850_p1), %v12712_v23, 16  ;;  %v12708_v30 = vld [vmem:[%s13139_s17 + $0x18] sm:$0xff] (!%p9850_p1)  }
 0x184   : > { %3344 = vst [vmem:[#allocation2 + $0x8] sm:$0xff] %v11847_v33  ;;  %v12714_v28 = vld [vmem:[%s13139_s17 + $0x24] sm:$0xff] (!%p9850_p1)   ;;  %v3468_v32 = vrot.slane (!%p9850_p1), %v3466_v26, 3  ;;  %v12728_v0 = vld [vmem:[%s13139_s17 + $0x3c] sm:$0xff] (!%p9850_p1)   ;;  %v12733_v20 = vld [vmem:[%s14258_s3 + $0x170] sm:$0xff] (!%p9850_p1)  }
 0x185   : > { %v11242_v36 = vpop.f32.mrb[20].mxu1  ;;  %11247 = vmatpush3.bf16.msra.mxu1 (!%p9850_p1), %v12689_v53  ;;  %v12710_v31 = vld [vmem:[%s14258_s3 + $0x48] sm:$0xff] (!%p9850_p1)   ;;  %v3471_v33 = vrot.slane (!%p9850_p1), %v3469_v27, 4  ;;  %v3475_v34 = vshrl.u32 (!%p9850_p1), %v12714_v28, 16  ;;  %v12724_v6 = vld [vmem:[%s13139_s17 + $0x38] sm:$0xff] (!%p9850_p1)   ;;  %v12729_v13 = vld [vmem:[%s13139_s17 + $0x40] sm:$0xff] (!%p9850_p1)  }
 0x186   : > { %v11234_v35 = vpop.f32.mrb[4].mxu0  ;;  %v11889_v38 = vadd.f32 %v11886_v9, %v11242_v36  ;;  %v3296_v40 = vpop.f32.mrb[21].mxu1  ;;  %3362 = sbr.rel (%p9850_p1) target bundleno = 771 (0x303), region = 48  ;;  %11375 = vmatpush3.bf16.msra.mxu0 (!%p9850_p1), %v12690_v54  ;;  %v3442_v9 = vrot.slane (!%p9850_p1), %v3440_v4, 3  ;;  %v12711_v36 = vld [vmem:[%s14258_s3 + $0x148] sm:$0xff] (!%p9850_p1)   ;;  %v3505_v4 = vshll.u32 (!%p9850_p1), %v12728_v0, 16 }
 0x187   : > { %v11850_v37 = vadd.f32 %v11234_v35, %v11074_v55  ;;  %v3264_v39 = vpop.f32.mrb[5].mxu0  ;;  %v11895_v42 = vadd.f32 %v11892_v12, %v3296_v40  ;;  %v11243_v44 = vpop.f32.mrb[22].mxu1  ;;  %v12691_v55 = vld [vmem:[%s14258_s3 + $0x10] sm:$0xff] (!%p9850_p1)   ;;  %v3453_v12 = vrot.slane (!%p9850_p1), %v3451_v7, 4  ;;  %v3478_v35 = vshll.u32 (!%p9850_p1), %v12714_v28, 16  ;;  %v12726_v7 = vld [vmem:[%s14258_s3 + $0x68] sm:$0xff] (!%p9850_p1)  }
 0x188   : > { %v11853_v41 = vadd.f32 %v3264_v39, %v1666_v56  ;;  %v11235_v43 = vpop.f32.mrb[6].mxu0  ;;  %3357 = vst [vmem:[#allocation2 + $0x70] sm:$0xff] %v11889_v38  ;;  %v11901_v46 = vadd.f32 %v11898_v15, %v11243_v44  ;;  %v3299_v48 = vpop.f32.mrb[23].mxu1  ;;  %v12692_v56 = vld [vmem:[%s14258_s3 + $0x110] sm:$0xff] (!%p9850_p1)   ;;  %11248 = vmatprep.subr.bf16.mxu1 (!%p9850_p1), %v12691_v55  ;;  %v3446_v15 = vor.u32 (!%p9850_p1), %v3445_v10, %v3442_v9  ;;  %v12713_v38 = vld [vmem:[%s13139_s17 + $0x20] sm:$0xff] (!%p9850_p1)   ;;  %v3477_v39 = vrot.slane (!%p9850_p1), %v3475_v34, 3 }
 0x189   : > { %3349 = vst [vmem:[#allocation2 + $0x30] sm:$0xff] %v11850_v37  ;;  %v11856_v45 = vadd.f32 %v11235_v43, %v11075_v57  ;;  %v3267_v47 = vpop.f32.mrb[7].mxu0  ;;  %3355 = vst [vmem:[#allocation2 + $0x60] sm:$0xff] %v11895_v42  ;;  %v11907_v50 = vadd.f32 %v11904_v18, %v3299_v48  ;;  %v12693_v57 = vld [vmem:[%s14258_s3 + $0x18] sm:$0xff] (!%p9850_p1)   ;;  %11376 = vmatprep.subr.bf16.mxu0 (!%p9850_p1), %v12692_v56  ;;  %11249 = vmatpush3.bf16.msra.mxu1 (!%p9850_p1), %v12691_v55  ;;  %v3480_v40 = vrot.slane (!%p9850_p1), %v3478_v35, 4  ;;  %v12720_v43 = vld [vmem:[%s13139_s17 + $0x2c] sm:$0xff] (!%p9850_p1)  }
 0x18a   : > { %3347 = vst [vmem:[#allocation2 + $0x20] sm:$0xff] %v11853_v41  ;;  %v11859_v49 = vadd.f32 %v3267_v47, %v13469_v58  ;;  %3358 = vst [vmem:[#allocation2 + $0x78] sm:$0xff] %v11901_v46  ;;  %v12694_v58 = vld [vmem:[%s14258_s3 + $0x118] sm:$0xff] (!%p9850_p1)   ;;  %11377 = vmatpush3.bf16.msra.mxu0 (!%p9850_p1), %v12692_v56  ;;  %11250 = vmatprep.subr.bf16.mxu1 (!%p9850_p1), %v12693_v57  ;;  %v3454_v16 = vor.u32 (!%p9850_p1), %v3453_v12, %v3450_v11  ;;  %v12715_v44 = vld [vmem:[%s14258_s3 + $0x50] sm:$0xff] (!%p9850_p1)   ;;  %v3484_v47 = vshrl.u32 (!%p9850_p1), %v12720_v43, 16 }
 0x18b   : > { %3350 = vst [vmem:[#allocation2 + $0x38] sm:$0xff] %v11856_v45  ;;  %3356 = vst [vmem:[#allocation2 + $0x68] sm:$0xff] %v11907_v50  ;;  %11378 = vmatprep.subr.bf16.mxu0 (!%p9850_p1), %v12694_v58  ;;  %v12702_v18 = vld [vmem:[%s14258_s3 + $0x138] sm:$0xff] (!%p9850_p1)   ;;  %v3472_v37 = vor.u32 (!%p9850_p1), %v3471_v33, %v3468_v32  ;;  %v3481_v42 = vor.u32 (!%p9850_p1), %v3480_v40, %v3477_v39  ;;  %v12716_v45 = vld [vmem:[%s13139_s17 + $0x28] sm:$0xff] (!%p9850_p1)   ;;  %v3487_v48 = vshll.u32 (!%p9850_p1), %v12720_v43, 16  ;;  %v3514_v9 = vshll.u32 (!%p9850_p1), %v12730_v2, 16 }
 0x18c   : > { %3348 = vst [vmem:[#allocation2 + $0x28] sm:$0xff] %v11859_v49  ;;  %v3455_v21 = vsel (!%p9850_p1), %vm532_vm0, %v3446_v15, %v3454_v16  ;;  %v3464_v29 = vsel (!%p9850_p1), %vm532_vm0, %v3454_v16, %v3463_v22  ;;  %v12717_v46 = vld [vmem:[%s14258_s3 + $0x150] sm:$0xff] (!%p9850_p1)   ;;  %v3486_v51 = vrot.slane (!%p9850_p1), %v3484_v47, 3  ;;  %v12718_v55 = vld [vmem:[%s14258_s3 + $0x58] sm:$0xff] (!%p9850_p1)   ;;  %v3507_v11 = vrot.slane (!%p9850_p1), %v3505_v4, 4  ;;  %v12727_v12 = vld [vmem:[%s14258_s3 + $0x168] sm:$0xff] (!%p9850_p1)  }
 0x18d   : > { %11251 = vmatpush3.bf16.msra.mxu1 %v12693_v57  ;;  %11260 = vmatprep.mubr.bf16.mxu1 %v3455_v21  ;;  %v3473_v41 = vsel %vm532_vm0, %v3463_v22, %v3472_v37  ;;  %v12722_v49 = vld [vmem:[%s13139_s17 + $0x34] sm:$0xff]   ;;  %v3482_v50 = vsel %vm532_vm0, %v3472_v37, %v3481_v42  ;;  %v3489_v52 = vrot.slane %v3487_v48, 4  ;;  %v3516_v15 = vrot.slane %v3514_v9, 4  ;;  %v12732_v21 = vld [vmem:[%s13139_s17 + $0x48] sm:$0xff]   ;;  %v12741_v34 = vld [vmem:[%s13139_s17 + $0x20] sm:$0xff]  }
 0x18e   : > { %11379 = vmatpush3.bf16.msra.mxu0 %v12694_v58  ;;  %11252 = vmatprep.subr.bf16.mxu1 %v12695_v59  ;;  %v3493_v53 = vshrl.u32 %v12722_v49, 16  ;;  %v3496_v54 = vshll.u32 %v12722_v49, 16  ;;  %v12719_v56 = vld [vmem:[%s14258_s3 + $0x158] sm:$0xff]   ;;  %v12721_v58 = vld [vmem:[%s13139_s17 + $0x30] sm:$0xff]   ;;  %v5065_v39 = vshll.u32 %v12741_v34, 16  ;;  %v12742_v40 = vld [vmem:[%s14258_s3 + $0x180] sm:$0xff]  }
 0x18f   : > { %11380 = vmatprep.subr.bf16.mxu0 %v12696_v60  ;;  %v3490_v57 = vor.u32 %v3489_v52, %v3486_v51  ;;  %v12734_v22 = vld [vmem:[%s14258_s3 + $0x78] sm:$0xff]   ;;  %v12737_v23 = vld [vmem:[%s13139_s17 + $0x10] sm:$0xff]   ;;  %v12744_v47 = vld [vmem:[%s14258_s3 + $0x188] sm:$0xff]  }
 0x190   : > { %v12735_v26 = vld [vmem:[%s14258_s3 + $0x178] sm:$0xff]   ;;  %v5050_v27 = vshrl.u32 %v12737_v23, 16  ;;  %v5052_v28 = vshll.u32 %v12737_v23, 16  ;;  %v12739_v37 = vld [vmem:[%s13139_s17 + $0x10] sm:$0xff]   ;;  %v5067_v43 = vrot.slane %v5065_v39, 1  ;;  %v12753_v2 = vld [vmem:[%s13139_s17 + $0x28] sm:$0xff]  }
 0x191   : > { %11253 = vmatpush3.bf16.msra.mxu1 %v12695_v59  ;;  %v3495_v59 = vrot.slane %v3493_v53, 3  ;;  %v12745_v48 = vld [vmem:[%s13139_s17 + $0x18] sm:$0xff]   ;;  %v12749_v51 = vld [vmem:[%s13139_s17 + $0x30] sm:$0xff]  }
 0x192   : > { %11381 = vmatpush3.bf16.msra.mxu0 %v12696_v60  ;;  %11254 = vmatprep.subr.bf16.mxu1 %v12697_v61  ;;  %v3498_v60 = vrot.slane %v3496_v54, 4  ;;  %v5054_v32 = vrot.slane %v5052_v28, 1  ;;  %v12747_v54 = vld [vmem:[%s13139_s17 + $0x20] sm:$0xff]  }
 0x193   : > { %11382 = vmatprep.subr.bf16.mxu0 %v12698_v62  ;;  %v12763_v28 = vld [vmem:[%s13139_s17 + $0x40] sm:$0xff]  }
 0x194   : > { %v5055_v35 = vor.u32 %v5054_v32, %v5050_v27  ;;  %v12766_v27 = vld [vmem:[%s14258_s3 + $0x1b0] sm:$0xff]  }
 0x195   : > { %11255 = vmatpush3.bf16.msra.mxu1 %v12697_v61  ;;  %v3491_v61 = vsel %vm532_vm0, %v3481_v42, %v3490_v57 }
 0x196   : > { %11383 = vmatpush3.bf16.msra.mxu0 %v12698_v62  ;;  %11256 = vmatprep.subr.bf16.mxu1 %v12699_v1  ;;  %v3499_v62 = vor.u32 %v3498_v60, %v3495_v59  ;;  %v12750_v59 = vld [vmem:[%s14258_s3 + $0x190] sm:$0xff]   ;;  %v5085_v60 = vshrl.u32 %v12749_v51, 16 }
 0x197   : > { %11384 = vmatprep.subr.bf16.mxu0 %v12700_v3 }
 0x198   : > { %v3500_v5 = vsel %vm532_vm0, %v3490_v57, %v3499_v62 }
 0x199   : > { %11257 = vmatpush3.bf16.msra.mxu1 %v12699_v1  ;;  %v12725_v1 = vld [vmem:[%s14258_s3 + $0x160] sm:$0xff]  }
 0x19a   : > { %11385 = vmatpush3.bf16.msra.mxu0 %v12700_v3  ;;  %11258 = vmatprep.subr.bf16.mxu1 %v12701_v17  ;;  %v3502_v3 = vshrl.u32 %v12728_v0, 16 }
 0x19b   : > { %11386 = vmatprep.subr.bf16.mxu0 %v12702_v18 }
 0x19c   : > { %v3504_v10 = vrot.slane %v3502_v3, 3 }
 0x19d   : > { %11259 = vmatpush3.bf16.msra.mxu1 %v12701_v17  ;;  %v3517_v17 = vor.u32 %v3516_v15, %v3513_v14  ;;  %v12755_v14 = vld [vmem:[%s13139_s17 + $0x30] sm:$0xff]  }
 0x19e   : > { %11387 = vmatpush3.bf16.msra.mxu0 %v12702_v18  ;;  %11276 = vmatprep.subr.bf16.mxu1 %v12707_v24  ;;  %v3508_v16 = vor.u32 %v3507_v11, %v3504_v10  ;;  %v12731_v18 = vld [vmem:[%s14258_s3 + $0x70] sm:$0xff]  }
 0x19f   : > { %11404 = vmatprep.subr.bf16.mxu0 %v12709_v25 }
 0x1a0   : > { %11261 = vmatmul.mubr.bf16.vlgmr.msra.gmra.mrb[0].mxu1 %v3464_v29  ;;  %v3509_v19 = vsel %vm532_vm0, %v3499_v62, %v3508_v16  ;;  %v12751_v62 = vld [vmem:[%s14258_s3 + $0x98] sm:$0xff]  }
 0x1a1   : > { %11389 = vmatmul.mubr.bf16.vlgmr.msra.gmra.mrb[0].mxu0 %v12708_v30  ;;  %11277 = vmatpush3.bf16.msra.mxu1 %v12707_v24  ;;  %v12738_v24 = vld [vmem:[%s13139_s17 + $0x18] sm:$0xff]  }
 0x1a2   : > { %11405 = vmatpush3.bf16.msra.mxu0 %v12709_v25  ;;  %11278 = vmatprep.subr.bf16.mxu1 %v12710_v31  ;;  %v3518_v25 = vsel %vm532_vm0, %v3508_v16, %v3517_v17  ;;  %v5057_v29 = vshll.u32 %v12738_v24, 16  ;;  %v5061_v30 = vshrl.u32 %v12738_v24, 16  ;;  %v12762_v16 = vld [vmem:[%s13139_s17 + $0x48] sm:$0xff]   ;;  %v12764_v24 = vld [vmem:[%s14258_s3 + $0xb0] sm:$0xff]  }
 0x1a3   : > { %11406 = vmatprep.subr.bf16.mxu0 %v12711_v36  ;;  %11264 = vmatprep.mubr.bf16.mxu1 %v3473_v41  ;;  %v5069_v41 = vshrl.u32 %v12741_v34, 16  ;;  %v5109_v23 = vshrl.u32 %v12762_v16, 16  ;;  %v12767_v34 = vld [vmem:[%s14258_s3 + $0xb8] sm:$0xff]  }
 0x1a4   : > { %11392 = vmatprep.mubr.bf16.mxu0 %v12713_v38  ;;  %v5059_v33 = vrot.slane %v5057_v29, 1  ;;  %v12740_v38 = vld [vmem:[%s14258_s3 + $0x80] sm:$0xff]  }
 0x1a5   : > { %11279 = vmatpush3.bf16.msra.mxu1 %v12710_v31  ;;  %v12736_v31 = vld [vmem:[%s13139_s17 + $0x8] sm:$0xff]   ;;  %v5071_v49 = vor.u32 %v5069_v41, %v5067_v43 }
 0x1a6   : > { %11407 = vmatpush3.bf16.msra.mxu0 %v12711_v36  ;;  %11280 = vmatprep.subr.bf16.mxu1 %v12715_v44  ;;  %v5063_v36 = vor.u32 %v5061_v30, %v5059_v33  ;;  %v5060_v42 = vsel %vm1133_vm1, %v5055_v35, %v5059_v33  ;;  %v12769_v30 = vld [vmem:[%s13139_s17 + $0x8] sm:$0xff]   ;;  %v12770_v35 = vld [vmem:[%s13139_s17 + $0x10] sm:$0xff]  }
 0x1a7   : > { %11408 = vmatprep.subr.bf16.mxu0 %v12717_v46  ;;  %v4083_v41 = vshrl.u32 %v12770_v35, 16 }
 0x1a8   : > { %11265 = vmatmul.mubr.bf16.gmra.mrb[4].mxu1 %v3482_v50 }
 0x1a9   : > { %11393 = vmatmul.mubr.bf16.gmra.mrb[4].mxu0 %v12716_v45  ;;  %11281 = vmatpush3.bf16.msra.mxu1 %v12715_v44  ;;  %v12743_v44 = vld [vmem:[%s14258_s3 + $0x88] sm:$0xff]  }
 0x1aa   : > { %11409 = vmatpush3.bf16.msra.mxu0 %v12717_v46  ;;  %11282 = vmatprep.subr.bf16.mxu1 %v12718_v55  ;;  %v12746_v45 = vld [vmem:[%s13139_s17 + $0x28] sm:$0xff]   ;;  %v5068_v46 = vsel %vm1133_vm1, %v5063_v36, %v5067_v43  ;;  %v12768_v36 = vld [vmem:[%s14258_s3 + $0x1b8] sm:$0xff]  }
 0x1ab   : > { %11410 = vmatprep.subr.bf16.mxu0 %v12719_v56  ;;  %11268 = vmatprep.mubr.bf16.mxu1 %v3491_v61  ;;  %v5073_v50 = vshll.u32 %v12746_v45, 16  ;;  %v5077_v52 = vshrl.u32 %v12746_v45, 16  ;;  %v12771_v43 = vld [vmem:[%s13139_s17 + $0x14] sm:$0xf8]  }
 0x1ac   : > { %11396 = vmatprep.mubr.bf16.mxu0 %v12721_v58 }
 0x1ad   : > { %11283 = vmatpush3.bf16.msra.mxu1 %v12718_v55  ;;  %v5075_v53 = vrot.slane %v5073_v50, 1  ;;  %v12748_v55 = vld [vmem:[%s14258_s3 + $0x90] sm:$0xff]  }
 0x1ae   : > { %11411 = vmatpush3.bf16.msra.mxu0 %v12719_v56  ;;  %11284 = vmatprep.subr.bf16.mxu1 %v12723_v63  ;;  %v5081_v56 = vshll.u32 %v12749_v51, 16  ;;  %v12774_v51 = vld [vmem:[%s14258_s3 + $0xc0] sm:$0xff]  }
 0x1af   : > { %11412 = vmatprep.subr.bf16.mxu0 %v12725_v1  ;;  %v5076_v57 = vsel %vm1133_vm1, %v5071_v49, %v5075_v53  ;;  %v5079_v58 = vor.u32 %v5077_v52, %v5075_v53  ;;  %v5399_v49 = vshll.u32 %v12771_v43, 16 }
 0x1b0   : > { %11269 = vmatmul.mubr.bf16.gmra.mrb[8].mxu1 %v3500_v5  ;;  %v5083_v61 = vrot.slane %v5081_v56, 1  ;;  %v12757_v5 = vld [vmem:[%s13139_s17 + $0x40] sm:$0xff]  }
 0x1b1   : > { %11397 = vmatmul.mubr.bf16.gmra.mrb[8].mxu0 %v12724_v6  ;;  %11285 = vmatpush3.bf16.msra.mxu1 %v12723_v63  ;;  %v12754_v63 = vld [vmem:[%s13139_s17 + $0x38] sm:$0xff]   ;;  %v5097_v9 = vshll.u32 %v12757_v5, 16 }
 0x1b2   : > { %11413 = vmatpush3.bf16.msra.mxu0 %v12725_v1  ;;  %11286 = vmatprep.subr.bf16.mxu1 %v12726_v7  ;;  %v5084_v0 = vsel %vm1133_vm1, %v5079_v58, %v5083_v61  ;;  %v12752_v1 = vld [vmem:[%s14258_s3 + $0x198] sm:$0xff]   ;;  %v5087_v3 = vor.u32 %v5085_v60, %v5083_v61  ;;  %v5089_v4 = vshll.u32 %v12754_v63, 16  ;;  %v5093_v6 = vshrl.u32 %v12754_v63, 16 }
 0x1b3   : > { %11414 = vmatprep.subr.bf16.mxu0 %v12727_v12  ;;  %11272 = vmatprep.mubr.bf16.mxu1 %v3509_v19  ;;  %v5099_v15 = vrot.slane %v5097_v9, 1  ;;  %v12760_v19 = vld [vmem:[%s14258_s3 + $0x1a8] sm:$0xff]  }
 0x1b4   : > { %11400 = vmatprep.mubr.bf16.mxu0 %v12729_v13  ;;  %v5101_v13 = vshrl.u32 %v12757_v5, 16  ;;  %v12778_v9 = vld [vmem:[%s14258_s3 + $0x1c8] sm:$0xff]  }
 0x1b5   : > { %11287 = vmatpush3.bf16.msra.mxu1 %v12726_v7  ;;  %v5091_v7 = vrot.slane %v5089_v4, 1  ;;  %v12777_v4 = vld [vmem:[%s14258_s3 + $0xc8] sm:$0xff]  }
 0x1b6   : > { %11415 = vmatpush3.bf16.msra.mxu0 %v12727_v12  ;;  %11288 = vmatprep.subr.bf16.mxu1 %v12731_v18  ;;  %v12758_v12 = vld [vmem:[%s14258_s3 + $0x1a0] sm:$0xff]  }
 0x1b7   : > { %11416 = vmatprep.subr.bf16.mxu0 %v12733_v20  ;;  %v5092_v10 = vsel %vm1133_vm1, %v5087_v3, %v5091_v7  ;;  %v5095_v11 = vor.u32 %v5093_v6, %v5091_v7 }
 0x1b8   : > { %11273 = vmatmul.mubr.bf16.gmra.mrb[12].mxu1 %v3518_v25  ;;  %v12765_v25 = vld [vmem:[%s13139_s17 + $0x50] ss:$0 sps:$4 sm:$0x11]  }
 0x1b9   : > { %11401 = vmatmul.mubr.bf16.gmra.mrb[12].mxu0 %v12732_v21  ;;  %11289 = vmatpush3.bf16.msra.mxu1 %v12731_v18  ;;  %v5100_v17 = vsel %vm1133_vm1, %v5095_v11, %v5099_v15  ;;  %v12759_v18 = vld [vmem:[%s14258_s3 + $0xa8] sm:$0xff]   ;;  %v5103_v21 = vor.u32 %v5101_v13, %v5099_v15  ;;  %v5113_v29 = vshll.u32 %v12765_v25, 16 }
 0x1ba   : > { %11417 = vmatpush3.bf16.msra.mxu0 %v12733_v20  ;;  %11290 = vmatprep.subr.bf16.mxu1 %v12734_v22  ;;  %v12761_v20 = vld [vmem:[%s13139_s17 + $0x38] sm:$0xff]   ;;  %v12781_v15 = vld [vmem:[%s13139_s17 + $0x28] sm:$0xff]  }
 0x1bb   : > { %11418 = vmatprep.subr.bf16.mxu0 %v12735_v26  ;;  %11292 = vmatprep.mubr.bf16.mxu1 %v12736_v31  ;;  %v5115_v33 = vrot.slane %v5113_v29, 1 }
 0x1bc   : > { %11420 = vmatprep.mubr.bf16.mxu0 %v5060_v42 }
 0x1bd   : > { %11291 = vmatpush3.bf16.msra.mxu1 %v12734_v22  ;;  %v5105_v22 = vshll.u32 %v12762_v16, 16 }
 0x1be   : > { %11419 = vmatpush3.bf16.msra.mxu0 %v12735_v26  ;;  %11308 = vmatprep.subr.bf16.mxu1 %v12740_v38 }
 0x1bf   : > { %11436 = vmatprep.subr.bf16.mxu0 %v12742_v40  ;;  %v5107_v26 = vrot.slane %v5105_v22, 1  ;;  %v4103_v22 = vshll.u32 %v12781_v15, 16 }
 0x1c0   : > { %11293 = vmatmul.mubr.bf16.vlgmr.msra.gmra.mrb[0].mxu1 %v12739_v37  ;;  %v4072_v37 = vshrl.u32 %v12769_v30, 16 }
 0x1c1   : > { %11421 = vmatmul.mubr.bf16.vlgmr.msra.gmra.mrb[0].mxu0 %v5068_v46  ;;  %11309 = vmatpush3.bf16.msra.mxu1 %v12740_v38  ;;  %v5108_v31 = vsel %vm1133_vm1, %v5103_v21, %v5107_v26  ;;  %v5111_v32 = vor.u32 %v5109_v23, %v5107_v26  ;;  %v4074_v38 = vshll.u32 %v12769_v30, 16  ;;  %v12773_v46 = vld [vmem:[%s13139_s17 + $0x18] sm:$0xff]   ;;  %v4105_v29 = vrot.slane %v4103_v22, 1 }
 0x1c2   : > { %11437 = vmatpush3.bf16.msra.mxu0 %v12742_v40  ;;  %11310 = vmatprep.subr.bf16.mxu1 %v12743_v44  ;;  %v4079_v40 = vshll.u32 %v12770_v35, 16  ;;  %v4091_v5 = vshrl.u32 %v12773_v46, 16  ;;  %v12783_v23 = vld [vmem:[%s13139_s17 + $0x34] sm:$0xff]  }
 0x1c3   : > { %11438 = vmatprep.subr.bf16.mxu0 %v12744_v47  ;;  %11296 = vmatprep.mubr.bf16.mxu1 %v12745_v48  ;;  %v5116_v39 = vsel %vm1133_vm1, %v5111_v32, %v5115_v33  ;;  %v4076_v42 = vrot.slane %v4074_v38, 1  ;;  %v5396_v48 = vshrl.u32 %v12771_v43, 16  ;;  %v5431_v30 = vshrl.u32 %v12783_v23, 16  ;;  %v12785_v33 = vld [vmem:[%s14258_s3 + $0xd8] sm:$0xff]  }
 0x1c4   : > { %11424 = vmatprep.mubr.bf16.mxu0 %v5076_v57  ;;  %v4081_v45 = vrot.slane %v4079_v40, 1  ;;  %v5401_v57 = vrot.slane %v5399_v49, 4  ;;  %v5434_v32 = vshll.u32 %v12783_v23, 16  ;;  %v4107_v40 = vshrl.u32 %v12781_v15, 16  ;;  %v12801_v23 = vld [vmem:[%s14258_s3 + $0xf8] sm:$0xff]  }
 0x1c5   : > { %11311 = vmatpush3.bf16.msra.mxu1 %v12743_v44  ;;  %v12772_v44 = vld [vmem:[%s13139_s17 + $0x1c] sm:$0xff]   ;;  %v5398_v56 = vrot.slane %v5396_v48, 3  ;;  %v5433_v35 = vrot.slane %v5431_v30, 3 }
 0x1c6   : > { %11439 = vmatpush3.bf16.msra.mxu0 %v12744_v47  ;;  %11312 = vmatprep.subr.bf16.mxu1 %v12748_v55  ;;  %v4077_v47 = vor.u32 %v4076_v42, %v4072_v37  ;;  %v5404_v50 = vshrl.u32 %v12772_v44, 16  ;;  %v4085_v52 = vor.u32 %v4083_v41, %v4081_v45  ;;  %v5407_v53 = vshll.u32 %v12772_v44, 16  ;;  %v12788_v41 = vld [vmem:[%s13139_s17 + $0x3c] sm:$0xff]  }
 0x1c7   : > { %11440 = vmatprep.subr.bf16.mxu0 %v12750_v59  ;;  %v5402_v63 = vor.u32 %v5401_v57, %v5398_v56  ;;  %v5436_v38 = vrot.slane %v5434_v32, 4  ;;  %v4109_v43 = vor.u32 %v4107_v40, %v4105_v29  ;;  %v5443_v48 = vshll.u32 %v12788_v41, 16  ;;  %v12792_v56 = vld [vmem:[%s14258_s3 + $0x1e0] sm:$0xff]   ;;  %v12802_v30 = vld [vmem:[%s14258_s3 + $0x1f8] sm:$0xff]  }
 0x1c8   : > { %11297 = vmatmul.mubr.bf16.gmra.mrb[4].mxu1 %v12747_v54  ;;  %v4087_v54 = vshll.u32 %v12773_v46, 16  ;;  %v5406_v58 = vrot.slane %v5404_v50, 3  ;;  %v5409_v60 = vrot.slane %v5407_v53, 4  ;;  %v12789_v46 = vld [vmem:[%s13139_s17 + $0x38] sm:$0xff]  }
 0x1c9   : > { %11425 = vmatmul.mubr.bf16.gmra.mrb[4].mxu0 %v5084_v0  ;;  %11313 = vmatpush3.bf16.msra.mxu1 %v12748_v55  ;;  %v4082_v55 = vsel %vm1133_vm1, %v4077_v47, %v4081_v45  ;;  %v5437_v42 = vor.u32 %v5436_v38, %v5433_v35  ;;  %v5440_v45 = vshrl.u32 %v12788_v41, 16  ;;  %v12790_v47 = vld [vmem:[%s14258_s3 + $0xe0] sm:$0xff]   ;;  %v4119_v53 = vshll.u32 %v12789_v46, 16 }
 0x1ca   : > { %11441 = vmatpush3.bf16.msra.mxu0 %v12750_v59  ;;  %11314 = vmatprep.subr.bf16.mxu1 %v12751_v62  ;;  %v12775_v59 = vld [vmem:[%s13139_s17 + $0x24] sm:$0xff]   ;;  %v4089_v61 = vrot.slane %v4087_v54, 1 }
 0x1cb   : > { %11442 = vmatprep.subr.bf16.mxu0 %v12752_v1  ;;  %11300 = vmatprep.mubr.bf16.mxu1 %v12753_v2  ;;  %v5413_v0 = vshrl.u32 %v12775_v59, 16  ;;  %v5410_v2 = vor.u32 %v5409_v60, %v5406_v58  ;;  %v12791_v54 = vld [vmem:[%s13139_s17 + $0x44] sm:$0xff]  }
 0x1cc   : > { %11428 = vmatprep.mubr.bf16.mxu0 %v5092_v10  ;;  %v4090_v3 = vsel %vm1133_vm1, %v4085_v52, %v4089_v61  ;;  %v12779_v10 = vld [vmem:[%s13139_s17 + $0x20] sm:$0xff]   ;;  %v4093_v13 = vor.u32 %v4091_v5, %v4089_v61  ;;  %v5442_v52 = vrot.slane %v5440_v45, 3  ;;  %v5449_v60 = vshrl.u32 %v12791_v54, 16 }
 0x1cd   : > { %11315 = vmatpush3.bf16.msra.mxu1 %v12751_v62  ;;  %v12776_v62 = vld [vmem:[%s14258_s3 + $0x1c0] sm:$0xff]   ;;  %v5415_v6 = vrot.slane %v5413_v0, 3  ;;  %v4099_v16 = vshrl.u32 %v12779_v10, 16 }
 0x1ce   : > { %11443 = vmatpush3.bf16.msra.mxu0 %v12752_v1  ;;  %11316 = vmatprep.subr.bf16.mxu1 %v12756_v8  ;;  %v5416_v1 = vshll.u32 %v12775_v59, 16  ;;  %v4121_v59 = vrot.slane %v4119_v53, 1  ;;  %v12795_v5 = vld [vmem:[%s13139_s17 + $0x40] sm:$0xff]  }
 0x1cf   : > { %11444 = vmatprep.subr.bf16.mxu0 %v12758_v12  ;;  %v4131_v15 = vshrl.u32 %v12795_v5, 16  ;;  %v12806_v45 = vld [vmem:[%s13139_s17 + $0x1c] sm:$0xff]  }
 0x1d0   : > { %11301 = vmatmul.mubr.bf16.gmra.mrb[8].mxu1 %v12755_v14  ;;  %v5418_v7 = vrot.slane %v5416_v1, 4  ;;  %v4095_v14 = vshll.u32 %v12779_v10, 16  ;;  %v5451_v1 = vrot.slane %v5449_v60, 3  ;;  %v4127_v10 = vshll.u32 %v12795_v5, 16 }
 0x1d1   : > { %11429 = vmatmul.mubr.bf16.gmra.mrb[8].mxu0 %v5100_v17  ;;  %11317 = vmatpush3.bf16.msra.mxu1 %v12756_v8  ;;  %v5411_v8 = vsel %vm532_vm0, %v5402_v63, %v5410_v2  ;;  %v12782_v17 = vld [vmem:[%s14258_s3 + $0xd0] sm:$0xff]   ;;  %v12793_v63 = vld [vmem:[%s14258_s3 + $0xe8] sm:$0xff]  }
 0x1d2   : > { %11445 = vmatpush3.bf16.msra.mxu0 %v12758_v12  ;;  %11318 = vmatprep.subr.bf16.mxu1 %v12759_v18  ;;  %v5419_v11 = vor.u32 %v5418_v7, %v5415_v6  ;;  %v12780_v12 = vld [vmem:[%s13139_s17 + $0x2c] sm:$0xff]   ;;  %v4097_v21 = vrot.slane %v4095_v14, 1  ;;  %v4123_v6 = vshrl.u32 %v12789_v46, 16 }
 0x1d3   : > { %11446 = vmatprep.subr.bf16.mxu0 %v12760_v19  ;;  %11304 = vmatprep.mubr.bf16.mxu1 %v12761_v20  ;;  %v5425_v20 = vshll.u32 %v12780_v12, 16  ;;  %v12796_v7 = vld [vmem:[%s13139_s17 + $0x4c] sm:$0xff]  }
 0x1d4   : > { %11432 = vmatprep.mubr.bf16.mxu0 %v5108_v31  ;;  %v5461_v14 = vshll.u32 %v12796_v7, 16 }
 0x1d5   : > { %11319 = vmatpush3.bf16.msra.mxu1 %v12759_v18  ;;  %v5420_v18 = vsel %vm532_vm0, %v5410_v2, %v5419_v11  ;;  %v5427_v26 = vrot.slane %v5425_v20, 4  ;;  %v12794_v2 = vld [vmem:[%s14258_s3 + $0x1e8] sm:$0xff]   ;;  %v12799_v20 = vld [vmem:[%s13139_s17 + $0x54] ss:$0 sps:$4 sm:$0xff]  }
 0x1d6   : > { %11447 = vmatpush3.bf16.msra.mxu0 %v12760_v19  ;;  %11320 = vmatprep.subr.bf16.mxu1 %v12764_v24  ;;  %v5422_v19 = vshrl.u32 %v12780_v12, 16  ;;  %v12797_v12 = vld [vmem:[%s13139_s17 + $0x48] ss:$0 sps:$4 sm:$0x11]   ;;  %v5463_v22 = vrot.slane %v5461_v14, 4 }
 0x1d7   : > { %11448 = vmatprep.subr.bf16.mxu0 %v12766_v27 }
 0x1d8   : > { %11305 = vmatmul.mubr.bf16.gmra.mrb[12].mxu1 %v12763_v28  ;;  %v5424_v25 = vrot.slane %v5422_v19, 3  ;;  %v4101_v28 = vor.u32 %v4099_v16, %v4097_v21  ;;  %v4135_v19 = vshll.u32 %v12797_v12, 16 }
 0x1d9   : > { %11433 = vmatmul.mubr.bf16.gmra.mrb[12].mxu0 %v5116_v39  ;;  %11321 = vmatpush3.bf16.msra.mxu1 %v12764_v24  ;;  %v12784_v24 = vld [vmem:[%s14258_s3 + $0x1d0] sm:$0xff]  }
 0x1da   : > { %11449 = vmatpush3.bf16.msra.mxu0 %v12766_v27  ;;  %11322 = vmatprep.subr.bf16.mxu1 %v12767_v34  ;;  %v4098_v27 = vsel %vm1133_vm1, %v4093_v13, %v4097_v21  ;;  %v5428_v31 = vor.u32 %v5427_v26, %v5424_v25  ;;  %v12787_v39 = vld [vmem:[%s13139_s17 + $0x30] sm:$0xff]   ;;  %v4137_v26 = vrot.slane %v4135_v19, 1 }
 0x1db   : > { %11450 = vmatprep.subr.bf16.mxu0 %v12768_v36  ;;  %11324 = vmatprep.mubr.bf16.mxu1 %v4082_v55  ;;  %v4111_v44 = vshll.u32 %v12787_v39, 16  ;;  %v4115_v49 = vshrl.u32 %v12787_v39, 16  ;;  %v5445_v55 = vrot.slane %v5443_v48, 4  ;;  %v12798_v13 = vld [vmem:[%s14258_s3 + $0xf0] sm:$0xff]  }
 0x1dc   : > { %11452 = vmatprep.mubr.bf16.mxu0 %v5411_v8  ;;  %v5429_v37 = vsel %vm532_vm0, %v5419_v11, %v5428_v31  ;;  %v5438_v50 = vsel %vm532_vm0, %v5428_v31, %v5437_v42  ;;  %v5458_v11 = vshrl.u32 %v12796_v7, 16  ;;  %v12800_v21 = vld [vmem:[%s14258_s3 + $0x1f0] sm:$0xff]  }
 0x1dd   : > { %11323 = vmatpush3.bf16.msra.mxu1 %v12767_v34  ;;  %v4106_v34 = vsel %vm1133_vm1, %v4101_v28, %v4105_v29  ;;  %v5446_v61 = vor.u32 %v5445_v55, %v5442_v52  ;;  %v5470_v29 = vshll.u32 %v12799_v20, 16  ;;  %v4438_v52 = vshll.u32 %v12806_v45, 16  ;;  %v12810_v55 = vld [vmem:[%s13139_s17 + $0x24] sm:$0xff]  }
 0x1de   : > { %11451 = vmatpush3.bf16.msra.mxu0 %v12768_v36  ;;  %11340 = vmatprep.subr.bf16.mxu1 %v12774_v51  ;;  %v12786_v36 = vld [vmem:[%s14258_s3 + $0x1d8] sm:$0xff]   ;;  %v4447_v60 = vshll.u32 %v12810_v55, 16 }
 0x1df   : > { %11468 = vmatprep.subr.bf16.mxu0 %v12776_v62  ;;  %v5472_v35 = vrot.slane %v5470_v29, 4 }
 0x1e0   : > { %11325 = vmatmul.mubr.bf16.vlgmr.msra.gmra.mrb[0].mxu1 %v4090_v3  ;;  %v5447_v3 = vsel %vm532_vm0, %v5437_v42, %v5446_v61 }
 0x1e1   : > { %11341 = vmatpush3.bf16.msra.mxu1 %v12774_v51  ;;  %11453 = vmatmul.mubr.bf16.vlgmr.msra.gmra.mrb[0].mxu0 %v5420_v18  ;;  %v4113_v51 = vrot.slane %v4111_v44, 1  ;;  %v5460_v18 = vrot.slane %v5458_v11, 3 }
 0x1e2   : > { %11342 = vmatprep.subr.bf16.mxu1 %v12777_v4  ;;  %11469 = vmatpush3.bf16.msra.mxu0 %v12776_v62  ;;  %v5452_v62 = vshll.u32 %v12791_v54, 16 }
 0x1e3   : > { %11470 = vmatprep.subr.bf16.mxu0 %v12778_v9  ;;  %11328 = vmatprep.mubr.bf16.mxu1 %v4098_v27  ;;  %v4114_v57 = vsel %vm1133_vm1, %v4109_v43, %v4113_v51  ;;  %v4117_v58 = vor.u32 %v4115_v49, %v4113_v51  ;;  %v5467_v27 = vshrl.u32 %v12799_v20, 16  ;;  %v5464_v28 = vor.u32 %v5463_v22, %v5460_v18  ;;  %v12808_v51 = vld [vmem:[%s14258_s3 + $0x200] sm:$0xff]   ;;  %v12815_v18 = vld [vmem:[%s14258_s3 + $0x218] sm:$0xff]  }
 0x1e4   : > { %11456 = vmatprep.mubr.bf16.mxu0 %v5429_v37  ;;  %v12803_v37 = vld [vmem:[%s13139_s17 + $0xc] sm:$0xf8]   ;;  %v12817_v22 = vld [vmem:[%s13139_s17 + $0x38] sm:$0xff]  }
 0x1e5   : > { %11343 = vmatpush3.bf16.msra.mxu1 %v12777_v4  ;;  %v4122_v0 = vsel %vm1133_vm1, %v4117_v58, %v4121_v59  ;;  %v5454_v4 = vrot.slane %v5452_v62, 4  ;;  %v5469_v32 = vrot.slane %v5467_v27, 3  ;;  %v4418_v41 = vshrl.u32 %v12803_v37, 16  ;;  %v12812_v62 = vld [vmem:[%s13139_s17 + $0x2c] sm:$0xff]  }
 0x1e6   : > { %11344 = vmatprep.subr.bf16.mxu1 %v12782_v17  ;;  %11471 = vmatpush3.bf16.msra.mxu0 %v12778_v9  ;;  %v4125_v9 = vor.u32 %v4123_v6, %v4121_v59  ;;  %v4421_v42 = vshll.u32 %v12803_v37, 16  ;;  %v4444_v59 = vshrl.u32 %v12810_v55, 16  ;;  %v4456_v5 = vshll.u32 %v12812_v62, 16  ;;  %v12831_v55 = vld [vmem:[%s13139_s17 + $0x38] sm:$0xff]  }
 0x1e7   : > { %11472 = vmatprep.subr.bf16.mxu0 %v12784_v24  ;;  %v5455_v8 = vor.u32 %v5454_v4, %v5451_v1  ;;  %v5473_v40 = vor.u32 %v5472_v35, %v5469_v32  ;;  %v4449_v1 = vrot.slane %v4447_v60, 4  ;;  %v4453_v4 = vshrl.u32 %v12812_v62, 16  ;;  %v12833_v62 = vld [vmem:[%s13139_s17 + $0x48] sm:$0xff]  }
 0x1e8   : > { %11329 = vmatmul.mubr.bf16.gmra.mrb[4].mxu1 %v4106_v34  ;;  %v4423_v48 = vrot.slane %v4421_v42, 4  ;;  %v12823_v42 = vld [vmem:[%s13139_s17 + $0x48] sm:$0xff]   ;;  %v6059_v60 = vshll.u32 %v12831_v55, 16 }
 0x1e9   : > { %11345 = vmatpush3.bf16.msra.mxu1 %v12782_v17  ;;  %11457 = vmatmul.mubr.bf16.gmra.mrb[4].mxu0 %v5438_v50  ;;  %v5456_v16 = vsel %vm532_vm0, %v5446_v61, %v5455_v8  ;;  %v4129_v17 = vrot.slane %v4127_v10, 1  ;;  %v5465_v34 = vsel %vm532_vm0, %v5455_v8, %v5464_v28  ;;  %v5474_v46 = vsel %vm532_vm0, %v5464_v28, %v5473_v40  ;;  %v12816_v10 = vld [vmem:[%s13139_s17 + $0x34] sm:$0xff]  }
 0x1ea   : > { %11346 = vmatprep.subr.bf16.mxu1 %v12785_v33  ;;  %11473 = vmatpush3.bf16.msra.mxu0 %v12784_v24  ;;  %v4435_v50 = vshrl.u32 %v12806_v45, 16  ;;  %v4455_v7 = vrot.slane %v4453_v4, 3  ;;  %v4458_v8 = vrot.slane %v4456_v5, 4  ;;  %v4462_v14 = vshrl.u32 %v12816_v10, 16  ;;  %v12828_v45 = vld [vmem:[%s13139_s17 + $0x18] sm:$0xff]  }
 0x1eb   : > { %11474 = vmatprep.subr.bf16.mxu0 %v12786_v36  ;;  %11332 = vmatprep.mubr.bf16.mxu1 %v4114_v57  ;;  %v4130_v24 = vsel %vm1133_vm1, %v4125_v9, %v4129_v17  ;;  %v4133_v25 = vor.u32 %v4131_v15, %v4129_v17  ;;  %v12807_v57 = vld [vmem:[%s13139_s17 + $0x20] sm:$0xff]   ;;  %v12814_v9 = vld [vmem:[%s14258_s3 + $0x210] sm:$0xff]   ;;  %v4465_v15 = vshll.u32 %v12816_v10, 16  ;;  %v6061_v5 = vrot.slane %v6059_v60, 1 }
 0x1ec   : > { %11460 = vmatprep.mubr.bf16.mxu0 %v5447_v3  ;;  %v4437_v54 = vrot.slane %v4435_v50, 3  ;;  %v4459_v12 = vor.u32 %v4458_v8, %v4455_v7  ;;  %v4464_v19 = vrot.slane %v4462_v14, 3  ;;  %v12827_v7 = vld [vmem:[%s14258_s3 + $0x238] sm:$0xff]  }
 0x1ed   : > { %11347 = vmatpush3.bf16.msra.mxu1 %v12785_v33  ;;  %v4138_v31 = vsel %vm1133_vm1, %v4133_v25, %v4137_v26  ;;  %v12804_v33 = vld [vmem:[%s13139_s17 + $0x14] sm:$0xff]   ;;  %v4467_v20 = vrot.slane %v4465_v15, 4  ;;  %v12822_v26 = vld [vmem:[%s13139_s17 + $0x44] sm:$0xff]  }
 0x1ee   : > { %11348 = vmatprep.subr.bf16.mxu1 %v12790_v47  ;;  %11475 = vmatpush3.bf16.msra.mxu0 %v12786_v36  ;;  %v12805_v36 = vld [vmem:[%s13139_s17 + $0x18] sm:$0xff]   ;;  %v4426_v38 = vshrl.u32 %v12804_v33, 16  ;;  %v4429_v39 = vshll.u32 %v12804_v33, 16  ;;  %v4480_v29 = vshrl.u32 %v12822_v26, 16  ;;  %v12819_v33 = vld [vmem:[%s13139_s17 + $0x40] sm:$0xff]  }
 0x1ef   : > { %11476 = vmatprep.subr.bf16.mxu0 %v12792_v56 }
 0x1f0   : > { %11333 = vmatmul.mubr.bf16.gmra.mrb[8].mxu1 %v4122_v0  ;;  %v4428_v43 = vrot.slane %v4426_v38, 3  ;;  %v4431_v44 = vrot.slane %v4429_v39, 4  ;;  %v4446_v0 = vrot.slane %v4444_v59, 3  ;;  %v4482_v35 = vrot.slane %v4480_v29, 3  ;;  %v12821_v39 = vld [vmem:[%s14258_s3 + $0x228] sm:$0xff]  }
 0x1f1   : > { %11349 = vmatpush3.bf16.msra.mxu1 %v12790_v47  ;;  %11461 = vmatmul.mubr.bf16.gmra.mrb[8].mxu0 %v5456_v16  ;;  %v4420_v47 = vrot.slane %v4418_v41, 3  ;;  %v12818_v16 = vld [vmem:[%s13139_s17 + $0x3c] sm:$0xff]  }
 0x1f2   : > { %11350 = vmatprep.subr.bf16.mxu1 %v12793_v63  ;;  %11477 = vmatpush3.bf16.msra.mxu0 %v12792_v56  ;;  %v4432_v49 = vor.u32 %v4431_v44, %v4428_v43  ;;  %v4440_v56 = vrot.slane %v4438_v52, 4  ;;  %v4450_v6 = vor.u32 %v4449_v1, %v4446_v0  ;;  %v12826_v52 = vld [vmem:[%s14258_s3 + $0x230] sm:$0xff]  }
 0x1f3   : > { %11478 = vmatprep.subr.bf16.mxu0 %v12794_v2  ;;  %11336 = vmatprep.mubr.bf16.mxu1 %v4130_v24  ;;  %v4424_v53 = vor.u32 %v4423_v48, %v4420_v47  ;;  %v4468_v24 = vor.u32 %v4467_v20, %v4464_v19  ;;  %v6028_v47 = vshrl.u32 %v12828_v45, 16  ;;  %v6030_v48 = vshll.u32 %v12828_v45, 16 }
 0x1f4   : > { %11464 = vmatprep.mubr.bf16.mxu0 %v5465_v34  ;;  %v4441_v61 = vor.u32 %v4440_v56, %v4437_v54  ;;  %v4460_v17 = vsel %vm532_vm0, %v4450_v6, %v4459_v12  ;;  %v12820_v34 = vld [vmem:[%s14258_s3 + $0x220] sm:$0xff]   ;;  %v12825_v56 = vld [vmem:[%s13139_s17 + $0x50] sm:$0xff]  }
 0x1f5   : > { %11351 = vmatpush3.bf16.msra.mxu1 %v12793_v63  ;;  %v4433_v58 = vsel %vm532_vm0, %v4424_v53, %v4432_v49  ;;  %v12809_v63 = vld [vmem:[%s14258_s3 + $0x208] sm:$0xff]   ;;  %v4469_v28 = vsel %vm532_vm0, %v4459_v12, %v4468_v24  ;;  %v6032_v53 = vrot.slane %v6030_v48, 1  ;;  %v12835_v12 = vld [vmem:[%s13139_s17 + $0x50] sm:$0xff]  }
 0x1f6   : > { %11352 = vmatprep.subr.bf16.mxu1 %v12798_v13  ;;  %11479 = vmatpush3.bf16.msra.mxu0 %v12794_v2  ;;  %v12811_v2 = vld [vmem:[%s13139_s17 + $0x28] sm:$0xff]   ;;  %v4442_v3 = vsel %vm532_vm0, %v4432_v49, %v4441_v61  ;;  %v4451_v11 = vsel %vm532_vm0, %v4441_v61, %v4450_v6  ;;  %v6063_v61 = vshrl.u32 %v12831_v55, 16  ;;  %v6075_v6 = vshll.u32 %v12833_v62, 16 }
 0x1f7   : > { %11480 = vmatprep.subr.bf16.mxu0 %v12800_v21  ;;  %v12830_v49 = vld [vmem:[%s13139_s17 + $0x28] sm:$0xff]   ;;  %v6083_v20 = vshll.u32 %v12835_v12, 16  ;;  %v6087_v29 = vshrl.u32 %v12835_v12, 16 }
 0x1f8   : > { %11337 = vmatmul.mubr.bf16.gmra.mrb[12].mxu1 %v4138_v31  ;;  %v12824_v31 = vld [vmem:[%s13139_s17 + $0x4c] ss:$0 sps:$4 sm:$0xff]   ;;  %v6043_v59 = vshll.u32 %v12830_v49, 16 }
 0x1f9   : > { %11353 = vmatpush3.bf16.msra.mxu1 %v12798_v13  ;;  %11465 = vmatmul.mubr.bf16.gmra.mrb[12].mxu0 %v5474_v46  ;;  %v12813_v13 = vld [vmem:[%s13139_s17 + $0x30] sm:$0xff]   ;;  %v4489_v37 = vshrl.u32 %v12824_v31, 16  ;;  %v4492_v38 = vshll.u32 %v12824_v31, 16  ;;  %v12829_v46 = vld [vmem:[%s13139_s17 + $0x20] sm:$0xff]  }
 0x1fa   : > { %11481 = vmatpush3.bf16.msra.mxu0 %v12800_v21  ;;  %11354 = vmatprep.subr.bf16.mxu1 %v12801_v23  ;;  %v4471_v21 = vshrl.u32 %v12818_v16, 16  ;;  %v6035_v54 = vshll.u32 %v12829_v46, 16  ;;  %v6045_v15 = vrot.slane %v6043_v59, 1 }
 0x1fb   : > { %11482 = vmatprep.subr.bf16.mxu0 %v12802_v30  ;;  %11484 = vmatprep.mubr.bf16.mxu0 %v12805_v36  ;;  %v4491_v43 = vrot.slane %v4489_v37, 3  ;;  %v4494_v44 = vrot.slane %v4492_v38, 4 }
 0x1fc   : > { %11356 = vmatprep.mubr.bf16.mxu1 %v4433_v58  ;;  %v4473_v25 = vrot.slane %v4471_v21, 3  ;;  %v12832_v58 = vld [vmem:[%s13139_s17 + $0x40] sm:$0xff]   ;;  %v6037_v0 = vrot.slane %v6035_v54, 1  ;;  %v12836_v21 = vld [vmem:[%s13139_s17 + $0x58] ss:$0 sps:$4 sm:$0x11]  }
 0x1fd   : > { %11355 = vmatpush3.bf16.msra.mxu1 %v12801_v23  ;;  %v4474_v23 = vshll.u32 %v12818_v16, 16  ;;  %v6067_v1 = vshll.u32 %v12832_v58, 16  ;;  %v6077_v16 = vrot.slane %v6075_v6, 1  ;;  %v3681_v54 = vld [vmem:[#allocation2 + $0x48] sm:$0xff]  ;;  %v3687_v6 = vld [vmem:[#allocation2 + $0x78] sm:$0xff] }
 0x1fe   : > { %11483 = vmatpush3.bf16.msra.mxu0 %v12802_v30  ;;  %12012 = vmatprep.subr.bf16.mxu1 %v12808_v51  ;;  %v4483_v30 = vshll.u32 %v12822_v26, 16 }
 0x1ff   : > { %11500 = vmatprep.subr.bf16.mxu0 %v12808_v51  ;;  %v4476_v27 = vrot.slane %v4474_v23, 4  ;;  %v6069_v8 = vrot.slane %v6067_v1, 1 }
 0x200   : > { %11357 = vmatmul.mubr.bf16.vlgmr.msra.gmra.mrb[0].mxu1 %v4442_v3  ;;  %v4485_v36 = vrot.slane %v4483_v30, 4  ;;  %v12834_v3 = vld [vmem:[%s13139_s17 + $0x30] sm:$0xff]   ;;  %v6091_v30 = vshll.u32 %v12836_v21, 16  ;;  %v3672_v21 = vld [vmem:[#allocation2] sm:$0xff] }
 0x201   : > { %11485 = vmatmul.mubr.bf16.vlgmr.msra.gmra.mrb[0].mxu0 %v12807_v57  ;;  %12020 = vmatpush3.bf16.msra.mxu1 %v12808_v51  ;;  %v4477_v32 = vor.u32 %v4476_v27, %v4473_v25  ;;  %v6039_v57 = vshrl.u32 %v12829_v46, 16  ;;  %v6051_v10 = vshll.u32 %v12834_v3, 16  ;;  %v6085_v25 = vrot.slane %v6083_v20, 1  ;;  %v3682_v46 = vld [vmem:[#allocation2 + $0x50] sm:$0xff] }
 0x202   : > { %11501 = vmatpush3.bf16.msra.mxu0 %v12808_v51  ;;  %12013 = vmatprep.subr.bf16.mxu1 %v12809_v63  ;;  %v4486_v41 = vor.u32 %v4485_v36, %v4482_v35  ;;  %v4495_v51 = vor.u32 %v4494_v44, %v4491_v43  ;;  %v6055_v26 = vshrl.u32 %v12834_v3, 16  ;;  %v6093_v35 = vrot.slane %v6091_v30, 1  ;;  %v3684_v3 = vld [vmem:[#allocation2 + $0x60] sm:$0xff] }
 0x203   : > { %11502 = vmatprep.subr.bf16.mxu0 %v12809_v63  ;;  %11360 = vmatprep.mubr.bf16.mxu1 %v4451_v11  ;;  %v4478_v40 = vsel %vm532_vm0, %v4468_v24, %v4477_v32  ;;  %v6065_v11 = vor.u32 %v6063_v61, %v6061_v5  ;;  %v6053_v23 = vrot.slane %v6051_v10, 1  ;;  %v3685_v10 = vld [vmem:[#allocation2 + $0x68] sm:$0xff] }
 0x204   : > { %11488 = vmatprep.mubr.bf16.mxu0 %v12811_v2  ;;  %v4487_v50 = vsel %vm532_vm0, %v4477_v32, %v4486_v41  ;;  %v6071_v2 = vshrl.u32 %v12832_v58, 16  ;;  %v4496_v4 = vsel %vm532_vm0, %v4486_v41, %v4495_v51 }
 0x205   : > { %12021 = vmatpush3.bf16.msra.mxu1 %v12809_v63 }
 0x206   : > { %11503 = vmatpush3.bf16.msra.mxu0 %v12809_v63  ;;  %12014 = vmatprep.subr.bf16.mxu1 %v12814_v9  ;;  %v6033_v63 = vor.u32 %v6032_v53, %v6028_v47  ;;  %v6073_v19 = vor.u32 %v6071_v2, %v6069_v8  ;;  %v3680_v47 = vld [vmem:[#allocation2 + $0x40] sm:$0xff]  ;;  %v3686_v2 = vld [vmem:[#allocation2 + $0x70] sm:$0xff] }
 0x207   : > { %11504 = vmatprep.subr.bf16.mxu0 %v12814_v9 }
 0x208   : > { %11361 = vmatmul.mubr.bf16.gmra.mrb[4].mxu1 %v4460_v17  ;;  %v6038_v14 = vsel %vm1133_vm1, %v6033_v63, %v6037_v0  ;;  %v6041_v17 = vor.u32 %v6039_v57, %v6037_v0 }
 0x209   : > { %11489 = vmatmul.mubr.bf16.gmra.mrb[4].mxu0 %v12813_v13  ;;  %12022 = vmatpush3.bf16.msra.mxu1 %v12814_v9  ;;  %v6079_v13 = vshrl.u32 %v12833_v62, 16 }
 0x20a   : > { %11505 = vmatpush3.bf16.msra.mxu0 %v12814_v9  ;;  %12015 = vmatprep.subr.bf16.mxu1 %v12815_v18  ;;  %v6047_v9 = vshrl.u32 %v12830_v49, 16  ;;  %v6046_v27 = vsel %vm1133_vm1, %v6041_v17, %v6045_v15 }
 0x20b   : > { %11506 = vmatprep.subr.bf16.mxu0 %v12815_v18  ;;  %11364 = vmatprep.mubr.bf16.mxu1 %v4469_v28  ;;  %v6081_v24 = vor.u32 %v6079_v13, %v6077_v16  ;;  %v6078_v28 = vsel %vm1133_vm1, %v6073_v19, %v6077_v16 }
 0x20c   : > { %11492 = vmatprep.mubr.bf16.mxu0 %v12817_v22  ;;  %v6049_v22 = vor.u32 %v6047_v9, %v6045_v15 }
 0x20d   : > { %12023 = vmatpush3.bf16.msra.mxu1 %v12815_v18  ;;  %v6086_v32 = vsel %vm1133_vm1, %v6081_v24, %v6085_v25 }
 0x20e   : > { %11507 = vmatpush3.bf16.msra.mxu0 %v12815_v18  ;;  %12016 = vmatprep.subr.bf16.mxu1 %v12820_v34  ;;  %v6070_v18 = vsel %vm1133_vm1, %v6065_v11, %v6069_v8  ;;  %v6054_v31 = vsel %vm1133_vm1, %v6049_v22, %v6053_v23 }
 0x20f   : > { %11508 = vmatprep.subr.bf16.mxu0 %v12820_v34 }
 0x210   : > { %11365 = vmatmul.mubr.bf16.gmra.mrb[8].mxu1 %v4478_v40 }
 0x211   : > { %11493 = vmatmul.mubr.bf16.gmra.mrb[8].mxu0 %v12819_v33  ;;  %12024 = vmatpush3.bf16.msra.mxu1 %v12820_v34  ;;  %v6057_v33 = vor.u32 %v6055_v26, %v6053_v23  ;;  %v3675_v23 = vld [vmem:[#allocation2 + $0x18] sm:$0xff]  ;;  %v3673_v26 = vld [vmem:[#allocation2 + $0x8] sm:$0xff] }
 0x212   : > { %11509 = vmatpush3.bf16.msra.mxu0 %v12820_v34  ;;  %12017 = vmatprep.subr.bf16.mxu1 %v12821_v39  ;;  %v6089_v34 = vor.u32 %v6087_v29, %v6085_v25 }
 0x213   : > { %11510 = vmatprep.subr.bf16.mxu0 %v12821_v39  ;;  %11368 = vmatprep.mubr.bf16.mxu1 %v4487_v50  ;;  %v6062_v36 = vsel %vm1133_vm1, %v6057_v33, %v6061_v5  ;;  %v3683_v50 = vld [vmem:[#allocation2 + $0x58] sm:$0xff] }
 0x214   : > { %11496 = vmatprep.mubr.bf16.mxu0 %v12823_v42  ;;  %v6094_v37 = vsel %vm1133_vm1, %v6089_v34, %v6093_v35 }
 0x215   : > { %12025 = vmatpush3.bf16.msra.mxu1 %v12821_v39 }
 0x216   : > { %11511 = vmatpush3.bf16.msra.mxu0 %v12821_v39  ;;  %12018 = vmatprep.subr.bf16.mxu1 %v12826_v52 }
 0x217   : > { %11512 = vmatprep.subr.bf16.mxu0 %v12826_v52 }
 0x218   : > { %11369 = vmatmul.mubr.bf16.gmra.mrb[12].mxu1 %v4496_v4 }
 0x219   : > { %11497 = vmatmul.mubr.bf16.gmra.mrb[12].mxu0 %v12825_v56  ;;  %12026 = vmatpush3.bf16.msra.mxu1 %v12826_v52 }
 0x21a   : > { %11513 = vmatpush3.bf16.msra.mxu0 %v12826_v52  ;;  %12019 = vmatprep.subr.bf16.mxu1 %v12827_v7 }
 0x21b   : > { %11514 = vmatprep.subr.bf16.mxu0 %v12827_v7  ;;  %11516 = vmatprep.mubr.bf16.mxu0 %v6038_v14 }
 0x21c   : > { %11524 = vmatprep.mubr.bf16.mxu1 %v6070_v18  ;;  %v3674_v18 = vld [vmem:[#allocation2 + $0x10] sm:$0xff] }
 0x21d   : > { %12027 = vmatpush3.bf16.msra.mxu1 %v12827_v7 }
 0x21e   : > { %11515 = vmatpush3.bf16.msra.mxu0 %v12827_v7 }
 0x220   : > { %11525 = vmatmul.mubr.bf16.vlgmr.msra.gmra.mrb[16].mxu1 %v6078_v28 }
 0x221   : > { %11517 = vmatmul.mubr.bf16.vlgmr.msra.gmra.mrb[0].mxu0 %v6046_v27  ;;  %11528 = vmatprep.mubr.bf16.mxu1 %v6086_v32 }
 0x222   : > { %11520 = vmatprep.mubr.bf16.mxu0 %v6054_v31 }
 0x228   : > { %11529 = vmatmul.mubr.bf16.gmra.mrb[20].mxu1 %v6094_v37 }
 0x229   : > { %11521 = vmatmul.mubr.bf16.gmra.mrb[4].mxu0 %v6062_v36 }
 0x2d3   : > { %v11358_v38 = vpop.f32.mrb[0].mxu1 }
 0x2d4   : > { %v4587_v39 = vpop.f32.mrb[1].mxu1  ;;  %v12030_v25 = vadd.f32 %v11358_v38, %v3674_v18 }
 0x2d5   : > { %v11359_v40 = vpop.f32.mrb[2].mxu1  ;;  %v12036_v27 = vadd.f32 %v4587_v39, %v3672_v21 }
 0x2d6   : > { %v4590_v41 = vpop.f32.mrb[3].mxu1  ;;  %v12042_v30 = vadd.f32 %v11359_v40, %v3675_v23 }
 0x2d7   : > { %v12048_v35 = vadd.f32 %v4590_v41, %v3673_v26 }
 0x2db   : > { %v13815_v42 = vpop.f32.mrb[4].mxu1 }
 0x2dc   : > { %v13817_v43 = vpop.f32.mrb[5].mxu1 }
 0x2dd   : > { %v13819_v44 = vpop.f32.mrb[6].mxu1 }
 0x2de   : > { %v13821_v45 = vpop.f32.mrb[7].mxu1 }
 0x2e3   : > { %v11366_v48 = vpop.f32.mrb[8].mxu1 }
 0x2e4   : > { %v11494_v49 = vpop.f32.mrb[8].mxu0  ;;  %v12078_v51 = vadd.f32 %v11366_v48, %v3682_v46  ;;  %v4619_v52 = vpop.f32.mrb[9].mxu1 }
 0x2e5   : > { %v5871_v53 = vpop.f32.mrb[9].mxu0  ;;  %v12087_v55 = vadd.f32 %v4619_v52, %v3680_v47  ;;  %v11367_v56 = vpop.f32.mrb[10].mxu1  ;;  %v3676_v52 = vld [vmem:[#allocation2 + $0x20] sm:$0xff] }
 0x2e6   : > { %v11495_v57 = vpop.f32.mrb[10].mxu0  ;;  %v12081_v58 = vadd.f32 %v12078_v51, %v11494_v49  ;;  %v12096_v59 = vadd.f32 %v11367_v56, %v3683_v50  ;;  %v4622_v60 = vpop.f32.mrb[11].mxu1  ;;  %v3678_v51 = vld [vmem:[#allocation2 + $0x30] sm:$0xff] }
 0x2e7   : > { %v5874_v61 = vpop.f32.mrb[11].mxu0  ;;  %v12090_v62 = vadd.f32 %v12087_v55, %v5871_v53  ;;  %v12105_v63 = vadd.f32 %v4622_v60, %v3681_v54  ;;  %v3679_v53 = vld [vmem:[#allocation2 + $0x38] sm:$0xff]  ;;  %v12054_v41 = vadd.f32 %v13815_v42, %v3678_v51  ;;  %v3677_v54 = vld [vmem:[#allocation2 + $0x28] sm:$0xff]  ;;  %v12060_v55 = vadd.f32 %v13817_v43, %v3676_v52 }
 0x2e8   : > { %v12099_v0 = vadd.f32 %v12096_v59, %v11495_v57 }
 0x2e9   : > { %v12108_v1 = vadd.f32 %v12105_v63, %v5874_v61  ;;  %v12072_v63 = vadd.f32 %v13821_v45, %v3677_v54 }
 0x2eb   : > { %v11370_v4 = vpop.f32.mrb[12].mxu1 }
 0x2ec   : > { %v11498_v5 = vpop.f32.mrb[12].mxu0  ;;  %v12114_v7 = vadd.f32 %v11370_v4, %v3686_v2  ;;  %v4635_v8 = vpop.f32.mrb[13].mxu1 }
 0x2ed   : > { %v5887_v9 = vpop.f32.mrb[13].mxu0  ;;  %v12123_v11 = vadd.f32 %v4635_v8, %v3684_v3  ;;  %v11371_v12 = vpop.f32.mrb[14].mxu1 }
 0x2ee   : > { %v11499_v13 = vpop.f32.mrb[14].mxu0  ;;  %v12117_v14 = vadd.f32 %v12114_v7, %v11498_v5  ;;  %v12132_v15 = vadd.f32 %v11371_v12, %v3687_v6  ;;  %v4638_v16 = vpop.f32.mrb[15].mxu1 }
 0x2ef   : > { %v5890_v17 = vpop.f32.mrb[15].mxu0  ;;  %v12126_v19 = vadd.f32 %v12123_v11, %v5887_v9  ;;  %v12141_v20 = vadd.f32 %v4638_v16, %v3685_v10 }
 0x2f0   : > { %v12135_v22 = vadd.f32 %v12132_v15, %v11499_v13 }
 0x2f1   : > { %v12144_v24 = vadd.f32 %v12141_v20, %v5890_v17 }
 0x2f3   : > { %v11526_v29 = vpop.f32.mrb[16].mxu1 }
 0x2f4   : > { %v11518_v28 = vpop.f32.mrb[0].mxu0  ;;  %v12084_v33 = vadd.f32 %v12081_v58, %v11526_v29  ;;  %v6217_v34 = vpop.f32.mrb[17].mxu1  ;;  %v12066_v58 = vadd.f32 %v13819_v44, %v3679_v53 }
 0x2f5   : > { %v12033_v31 = vadd.f32 %v12030_v25, %v11518_v28  ;;  %v6185_v32 = vpop.f32.mrb[1].mxu0  ;;  %v12093_v46 = vadd.f32 %v12090_v62, %v6217_v34  ;;  %v11527_v47 = vpop.f32.mrb[18].mxu1 }
 0x2f6   : > { %v12039_v36 = vadd.f32 %v12036_v27, %v6185_v32  ;;  %v11519_v37 = vpop.f32.mrb[2].mxu0  ;;  %6290 = vst [vmem:[#allocation2 + $0x50] sm:$0xff] %v12084_v33  ;;  %v12102_v50 = vadd.f32 %v12099_v0, %v11527_v47  ;;  %v6220_v38 = vpop.f32.mrb[19].mxu1 }
 0x2f7   : > { %6282 = vst [vmem:[#allocation2 + $0x10] sm:$0xff] %v12033_v31  ;;  %v12045_v48 = vadd.f32 %v12042_v30, %v11519_v37  ;;  %v6188_v49 = vpop.f32.mrb[3].mxu0  ;;  %6288 = vst [vmem:[#allocation2 + $0x40] sm:$0xff] %v12093_v46  ;;  %v12111_v40 = vadd.f32 %v12108_v1, %v6220_v38 }
 0x2f8   : > { %6280 = vst [vmem:[#allocation2] sm:$0xff] %v12039_v36  ;;  %v12051_v39 = vadd.f32 %v12048_v35, %v6188_v49  ;;  %6291 = vst [vmem:[#allocation2 + $0x58] sm:$0xff] %v12102_v50 }
 0x2f9   : > { %6283 = vst [vmem:[#allocation2 + $0x18] sm:$0xff] %v12045_v48  ;;  %6289 = vst [vmem:[#allocation2 + $0x48] sm:$0xff] %v12111_v40 }
 0x2fa   : > { %6281 = vst [vmem:[#allocation2 + $0x8] sm:$0xff] %v12051_v39 }
 0x2fb   : > { %v11530_v57 = vpop.f32.mrb[20].mxu1 }
 0x2fc   : > { %v11522_v56 = vpop.f32.mrb[4].mxu0  ;;  %v12120_v61 = vadd.f32 %v12117_v14, %v11530_v57  ;;  %v6233_v62 = vpop.f32.mrb[21].mxu1 }
 0x2fd   : > { %v12057_v59 = vadd.f32 %v12054_v41, %v11522_v56  ;;  %v6201_v60 = vpop.f32.mrb[5].mxu0  ;;  %v12129_v2 = vadd.f32 %v12126_v19, %v6233_v62  ;;  %v11531_v3 = vpop.f32.mrb[22].mxu1 }
 0x2fe   : > { %v12063_v0 = vadd.f32 %v12060_v55, %v6201_v60  ;;  %v11523_v1 = vpop.f32.mrb[6].mxu0  ;;  %6294 = vst [vmem:[#allocation2 + $0x70] sm:$0xff] %v12120_v61  ;;  %v12138_v5 = vadd.f32 %v12135_v22, %v11531_v3  ;;  %v6236_v43 = vpop.f32.mrb[23].mxu1 }
 0x2ff   : > { %6286 = vst [vmem:[#allocation2 + $0x30] sm:$0xff] %v12057_v59  ;;  %v12069_v4 = vadd.f32 %v12066_v58, %v11523_v1  ;;  %v6204_v42 = vpop.f32.mrb[7].mxu0  ;;  %6292 = vst [vmem:[#allocation2 + $0x60] sm:$0xff] %v12129_v2  ;;  %v12147_v44 = vadd.f32 %v12144_v24, %v6236_v43 }
 0x300   : > { %6284 = vst [vmem:[#allocation2 + $0x20] sm:$0xff] %v12063_v0  ;;  %v12075_v6 = vadd.f32 %v12072_v63, %v6204_v42  ;;  %6295 = vst [vmem:[#allocation2 + $0x78] sm:$0xff] %v12138_v5 }
 0x301   : > { %6287 = vst [vmem:[#allocation2 + $0x38] sm:$0xff] %v12069_v4  ;;  %6293 = vst [vmem:[#allocation2 + $0x68] sm:$0xff] %v12147_v44 }
 0x302   : > { %6285 = vst [vmem:[#allocation2 + $0x28] sm:$0xff] %v12075_v6 }
 0x303 PF: > { %p10129_p2 = scmp.ge.s32.totalorder %s13009_s21, 3 }
 0x304   : > { %v12837_v45 = vld [vmem:[%s14258_s3 + $0x480] sm:$0xff] (!%p10129_p2)   ;;  %v12839_v8 = vld [vmem:[%s14258_s3 + $0x488] sm:$0xff] (!%p10129_p2)   ;;  %v12841_v10 = vld [vmem:[%s14258_s3 + $0x490] sm:$0xff] (!%p10129_p2)  }
 0x305   : > { %6299 = sbr.rel (%p10129_p2) target bundleno = 1160 (0x488), region = 52  ;;  %v12838_v7 = vld [vmem:[%s14258_s3 + $0x580] sm:$0xff] (!%p10129_p2)   ;;  %11532 = vmatprep.subr.bf16.mxu1 (!%p10129_p2), %v12837_v45  ;;  %v12840_v9 = vld [vmem:[%s14258_s3 + $0x588] sm:$0xff] (!%p10129_p2)   ;;  %v12842_v11 = vld [vmem:[%s14258_s3 + $0x590] sm:$0xff] (!%p10129_p2)  }
 0x306   : > { %11660 = vmatprep.subr.bf16.mxu0 (!%p10129_p2), %v12838_v7  ;;  %11533 = vmatpush3.bf16.msra.mxu1 (!%p10129_p2), %v12837_v45  ;;  %v12843_v12 = vld [vmem:[%s14258_s3 + $0x498] sm:$0xff] (!%p10129_p2)   ;;  %v12845_v14 = vld [vmem:[%s14258_s3 + $0x4a0] sm:$0xff] (!%p10129_p2)   ;;  %v12847_v16 = vld [vmem:[%s14258_s3 + $0x4a8] sm:$0xff] (!%p10129_p2)  }
 0x307   : > { %11661 = vmatpush3.bf16.msra.mxu0 (!%p10129_p2), %v12838_v7  ;;  %11534 = vmatprep.subr.bf16.mxu1 (!%p10129_p2), %v12839_v8  ;;  %v12844_v13 = vld [vmem:[%s14258_s3 + $0x598] sm:$0xff] (!%p10129_p2)   ;;  %v12846_v15 = vld [vmem:[%s14258_s3 + $0x5a0] sm:$0xff] (!%p10129_p2)   ;;  %v12848_v17 = vld [vmem:[%s14258_s3 + $0x5a8] sm:$0xff] (!%p10129_p2)  }
 0x308   : > { %11662 = vmatprep.subr.bf16.mxu0 (!%p10129_p2), %v12840_v9  ;;  %v12853_v18 = vld [vmem:[%s13184_s10 + $0x4] sm:$0xf8] (!%p10129_p2)   ;;  %v12854_v19 = vld [vmem:[%s13184_s10 + $0xc] sm:$0xff] (!%p10129_p2)   ;;  %v12856_v27 = vld [vmem:[%s13184_s10 + $0x14] sm:$0xff] (!%p10129_p2)  }
 0x309   : > { %v12849_v20 = vld [vmem:[%s14258_s3 + $0x4b0] sm:$0xff] (!%p10129_p2)   ;;  %v6378_v23 = vshrl.u32 (!%p10129_p2), %v12853_v18, 16  ;;  %v6381_v24 = vshll.u32 (!%p10129_p2), %v12853_v18, 16  ;;  %v6386_v25 = vshrl.u32 (!%p10129_p2), %v12854_v19, 16  ;;  %v6389_v26 = vshll.u32 (!%p10129_p2), %v12854_v19, 16  ;;  %v12851_v36 = vld [vmem:[%s14258_s3 + $0x4b8] sm:$0xff] (!%p10129_p2)  }
 0x30a   : > { %11535 = vmatpush3.bf16.msra.mxu1 (!%p10129_p2), %v12839_v8  ;;  %v12855_v21 = vld [vmem:[%s13184_s10 + $0x10] sm:$0xff] (!%p10129_p2)   ;;  %v6395_v32 = vshrl.u32 (!%p10129_p2), %v12856_v27, 16  ;;  %v6398_v33 = vshll.u32 (!%p10129_p2), %v12856_v27, 16  ;;  %v12852_v37 = vld [vmem:[%s14258_s3 + $0x5b8] sm:$0xff] (!%p10129_p2)   ;;  %v12857_v38 = vld [vmem:[%s14258_s3 + $0x4c0] sm:$0xff] (!%p10129_p2)  }
 0x30b   : > { %11663 = vmatpush3.bf16.msra.mxu0 (!%p10129_p2), %v12840_v9  ;;  %11536 = vmatprep.subr.bf16.mxu1 (!%p10129_p2), %v12841_v10  ;;  %v12850_v22 = vld [vmem:[%s14258_s3 + $0x5b0] sm:$0xff] (!%p10129_p2)   ;;  %v6380_v28 = vrot.slane (!%p10129_p2), %v6378_v23, 3  ;;  %v6383_v29 = vrot.slane (!%p10129_p2), %v6381_v24, 4  ;;  %v6388_v30 = vrot.slane (!%p10129_p2), %v6386_v25, 3  ;;  %v6391_v31 = vrot.slane (!%p10129_p2), %v6389_v26, 4  ;;  %v12862_v50 = vld [vmem:[%s13184_s10 + $0x1c] sm:$0xff] (!%p10129_p2)  }
 0x30c   : > { %11664 = vmatprep.subr.bf16.mxu0 %v12842_v11  ;;  %11676 = vmatprep.mubr.bf16.mxu0 %v12855_v21  ;;  %v6397_v46 = vrot.slane %v6395_v32, 3  ;;  %v6400_v47 = vrot.slane %v6398_v33, 4  ;;  %v12859_v51 = vld [vmem:[%s14258_s3 + $0x5c0] sm:$0xff]   ;;  %v6404_v39 = vshrl.u32 %v12862_v50, 16  ;;  %v6407_v40 = vshll.u32 %v12862_v50, 16  ;;  %v12858_v41 = vld [vmem:[%s13184_s10 + $0x18] sm:$0xff]  }
 0x30d   : > { %v6384_v34 = vor.u32 %v6383_v29, %v6380_v28  ;;  %v6392_v35 = vor.u32 %v6391_v31, %v6388_v30  ;;  %v12864_v52 = vld [vmem:[%s13184_s10 + $0x24] sm:$0xff]   ;;  %v12870_v2 = vld [vmem:[%s13184_s10 + $0x2c] sm:$0xff]   ;;  %v12872_v6 = vld [vmem:[%s13184_s10 + $0x34] sm:$0xff]  }
 0x30e   : > { %11537 = vmatpush3.bf16.msra.mxu1 %v12841_v10  ;;  %v6401_v49 = vor.u32 %v6400_v47, %v6397_v46  ;;  %v12860_v54 = vld [vmem:[%s14258_s3 + $0x4c8] sm:$0xff]   ;;  %v6406_v55 = vrot.slane %v6404_v39, 3  ;;  %v6409_v56 = vrot.slane %v6407_v40, 4  ;;  %v6413_v57 = vshrl.u32 %v12864_v52, 16  ;;  %v12863_v61 = vld [vmem:[%s13184_s10 + $0x20] sm:$0xff]   ;;  %v12865_v3 = vld [vmem:[%s14258_s3 + $0x4d0] sm:$0xff]  }
 0x30f   : > { %11665 = vmatpush3.bf16.msra.mxu0 %v12842_v11  ;;  %11538 = vmatprep.subr.bf16.mxu1 %v12843_v12  ;;  %v6393_v48 = vsel %vm532_vm0, %v6384_v34, %v6392_v35  ;;  %v6416_v58 = vshll.u32 %v12864_v52, 16  ;;  %v12861_v59 = vld [vmem:[%s14258_s3 + $0x5c8] sm:$0xff]   ;;  %v12867_v42 = vld [vmem:[%s14258_s3 + $0x5d0] sm:$0xff]   ;;  %v6422_v5 = vshrl.u32 %v12870_v2, 16  ;;  %v6425_v43 = vshll.u32 %v12870_v2, 16  ;;  %v12868_v10 = vld [vmem:[%s14258_s3 + $0x4d8] sm:$0xff]  }
 0x310   : > { %11666 = vmatprep.subr.bf16.mxu0 %v12844_v13  ;;  %11548 = vmatprep.mubr.bf16.mxu1 %v6393_v48  ;;  %v6402_v53 = vsel %vm532_vm0, %v6392_v35, %v6401_v49  ;;  %v6410_v60 = vor.u32 %v6409_v56, %v6406_v55  ;;  %v6415_v62 = vrot.slane %v6413_v57, 3  ;;  %v12866_v4 = vld [vmem:[%s13184_s10 + $0x28] sm:$0xff]   ;;  %v6431_v8 = vshrl.u32 %v12872_v6, 16  ;;  %v12869_v11 = vld [vmem:[%s14258_s3 + $0x5d8] sm:$0xff]   ;;  %v12873_v18 = vld [vmem:[%s14258_s3 + $0x4e0] sm:$0xff]  }
 0x311   : > { %v6418_v63 = vrot.slane %v6416_v58, 4  ;;  %v6424_v45 = vrot.slane %v6422_v5, 3  ;;  %v6427_v7 = vrot.slane %v6425_v43, 4  ;;  %v6434_v9 = vshll.u32 %v12872_v6, 16  ;;  %v12878_v19 = vld [vmem:[%s13184_s10 + $0x3c] sm:$0xff]   ;;  %v12876_v26 = vld [vmem:[%s14258_s3 + $0x4e8] sm:$0xff]  }
 0x312   : > { %11539 = vmatpush3.bf16.msra.mxu1 %v12843_v12  ;;  %v6411_v0 = vsel %vm532_vm0, %v6401_v49, %v6410_v60  ;;  %v12880_v21 = vld [vmem:[%s13184_s10 + $0x44] ss:$0 sps:$4 sm:$0xff]   ;;  %v6443_v23 = vshll.u32 %v12878_v19, 16  ;;  %v12874_v25 = vld [vmem:[%s13184_s10 + $0x38] sm:$0xff]   ;;  %v12877_v31 = vld [vmem:[%s14258_s3 + $0x5e8] sm:$0xff]  }
 0x313   : > { %11667 = vmatpush3.bf16.msra.mxu0 %v12844_v13  ;;  %11540 = vmatprep.subr.bf16.mxu1 %v12845_v14  ;;  %v6419_v1 = vor.u32 %v6418_v63, %v6415_v62  ;;  %v6428_v12 = vor.u32 %v6427_v7, %v6424_v45  ;;  %v12871_v13 = vld [vmem:[%s13184_s10 + $0x30] sm:$0xff]   ;;  %v6449_v27 = vshrl.u32 %v12880_v21, 16  ;;  %v6452_v28 = vshll.u32 %v12880_v21, 16  ;;  %v12879_v32 = vld [vmem:[%s13184_s10 + $0x40] sm:$0xff]   ;;  %v12882_v48 = vld [vmem:[%s13184_s10 + $0x48] sm:$0xff]  }
 0x314   : > { %11668 = vmatprep.subr.bf16.mxu0 %v12846_v15  ;;  %v6445_v30 = vrot.slane %v6443_v23, 4  ;;  %v12883_v47 = vld [vmem:[%s14258_s3 + $0x5f0] sm:$0xff]   ;;  %v12884_v49 = vld [vmem:[%s14258_s3 + $0x4f8] sm:$0xff]   ;;  %v12891_v57 = vld [vmem:[%s13184_s10 + $0x20] sm:$0xff]  }
 0x315   : > { %v6420_v44 = vsel %vm532_vm0, %v6410_v60, %v6419_v1  ;;  %v6451_v33 = vrot.slane %v6449_v27, 3  ;;  %v6454_v34 = vrot.slane %v6452_v28, 4  ;;  %v12887_v50 = vld [vmem:[%s13184_s10 + $0x10] sm:$0xff]   ;;  %v12885_v39 = vld [vmem:[%s14258_s3 + $0x5f8] sm:$0xff]   ;;  %v8003_v62 = vshll.u32 %v12891_v57, 16  ;;  %v12892_v63 = vld [vmem:[%s14258_s3 + $0x600] sm:$0xff]  }
 0x316   : > { %11541 = vmatpush3.bf16.msra.mxu1 %v12845_v14  ;;  %v6433_v14 = vrot.slane %v6431_v8, 3  ;;  %v7988_v40 = vshrl.u32 %v12887_v50, 16  ;;  %v7990_v52 = vshll.u32 %v12887_v50, 16  ;;  %v12889_v60 = vld [vmem:[%s13184_s10 + $0x10] sm:$0xff]   ;;  %v12894_v5 = vld [vmem:[%s14258_s3 + $0x608] sm:$0xff]   ;;  %v12895_v43 = vld [vmem:[%s13184_s10 + $0x18] sm:$0xff]  }
 0x317   : > { %11669 = vmatpush3.bf16.msra.mxu0 %v12846_v15  ;;  %11542 = vmatprep.subr.bf16.mxu1 %v12847_v16  ;;  %v6436_v15 = vrot.slane %v6434_v9, 4  ;;  %v8005_v2 = vrot.slane %v8003_v62, 1  ;;  %v12899_v45 = vld [vmem:[%s13184_s10 + $0x30] sm:$0xff]   ;;  %v12897_v9 = vld [vmem:[%s13184_s10 + $0x20] sm:$0xff]   ;;  %v12903_v21 = vld [vmem:[%s13184_s10 + $0x28] sm:$0xff]  }
 0x318   : > { %11670 = vmatprep.subr.bf16.mxu0 %v12848_v17  ;;  %v7992_v55 = vrot.slane %v7990_v52, 1  ;;  %v12906_v27 = vld [vmem:[%s14258_s3 + $0x520] sm:$0xff]  }
 0x319   : > { %v12913_v52 = vld [vmem:[%s13184_s10 + $0x40] sm:$0xff]  }
 0x31a   : > { %11543 = vmatpush3.bf16.msra.mxu1 %v12847_v16  ;;  %v6429_v16 = vsel %vm532_vm0, %v6419_v1, %v6428_v12  ;;  %v7993_v58 = vor.u32 %v7992_v55, %v7988_v40  ;;  %v12916_v40 = vld [vmem:[%s14258_s3 + $0x630] sm:$0xff]  }
 0x31b   : > { %11671 = vmatpush3.bf16.msra.mxu0 %v12848_v17  ;;  %11544 = vmatprep.subr.bf16.mxu1 %v12849_v20  ;;  %v6437_v17 = vor.u32 %v6436_v15, %v6433_v14  ;;  %v12900_v14 = vld [vmem:[%s14258_s3 + $0x610] sm:$0xff]   ;;  %v8023_v15 = vshrl.u32 %v12899_v45, 16 }
 0x31c   : > { %11672 = vmatprep.subr.bf16.mxu0 %v12850_v22 }
 0x31d   : > { %v6438_v24 = vsel %vm532_vm0, %v6428_v12, %v6437_v17 }
 0x31e   : > { %11545 = vmatpush3.bf16.msra.mxu1 %v12849_v20  ;;  %v12875_v20 = vld [vmem:[%s14258_s3 + $0x5e0] sm:$0xff]  }
 0x31f   : > { %11673 = vmatpush3.bf16.msra.mxu0 %v12850_v22  ;;  %11546 = vmatprep.subr.bf16.mxu1 %v12851_v36  ;;  %v6440_v22 = vshrl.u32 %v12878_v19, 16 }
 0x320   : > { %11674 = vmatprep.subr.bf16.mxu0 %v12852_v37 }
 0x321   : > { %v6442_v29 = vrot.slane %v6440_v22, 3 }
 0x322   : > { %11547 = vmatpush3.bf16.msra.mxu1 %v12851_v36  ;;  %v6455_v36 = vor.u32 %v6454_v34, %v6451_v33  ;;  %v12905_v33 = vld [vmem:[%s13184_s10 + $0x30] sm:$0xff]  }
 0x323   : > { %11675 = vmatpush3.bf16.msra.mxu0 %v12852_v37  ;;  %11564 = vmatprep.subr.bf16.mxu1 %v12857_v38  ;;  %v6446_v35 = vor.u32 %v6445_v30, %v6442_v29  ;;  %v12881_v37 = vld [vmem:[%s14258_s3 + $0x4f0] sm:$0xff]  }
 0x324   : > { %11692 = vmatprep.subr.bf16.mxu0 %v12859_v51 }
 0x325   : > { %11549 = vmatmul.mubr.bf16.vlgmr.msra.gmra.mrb[0].mxu1 %v6402_v53  ;;  %v6447_v46 = vsel %vm532_vm0, %v6437_v17, %v6446_v35  ;;  %v12901_v17 = vld [vmem:[%s14258_s3 + $0x518] sm:$0xff]  }
 0x326   : > { %11677 = vmatmul.mubr.bf16.vlgmr.msra.gmra.mrb[0].mxu0 %v12858_v41  ;;  %11565 = vmatpush3.bf16.msra.mxu1 %v12857_v38  ;;  %v12888_v38 = vld [vmem:[%s13184_s10 + $0x18] sm:$0xff]  }
 0x327   : > { %11693 = vmatpush3.bf16.msra.mxu0 %v12859_v51  ;;  %11566 = vmatprep.subr.bf16.mxu1 %v12860_v54  ;;  %v6456_v51 = vsel %vm532_vm0, %v6446_v35, %v6455_v36  ;;  %v7995_v53 = vshll.u32 %v12888_v38, 16  ;;  %v7999_v41 = vshrl.u32 %v12888_v38, 16  ;;  %v12912_v35 = vld [vmem:[%s13184_s10 + $0x48] sm:$0xff]   ;;  %v12914_v38 = vld [vmem:[%s14258_s3 + $0x530] sm:$0xff]  }
 0x328   : > { %11694 = vmatprep.subr.bf16.mxu0 %v12861_v59  ;;  %11552 = vmatprep.mubr.bf16.mxu1 %v6411_v0  ;;  %v8007_v0 = vshrl.u32 %v12891_v57, 16  ;;  %v8047_v50 = vshrl.u32 %v12912_v35, 16  ;;  %v12917_v57 = vld [vmem:[%s14258_s3 + $0x538] sm:$0xff]  }
 0x329   : > { %11680 = vmatprep.mubr.bf16.mxu0 %v12863_v61  ;;  %v7997_v56 = vrot.slane %v7995_v53, 1  ;;  %v12890_v61 = vld [vmem:[%s14258_s3 + $0x500] sm:$0xff]  }
 0x32a   : > { %11567 = vmatpush3.bf16.msra.mxu1 %v12860_v54  ;;  %v12886_v54 = vld [vmem:[%s13184_s10 + $0x8] sm:$0xff]   ;;  %v8009_v6 = vor.u32 %v8007_v0, %v8005_v2 }
 0x32b   : > { %11695 = vmatpush3.bf16.msra.mxu0 %v12861_v59  ;;  %11568 = vmatprep.subr.bf16.mxu1 %v12865_v3  ;;  %v8001_v59 = vor.u32 %v7999_v41, %v7997_v56  ;;  %v7998_v1 = vsel %vm1133_vm1, %v7993_v58, %v7997_v56  ;;  %v12919_v41 = vld [vmem:[%s13184_s10 + $0x8] sm:$0xff]   ;;  %v12920_v58 = vld [vmem:[%s13184_s10 + $0x10] sm:$0xff]  }
 0x32c   : > { %11696 = vmatprep.subr.bf16.mxu0 %v12867_v42  ;;  %v7021_v0 = vshrl.u32 %v12920_v58, 16 }
 0x32d   : > { %11553 = vmatmul.mubr.bf16.gmra.mrb[4].mxu1 %v6420_v44 }
 0x32e   : > { %11681 = vmatmul.mubr.bf16.gmra.mrb[4].mxu0 %v12866_v4  ;;  %11569 = vmatpush3.bf16.msra.mxu1 %v12865_v3  ;;  %v12893_v3 = vld [vmem:[%s14258_s3 + $0x508] sm:$0xff]  }
 0x32f   : > { %11697 = vmatpush3.bf16.msra.mxu0 %v12867_v42  ;;  %11570 = vmatprep.subr.bf16.mxu1 %v12868_v10  ;;  %v12896_v4 = vld [vmem:[%s13184_s10 + $0x28] sm:$0xff]   ;;  %v8006_v42 = vsel %vm1133_vm1, %v8001_v59, %v8005_v2  ;;  %v12918_v59 = vld [vmem:[%s14258_s3 + $0x638] sm:$0xff]  }
 0x330   : > { %11698 = vmatprep.subr.bf16.mxu0 %v12869_v11  ;;  %11556 = vmatprep.mubr.bf16.mxu1 %v6429_v16  ;;  %v8011_v44 = vshll.u32 %v12896_v4, 16  ;;  %v8015_v7 = vshrl.u32 %v12896_v4, 16  ;;  %v12921_v2 = vld [vmem:[%s13184_s10 + $0x14] sm:$0xf8]  }
 0x331   : > { %11684 = vmatprep.mubr.bf16.mxu0 %v12871_v13 }
 0x332   : > { %11571 = vmatpush3.bf16.msra.mxu1 %v12868_v10  ;;  %v8013_v8 = vrot.slane %v8011_v44, 1  ;;  %v12898_v10 = vld [vmem:[%s14258_s3 + $0x510] sm:$0xff]  }
 0x333   : > { %11699 = vmatpush3.bf16.msra.mxu0 %v12869_v11  ;;  %11572 = vmatprep.subr.bf16.mxu1 %v12873_v18  ;;  %v8019_v11 = vshll.u32 %v12899_v45, 16  ;;  %v12924_v45 = vld [vmem:[%s14258_s3 + $0x540] sm:$0xff]  }
 0x334   : > { %11700 = vmatprep.subr.bf16.mxu0 %v12875_v20  ;;  %v8014_v12 = vsel %vm1133_vm1, %v8009_v6, %v8013_v8  ;;  %v8017_v13 = vor.u32 %v8015_v7, %v8013_v8  ;;  %v8337_v6 = vshll.u32 %v12921_v2, 16 }
 0x335   : > { %11557 = vmatmul.mubr.bf16.gmra.mrb[8].mxu1 %v6438_v24  ;;  %v8021_v16 = vrot.slane %v8019_v11, 1  ;;  %v12907_v24 = vld [vmem:[%s13184_s10 + $0x40] sm:$0xff]  }
 0x336   : > { %11685 = vmatmul.mubr.bf16.gmra.mrb[8].mxu0 %v12874_v25  ;;  %11573 = vmatpush3.bf16.msra.mxu1 %v12873_v18  ;;  %v12904_v18 = vld [vmem:[%s13184_s10 + $0x38] sm:$0xff]   ;;  %v8035_v28 = vshll.u32 %v12907_v24, 16 }
 0x337   : > { %11701 = vmatpush3.bf16.msra.mxu0 %v12875_v20  ;;  %11574 = vmatprep.subr.bf16.mxu1 %v12876_v26  ;;  %v8022_v19 = vsel %vm1133_vm1, %v8017_v13, %v8021_v16  ;;  %v12902_v20 = vld [vmem:[%s14258_s3 + $0x618] sm:$0xff]   ;;  %v8025_v22 = vor.u32 %v8023_v15, %v8021_v16  ;;  %v8027_v23 = vshll.u32 %v12904_v18, 16  ;;  %v8031_v25 = vshrl.u32 %v12904_v18, 16 }
 0x338   : > { %11702 = vmatprep.subr.bf16.mxu0 %v12877_v31  ;;  %11560 = vmatprep.mubr.bf16.mxu1 %v6447_v46  ;;  %v8037_v34 = vrot.slane %v8035_v28, 1  ;;  %v12910_v46 = vld [vmem:[%s14258_s3 + $0x628] sm:$0xff]  }
 0x339   : > { %11688 = vmatprep.mubr.bf16.mxu0 %v12879_v32  ;;  %v8039_v32 = vshrl.u32 %v12907_v24, 16  ;;  %v12928_v28 = vld [vmem:[%s14258_s3 + $0x648] sm:$0xff]  }
 0x33a   : > { %11575 = vmatpush3.bf16.msra.mxu1 %v12876_v26  ;;  %v8029_v26 = vrot.slane %v8027_v23, 1  ;;  %v12927_v23 = vld [vmem:[%s14258_s3 + $0x548] sm:$0xff]  }
 0x33b   : > { %11703 = vmatpush3.bf16.msra.mxu0 %v12877_v31  ;;  %11576 = vmatprep.subr.bf16.mxu1 %v12881_v37  ;;  %v12908_v31 = vld [vmem:[%s14258_s3 + $0x620] sm:$0xff]  }
 0x33c   : > { %11704 = vmatprep.subr.bf16.mxu0 %v12883_v47  ;;  %v8030_v29 = vsel %vm1133_vm1, %v8025_v22, %v8029_v26  ;;  %v8033_v30 = vor.u32 %v8031_v25, %v8029_v26 }
 0x33d   : > { %11561 = vmatmul.mubr.bf16.gmra.mrb[12].mxu1 %v6456_v51  ;;  %v12915_v51 = vld [vmem:[%s13184_s10 + $0x50] ss:$0 sps:$4 sm:$0x11]  }
 0x33e   : > { %11689 = vmatmul.mubr.bf16.gmra.mrb[12].mxu0 %v12882_v48  ;;  %11577 = vmatpush3.bf16.msra.mxu1 %v12881_v37  ;;  %v8038_v36 = vsel %vm1133_vm1, %v8033_v30, %v8037_v34  ;;  %v12909_v37 = vld [vmem:[%s14258_s3 + $0x528] sm:$0xff]   ;;  %v8041_v48 = vor.u32 %v8039_v32, %v8037_v34  ;;  %v8051_v53 = vshll.u32 %v12915_v51, 16 }
 0x33f   : > { %11705 = vmatpush3.bf16.msra.mxu0 %v12883_v47  ;;  %11578 = vmatprep.subr.bf16.mxu1 %v12884_v49  ;;  %v12911_v47 = vld [vmem:[%s13184_s10 + $0x38] sm:$0xff]   ;;  %v12931_v34 = vld [vmem:[%s13184_s10 + $0x28] sm:$0xff]  }
 0x340   : > { %11706 = vmatprep.subr.bf16.mxu0 %v12885_v39  ;;  %11580 = vmatprep.mubr.bf16.mxu1 %v12886_v54  ;;  %v8053_v56 = vrot.slane %v8051_v53, 1 }
 0x341   : > { %11708 = vmatprep.mubr.bf16.mxu0 %v7998_v1 }
 0x342   : > { %11579 = vmatpush3.bf16.msra.mxu1 %v12884_v49  ;;  %v8043_v49 = vshll.u32 %v12912_v35, 16 }
 0x343   : > { %11707 = vmatpush3.bf16.msra.mxu0 %v12885_v39  ;;  %11596 = vmatprep.subr.bf16.mxu1 %v12890_v61 }
 0x344   : > { %11724 = vmatprep.subr.bf16.mxu0 %v12892_v63  ;;  %v8045_v39 = vrot.slane %v8043_v49, 1  ;;  %v7041_v49 = vshll.u32 %v12931_v34, 16 }
 0x345   : > { %11581 = vmatmul.mubr.bf16.vlgmr.msra.gmra.mrb[0].mxu1 %v12889_v60  ;;  %v7010_v60 = vshrl.u32 %v12919_v41, 16 }
 0x346   : > { %11709 = vmatmul.mubr.bf16.vlgmr.msra.gmra.mrb[0].mxu0 %v8006_v42  ;;  %11597 = vmatpush3.bf16.msra.mxu1 %v12890_v61  ;;  %v8046_v54 = vsel %vm1133_vm1, %v8041_v48, %v8045_v39  ;;  %v8049_v55 = vor.u32 %v8047_v50, %v8045_v39  ;;  %v7012_v61 = vshll.u32 %v12919_v41, 16  ;;  %v12923_v42 = vld [vmem:[%s13184_s10 + $0x18] sm:$0xff]   ;;  %v7043_v53 = vrot.slane %v7041_v49, 1 }
 0x347   : > { %11725 = vmatpush3.bf16.msra.mxu0 %v12892_v63  ;;  %11598 = vmatprep.subr.bf16.mxu1 %v12893_v3  ;;  %v7017_v63 = vshll.u32 %v12920_v58, 16  ;;  %v7029_v24 = vshrl.u32 %v12923_v42, 16  ;;  %v12933_v50 = vld [vmem:[%s13184_s10 + $0x34] sm:$0xff]  }
 0x348   : > { %11726 = vmatprep.subr.bf16.mxu0 %v12894_v5  ;;  %11584 = vmatprep.mubr.bf16.mxu1 %v12895_v43  ;;  %v8054_v62 = vsel %vm1133_vm1, %v8049_v55, %v8053_v56  ;;  %v7014_v1 = vrot.slane %v7012_v61, 1  ;;  %v8334_v43 = vshrl.u32 %v12921_v2, 16  ;;  %v8369_v41 = vshrl.u32 %v12933_v50, 16  ;;  %v12935_v56 = vld [vmem:[%s14258_s3 + $0x558] sm:$0xff]  }
 0x349   : > { %11712 = vmatprep.mubr.bf16.mxu0 %v8014_v12  ;;  %v7019_v4 = vrot.slane %v7017_v63, 1  ;;  %v8339_v12 = vrot.slane %v8337_v6, 4  ;;  %v8372_v55 = vshll.u32 %v12933_v50, 16  ;;  %v7045_v63 = vshrl.u32 %v12931_v34, 16  ;;  %v12951_v50 = vld [vmem:[%s14258_s3 + $0x578] sm:$0xff]  }
 0x34a   : > { %11599 = vmatpush3.bf16.msra.mxu1 %v12893_v3  ;;  %v12922_v3 = vld [vmem:[%s13184_s10 + $0x1c] sm:$0xff]   ;;  %v8336_v11 = vrot.slane %v8334_v43, 3  ;;  %v8371_v58 = vrot.slane %v8369_v41, 3 }
 0x34b   : > { %11727 = vmatpush3.bf16.msra.mxu0 %v12894_v5  ;;  %11600 = vmatprep.subr.bf16.mxu1 %v12898_v10  ;;  %v7015_v5 = vor.u32 %v7014_v1, %v7010_v60  ;;  %v8342_v44 = vshrl.u32 %v12922_v3, 16  ;;  %v7023_v7 = vor.u32 %v7021_v0, %v7019_v4  ;;  %v8345_v8 = vshll.u32 %v12922_v3, 16  ;;  %v12938_v0 = vld [vmem:[%s13184_s10 + $0x3c] sm:$0xff]  }
 0x34c   : > { %11728 = vmatprep.subr.bf16.mxu0 %v12900_v14  ;;  %v8340_v18 = vor.u32 %v8339_v12, %v8336_v11  ;;  %v8374_v61 = vrot.slane %v8372_v55, 4  ;;  %v7047_v2 = vor.u32 %v7045_v63, %v7043_v53  ;;  %v8381_v43 = vshll.u32 %v12938_v0, 16  ;;  %v12942_v11 = vld [vmem:[%s14258_s3 + $0x660] sm:$0xff]   ;;  %v12952_v41 = vld [vmem:[%s14258_s3 + $0x678] sm:$0xff]  }
 0x34d   : > { %11585 = vmatmul.mubr.bf16.gmra.mrb[4].mxu1 %v12897_v9  ;;  %v7025_v9 = vshll.u32 %v12923_v42, 16  ;;  %v8344_v13 = vrot.slane %v8342_v44, 3  ;;  %v8347_v15 = vrot.slane %v8345_v8, 4  ;;  %v12939_v42 = vld [vmem:[%s13184_s10 + $0x38] sm:$0xff]  }
 0x34e   : > { %11713 = vmatmul.mubr.bf16.gmra.mrb[4].mxu0 %v8022_v19  ;;  %11601 = vmatpush3.bf16.msra.mxu1 %v12898_v10  ;;  %v7020_v10 = vsel %vm1133_vm1, %v7015_v5, %v7019_v4  ;;  %v8375_v1 = vor.u32 %v8374_v61, %v8371_v58  ;;  %v8378_v4 = vshrl.u32 %v12938_v0, 16  ;;  %v12940_v5 = vld [vmem:[%s14258_s3 + $0x560] sm:$0xff]   ;;  %v7057_v8 = vshll.u32 %v12939_v42, 16 }
 0x34f   : > { %11729 = vmatpush3.bf16.msra.mxu0 %v12900_v14  ;;  %11602 = vmatprep.subr.bf16.mxu1 %v12901_v17  ;;  %v12925_v14 = vld [vmem:[%s13184_s10 + $0x24] sm:$0xff]   ;;  %v7027_v16 = vrot.slane %v7025_v9, 1 }
 0x350   : > { %11730 = vmatprep.subr.bf16.mxu0 %v12902_v20  ;;  %11588 = vmatprep.mubr.bf16.mxu1 %v12903_v21  ;;  %v8351_v19 = vshrl.u32 %v12925_v14, 16  ;;  %v8348_v21 = vor.u32 %v8347_v15, %v8344_v13  ;;  %v12941_v9 = vld [vmem:[%s13184_s10 + $0x44] sm:$0xff]  }
 0x351   : > { %11716 = vmatprep.mubr.bf16.mxu0 %v8030_v29  ;;  %v7028_v22 = vsel %vm1133_vm1, %v7023_v7, %v7027_v16  ;;  %v12929_v29 = vld [vmem:[%s13184_s10 + $0x20] sm:$0xff]   ;;  %v7031_v32 = vor.u32 %v7029_v24, %v7027_v16  ;;  %v8380_v7 = vrot.slane %v8378_v4, 3  ;;  %v8387_v15 = vshrl.u32 %v12941_v9, 16 }
 0x352   : > { %11603 = vmatpush3.bf16.msra.mxu1 %v12901_v17  ;;  %v12926_v17 = vld [vmem:[%s14258_s3 + $0x640] sm:$0xff]   ;;  %v8353_v25 = vrot.slane %v8351_v19, 3  ;;  %v7037_v35 = vshrl.u32 %v12929_v29, 16 }
 0x353   : > { %11731 = vmatpush3.bf16.msra.mxu0 %v12902_v20  ;;  %11604 = vmatprep.subr.bf16.mxu1 %v12906_v27  ;;  %v8354_v20 = vshll.u32 %v12925_v14, 16  ;;  %v7059_v14 = vrot.slane %v7057_v8, 1  ;;  %v12945_v24 = vld [vmem:[%s13184_s10 + $0x40] sm:$0xff]  }
 0x354   : > { %11732 = vmatprep.subr.bf16.mxu0 %v12908_v31  ;;  %v7069_v34 = vshrl.u32 %v12945_v24, 16  ;;  %v12956_v4 = vld [vmem:[%s13184_s10 + $0x1c] sm:$0xff]  }
 0x355   : > { %11589 = vmatmul.mubr.bf16.gmra.mrb[8].mxu1 %v12905_v33  ;;  %v8356_v26 = vrot.slane %v8354_v20, 4  ;;  %v7033_v33 = vshll.u32 %v12929_v29, 16  ;;  %v8389_v20 = vrot.slane %v8387_v15, 3  ;;  %v7065_v29 = vshll.u32 %v12945_v24, 16 }
 0x356   : > { %11717 = vmatmul.mubr.bf16.gmra.mrb[8].mxu0 %v8038_v36  ;;  %11605 = vmatpush3.bf16.msra.mxu1 %v12906_v27  ;;  %v8349_v27 = vsel %vm532_vm0, %v8340_v18, %v8348_v21  ;;  %v12932_v36 = vld [vmem:[%s14258_s3 + $0x550] sm:$0xff]   ;;  %v12943_v18 = vld [vmem:[%s14258_s3 + $0x568] sm:$0xff]  }
 0x357   : > { %11733 = vmatpush3.bf16.msra.mxu0 %v12908_v31  ;;  %11606 = vmatprep.subr.bf16.mxu1 %v12909_v37  ;;  %v8357_v30 = vor.u32 %v8356_v26, %v8353_v25  ;;  %v12930_v31 = vld [vmem:[%s13184_s10 + $0x2c] sm:$0xff]   ;;  %v7035_v48 = vrot.slane %v7033_v33, 1  ;;  %v7061_v25 = vshrl.u32 %v12939_v42, 16 }
 0x358   : > { %11734 = vmatprep.subr.bf16.mxu0 %v12910_v46  ;;  %11592 = vmatprep.mubr.bf16.mxu1 %v12911_v47  ;;  %v8363_v47 = vshll.u32 %v12930_v31, 16  ;;  %v12946_v26 = vld [vmem:[%s13184_s10 + $0x4c] sm:$0xff]  }
 0x359   : > { %11720 = vmatprep.mubr.bf16.mxu0 %v8046_v54  ;;  %v8399_v33 = vshll.u32 %v12946_v26, 16 }
 0x35a   : > { %11607 = vmatpush3.bf16.msra.mxu1 %v12909_v37  ;;  %v8358_v37 = vsel %vm532_vm0, %v8348_v21, %v8357_v30  ;;  %v8365_v39 = vrot.slane %v8363_v47, 4  ;;  %v12944_v21 = vld [vmem:[%s14258_s3 + $0x668] sm:$0xff]   ;;  %v12949_v47 = vld [vmem:[%s13184_s10 + $0x54] ss:$0 sps:$4 sm:$0xff]  }
 0x35b   : > { %11735 = vmatpush3.bf16.msra.mxu0 %v12910_v46  ;;  %11608 = vmatprep.subr.bf16.mxu1 %v12914_v38  ;;  %v8360_v46 = vshrl.u32 %v12930_v31, 16  ;;  %v12947_v31 = vld [vmem:[%s13184_s10 + $0x48] ss:$0 sps:$4 sm:$0x11]   ;;  %v8401_v49 = vrot.slane %v8399_v33, 4 }
 0x35c   : > { %11736 = vmatprep.subr.bf16.mxu0 %v12916_v40 }
 0x35d   : > { %11593 = vmatmul.mubr.bf16.gmra.mrb[12].mxu1 %v12913_v52  ;;  %v8362_v51 = vrot.slane %v8360_v46, 3  ;;  %v7039_v52 = vor.u32 %v7037_v35, %v7035_v48  ;;  %v7073_v46 = vshll.u32 %v12947_v31, 16 }
 0x35e   : > { %11721 = vmatmul.mubr.bf16.gmra.mrb[12].mxu0 %v8054_v62  ;;  %11609 = vmatpush3.bf16.msra.mxu1 %v12914_v38  ;;  %v12934_v38 = vld [vmem:[%s14258_s3 + $0x650] sm:$0xff]  }
 0x35f   : > { %11737 = vmatpush3.bf16.msra.mxu0 %v12916_v40  ;;  %11610 = vmatprep.subr.bf16.mxu1 %v12917_v57  ;;  %v7036_v40 = vsel %vm1133_vm1, %v7031_v32, %v7035_v48  ;;  %v8366_v54 = vor.u32 %v8365_v39, %v8362_v51  ;;  %v12937_v62 = vld [vmem:[%s13184_s10 + $0x30] sm:$0xff]   ;;  %v7075_v39 = vrot.slane %v7073_v46, 1 }
 0x360   : > { %11738 = vmatprep.subr.bf16.mxu0 %v12918_v59  ;;  %11612 = vmatprep.mubr.bf16.mxu1 %v7020_v10  ;;  %v7049_v3 = vshll.u32 %v12937_v62, 16  ;;  %v7053_v6 = vshrl.u32 %v12937_v62, 16  ;;  %v8383_v10 = vrot.slane %v8381_v43, 4  ;;  %v12948_v32 = vld [vmem:[%s14258_s3 + $0x570] sm:$0xff]  }
 0x361   : > { %11740 = vmatprep.mubr.bf16.mxu0 %v8349_v27  ;;  %v8367_v60 = vsel %vm532_vm0, %v8357_v30, %v8366_v54  ;;  %v8376_v44 = vsel %vm532_vm0, %v8366_v54, %v8375_v1  ;;  %v8396_v30 = vshrl.u32 %v12946_v26, 16  ;;  %v12950_v48 = vld [vmem:[%s14258_s3 + $0x670] sm:$0xff]  }
 0x362   : > { %11611 = vmatpush3.bf16.msra.mxu1 %v12917_v57  ;;  %v7044_v57 = vsel %vm1133_vm1, %v7039_v52, %v7043_v53  ;;  %v8384_v16 = vor.u32 %v8383_v10, %v8380_v7  ;;  %v8408_v53 = vshll.u32 %v12949_v47, 16  ;;  %v7376_v7 = vshll.u32 %v12956_v4, 16  ;;  %v12960_v10 = vld [vmem:[%s13184_s10 + $0x24] sm:$0xff]  }
 0x363   : > { %11739 = vmatpush3.bf16.msra.mxu0 %v12918_v59  ;;  %11628 = vmatprep.subr.bf16.mxu1 %v12924_v45  ;;  %v12936_v59 = vld [vmem:[%s14258_s3 + $0x658] sm:$0xff]   ;;  %v7385_v15 = vshll.u32 %v12960_v10, 16 }
 0x364   : > { %11756 = vmatprep.subr.bf16.mxu0 %v12926_v17  ;;  %v8410_v58 = vrot.slane %v8408_v53, 4 }
 0x365   : > { %11613 = vmatmul.mubr.bf16.vlgmr.msra.gmra.mrb[0].mxu1 %v7028_v22  ;;  %v8385_v22 = vsel %vm532_vm0, %v8375_v1, %v8384_v16 }
 0x366   : > { %11629 = vmatpush3.bf16.msra.mxu1 %v12924_v45  ;;  %11741 = vmatmul.mubr.bf16.vlgmr.msra.gmra.mrb[0].mxu0 %v8358_v37  ;;  %v7051_v45 = vrot.slane %v7049_v3, 1  ;;  %v8398_v37 = vrot.slane %v8396_v30, 3 }
 0x367   : > { %11630 = vmatprep.subr.bf16.mxu1 %v12927_v23  ;;  %11757 = vmatpush3.bf16.msra.mxu0 %v12926_v17  ;;  %v8390_v17 = vshll.u32 %v12941_v9, 16 }
 0x368   : > { %11758 = vmatprep.subr.bf16.mxu0 %v12928_v28  ;;  %11616 = vmatprep.mubr.bf16.mxu1 %v7036_v40  ;;  %v7052_v12 = vsel %vm1133_vm1, %v7047_v2, %v7051_v45  ;;  %v7055_v13 = vor.u32 %v7053_v6, %v7051_v45  ;;  %v8405_v40 = vshrl.u32 %v12949_v47, 16  ;;  %v8402_v52 = vor.u32 %v8401_v49, %v8398_v37  ;;  %v12958_v45 = vld [vmem:[%s14258_s3 + $0x680] sm:$0xff]   ;;  %v12965_v37 = vld [vmem:[%s14258_s3 + $0x698] sm:$0xff]  }
 0x369   : > { %11744 = vmatprep.mubr.bf16.mxu0 %v8367_v60  ;;  %v12953_v60 = vld [vmem:[%s13184_s10 + $0xc] sm:$0xf8]   ;;  %v12967_v49 = vld [vmem:[%s13184_s10 + $0x38] sm:$0xff]  }
 0x36a   : > { %11631 = vmatpush3.bf16.msra.mxu1 %v12927_v23  ;;  %v7060_v19 = vsel %vm1133_vm1, %v7055_v13, %v7059_v14  ;;  %v8392_v23 = vrot.slane %v8390_v17, 4  ;;  %v8407_v55 = vrot.slane %v8405_v40, 3  ;;  %v7356_v0 = vshrl.u32 %v12953_v60, 16  ;;  %v12962_v17 = vld [vmem:[%s13184_s10 + $0x2c] sm:$0xff]  }
 0x36b   : > { %11632 = vmatprep.subr.bf16.mxu1 %v12932_v36  ;;  %11759 = vmatpush3.bf16.msra.mxu0 %v12928_v28  ;;  %v7063_v28 = vor.u32 %v7061_v25, %v7059_v14  ;;  %v7359_v1 = vshll.u32 %v12953_v60, 16  ;;  %v7382_v14 = vshrl.u32 %v12960_v10, 16  ;;  %v7394_v24 = vshll.u32 %v12962_v17, 16  ;;  %v12981_v10 = vld [vmem:[%s13184_s10 + $0x38] sm:$0xff]  }
 0x36c   : > { %11760 = vmatprep.subr.bf16.mxu0 %v12934_v38  ;;  %v8393_v27 = vor.u32 %v8392_v23, %v8389_v20  ;;  %v8411_v63 = vor.u32 %v8410_v58, %v8407_v55  ;;  %v7387_v20 = vrot.slane %v7385_v15, 4  ;;  %v7391_v23 = vshrl.u32 %v12962_v17, 16  ;;  %v12983_v17 = vld [vmem:[%s13184_s10 + $0x48] sm:$0xff]  }
 0x36d   : > { %11617 = vmatmul.mubr.bf16.gmra.mrb[4].mxu1 %v7044_v57  ;;  %v7361_v43 = vrot.slane %v7359_v1, 4  ;;  %v12973_v1 = vld [vmem:[%s13184_s10 + $0x48] sm:$0xff]   ;;  %v8997_v15 = vshll.u32 %v12981_v10, 16 }
 0x36e   : > { %11633 = vmatpush3.bf16.msra.mxu1 %v12932_v36  ;;  %11745 = vmatmul.mubr.bf16.gmra.mrb[4].mxu0 %v8376_v44  ;;  %v8394_v35 = vsel %vm532_vm0, %v8384_v16, %v8393_v27  ;;  %v7067_v36 = vrot.slane %v7065_v29, 1  ;;  %v8403_v57 = vsel %vm532_vm0, %v8393_v27, %v8402_v52  ;;  %v8412_v42 = vsel %vm532_vm0, %v8402_v52, %v8411_v63  ;;  %v12966_v29 = vld [vmem:[%s13184_s10 + $0x34] sm:$0xff]  }
 0x36f   : > { %11634 = vmatprep.subr.bf16.mxu1 %v12935_v56  ;;  %11761 = vmatpush3.bf16.msra.mxu0 %v12934_v38  ;;  %v7373_v44 = vshrl.u32 %v12956_v4, 16  ;;  %v7393_v26 = vrot.slane %v7391_v23, 3  ;;  %v7396_v27 = vrot.slane %v7394_v24, 4  ;;  %v7400_v33 = vshrl.u32 %v12966_v29, 16  ;;  %v12978_v4 = vld [vmem:[%s13184_s10 + $0x18] sm:$0xff]  }
 0x370   : > { %11762 = vmatprep.subr.bf16.mxu0 %v12936_v59  ;;  %11620 = vmatprep.mubr.bf16.mxu1 %v7052_v12  ;;  %v7068_v38 = vsel %vm1133_vm1, %v7063_v28, %v7067_v36  ;;  %v7071_v51 = vor.u32 %v7069_v34, %v7067_v36  ;;  %v12957_v12 = vld [vmem:[%s13184_s10 + $0x20] sm:$0xff]   ;;  %v12964_v28 = vld [vmem:[%s14258_s3 + $0x690] sm:$0xff]   ;;  %v7403_v34 = vshll.u32 %v12966_v29, 16  ;;  %v8999_v24 = vrot.slane %v8997_v15, 1 }
 0x371   : > { %11748 = vmatprep.mubr.bf16.mxu0 %v8385_v22  ;;  %v7375_v9 = vrot.slane %v7373_v44, 3  ;;  %v7397_v31 = vor.u32 %v7396_v27, %v7393_v26  ;;  %v7402_v46 = vrot.slane %v7400_v33, 3  ;;  %v12977_v26 = vld [vmem:[%s14258_s3 + $0x6b8] sm:$0xff]  }
 0x372   : > { %11635 = vmatpush3.bf16.msra.mxu1 %v12935_v56  ;;  %v7076_v54 = vsel %vm1133_vm1, %v7071_v51, %v7075_v39  ;;  %v12954_v56 = vld [vmem:[%s13184_s10 + $0x14] sm:$0xff]   ;;  %v7405_v47 = vrot.slane %v7403_v34, 4  ;;  %v12972_v39 = vld [vmem:[%s13184_s10 + $0x44] sm:$0xff]  }
 0x373   : > { %11636 = vmatprep.subr.bf16.mxu1 %v12940_v5  ;;  %11763 = vmatpush3.bf16.msra.mxu0 %v12936_v59  ;;  %v12955_v59 = vld [vmem:[%s13184_s10 + $0x18] sm:$0xff]   ;;  %v7364_v61 = vshrl.u32 %v12954_v56, 16  ;;  %v7367_v62 = vshll.u32 %v12954_v56, 16  ;;  %v7418_v53 = vshrl.u32 %v12972_v39, 16  ;;  %v12969_v56 = vld [vmem:[%s13184_s10 + $0x40] sm:$0xff]  }
 0x374   : > { %11764 = vmatprep.subr.bf16.mxu0 %v12942_v11 }
 0x375   : > { %11621 = vmatmul.mubr.bf16.gmra.mrb[8].mxu1 %v7060_v19  ;;  %v7366_v2 = vrot.slane %v7364_v61, 3  ;;  %v7369_v3 = vrot.slane %v7367_v62, 4  ;;  %v7384_v19 = vrot.slane %v7382_v14, 3  ;;  %v7420_v58 = vrot.slane %v7418_v53, 3  ;;  %v12971_v62 = vld [vmem:[%s14258_s3 + $0x6a8] sm:$0xff]  }
 0x376   : > { %11637 = vmatpush3.bf16.msra.mxu1 %v12940_v5  ;;  %11749 = vmatmul.mubr.bf16.gmra.mrb[8].mxu0 %v8394_v35  ;;  %v7358_v5 = vrot.slane %v7356_v0, 3  ;;  %v12968_v35 = vld [vmem:[%s13184_s10 + $0x3c] sm:$0xff]  }
 0x377   : > { %11638 = vmatprep.subr.bf16.mxu1 %v12943_v18  ;;  %11765 = vmatpush3.bf16.msra.mxu0 %v12942_v11  ;;  %v7370_v6 = vor.u32 %v7369_v3, %v7366_v2  ;;  %v7378_v11 = vrot.slane %v7376_v7, 4  ;;  %v7388_v25 = vor.u32 %v7387_v20, %v7384_v19  ;;  %v12976_v7 = vld [vmem:[%s14258_s3 + $0x6b0] sm:$0xff]  }
 0x378   : > { %11766 = vmatprep.subr.bf16.mxu0 %v12944_v21  ;;  %11624 = vmatprep.mubr.bf16.mxu1 %v7068_v38  ;;  %v7362_v8 = vor.u32 %v7361_v43, %v7358_v5  ;;  %v7406_v38 = vor.u32 %v7405_v47, %v7402_v46  ;;  %v8966_v5 = vshrl.u32 %v12978_v4, 16  ;;  %v8968_v43 = vshll.u32 %v12978_v4, 16 }
 0x379   : > { %11752 = vmatprep.mubr.bf16.mxu0 %v8403_v57  ;;  %v7379_v16 = vor.u32 %v7378_v11, %v7375_v9  ;;  %v7398_v36 = vsel %vm532_vm0, %v7388_v25, %v7397_v31  ;;  %v12970_v57 = vld [vmem:[%s14258_s3 + $0x6a0] sm:$0xff]   ;;  %v12975_v11 = vld [vmem:[%s13184_s10 + $0x50] sm:$0xff]  }
 0x37a   : > { %11639 = vmatpush3.bf16.msra.mxu1 %v12943_v18  ;;  %v7371_v13 = vsel %vm532_vm0, %v7362_v8, %v7370_v6  ;;  %v12959_v18 = vld [vmem:[%s14258_s3 + $0x688] sm:$0xff]   ;;  %v7407_v52 = vsel %vm532_vm0, %v7397_v31, %v7406_v38  ;;  %v8970_v8 = vrot.slane %v8968_v43, 1  ;;  %v12985_v31 = vld [vmem:[%s13184_s10 + $0x50] sm:$0xff]  }
 0x37b   : > { %11640 = vmatprep.subr.bf16.mxu1 %v12948_v32  ;;  %11767 = vmatpush3.bf16.msra.mxu0 %v12944_v21  ;;  %v12961_v21 = vld [vmem:[%s13184_s10 + $0x28] sm:$0xff]   ;;  %v7380_v22 = vsel %vm532_vm0, %v7370_v6, %v7379_v16  ;;  %v7389_v30 = vsel %vm532_vm0, %v7379_v16, %v7388_v25  ;;  %v9001_v16 = vshrl.u32 %v12981_v10, 16  ;;  %v9013_v25 = vshll.u32 %v12983_v17, 16 }
 0x37c   : > { %11768 = vmatprep.subr.bf16.mxu0 %v12950_v48  ;;  %v12980_v6 = vld [vmem:[%s13184_s10 + $0x28] sm:$0xff]   ;;  %v9021_v47 = vshll.u32 %v12985_v31, 16  ;;  %v9025_v53 = vshrl.u32 %v12985_v31, 16 }
 0x37d   : > { %11625 = vmatmul.mubr.bf16.gmra.mrb[12].mxu1 %v7076_v54  ;;  %v12974_v54 = vld [vmem:[%s13184_s10 + $0x4c] ss:$0 sps:$4 sm:$0xff]   ;;  %v8981_v14 = vshll.u32 %v12980_v6, 16 }
 0x37e   : > { %11641 = vmatpush3.bf16.msra.mxu1 %v12948_v32  ;;  %11753 = vmatmul.mubr.bf16.gmra.mrb[12].mxu0 %v8412_v42  ;;  %v12963_v32 = vld [vmem:[%s13184_s10 + $0x30] sm:$0xff]   ;;  %v7427_v60 = vshrl.u32 %v12974_v54, 16  ;;  %v7430_v61 = vshll.u32 %v12974_v54, 16  ;;  %v12979_v42 = vld [vmem:[%s13184_s10 + $0x20] sm:$0xff]  }
 0x37f   : > { %11769 = vmatpush3.bf16.msra.mxu0 %v12950_v48  ;;  %11642 = vmatprep.subr.bf16.mxu1 %v12951_v50  ;;  %v7409_v48 = vshrl.u32 %v12968_v35, 16  ;;  %v8973_v9 = vshll.u32 %v12979_v42, 16  ;;  %v8983_v34 = vrot.slane %v8981_v14, 1 }
 0x380   : > { %11770 = vmatprep.subr.bf16.mxu0 %v12952_v41  ;;  %11772 = vmatprep.mubr.bf16.mxu0 %v12955_v59  ;;  %v7429_v2 = vrot.slane %v7427_v60, 3  ;;  %v7432_v3 = vrot.slane %v7430_v61, 4 }
 0x381   : > { %11644 = vmatprep.mubr.bf16.mxu1 %v7371_v13  ;;  %v7411_v51 = vrot.slane %v7409_v48, 3  ;;  %v12982_v13 = vld [vmem:[%s13184_s10 + $0x40] sm:$0xff]   ;;  %v8975_v19 = vrot.slane %v8973_v9, 1  ;;  %v12986_v48 = vld [vmem:[%s13184_s10 + $0x58] ss:$0 sps:$4 sm:$0x11]  }
 0x382   : > { %11643 = vmatpush3.bf16.msra.mxu1 %v12951_v50  ;;  %v7412_v50 = vshll.u32 %v12968_v35, 16  ;;  %v9005_v20 = vshll.u32 %v12982_v13, 16  ;;  %v9015_v35 = vrot.slane %v9013_v25, 1  ;;  %v6619_v9 = vld [vmem:[#allocation2 + $0x48] sm:$0xff]  ;;  %v6625_v25 = vld [vmem:[#allocation2 + $0x78] sm:$0xff] }
 0x383   : > { %11771 = vmatpush3.bf16.msra.mxu0 %v12952_v41  ;;  %12252 = vmatprep.subr.bf16.mxu1 %v12958_v45  ;;  %v7421_v41 = vshll.u32 %v12972_v39, 16 }
 0x384   : > { %11788 = vmatprep.subr.bf16.mxu0 %v12958_v45  ;;  %v7414_v40 = vrot.slane %v7412_v50, 4  ;;  %v9007_v27 = vrot.slane %v9005_v20, 1 }
 0x385   : > { %11645 = vmatmul.mubr.bf16.vlgmr.msra.gmra.mrb[0].mxu1 %v7380_v22  ;;  %v7423_v59 = vrot.slane %v7421_v41, 4  ;;  %v12984_v22 = vld [vmem:[%s13184_s10 + $0x30] sm:$0xff]   ;;  %v9029_v41 = vshll.u32 %v12986_v48, 16  ;;  %v6610_v48 = vld [vmem:[#allocation2] sm:$0xff] }
 0x386   : > { %11773 = vmatmul.mubr.bf16.vlgmr.msra.gmra.mrb[0].mxu0 %v12957_v12  ;;  %12260 = vmatpush3.bf16.msra.mxu1 %v12958_v45  ;;  %v7415_v55 = vor.u32 %v7414_v40, %v7411_v51  ;;  %v8977_v12 = vshrl.u32 %v12979_v42, 16  ;;  %v8989_v29 = vshll.u32 %v12984_v22, 16  ;;  %v9023_v51 = vrot.slane %v9021_v47, 1  ;;  %v6620_v42 = vld [vmem:[#allocation2 + $0x50] sm:$0xff] }
 0x387   : > { %11789 = vmatpush3.bf16.msra.mxu0 %v12958_v45  ;;  %12253 = vmatprep.subr.bf16.mxu1 %v12959_v18  ;;  %v7424_v0 = vor.u32 %v7423_v59, %v7420_v58  ;;  %v7433_v45 = vor.u32 %v7432_v3, %v7429_v2  ;;  %v8993_v39 = vshrl.u32 %v12984_v22, 16  ;;  %v9031_v58 = vrot.slane %v9029_v41, 1  ;;  %v6622_v22 = vld [vmem:[#allocation2 + $0x60] sm:$0xff] }
 0x388   : > { %11790 = vmatprep.subr.bf16.mxu0 %v12959_v18  ;;  %11648 = vmatprep.mubr.bf16.mxu1 %v7389_v30  ;;  %v7416_v63 = vsel %vm532_vm0, %v7406_v38, %v7415_v55  ;;  %v9003_v30 = vor.u32 %v9001_v16, %v8999_v24  ;;  %v8991_v50 = vrot.slane %v8989_v29, 1  ;;  %v6623_v29 = vld [vmem:[#allocation2 + $0x68] sm:$0xff] }
 0x389   : > { %11776 = vmatprep.mubr.bf16.mxu0 %v12961_v21  ;;  %v7425_v44 = vsel %vm532_vm0, %v7415_v55, %v7424_v0  ;;  %v9009_v21 = vshrl.u32 %v12982_v13, 16  ;;  %v7434_v23 = vsel %vm532_vm0, %v7424_v0, %v7433_v45 }
 0x38a   : > { %12261 = vmatpush3.bf16.msra.mxu1 %v12959_v18 }
 0x38b   : > { %11791 = vmatpush3.bf16.msra.mxu0 %v12959_v18  ;;  %12254 = vmatprep.subr.bf16.mxu1 %v12964_v28  ;;  %v8971_v18 = vor.u32 %v8970_v8, %v8966_v5  ;;  %v9011_v46 = vor.u32 %v9009_v21, %v9007_v27  ;;  %v6618_v5 = vld [vmem:[#allocation2 + $0x40] sm:$0xff]  ;;  %v6624_v21 = vld [vmem:[#allocation2 + $0x70] sm:$0xff] }
 0x38c   : > { %11792 = vmatprep.subr.bf16.mxu0 %v12964_v28 }
 0x38d   : > { %11649 = vmatmul.mubr.bf16.gmra.mrb[4].mxu1 %v7398_v36  ;;  %v8976_v33 = vsel %vm1133_vm1, %v8971_v18, %v8975_v19  ;;  %v8979_v36 = vor.u32 %v8977_v12, %v8975_v19 }
 0x38e   : > { %11777 = vmatmul.mubr.bf16.gmra.mrb[4].mxu0 %v12963_v32  ;;  %12262 = vmatpush3.bf16.msra.mxu1 %v12964_v28  ;;  %v9017_v32 = vshrl.u32 %v12983_v17, 16 }
 0x38f   : > { %11793 = vmatpush3.bf16.msra.mxu0 %v12964_v28  ;;  %12255 = vmatprep.subr.bf16.mxu1 %v12965_v37  ;;  %v8985_v28 = vshrl.u32 %v12980_v6, 16  ;;  %v8984_v40 = vsel %vm1133_vm1, %v8979_v36, %v8983_v34 }
 0x390   : > { %11794 = vmatprep.subr.bf16.mxu0 %v12965_v37  ;;  %11652 = vmatprep.mubr.bf16.mxu1 %v7407_v52  ;;  %v9019_v38 = vor.u32 %v9017_v32, %v9015_v35  ;;  %v9016_v52 = vsel %vm1133_vm1, %v9011_v46, %v9015_v35 }
 0x391   : > { %11780 = vmatprep.mubr.bf16.mxu0 %v12967_v49  ;;  %v8987_v49 = vor.u32 %v8985_v28, %v8983_v34 }
 0x392   : > { %12263 = vmatpush3.bf16.msra.mxu1 %v12965_v37  ;;  %v9024_v55 = vsel %vm1133_vm1, %v9019_v38, %v9023_v51 }
 0x393   : > { %11795 = vmatpush3.bf16.msra.mxu0 %v12965_v37  ;;  %12256 = vmatprep.subr.bf16.mxu1 %v12970_v57  ;;  %v9008_v37 = vsel %vm1133_vm1, %v9003_v30, %v9007_v27  ;;  %v8992_v54 = vsel %vm1133_vm1, %v8987_v49, %v8991_v50 }
 0x394   : > { %11796 = vmatprep.subr.bf16.mxu0 %v12970_v57 }
 0x395   : > { %11653 = vmatmul.mubr.bf16.gmra.mrb[8].mxu1 %v7416_v63 }
 0x396   : > { %11781 = vmatmul.mubr.bf16.gmra.mrb[8].mxu0 %v12969_v56  ;;  %12264 = vmatpush3.bf16.msra.mxu1 %v12970_v57  ;;  %v8995_v56 = vor.u32 %v8993_v39, %v8991_v50  ;;  %v6613_v50 = vld [vmem:[#allocation2 + $0x18] sm:$0xff]  ;;  %v6611_v39 = vld [vmem:[#allocation2 + $0x8] sm:$0xff] }
 0x397   : > { %11797 = vmatpush3.bf16.msra.mxu0 %v12970_v57  ;;  %12257 = vmatprep.subr.bf16.mxu1 %v12971_v62  ;;  %v9027_v57 = vor.u32 %v9025_v53, %v9023_v51 }
 0x398   : > { %11798 = vmatprep.subr.bf16.mxu0 %v12971_v62  ;;  %11656 = vmatprep.mubr.bf16.mxu1 %v7425_v44  ;;  %v9000_v59 = vsel %vm1133_vm1, %v8995_v56, %v8999_v24  ;;  %v6621_v44 = vld [vmem:[#allocation2 + $0x58] sm:$0xff] }
 0x399   : > { %11784 = vmatprep.mubr.bf16.mxu0 %v12973_v1  ;;  %v9032_v60 = vsel %vm1133_vm1, %v9027_v57, %v9031_v58 }
 0x39a   : > { %12265 = vmatpush3.bf16.msra.mxu1 %v12971_v62 }
 0x39b   : > { %11799 = vmatpush3.bf16.msra.mxu0 %v12971_v62  ;;  %12258 = vmatprep.subr.bf16.mxu1 %v12976_v7 }
 0x39c   : > { %11800 = vmatprep.subr.bf16.mxu0 %v12976_v7 }
 0x39d   : > { %11657 = vmatmul.mubr.bf16.gmra.mrb[12].mxu1 %v7434_v23 }
 0x39e   : > { %11785 = vmatmul.mubr.bf16.gmra.mrb[12].mxu0 %v12975_v11  ;;  %12266 = vmatpush3.bf16.msra.mxu1 %v12976_v7 }
 0x39f   : > { %11801 = vmatpush3.bf16.msra.mxu0 %v12976_v7  ;;  %12259 = vmatprep.subr.bf16.mxu1 %v12977_v26 }
 0x3a0   : > { %11802 = vmatprep.subr.bf16.mxu0 %v12977_v26  ;;  %11804 = vmatprep.mubr.bf16.mxu0 %v8976_v33 }
 0x3a1   : > { %11812 = vmatprep.mubr.bf16.mxu1 %v9008_v37  ;;  %v6612_v37 = vld [vmem:[#allocation2 + $0x10] sm:$0xff] }
 0x3a2   : > { %12267 = vmatpush3.bf16.msra.mxu1 %v12977_v26 }
 0x3a3   : > { %11803 = vmatpush3.bf16.msra.mxu0 %v12977_v26 }
 0x3a5   : > { %11813 = vmatmul.mubr.bf16.vlgmr.msra.gmra.mrb[16].mxu1 %v9016_v52 }
 0x3a6   : > { %11805 = vmatmul.mubr.bf16.vlgmr.msra.gmra.mrb[0].mxu0 %v8984_v40  ;;  %11816 = vmatprep.mubr.bf16.mxu1 %v9024_v55 }
 0x3a7   : > { %11808 = vmatprep.mubr.bf16.mxu0 %v8992_v54 }
 0x3ad   : > { %11817 = vmatmul.mubr.bf16.gmra.mrb[20].mxu1 %v9032_v60 }
 0x3ae   : > { %11809 = vmatmul.mubr.bf16.gmra.mrb[4].mxu0 %v9000_v59 }
 0x458   : > { %v11646_v61 = vpop.f32.mrb[0].mxu1 }
 0x459   : > { %v7525_v62 = vpop.f32.mrb[1].mxu1  ;;  %v12270_v51 = vadd.f32 %v11646_v61, %v6612_v37 }
 0x45a   : > { %v11647_v63 = vpop.f32.mrb[2].mxu1  ;;  %v12276_v40 = vadd.f32 %v7525_v62, %v6610_v48 }
 0x45b   : > { %v7528_v0 = vpop.f32.mrb[3].mxu1  ;;  %v12282_v41 = vadd.f32 %v11647_v63, %v6613_v50 }
 0x45c   : > { %v12288_v58 = vadd.f32 %v7528_v0, %v6611_v39 }
 0x460   : > { %v14170_v1 = vpop.f32.mrb[4].mxu1 }
 0x461   : > { %v14172_v2 = vpop.f32.mrb[5].mxu1 }
 0x462   : > { %v14174_v3 = vpop.f32.mrb[6].mxu1 }
 0x463   : > { %v14176_v4 = vpop.f32.mrb[7].mxu1 }
 0x468   : > { %v11654_v43 = vpop.f32.mrb[8].mxu1 }
 0x469   : > { %v11782_v6 = vpop.f32.mrb[8].mxu0  ;;  %v12318_v45 = vadd.f32 %v11654_v43, %v6620_v42  ;;  %v7557_v7 = vpop.f32.mrb[9].mxu1 }
 0x46a   : > { %v8809_v8 = vpop.f32.mrb[9].mxu0  ;;  %v12327_v10 = vadd.f32 %v7557_v7, %v6618_v5  ;;  %v11655_v11 = vpop.f32.mrb[10].mxu1  ;;  %v6614_v7 = vld [vmem:[#allocation2 + $0x20] sm:$0xff] }
 0x46b   : > { %v11783_v12 = vpop.f32.mrb[10].mxu0  ;;  %v12321_v13 = vadd.f32 %v12318_v45, %v11782_v6  ;;  %v12336_v14 = vadd.f32 %v11655_v11, %v6621_v44  ;;  %v7560_v15 = vpop.f32.mrb[11].mxu1  ;;  %v6616_v45 = vld [vmem:[#allocation2 + $0x30] sm:$0xff] }
 0x46c   : > { %v8812_v16 = vpop.f32.mrb[11].mxu0  ;;  %v12330_v17 = vadd.f32 %v12327_v10, %v8809_v8  ;;  %v12345_v18 = vadd.f32 %v7560_v15, %v6619_v9  ;;  %v6617_v8 = vld [vmem:[#allocation2 + $0x38] sm:$0xff]  ;;  %v12294_v0 = vadd.f32 %v14170_v1, %v6616_v45  ;;  %v6615_v9 = vld [vmem:[#allocation2 + $0x28] sm:$0xff]  ;;  %v12300_v10 = vadd.f32 %v14172_v2, %v6614_v7 }
 0x46d   : > { %v12339_v19 = vadd.f32 %v12336_v14, %v11783_v12 }
 0x46e   : > { %v12348_v20 = vadd.f32 %v12345_v18, %v8812_v16  ;;  %v12312_v18 = vadd.f32 %v14176_v4, %v6615_v9 }
 0x470   : > { %v11658_v23 = vpop.f32.mrb[12].mxu1 }
 0x471   : > { %v11786_v24 = vpop.f32.mrb[12].mxu0  ;;  %v12354_v26 = vadd.f32 %v11658_v23, %v6624_v21  ;;  %v7573_v27 = vpop.f32.mrb[13].mxu1 }
 0x472   : > { %v8825_v28 = vpop.f32.mrb[13].mxu0  ;;  %v12363_v30 = vadd.f32 %v7573_v27, %v6622_v22  ;;  %v11659_v31 = vpop.f32.mrb[14].mxu1 }
 0x473   : > { %v11787_v32 = vpop.f32.mrb[14].mxu0  ;;  %v12357_v33 = vadd.f32 %v12354_v26, %v11786_v24  ;;  %v12372_v34 = vadd.f32 %v11659_v31, %v6625_v25  ;;  %v7576_v35 = vpop.f32.mrb[15].mxu1 }
 0x474   : > { %v8828_v36 = vpop.f32.mrb[15].mxu0  ;;  %v12366_v46 = vadd.f32 %v12363_v30, %v8825_v28  ;;  %v12381_v47 = vadd.f32 %v7576_v35, %v6623_v29 }
 0x475   : > { %v12375_v49 = vadd.f32 %v12372_v34, %v11787_v32 }
 0x476   : > { %v12384_v38 = vadd.f32 %v12381_v47, %v8828_v36 }
 0x478   : > { %v11814_v53 = vpop.f32.mrb[16].mxu1 }
 0x479   : > { %v11806_v52 = vpop.f32.mrb[0].mxu0  ;;  %v12324_v56 = vadd.f32 %v12321_v13, %v11814_v53  ;;  %v9155_v57 = vpop.f32.mrb[17].mxu1  ;;  %v12306_v13 = vadd.f32 %v14174_v3, %v6617_v8 }
 0x47a   : > { %v12273_v54 = vadd.f32 %v12270_v51, %v11806_v52  ;;  %v9123_v55 = vpop.f32.mrb[1].mxu0  ;;  %v12333_v42 = vadd.f32 %v12330_v17, %v9155_v57  ;;  %v11815_v5 = vpop.f32.mrb[18].mxu1 }
 0x47b   : > { %v12279_v59 = vadd.f32 %v12276_v40, %v9123_v55  ;;  %v11807_v60 = vpop.f32.mrb[2].mxu0  ;;  %9228 = vst [vmem:[#allocation2 + $0x50] sm:$0xff] %v12324_v56  ;;  %v12342_v44 = vadd.f32 %v12339_v19, %v11815_v5  ;;  %v9158_v61 = vpop.f32.mrb[19].mxu1 }
 0x47c   : > { %9220 = vst [vmem:[#allocation2 + $0x10] sm:$0xff] %v12273_v54  ;;  %v12285_v43 = vadd.f32 %v12282_v41, %v11807_v60  ;;  %v9126_v6 = vpop.f32.mrb[3].mxu0  ;;  %9226 = vst [vmem:[#allocation2 + $0x40] sm:$0xff] %v12333_v42  ;;  %v12351_v63 = vadd.f32 %v12348_v20, %v9158_v61 }
 0x47d   : > { %9218 = vst [vmem:[#allocation2] sm:$0xff] %v12279_v59  ;;  %v12291_v62 = vadd.f32 %v12288_v58, %v9126_v6  ;;  %9229 = vst [vmem:[#allocation2 + $0x58] sm:$0xff] %v12342_v44 }
 0x47e   : > { %9221 = vst [vmem:[#allocation2 + $0x18] sm:$0xff] %v12285_v43  ;;  %9227 = vst [vmem:[#allocation2 + $0x48] sm:$0xff] %v12351_v63 }
 0x47f   : > { %9219 = vst [vmem:[#allocation2 + $0x8] sm:$0xff] %v12291_v62 }
 0x480   : > { %v11818_v12 = vpop.f32.mrb[20].mxu1 }
 0x481   : > { %v11810_v11 = vpop.f32.mrb[4].mxu0  ;;  %v12360_v16 = vadd.f32 %v12357_v33, %v11818_v12  ;;  %v9171_v17 = vpop.f32.mrb[21].mxu1 }
 0x482   : > { %v12297_v14 = vadd.f32 %v12294_v0, %v11810_v11  ;;  %v9139_v15 = vpop.f32.mrb[5].mxu0  ;;  %v12369_v21 = vadd.f32 %v12366_v46, %v9171_v17  ;;  %v11819_v22 = vpop.f32.mrb[22].mxu1 }
 0x483   : > { %v12303_v19 = vadd.f32 %v12300_v10, %v9139_v15  ;;  %v11811_v20 = vpop.f32.mrb[6].mxu0  ;;  %9232 = vst [vmem:[#allocation2 + $0x70] sm:$0xff] %v12360_v16  ;;  %v12378_v24 = vadd.f32 %v12375_v49, %v11819_v22  ;;  %v9174_v2 = vpop.f32.mrb[23].mxu1 }
 0x484   : > { %9224 = vst [vmem:[#allocation2 + $0x30] sm:$0xff] %v12297_v14  ;;  %v12309_v23 = vadd.f32 %v12306_v13, %v11811_v20  ;;  %v9142_v1 = vpop.f32.mrb[7].mxu0  ;;  %9230 = vst [vmem:[#allocation2 + $0x60] sm:$0xff] %v12369_v21  ;;  %v12387_v3 = vadd.f32 %v12384_v38, %v9174_v2 }
 0x485   : > { %9222 = vst [vmem:[#allocation2 + $0x20] sm:$0xff] %v12303_v19  ;;  %v12315_v25 = vadd.f32 %v12312_v18, %v9142_v1  ;;  %9233 = vst [vmem:[#allocation2 + $0x78] sm:$0xff] %v12378_v24 }
 0x486   : > { %9225 = vst [vmem:[#allocation2 + $0x38] sm:$0xff] %v12309_v23  ;;  %9231 = vst [vmem:[#allocation2 + $0x68] sm:$0xff] %v12387_v3 }
 0x487   : > { %9223 = vst [vmem:[#allocation2 + $0x28] sm:$0xff] %v12315_v25 }
 0x488 PF: > { %v9234_v4 = vld [vmem:[#allocation2] sm:$0xff]  ;;  %v9235_v26 = vld [vmem:[#allocation2 + $0x8] sm:$0xff]  ;;  %v13027_v28 = vmov 0   ;;  %v9236_v34 = vld [vmem:[#allocation2 + $0x10] sm:$0xff] }
 0x489   : > { %v14185_v27 = vld [vmem:[%s14259_s4] sm:$0xff]  ;;  %9310 = vst [vmem:[%s13172_s30] sm:$0xf] %v13027_v28  ;;  %9311 = vst [vmem:[%s13172_s30 + $0x4] sm:$0xf] %v13027_v28  ;;  %v9251_v29 = vld [vmem:[%s14259_s4 + $0x8] sm:$0xff] }
 0x48a   : > { %9312 = vst [vmem:[%s13172_s30 + $0x8] sm:$0xf] %v13027_v28  ;;  %9313 = vst [vmem:[%s13172_s30 + $0xc] sm:$0xf] %v13027_v28  ;;  %v9252_v30 = vmul.f32 %v14185_v27, %v9234_v4  ;;  %v14202_v31 = vld [vmem:[%s14260_s5] sm:$0xff]  ;;  %v14207_v32 = vld [vmem:[%s14260_s5 + $0x8] sm:$0xff]  ;;  %v9253_v33 = vmul.f32 %v9251_v29, %v9235_v26  ;;  %v9254_v46 = vmul.f32 %v14185_v27, %v9236_v34 }
 0x48b   : > { %9386 = vst [vmem:[%s13172_s30 + $0x50] sm:$0xf] %v13027_v28  ;;  %9387 = vst [vmem:[%s13172_s30 + $0x54] sm:$0xf] %v13027_v28  ;;  %v9237_v35 = vld [vmem:[#allocation2 + $0x18] sm:$0xff]  ;;  %v9240_v50 = vld [vmem:[#allocation2 + $0x30] sm:$0xff] }
 0x48c   : > { %9388 = vst [vmem:[%s13172_s30 + $0x58] sm:$0xf] %v13027_v28  ;;  %9389 = vst [vmem:[%s13172_s30 + $0x5c] sm:$0xf] %v13027_v28  ;;  %v9238_v36 = vld [vmem:[#allocation2 + $0x20] sm:$0xff]  ;;  %v9270_v37 = vadd.f32 %v14202_v31, %v9252_v30  ;;  %v9255_v47 = vmul.f32 %v9251_v29, %v9237_v35  ;;  %v9271_v51 = vadd.f32 %v14207_v32, %v9253_v33  ;;  %v9243_v42 = vld [vmem:[#allocation2 + $0x48] sm:$0xff] }
 0x48d   : > { %v9256_v49 = vmul.f32 %v14185_v27, %v9238_v36  ;;  %v9241_v38 = vld [vmem:[#allocation2 + $0x38] sm:$0xff]  ;;  %v9258_v40 = vmul.f32 %v14185_v27, %v9240_v50  ;;  %v9242_v53 = vld [vmem:[#allocation2 + $0x40] sm:$0xff]  ;;  %v9272_v54 = vadd.f32 %v14202_v31, %v9254_v46  ;;  %v9244_v5 = vld [vmem:[#allocation2 + $0x50] sm:$0xff]  ;;  %v9261_v11 = vmul.f32 %v9251_v29, %v9243_v42 }
 0x48e   : > { %v9239_v48 = vld [vmem:[#allocation2 + $0x28] sm:$0xff]  ;;  %v9259_v52 = vmul.f32 %v9251_v29, %v9241_v38  ;;  %v9286_v41 = vmax.f32 %v9270_v37, 0.0  ;;  %v9273_v55 = vadd.f32 %v14207_v32, %v9255_v47  ;;  %v9287_v57 = vmax.f32 %v9271_v51, 0.0  ;;  %v9245_v45 = vld [vmem:[#allocation2 + $0x58] sm:$0xff]  ;;  %v9246_v62 = vld [vmem:[#allocation2 + $0x60] sm:$0xff] }
 0x48f   : > { %v9257_v39 = vmul.f32 %v9251_v29, %v9239_v48  ;;  %v9274_v56 = vadd.f32 %v14202_v31, %v9256_v49  ;;  %v9276_v59 = vadd.f32 %v14202_v31, %v9258_v40  ;;  %v9288_v43 = vmax.f32 %v9272_v54, 0.0  ;;  %v9247_v9 = vld [vmem:[#allocation2 + $0x68] sm:$0xff]  ;;  %v9248_v14 = vld [vmem:[#allocation2 + $0x70] sm:$0xff]  ;;  %v9249_v15 = vld [vmem:[#allocation2 + $0x78] sm:$0xff] }
 0x490   : > { %v9277_v60 = vadd.f32 %v14207_v32, %v9259_v52  ;;  %v9289_v6 = vmax.f32 %v9273_v55, 0.0  ;;  %v9260_v61 = vmul.f32 %v14185_v27, %v9242_v53  ;;  %v10479_v63 = vpack.c.bf16 %v9287_v57, %v9286_v41 }
 0x491   : > { %v9275_v58 = vadd.f32 %v14207_v32, %v9257_v39  ;;  %v9290_v44 = vmax.f32 %v9274_v56, 0.0  ;;  %v9292_v8 = vmax.f32 %v9276_v59, 0.0  ;;  %v9262_v13 = vmul.f32 %v14185_v27, %v9244_v5 }
 0x492   : > { %v9293_v0 = vmax.f32 %v9277_v60, 0.0  ;;  %v10484_v10 = vpack.c.bf16 %v9289_v6, %v9288_v43  ;;  %v9278_v12 = vadd.f32 %v14202_v31, %v9260_v61  ;;  %10516 = vst [vmem:[%s13172_s30 + $0x10] sm:$0xff] %v10479_v63   ;;  %v9263_v18 = vmul.f32 %v9251_v29, %v9245_v45 }
 0x493   : > { %v9291_v7 = vmax.f32 %v9275_v58, 0.0  ;;  %v9264_v19 = vmul.f32 %v14185_v27, %v9246_v62  ;;  %v9279_v20 = vadd.f32 %v14207_v32, %v9261_v11  ;;  %v9280_v22 = vadd.f32 %v14202_v31, %v9262_v13 }
 0x494   : > { %v10494_v17 = vpack.c.bf16 %v9293_v0, %v9292_v8  ;;  %10517 = vst [vmem:[%s13172_s30 + $0x18] sm:$0xff] %v10484_v10   ;;  %v9294_v21 = vmax.f32 %v9278_v12, 0.0  ;;  %v9265_v23 = vmul.f32 %v9251_v29, %v9247_v9  ;;  %v9281_v1 = vadd.f32 %v14207_v32, %v9263_v18 }
 0x495   : > { %v10489_v16 = vpack.c.bf16 %v9291_v7, %v9290_v44  ;;  %v9282_v24 = vadd.f32 %v14202_v31, %v9264_v19  ;;  %v9266_v2 = vmul.f32 %v14185_v27, %v9248_v14  ;;  %v9267_v25 = vmul.f32 %v9251_v29, %v9249_v15 }
 0x496   : > { %10519 = vst [vmem:[%s13172_s30 + $0x28] sm:$0xff] %v10494_v17   ;;  %v9295_v3 = vmax.f32 %v9279_v20, 0.0  ;;  %v9296_v4 = vmax.f32 %v9280_v22, 0.0  ;;  %v9283_v26 = vadd.f32 %v14207_v32, %v9265_v23  ;;  %v9297_v28 = vmax.f32 %v9281_v1, 0.0 }
 0x497   : > { %10518 = vst [vmem:[%s13172_s30 + $0x20] sm:$0xff] %v10489_v16   ;;  %v9298_v30 = vmax.f32 %v9282_v24, 0.0  ;;  %v9284_v33 = vadd.f32 %v14202_v31, %v9266_v2  ;;  %v9285_v34 = vadd.f32 %v14207_v32, %v9267_v25 }
 0x498   : > { %v10499_v35 = vpack.c.bf16 %v9295_v3, %v9294_v21  ;;  %v9299_v36 = vmax.f32 %v9283_v26, 0.0  ;;  %v10504_v37 = vpack.c.bf16 %v9297_v28, %v9296_v4 }
 0x499   : > { %v9300_v46 = vmax.f32 %v9284_v33, 0.0  ;;  %v9301_v47 = vmax.f32 %v9285_v34, 0.0 }
 0x49a   : > { %10520 = vst [vmem:[%s13172_s30 + $0x30] sm:$0xff] %v10499_v35   ;;  %v10509_v27 = vpack.c.bf16 %v9299_v36, %v9298_v30  ;;  %10521 = vst [vmem:[%s13172_s30 + $0x38] sm:$0xff] %v10504_v37  }
 0x49b   : > { %v10514_v29 = vpack.c.bf16 %v9301_v47, %v9300_v46 }
 0x49c   : > { %10522 = vst [vmem:[%s13172_s30 + $0x40] sm:$0xff] %v10509_v27  }
 0x49d   : > { %10523 = vst [vmem:[%s13172_s30 + $0x48] sm:$0xff] %v10514_v29  }
 0x49e PF: > { %s16_s25 = sadd.s32 1, %s13025_s25   ;;  %s14262_s21 = smov %s13017_s23 }
 0x49f   : > { %p13_p3 = scmp.ge.s32.totalorder %s16_s25, 10   ;;  %s14263_s22 = smov %s13021_s24 }
 0x4a0   : > { %s14264_s23 = smov %s14267_s26  ;;  %s14265_s24 = smov %s14271_s27 }
 0x4a1   :  { %15 = sbr.rel (!%p13_p3) target bundleno = 3 (0x3), region = 114 }

</bundles_post_ra>
